<compile_context>
chip_gen: v6e
topology: v6e:2x2x1
jax: 0.10.0
libtpu: 0.0.40
codegen_flags: <defaults>
</compile_context>

<pallas_src>
import math

import jax
import jax.numpy as jnp
from jax import lax
from jax.experimental import pallas as pl
from jax.experimental.pallas import tpu as pltpu

F32 = jnp.float32


# ----------------------------- in-kernel math ------------------------------
def _sigmoid(x):
    return 1.0 / (1.0 + jnp.exp(-x))


def _erf(x):
    # Abramowitz & Stegun 7.1.26 (|err| < 1.5e-7)
    sign = jnp.where(x < 0.0, -1.0, 1.0)
    z = jnp.abs(x)
    t = 1.0 / (1.0 + 0.3275911 * z)
    poly = t * (0.254829592 + t * (-0.284496736 + t * (1.421413741
               + t * (-1.453152027 + t * 1.061405429))))
    return sign * (1.0 - poly * jnp.exp(-z * z))


def _gelu(x):
    # exact (erf-based) GELU, matching torch nn.GELU(approximate='none')
    return 0.5 * x * (1.0 + _erf(x * 0.7071067811865476))


def _pad_store(pad_ref, img, H, W, C, zero_border=True):
    """Write (H,W,C) image into the interior of the (H+2,W+2,C) scratch.

    Only the 1-pixel border is zeroed (4 small stores), not the whole buffer."""
    if zero_border:
        zrow = jnp.zeros((1, W + 2, C), F32)
        zcol = jnp.zeros((H + 2, 1, C), F32)
        pad_ref[0:1, :, :] = zrow
        pad_ref[H + 1:H + 2, :, :] = zrow
        pad_ref[:, 0:1, :] = zcol
        pad_ref[:, W + 1:W + 2, :] = zcol
    pad_ref[1:H + 1, 1:W + 1, :] = img


def _conv3x3_taps(pad_ref, H, W, taps):
    """Sum of the 9 shifted (H,W,C) windows, each optionally scaled by taps[k]."""
    acc = None
    for kh in range(3):
        for kw in range(3):
            k = kh * 3 + kw
            v = pad_ref[kh:kh + H, kw:kw + W, :]
            if taps is not None:
                v = v * taps[k]
            acc = v if acc is None else acc + v
    return acc


def _semlp_body(x, wrefs, pad_ref, H, W, C):
    """SEMlp on (N, C) tokens: fc1 -> dw3x3 -> gamma*dw + x1 -> fc2 -> SE gate."""
    (fc1w, fc1b, dww, dwb, gamma, fc2w, fc2b, serw, serb, seew, seeb) = wrefs
    N = H * W
    x1 = jnp.dot(x, fc1w[...], preferred_element_type=F32) + fc1b[...]
    taps = [dww[k:k + 1, :].reshape(1, 1, C) for k in range(9)]
    _pad_store(pad_ref, x1.reshape(H, W, C), H, W, C, zero_border=True)
    d = _conv3x3_taps(pad_ref, H, W, taps).reshape(N, C) + dwb[...]
    x2 = gamma[...] * d + x1
    x3 = jnp.dot(x2, fc2w[...], preferred_element_type=F32) + fc2b[...]
    # SqueezeExcite: global avg pool -> 1x1 reduce -> relu -> 1x1 expand -> sigmoid gate
    m = jnp.mean(x3, axis=0, keepdims=True)                              # (1, C)
    r = jnp.maximum(jnp.dot(m, serw[...], preferred_element_type=F32) + serb[...], 0.0)
    e = jnp.dot(r, seew[...], preferred_element_type=F32) + seeb[...]
    return x3 * _sigmoid(e)


# ------------- kernel 1: sdp proj + cmlp1 + GroupNorm/AvgPool residual ------
def _make_embed_kernel(H, W, Cin, C):
    N = H * W

    def kernel(x_ref, w9_ref, pb_ref,
               fc1w, fc1b, dww, dwb, gamma, fc2w, fc2b, serw, serb, seew, seeb,
               gng_ref, gnb_ref,
               o_ref, pad_in, pad_c):
        # --- sdp: 3x3 conv (pad=1) as 9 shifted matmuls, BN pre-folded into w9/pb, GELU
        _pad_store(pad_in, x_ref[...], H, W, Cin, zero_border=True)
        acc = jnp.zeros((N, C), F32)
        for kh in range(3):
            for kw in range(3):
                k = kh * 3 + kw
                tap = pad_in[kh:kh + H, kw:kw + W, :].reshape(N, Cin)
                acc = acc + jnp.dot(tap, w9_ref[k], preferred_element_type=F32)
        xs = _gelu(acc + pb_ref[...])                                    # x_sdp (N, C)

        # --- cmlp1 (SEMlp)
        se_out = _semlp_body(
            xs, (fc1w, fc1b, dww, dwb, gamma, fc2w, fc2b, serw, serb, seew, seeb),
            pad_c, H, W, C)

        # --- residual: AvgPool3x3(count_include_pad=False)(GroupNorm(1,C)(x_sdp))
        gsz = float(N * C)
        s = jnp.sum(xs, axis=1, keepdims=True)
        mu = jnp.sum(s, axis=0, keepdims=True) / gsz                     # (1, 1)
        xc = xs - mu
        s2 = jnp.sum(xc * xc, axis=1, keepdims=True)
        var = jnp.sum(s2, axis=0, keepdims=True) / gsz
        xn = xc * lax.rsqrt(var + 1e-5) * gng_ref[...] + gnb_ref[...]
        _pad_store(pad_c, xn.reshape(H, W, C), H, W, C, zero_border=False)  # border still 0
        acc_p = _conv3x3_taps(pad_c, H, W, None)                         # (H, W, C)
        ri = lax.broadcasted_iota(jnp.int32, (H, W, 1), 0)
        ci = lax.broadcasted_iota(jnp.int32, (H, W, 1), 1)
        ch = 3.0 - (ri == 0).astype(F32) - (ri == H - 1).astype(F32)
        cw = 3.0 - (ci == 0).astype(F32) - (ci == W - 1).astype(F32)
        o_ref[...] = se_out + (acc_p / (ch * cw)).reshape(N, C)

    return kernel


# -------- kernel 2: cmlp2 + fused DeformableMLP (offsets + sampling + 1x1) ---
def _make_head_kernel(H, W, C, max_offset):
    N = H * W

    def kernel(x_ref, xchw_ref,
               fc1w, fc1b, dww, dwb, gamma, fc2w, fc2b, serw, serb, seew, seeb,
               omdw_ref, pwy_ref, pwx_ref, pwm_ref, w_ref, b_ref,
               o_ref, pad_c):
        x = x_ref[...]                                                   # x_res (N, C)

        # --- cmlp2 (SEMlp) -> the residual term of the final sum
        x2 = _semlp_body(
            x, (fc1w, fc1b, dww, dwb, gamma, fc2w, fc2b, serw, serb, seew, seeb),
            pad_c, H, W, C)

        # --- offset/modulator branch: depthwise3x3 (no bias) + three 1x1 heads
        taps = [omdw_ref[k:k + 1, :].reshape(1, 1, C) for k in range(9)]
        _pad_store(pad_c, x.reshape(H, W, C), H, W, C, zero_border=False)  # border still 0
        d = _conv3x3_taps(pad_c, H, W, taps).reshape(N, C)
        dy = jnp.clip(jnp.dot(d, pwy_ref[...], preferred_element_type=F32),
                      -max_offset, max_offset)                           # (N, C)
        dx = jnp.clip(jnp.dot(d, pwx_ref[...], preferred_element_type=F32),
                      -max_offset, max_offset)
        mod = 2.0 * _sigmoid(jnp.dot(d, pwm_ref[...], preferred_element_type=F32))

        # --- channel-vectorized deformable bilinear sampling (one-hot weights)
        p_n = lax.broadcasted_iota(jnp.int32, (1, N), 1).astype(F32)
        hb = jnp.floor((p_n + 0.5) / float(W))                           # base row  (1, N)
        wb = p_n - hb * float(W)                                         # base col
        py = hb + dy.T                                                   # (C, N)
        px = wb + dx.T
        y0f = jnp.floor(py)
        x0f = jnp.floor(px)
        fy = (py - y0f).reshape(C, 1, N)
        fx = (px - x0f).reshape(C, 1, N)
        y0 = y0f.astype(jnp.int32).reshape(C, 1, N)
        x0 = x0f.astype(jnp.int32).reshape(C, 1, N)
        # out-of-range neighbours never match the iota -> exact zero padding
        ih = lax.broadcasted_iota(jnp.int32, (1, H, N), 1)
        iw = lax.broadcasted_iota(jnp.int32, (1, W, N), 1)
        wy = jnp.where(ih == y0, 1.0 - fy, 0.0) + jnp.where(ih == y0 + 1, fy, 0.0)  # (C,H,N)
        wx = jnp.where(iw == x0, 1.0 - fx, 0.0) + jnp.where(iw == x0 + 1, fx, 0.0)  # (C,W,N)
        # t[c,h,n] = sum_w img[c,h,w] * wx[c,w,n]  -- one channel-batched MXU matmul
        t = jnp.einsum("chw,cwn->chn", xchw_ref[...], wx,
                       preferred_element_type=F32)
        samp = jnp.sum(t * wy, axis=1)                                   # (C, N)
        val = samp.T * mod                                               # modulator mask (N, C)

        # --- 1x1 conv with folded BN, GELU, residual; store channel-leading (C, N)
        y = jnp.dot(val, w_ref[...], preferred_element_type=F32) + b_ref[...]
        o_ref[...] = (_gelu(y) + x2).T

    return kernel


# ------------------------------- host glue ----------------------------------
def _semlp_host(p, C):
    fc1w = jnp.transpose(p["fc1_w"])                       # (in, out)
    fc1b = p["fc1_b"].reshape(1, C)
    dww = jnp.transpose(p["dw_w"][:, 0], (1, 2, 0)).reshape(9, C)
    dwb = p["dw_b"].reshape(1, C)
    gamma = p["gamma"].reshape(1, C)
    fc2w = jnp.transpose(p["fc2_w"])
    fc2b = p["fc2_b"].reshape(1, C)
    serw = jnp.transpose(p["se_rw"][:, :, 0, 0])           # (C, Cr)
    Cr = serw.shape[1]
    serb = p["se_rb"].reshape(1, Cr)
    seew = jnp.transpose(p["se_ew"][:, :, 0, 0])           # (Cr, C)
    seeb = p["se_eb"].reshape(1, C)
    args = [fc1w, fc1b, dww, dwb, gamma, fc2w, fc2b, serw, serb, seew, seeb]
    specs = [
        pl.BlockSpec((C, C), lambda b: (0, 0)),
        pl.BlockSpec((1, C), lambda b: (0, 0)),
        pl.BlockSpec((9, C), lambda b: (0, 0)),
        pl.BlockSpec((1, C), lambda b: (0, 0)),
        pl.BlockSpec((1, C), lambda b: (0, 0)),
        pl.BlockSpec((C, C), lambda b: (0, 0)),
        pl.BlockSpec((1, C), lambda b: (0, 0)),
        pl.BlockSpec((C, Cr), lambda b: (0, 0)),
        pl.BlockSpec((1, Cr), lambda b: (0, 0)),
        pl.BlockSpec((Cr, C), lambda b: (0, 0)),
        pl.BlockSpec((1, C), lambda b: (0, 0)),
    ]
    return args, specs


def deformable_mlp_block_forward(x_nchw, params):
    B, Cin, H, W = x_nchw.shape
    N = H * W
    C = params["sdp"]["proj_w"].shape[0]
    x_nhwc = jnp.transpose(x_nchw, (0, 2, 3, 1)).astype(F32)             # channels -> lanes

    # ---- kernel 1: sdp (conv3x3 + folded BN + GELU) + cmlp1 + GN/pool residual ----
    sdp = params["sdp"]
    scale = sdp["bn_g"] / jnp.sqrt(sdp["bn_v"] + 1e-5)
    w9 = jnp.transpose(sdp["proj_w"], (2, 3, 1, 0)).reshape(9, Cin, C) * scale.reshape(1, 1, C)
    pb = (sdp["proj_b"] * scale + sdp["bn_b"] - sdp["bn_m"] * scale).reshape(1, C)
    c1_args, c1_specs = _semlp_host(params["cmlp1"], C)
    gng = params["norm1"]["g"].reshape(1, C)
    gnb = params["norm1"]["b"].reshape(1, C)

    x_res = pl.pallas_call(
        _make_embed_kernel(H, W, Cin, C),
        out_shape=jax.ShapeDtypeStruct((B, N, C), F32),
        grid=(B,),
        in_specs=[pl.BlockSpec((None, H, W, Cin), lambda b: (b, 0, 0, 0)),
                  pl.BlockSpec((9, Cin, C), lambda b: (0, 0, 0)),
                  pl.BlockSpec((1, C), lambda b: (0, 0))]
                 + c1_specs
                 + [pl.BlockSpec((1, C), lambda b: (0, 0)),
                    pl.BlockSpec((1, C), lambda b: (0, 0))],
        out_specs=pl.BlockSpec((None, N, C), lambda b: (b, 0, 0)),
        scratch_shapes=[pltpu.VMEM((H + 2, W + 2, Cin), F32),
                        pltpu.VMEM((H + 2, W + 2, C), F32)],
        compiler_params=pltpu.CompilerParams(dimension_semantics=("parallel",)),
    )(x_nhwc, w9, pb, *c1_args, gng, gnb)

    # ---- kernel 2: cmlp2 + fused DeformableMLP -> final output, channel-leading ----
    dm = params["dmlp"]
    c2_args, c2_specs = _semlp_host(params["cmlp2"], C)
    omdw = jnp.transpose(dm["om_dw_w"][:, 0], (1, 2, 0)).reshape(9, C)
    # pointwise 1x1 (C -> 3C): pre-permute columns so dy / dx / modulator come out as
    # three contiguous C-wide heads (torchvision reads offsets (dy, dx) interleaved per
    # offset group g: dy_g = offset[2g], dx_g = offset[2g+1]).
    pw_t = jnp.transpose(dm["om_pw_w"][:, :, 0, 0])                      # (C, 3C)
    pw_dy = pw_t[:, 0:2 * C:2]
    pw_dx = pw_t[:, 1:2 * C:2]
    pw_ml = pw_t[:, 2 * C:]
    max_offset = float(max(H, W) // 4)
    dscale = dm["bn_g"] / jnp.sqrt(dm["bn_v"] + 1e-5)
    w1 = jnp.transpose(dm["weight"][:, :, 0, 0] * dscale[:, None])       # (Cin, Cout), BN folded
    b1 = (dm["bias"] * dscale + dm["bn_b"] - dm["bn_m"] * dscale).reshape(1, C)
    # C-leading copy of x_res for the channel-batched sampling matmul
    x_res_chw = jnp.transpose(x_res.reshape(B, H, W, C), (0, 3, 1, 2))   # (B, C, H, W)

    out_cn = pl.pallas_call(
        _make_head_kernel(H, W, C, max_offset),
        out_shape=jax.ShapeDtypeStruct((B, C, N), F32),
        grid=(B,),
        in_specs=[pl.BlockSpec((None, N, C), lambda b: (b, 0, 0)),
                  pl.BlockSpec((None, C, H, W), lambda b: (b, 0, 0, 0))]
                 + c2_specs
                 + [pl.BlockSpec((9, C), lambda b: (0, 0)),
                    pl.BlockSpec((C, C), lambda b: (0, 0)),
                    pl.BlockSpec((C, C), lambda b: (0, 0)),
                    pl.BlockSpec((C, C), lambda b: (0, 0)),
                    pl.BlockSpec((C, C), lambda b: (0, 0)),
                    pl.BlockSpec((1, C), lambda b: (0, 0))],
        out_specs=pl.BlockSpec((None, C, N), lambda b: (b, 0, 0)),
        scratch_shapes=[pltpu.VMEM((H + 2, W + 2, C), F32)],
        compiler_params=pltpu.CompilerParams(dimension_semantics=("parallel",)),
    )(x_res, x_res_chw, *c2_args, omdw, pw_dy, pw_dx, pw_ml, w1, b1)

    return out_cn.reshape(B, C, H, W)                                    # NCHW, reshape only


# ------------------------------- parameters ---------------------------------
def make_divisible(v, divisor=8, min_value=None):
    min_value = min_value or divisor
    new_v = max(min_value, int(v + divisor / 2) // divisor * divisor)
    if new_v < 0.9 * v:
        new_v += divisor
    return new_v


def init_params(key, in_chans, emb_chans):
    C = emb_chans
    Cr = make_divisible(C * 0.25, 1)
    ks = iter(jax.random.split(key, 32))

    def rnd(shape, scale):
        return jax.random.normal(next(ks), shape, F32) * scale

    params = {
        "sdp": {
            "proj_w": rnd((C, in_chans, 3, 3), 1.0 / math.sqrt(in_chans * 9)),
            "proj_b": rnd((C,), 0.05),
            # offset_conv / modulator_conv are zero-init in __init__ -> not materialised
            "bn_g": jnp.ones((C,), F32), "bn_b": jnp.zeros((C,), F32),
            "bn_m": jnp.zeros((C,), F32), "bn_v": jnp.ones((C,), F32),
        },
        "norm1": {"g": jnp.ones((C,), F32), "b": jnp.zeros((C,), F32)},
        "dmlp": {
            "weight": rnd((C, C, 1, 1), 1.0 / math.sqrt(C)),
            "bias": rnd((C,), 0.05),
            "om_dw_w": rnd((C, 1, 3, 3), 1.0 / 3.0),
            "om_pw_w": rnd((3 * C, C, 1, 1), 1.0 / math.sqrt(C)),
            "bn_g": jnp.ones((C,), F32), "bn_b": jnp.zeros((C,), F32),
            "bn_m": jnp.zeros((C,), F32), "bn_v": jnp.ones((C,), F32),
        },
    }
    for name in ("cmlp1", "cmlp2"):
        params[name] = {
            "fc1_w": rnd((C, C), 0.02), "fc1_b": jnp.zeros((C,), F32),
            "dw_w": rnd((C, 1, 3, 3), math.sqrt(2.0 / 9.0)), "dw_b": jnp.zeros((C,), F32),
            "gamma": jnp.ones((C,), F32),
            "fc2_w": rnd((C, C), 0.02), "fc2_b": jnp.zeros((C,), F32),
            "se_rw": rnd((Cr, C, 1, 1), math.sqrt(2.0 / C)), "se_rb": jnp.zeros((Cr,), F32),
            "se_ew": rnd((C, Cr, 1, 1), math.sqrt(2.0 / Cr)), "se_eb": jnp.zeros((C,), F32),
        }
    return params


# ---------------------------------- main -------------------------------------
if __name__ == "__main__":
    key = jax.random.PRNGKey(0)
    kx, kp = jax.random.split(key)
    B, Cin, H, W = 2, 8, 8, 8
    emb_chans = 16
    x = jax.random.normal(kx, (B, Cin, H, W), F32)
    params = init_params(kp, Cin, emb_chans)

    fwd = jax.jit(deformable_mlp_block_forward)
    out = jax.block_until_ready(fwd(x, params))

    assert out.shape == (B, emb_chans, H, W), out.shape
    assert bool(jnp.all(jnp.isfinite(out)))
    print("KERNEL_OK")
</pallas_src>

<mosaic_0001>
module attributes {stable_mosaic.version = 11 : i64} {
  func.func @kernel(%arg0: i32, %arg1: memref<1x64x16xf32, #tpu.memory_space<vmem>>, %arg2: memref<1x16x8x8xf32, #tpu.memory_space<vmem>>, %arg3: memref<16x16xf32, #tpu.memory_space<vmem>>, %arg4: memref<1x16xf32, #tpu.memory_space<vmem>>, %arg5: memref<9x16xf32, #tpu.memory_space<vmem>>, %arg6: memref<1x16xf32, #tpu.memory_space<vmem>>, %arg7: memref<1x16xf32, #tpu.memory_space<vmem>>, %arg8: memref<16x16xf32, #tpu.memory_space<vmem>>, %arg9: memref<1x16xf32, #tpu.memory_space<vmem>>, %arg10: memref<16x4xf32, #tpu.memory_space<vmem>>, %arg11: memref<1x4xf32, #tpu.memory_space<vmem>>, %arg12: memref<4x16xf32, #tpu.memory_space<vmem>>, %arg13: memref<1x16xf32, #tpu.memory_space<vmem>>, %arg14: memref<9x16xf32, #tpu.memory_space<vmem>>, %arg15: memref<16x16xf32, #tpu.memory_space<vmem>>, %arg16: memref<16x16xf32, #tpu.memory_space<vmem>>, %arg17: memref<16x16xf32, #tpu.memory_space<vmem>>, %arg18: memref<16x16xf32, #tpu.memory_space<vmem>>, %arg19: memref<1x16xf32, #tpu.memory_space<vmem>>, %arg20: memref<1x16x64xf32, #tpu.memory_space<vmem>>, %arg21: memref<10x10x16xf32, #tpu.memory_space<vmem>>) attributes {dimension_semantics = [#tpu.dimension_semantics<parallel>], iteration_bounds = array<i64: 2>, scalar_prefetch = 0 : i64, scratch_operands = 1 : i64, tpu.core_type = #tpu.core_type<tc>, window_params = [{transform_indices = @transform_0, window_bounds = array<i64: 1, 64, 16>}, {transform_indices = @transform_1, window_bounds = array<i64: 1, 16, 8, 8>}, {pipeline_mode = #tpu.pipeline_mode<synchronous>, transform_indices = @transform_2, window_bounds = array<i64: 16, 16>}, {pipeline_mode = #tpu.pipeline_mode<synchronous>, transform_indices = @transform_3, window_bounds = array<i64: 1, 16>}, {pipeline_mode = #tpu.pipeline_mode<synchronous>, transform_indices = @transform_4, window_bounds = array<i64: 9, 16>}, {pipeline_mode = #tpu.pipeline_mode<synchronous>, transform_indices = @transform_5, window_bounds = array<i64: 1, 16>}, {pipeline_mode = #tpu.pipeline_mode<synchronous>, transform_indices = @transform_6, window_bounds = array<i64: 1, 16>}, {pipeline_mode = #tpu.pipeline_mode<synchronous>, transform_indices = @transform_7, window_bounds = array<i64: 16, 16>}, {pipeline_mode = #tpu.pipeline_mode<synchronous>, transform_indices = @transform_8, window_bounds = array<i64: 1, 16>}, {pipeline_mode = #tpu.pipeline_mode<synchronous>, transform_indices = @transform_9, window_bounds = array<i64: 16, 4>}, {pipeline_mode = #tpu.pipeline_mode<synchronous>, transform_indices = @transform_10, window_bounds = array<i64: 1, 4>}, {pipeline_mode = #tpu.pipeline_mode<synchronous>, transform_indices = @transform_11, window_bounds = array<i64: 4, 16>}, {pipeline_mode = #tpu.pipeline_mode<synchronous>, transform_indices = @transform_12, window_bounds = array<i64: 1, 16>}, {pipeline_mode = #tpu.pipeline_mode<synchronous>, transform_indices = @transform_13, window_bounds = array<i64: 9, 16>}, {pipeline_mode = #tpu.pipeline_mode<synchronous>, transform_indices = @transform_14, window_bounds = array<i64: 16, 16>}, {pipeline_mode = #tpu.pipeline_mode<synchronous>, transform_indices = @transform_15, window_bounds = array<i64: 16, 16>}, {pipeline_mode = #tpu.pipeline_mode<synchronous>, transform_indices = @transform_16, window_bounds = array<i64: 16, 16>}, {pipeline_mode = #tpu.pipeline_mode<synchronous>, transform_indices = @transform_17, window_bounds = array<i64: 16, 16>}, {pipeline_mode = #tpu.pipeline_mode<synchronous>, transform_indices = @transform_18, window_bounds = array<i64: 1, 16>}, {transform_indices = @transform_19, window_bounds = array<i64: 1, 16, 64>}]} {
    %c0 = arith.constant 0 : index
    %c0_0 = arith.constant 0 : index
    %c0_1 = arith.constant 0 : index
    %0 = vector.load %arg1[%c0, %c0_0, %c0_1] : memref<1x64x16xf32, #tpu.memory_space<vmem>>, vector<1x64x16xf32>
    %1 = vector.shape_cast %0 : vector<1x64x16xf32> to vector<64x16xf32>
    %c0_2 = arith.constant 0 : index
    %c0_3 = arith.constant 0 : index
    %2 = vector.load %arg3[%c0_2, %c0_3] : memref<16x16xf32, #tpu.memory_space<vmem>>, vector<16x16xf32>
    %cst = arith.constant dense<0.000000e+00> : vector<64x16xf32>
    %3 = tpu.matmul %1, %2, %cst {dimension_numbers = #tpu.dot_dimension_numbers<[1], [0], [0], [1], [0, 0, 1, 1], [], []>} : vector<64x16xf32>, vector<16x16xf32>, vector<64x16xf32> -> vector<64x16xf32>
    %c0_4 = arith.constant 0 : index
    %c0_5 = arith.constant 0 : index
    %4 = vector.load %arg4[%c0_4, %c0_5] : memref<1x16xf32, #tpu.memory_space<vmem>>, vector<1x16xf32>
    %5 = vector.broadcast %4 : vector<1x16xf32> to vector<64x16xf32>
    %6 = arith.addf %3, %5 : vector<64x16xf32>
    %c0_6 = arith.constant 0 : index
    %c0_7 = arith.constant 0 : index
    %7 = vector.load %arg5[%c0_6, %c0_7] : memref<9x16xf32, #tpu.memory_space<vmem>>, vector<1x16xf32>
    %8 = vector.shape_cast %7 : vector<1x16xf32> to vector<1x1x16xf32>
    %c1 = arith.constant 1 : index
    %c0_8 = arith.constant 0 : index
    %9 = vector.load %arg5[%c1, %c0_8] : memref<9x16xf32, #tpu.memory_space<vmem>>, vector<1x16xf32>
    %10 = vector.shape_cast %9 : vector<1x16xf32> to vector<1x1x16xf32>
    %c2 = arith.constant 2 : index
    %c0_9 = arith.constant 0 : index
    %11 = vector.load %arg5[%c2, %c0_9] : memref<9x16xf32, #tpu.memory_space<vmem>>, vector<1x16xf32>
    %12 = vector.shape_cast %11 : vector<1x16xf32> to vector<1x1x16xf32>
    %c3 = arith.constant 3 : index
    %c0_10 = arith.constant 0 : index
    %13 = vector.load %arg5[%c3, %c0_10] : memref<9x16xf32, #tpu.memory_space<vmem>>, vector<1x16xf32>
    %14 = vector.shape_cast %13 : vector<1x16xf32> to vector<1x1x16xf32>
    %c4 = arith.constant 4 : index
    %c0_11 = arith.constant 0 : index
    %15 = vector.load %arg5[%c4, %c0_11] : memref<9x16xf32, #tpu.memory_space<vmem>>, vector<1x16xf32>
    %16 = vector.shape_cast %15 : vector<1x16xf32> to vector<1x1x16xf32>
    %c5 = arith.constant 5 : index
    %c0_12 = arith.constant 0 : index
    %17 = vector.load %arg5[%c5, %c0_12] : memref<9x16xf32, #tpu.memory_space<vmem>>, vector<1x16xf32>
    %18 = vector.shape_cast %17 : vector<1x16xf32> to vector<1x1x16xf32>
    %c6 = arith.constant 6 : index
    %c0_13 = arith.constant 0 : index
    %19 = vector.load %arg5[%c6, %c0_13] : memref<9x16xf32, #tpu.memory_space<vmem>>, vector<1x16xf32>
    %20 = vector.shape_cast %19 : vector<1x16xf32> to vector<1x1x16xf32>
    %c7 = arith.constant 7 : index
    %c0_14 = arith.constant 0 : index
    %21 = vector.load %arg5[%c7, %c0_14] : memref<9x16xf32, #tpu.memory_space<vmem>>, vector<1x16xf32>
    %22 = vector.shape_cast %21 : vector<1x16xf32> to vector<1x1x16xf32>
    %c8 = arith.constant 8 : index
    %c0_15 = arith.constant 0 : index
    %23 = vector.load %arg5[%c8, %c0_15] : memref<9x16xf32, #tpu.memory_space<vmem>>, vector<1x16xf32>
    %24 = vector.shape_cast %23 : vector<1x16xf32> to vector<1x1x16xf32>
    %25 = vector.shape_cast %6 : vector<64x16xf32> to vector<8x8x16xf32>
    %cst_16 = arith.constant 0.000000e+00 : f32
    %26 = vector.broadcast %cst_16 : f32 to vector<1x10x16xf32>
    %cst_17 = arith.constant 0.000000e+00 : f32
    %27 = vector.broadcast %cst_17 : f32 to vector<10x1x16xf32>
    %c0_18 = arith.constant 0 : index
    %c0_19 = arith.constant 0 : index
    %c0_20 = arith.constant 0 : index
    %28 = vector.load %arg21[%c0_18, %c0_19, %c0_20] : memref<10x10x16xf32, #tpu.memory_space<vmem>>, vector<1x10x16xf32>
    tpu.vector_store %arg21[%c0_18, %c0_19, %c0_20], %26 {strides = array<i32>} : memref<10x10x16xf32, #tpu.memory_space<vmem>>, vector<1x10x16xf32>,
    %c9 = arith.constant 9 : index
    %c0_21 = arith.constant 0 : index
    %c0_22 = arith.constant 0 : index
    %29 = vector.load %arg21[%c9, %c0_21, %c0_22] : memref<10x10x16xf32, #tpu.memory_space<vmem>>, vector<1x10x16xf32>
    tpu.vector_store %arg21[%c9, %c0_21, %c0_22], %26 {strides = array<i32>} : memref<10x10x16xf32, #tpu.memory_space<vmem>>, vector<1x10x16xf32>,
    %c0_23 = arith.constant 0 : index
    %c0_24 = arith.constant 0 : index
    %c0_25 = arith.constant 0 : index
    %30 = vector.load %arg21[%c0_23, %c0_24, %c0_25] : memref<10x10x16xf32, #tpu.memory_space<vmem>>, vector<10x1x16xf32>
    tpu.vector_store %arg21[%c0_23, %c0_24, %c0_25], %27 {strides = array<i32>} : memref<10x10x16xf32, #tpu.memory_space<vmem>>, vector<10x1x16xf32>,
    %c0_26 = arith.constant 0 : index
    %c9_27 = arith.constant 9 : index
    %c0_28 = arith.constant 0 : index
    %31 = vector.load %arg21[%c0_26, %c9_27, %c0_28] : memref<10x10x16xf32, #tpu.memory_space<vmem>>, vector<10x1x16xf32>
    tpu.vector_store %arg21[%c0_26, %c9_27, %c0_28], %27 {strides = array<i32>} : memref<10x10x16xf32, #tpu.memory_space<vmem>>, vector<10x1x16xf32>,
    %c1_29 = arith.constant 1 : index
    %c1_30 = arith.constant 1 : index
    %c0_31 = arith.constant 0 : index
    %32 = vector.load %arg21[%c1_29, %c1_30, %c0_31] : memref<10x10x16xf32, #tpu.memory_space<vmem>>, vector<8x8x16xf32>
    tpu.vector_store %arg21[%c1_29, %c1_30, %c0_31], %25 {strides = array<i32>} : memref<10x10x16xf32, #tpu.memory_space<vmem>>, vector<8x8x16xf32>,
    %c0_32 = arith.constant 0 : index
    %c0_33 = arith.constant 0 : index
    %c0_34 = arith.constant 0 : index
    %33 = vector.load %arg21[%c0_32, %c0_33, %c0_34] : memref<10x10x16xf32, #tpu.memory_space<vmem>>, vector<8x8x16xf32>
    %34 = vector.broadcast %8 : vector<1x1x16xf32> to vector<8x8x16xf32>
    %35 = arith.mulf %33, %34 : vector<8x8x16xf32>
    %c0_35 = arith.constant 0 : index
    %c1_36 = arith.constant 1 : index
    %c0_37 = arith.constant 0 : index
    %36 = vector.load %arg21[%c0_35, %c1_36, %c0_37] : memref<10x10x16xf32, #tpu.memory_space<vmem>>, vector<8x8x16xf32>
    %37 = vector.broadcast %10 : vector<1x1x16xf32> to vector<8x8x16xf32>
    %38 = arith.mulf %36, %37 : vector<8x8x16xf32>
    %39 = arith.addf %35, %38 : vector<8x8x16xf32>
    %c0_38 = arith.constant 0 : index
    %c2_39 = arith.constant 2 : index
    %c0_40 = arith.constant 0 : index
    %40 = vector.load %arg21[%c0_38, %c2_39, %c0_40] : memref<10x10x16xf32, #tpu.memory_space<vmem>>, vector<8x8x16xf32>
    %41 = vector.broadcast %12 : vector<1x1x16xf32> to vector<8x8x16xf32>
    %42 = arith.mulf %40, %41 : vector<8x8x16xf32>
    %43 = arith.addf %39, %42 : vector<8x8x16xf32>
    %c1_41 = arith.constant 1 : index
    %c0_42 = arith.constant 0 : index
    %c0_43 = arith.constant 0 : index
    %44 = vector.load %arg21[%c1_41, %c0_42, %c0_43] : memref<10x10x16xf32, #tpu.memory_space<vmem>>, vector<8x8x16xf32>
    %45 = vector.broadcast %14 : vector<1x1x16xf32> to vector<8x8x16xf32>
    %46 = arith.mulf %44, %45 : vector<8x8x16xf32>
    %47 = arith.addf %43, %46 : vector<8x8x16xf32>
    %c1_44 = arith.constant 1 : index
    %c1_45 = arith.constant 1 : index
    %c0_46 = arith.constant 0 : index
    %48 = vector.load %arg21[%c1_44, %c1_45, %c0_46] : memref<10x10x16xf32, #tpu.memory_space<vmem>>, vector<8x8x16xf32>
    %49 = vector.broadcast %16 : vector<1x1x16xf32> to vector<8x8x16xf32>
    %50 = arith.mulf %48, %49 : vector<8x8x16xf32>
    %51 = arith.addf %47, %50 : vector<8x8x16xf32>
    %c1_47 = arith.constant 1 : index
    %c2_48 = arith.constant 2 : index
    %c0_49 = arith.constant 0 : index
    %52 = vector.load %arg21[%c1_47, %c2_48, %c0_49] : memref<10x10x16xf32, #tpu.memory_space<vmem>>, vector<8x8x16xf32>
    %53 = vector.broadcast %18 : vector<1x1x16xf32> to vector<8x8x16xf32>
    %54 = arith.mulf %52, %53 : vector<8x8x16xf32>
    %55 = arith.addf %51, %54 : vector<8x8x16xf32>
    %c2_50 = arith.constant 2 : index
    %c0_51 = arith.constant 0 : index
    %c0_52 = arith.constant 0 : index
    %56 = vector.load %arg21[%c2_50, %c0_51, %c0_52] : memref<10x10x16xf32, #tpu.memory_space<vmem>>, vector<8x8x16xf32>
    %57 = vector.broadcast %20 : vector<1x1x16xf32> to vector<8x8x16xf32>
    %58 = arith.mulf %56, %57 : vector<8x8x16xf32>
    %59 = arith.addf %55, %58 : vector<8x8x16xf32>
    %c2_53 = arith.constant 2 : index
    %c1_54 = arith.constant 1 : index
    %c0_55 = arith.constant 0 : index
    %60 = vector.load %arg21[%c2_53, %c1_54, %c0_55] : memref<10x10x16xf32, #tpu.memory_space<vmem>>, vector<8x8x16xf32>
    %61 = vector.broadcast %22 : vector<1x1x16xf32> to vector<8x8x16xf32>
    %62 = arith.mulf %60, %61 : vector<8x8x16xf32>
    %63 = arith.addf %59, %62 : vector<8x8x16xf32>
    %c2_56 = arith.constant 2 : index
    %c2_57 = arith.constant 2 : index
    %c0_58 = arith.constant 0 : index
    %64 = vector.load %arg21[%c2_56, %c2_57, %c0_58] : memref<10x10x16xf32, #tpu.memory_space<vmem>>, vector<8x8x16xf32>
    %65 = vector.broadcast %24 : vector<1x1x16xf32> to vector<8x8x16xf32>
    %66 = arith.mulf %64, %65 : vector<8x8x16xf32>
    %67 = arith.addf %63, %66 : vector<8x8x16xf32>
    %68 = vector.shape_cast %67 : vector<8x8x16xf32> to vector<64x16xf32>
    %c0_59 = arith.constant 0 : index
    %c0_60 = arith.constant 0 : index
    %69 = vector.load %arg6[%c0_59, %c0_60] : memref<1x16xf32, #tpu.memory_space<vmem>>, vector<1x16xf32>
    %70 = vector.broadcast %69 : vector<1x16xf32> to vector<64x16xf32>
    %71 = arith.addf %68, %70 : vector<64x16xf32>
    %c0_61 = arith.constant 0 : index
    %c0_62 = arith.constant 0 : index
    %72 = vector.load %arg7[%c0_61, %c0_62] : memref<1x16xf32, #tpu.memory_space<vmem>>, vector<1x16xf32>
    %73 = vector.broadcast %72 : vector<1x16xf32> to vector<64x16xf32>
    %74 = arith.mulf %73, %71 : vector<64x16xf32>
    %75 = arith.addf %74, %6 : vector<64x16xf32>
    %c0_63 = arith.constant 0 : index
    %c0_64 = arith.constant 0 : index
    %76 = vector.load %arg8[%c0_63, %c0_64] : memref<16x16xf32, #tpu.memory_space<vmem>>, vector<16x16xf32>
    %cst_65 = arith.constant dense<0.000000e+00> : vector<64x16xf32>
    %77 = tpu.matmul %75, %76, %cst_65 {dimension_numbers = #tpu.dot_dimension_numbers<[1], [0], [0], [1], [0, 0, 1, 1], [], []>} : vector<64x16xf32>, vector<16x16xf32>, vector<64x16xf32> -> vector<64x16xf32>
    %c0_66 = arith.constant 0 : index
    %c0_67 = arith.constant 0 : index
    %78 = vector.load %arg9[%c0_66, %c0_67] : memref<1x16xf32, #tpu.memory_space<vmem>>, vector<1x16xf32>
    %79 = vector.broadcast %78 : vector<1x16xf32> to vector<64x16xf32>
    %80 = arith.addf %77, %79 : vector<64x16xf32>
    %cst_68 = arith.constant dense<0.000000e+00> : vector<16xf32>
    %81 = vector.multi_reduction <add>, %80, %cst_68 [0] : vector<64x16xf32> to vector<16xf32>
    %82 = vector.shape_cast %81 : vector<16xf32> to vector<1x16xf32>
    %cst_69 = arith.constant 6.400000e+01 : f32
    %83 = vector.broadcast %cst_69 : f32 to vector<1x16xf32>
    %84 = arith.divf %82, %83 : vector<1x16xf32>
    %c0_70 = arith.constant 0 : index
    %c0_71 = arith.constant 0 : index
    %85 = vector.load %arg10[%c0_70, %c0_71] : memref<16x4xf32, #tpu.memory_space<vmem>>, vector<16x4xf32>
    %cst_72 = arith.constant dense<0.000000e+00> : vector<1x4xf32>
    %86 = tpu.matmul %84, %85, %cst_72 {dimension_numbers = #tpu.dot_dimension_numbers<[1], [0], [0], [1], [0, 0, 1, 1], [], []>} : vector<1x16xf32>, vector<16x4xf32>, vector<1x4xf32> -> vector<1x4xf32>
    %c0_73 = arith.constant 0 : index
    %c0_74 = arith.constant 0 : index
    %87 = vector.load %arg11[%c0_73, %c0_74] : memref<1x4xf32, #tpu.memory_space<vmem>>, vector<1x4xf32>
    %88 = arith.addf %86, %87 : vector<1x4xf32>
    %cst_75 = arith.constant 0.000000e+00 : f32
    %89 = vector.broadcast %cst_75 : f32 to vector<1x4xf32>
    %90 = arith.maximumf %88, %89 : vector<1x4xf32>
    %c0_76 = arith.constant 0 : index
    %c0_77 = arith.constant 0 : index
    %91 = vector.load %arg12[%c0_76, %c0_77] : memref<4x16xf32, #tpu.memory_space<vmem>>, vector<4x16xf32>
    %cst_78 = arith.constant dense<0.000000e+00> : vector<1x16xf32>
    %92 = tpu.matmul %90, %91, %cst_78 {dimension_numbers = #tpu.dot_dimension_numbers<[1], [0], [0], [1], [0, 0, 1, 1], [], []>} : vector<1x4xf32>, vector<4x16xf32>, vector<1x16xf32> -> vector<1x16xf32>
    %c0_79 = arith.constant 0 : index
    %c0_80 = arith.constant 0 : index
    %93 = vector.load %arg13[%c0_79, %c0_80] : memref<1x16xf32, #tpu.memory_space<vmem>>, vector<1x16xf32>
    %94 = arith.addf %92, %93 : vector<1x16xf32>
    %cst_81 = arith.constant 0.000000e+00 : f32
    %95 = vector.broadcast %cst_81 : f32 to vector<1x16xf32>
    %96 = arith.subf %95, %94 : vector<1x16xf32>
    %97 = math.exp %96 : vector<1x16xf32>
    %cst_82 = arith.constant 1.000000e+00 : f32
    %98 = vector.broadcast %cst_82 : f32 to vector<1x16xf32>
    %99 = arith.addf %98, %97 : vector<1x16xf32>
    %cst_83 = arith.constant 1.000000e+00 : f32
    %100 = vector.broadcast %cst_83 : f32 to vector<1x16xf32>
    %101 = arith.divf %100, %99 : vector<1x16xf32>
    %102 = vector.broadcast %101 : vector<1x16xf32> to vector<64x16xf32>
    %103 = arith.mulf %80, %102 : vector<64x16xf32>
    %c0_84 = arith.constant 0 : index
    %c0_85 = arith.constant 0 : index
    %104 = vector.load %arg14[%c0_84, %c0_85] : memref<9x16xf32, #tpu.memory_space<vmem>>, vector<1x16xf32>
    %105 = vector.shape_cast %104 : vector<1x16xf32> to vector<1x1x16xf32>
    %c1_86 = arith.constant 1 : index
    %c0_87 = arith.constant 0 : index
    %106 = vector.load %arg14[%c1_86, %c0_87] : memref<9x16xf32, #tpu.memory_space<vmem>>, vector<1x16xf32>
    %107 = vector.shape_cast %106 : vector<1x16xf32> to vector<1x1x16xf32>
    %c2_88 = arith.constant 2 : index
    %c0_89 = arith.constant 0 : index
    %108 = vector.load %arg14[%c2_88, %c0_89] : memref<9x16xf32, #tpu.memory_space<vmem>>, vector<1x16xf32>
    %109 = vector.shape_cast %108 : vector<1x16xf32> to vector<1x1x16xf32>
    %c3_90 = arith.constant 3 : index
    %c0_91 = arith.constant 0 : index
    %110 = vector.load %arg14[%c3_90, %c0_91] : memref<9x16xf32, #tpu.memory_space<vmem>>, vector<1x16xf32>
    %111 = vector.shape_cast %110 : vector<1x16xf32> to vector<1x1x16xf32>
    %c4_92 = arith.constant 4 : index
    %c0_93 = arith.constant 0 : index
    %112 = vector.load %arg14[%c4_92, %c0_93] : memref<9x16xf32, #tpu.memory_space<vmem>>, vector<1x16xf32>
    %113 = vector.shape_cast %112 : vector<1x16xf32> to vector<1x1x16xf32>
    %c5_94 = arith.constant 5 : index
    %c0_95 = arith.constant 0 : index
    %114 = vector.load %arg14[%c5_94, %c0_95] : memref<9x16xf32, #tpu.memory_space<vmem>>, vector<1x16xf32>
    %115 = vector.shape_cast %114 : vector<1x16xf32> to vector<1x1x16xf32>
    %c6_96 = arith.constant 6 : index
    %c0_97 = arith.constant 0 : index
    %116 = vector.load %arg14[%c6_96, %c0_97] : memref<9x16xf32, #tpu.memory_space<vmem>>, vector<1x16xf32>
    %117 = vector.shape_cast %116 : vector<1x16xf32> to vector<1x1x16xf32>
    %c7_98 = arith.constant 7 : index
    %c0_99 = arith.constant 0 : index
    %118 = vector.load %arg14[%c7_98, %c0_99] : memref<9x16xf32, #tpu.memory_space<vmem>>, vector<1x16xf32>
    %119 = vector.shape_cast %118 : vector<1x16xf32> to vector<1x1x16xf32>
    %c8_100 = arith.constant 8 : index
    %c0_101 = arith.constant 0 : index
    %120 = vector.load %arg14[%c8_100, %c0_101] : memref<9x16xf32, #tpu.memory_space<vmem>>, vector<1x16xf32>
    %121 = vector.shape_cast %120 : vector<1x16xf32> to vector<1x1x16xf32>
    %122 = vector.shape_cast %1 : vector<64x16xf32> to vector<8x8x16xf32>
    %c1_102 = arith.constant 1 : index
    %c1_103 = arith.constant 1 : index
    %c0_104 = arith.constant 0 : index
    %123 = vector.load %arg21[%c1_102, %c1_103, %c0_104] : memref<10x10x16xf32, #tpu.memory_space<vmem>>, vector<8x8x16xf32>
    tpu.vector_store %arg21[%c1_102, %c1_103, %c0_104], %122 {strides = array<i32>} : memref<10x10x16xf32, #tpu.memory_space<vmem>>, vector<8x8x16xf32>,
    %c0_105 = arith.constant 0 : index
    %c0_106 = arith.constant 0 : index
    %c0_107 = arith.constant 0 : index
    %124 = vector.load %arg21[%c0_105, %c0_106, %c0_107] : memref<10x10x16xf32, #tpu.memory_space<vmem>>, vector<8x8x16xf32>
    %125 = vector.broadcast %105 : vector<1x1x16xf32> to vector<8x8x16xf32>
    %126 = arith.mulf %124, %125 : vector<8x8x16xf32>
    %c0_108 = arith.constant 0 : index
    %c1_109 = arith.constant 1 : index
    %c0_110 = arith.constant 0 : index
    %127 = vector.load %arg21[%c0_108, %c1_109, %c0_110] : memref<10x10x16xf32, #tpu.memory_space<vmem>>, vector<8x8x16xf32>
    %128 = vector.broadcast %107 : vector<1x1x16xf32> to vector<8x8x16xf32>
    %129 = arith.mulf %127, %128 : vector<8x8x16xf32>
    %130 = arith.addf %126, %129 : vector<8x8x16xf32>
    %c0_111 = arith.constant 0 : index
    %c2_112 = arith.constant 2 : index
    %c0_113 = arith.constant 0 : index
    %131 = vector.load %arg21[%c0_111, %c2_112, %c0_113] : memref<10x10x16xf32, #tpu.memory_space<vmem>>, vector<8x8x16xf32>
    %132 = vector.broadcast %109 : vector<1x1x16xf32> to vector<8x8x16xf32>
    %133 = arith.mulf %131, %132 : vector<8x8x16xf32>
    %134 = arith.addf %130, %133 : vector<8x8x16xf32>
    %c1_114 = arith.constant 1 : index
    %c0_115 = arith.constant 0 : index
    %c0_116 = arith.constant 0 : index
    %135 = vector.load %arg21[%c1_114, %c0_115, %c0_116] : memref<10x10x16xf32, #tpu.memory_space<vmem>>, vector<8x8x16xf32>
    %136 = vector.broadcast %111 : vector<1x1x16xf32> to vector<8x8x16xf32>
    %137 = arith.mulf %135, %136 : vector<8x8x16xf32>
    %138 = arith.addf %134, %137 : vector<8x8x16xf32>
    %c1_117 = arith.constant 1 : index
    %c1_118 = arith.constant 1 : index
    %c0_119 = arith.constant 0 : index
    %139 = vector.load %arg21[%c1_117, %c1_118, %c0_119] : memref<10x10x16xf32, #tpu.memory_space<vmem>>, vector<8x8x16xf32>
    %140 = vector.broadcast %113 : vector<1x1x16xf32> to vector<8x8x16xf32>
    %141 = arith.mulf %139, %140 : vector<8x8x16xf32>
    %142 = arith.addf %138, %141 : vector<8x8x16xf32>
    %c1_120 = arith.constant 1 : index
    %c2_121 = arith.constant 2 : index
    %c0_122 = arith.constant 0 : index
    %143 = vector.load %arg21[%c1_120, %c2_121, %c0_122] : memref<10x10x16xf32, #tpu.memory_space<vmem>>, vector<8x8x16xf32>
    %144 = vector.broadcast %115 : vector<1x1x16xf32> to vector<8x8x16xf32>
    %145 = arith.mulf %143, %144 : vector<8x8x16xf32>
    %146 = arith.addf %142, %145 : vector<8x8x16xf32>
    %c2_123 = arith.constant 2 : index
    %c0_124 = arith.constant 0 : index
    %c0_125 = arith.constant 0 : index
    %147 = vector.load %arg21[%c2_123, %c0_124, %c0_125] : memref<10x10x16xf32, #tpu.memory_space<vmem>>, vector<8x8x16xf32>
    %148 = vector.broadcast %117 : vector<1x1x16xf32> to vector<8x8x16xf32>
    %149 = arith.mulf %147, %148 : vector<8x8x16xf32>
    %150 = arith.addf %146, %149 : vector<8x8x16xf32>
    %c2_126 = arith.constant 2 : index
    %c1_127 = arith.constant 1 : index
    %c0_128 = arith.constant 0 : index
    %151 = vector.load %arg21[%c2_126, %c1_127, %c0_128] : memref<10x10x16xf32, #tpu.memory_space<vmem>>, vector<8x8x16xf32>
    %152 = vector.broadcast %119 : vector<1x1x16xf32> to vector<8x8x16xf32>
    %153 = arith.mulf %151, %152 : vector<8x8x16xf32>
    %154 = arith.addf %150, %153 : vector<8x8x16xf32>
    %c2_129 = arith.constant 2 : index
    %c2_130 = arith.constant 2 : index
    %c0_131 = arith.constant 0 : index
    %155 = vector.load %arg21[%c2_129, %c2_130, %c0_131] : memref<10x10x16xf32, #tpu.memory_space<vmem>>, vector<8x8x16xf32>
    %156 = vector.broadcast %121 : vector<1x1x16xf32> to vector<8x8x16xf32>
    %157 = arith.mulf %155, %156 : vector<8x8x16xf32>
    %158 = arith.addf %154, %157 : vector<8x8x16xf32>
    %159 = vector.shape_cast %158 : vector<8x8x16xf32> to vector<64x16xf32>
    %c0_132 = arith.constant 0 : index
    %c0_133 = arith.constant 0 : index
    %160 = vector.load %arg15[%c0_132, %c0_133] : memref<16x16xf32, #tpu.memory_space<vmem>>, vector<16x16xf32>
    %cst_134 = arith.constant dense<0.000000e+00> : vector<64x16xf32>
    %161 = tpu.matmul %159, %160, %cst_134 {dimension_numbers = #tpu.dot_dimension_numbers<[1], [0], [0], [1], [0, 0, 1, 1], [], []>} : vector<64x16xf32>, vector<16x16xf32>, vector<64x16xf32> -> vector<64x16xf32>
    %cst_135 = arith.constant -2.000000e+00 : f32
    %cst_136 = arith.constant 2.000000e+00 : f32
    %162 = vector.broadcast %cst_135 : f32 to vector<64x16xf32>
    %163 = arith.maximumf %162, %161 : vector<64x16xf32>
    %164 = vector.broadcast %cst_136 : f32 to vector<64x16xf32>
    %165 = arith.minimumf %164, %163 : vector<64x16xf32>
    %c0_137 = arith.constant 0 : index
    %c0_138 = arith.constant 0 : index
    %166 = vector.load %arg16[%c0_137, %c0_138] : memref<16x16xf32, #tpu.memory_space<vmem>>, vector<16x16xf32>
    %cst_139 = arith.constant dense<0.000000e+00> : vector<64x16xf32>
    %167 = tpu.matmul %159, %166, %cst_139 {dimension_numbers = #tpu.dot_dimension_numbers<[1], [0], [0], [1], [0, 0, 1, 1], [], []>} : vector<64x16xf32>, vector<16x16xf32>, vector<64x16xf32> -> vector<64x16xf32>
    %cst_140 = arith.constant -2.000000e+00 : f32
    %cst_141 = arith.constant 2.000000e+00 : f32
    %168 = vector.broadcast %cst_140 : f32 to vector<64x16xf32>
    %169 = arith.maximumf %168, %167 : vector<64x16xf32>
    %170 = vector.broadcast %cst_141 : f32 to vector<64x16xf32>
    %171 = arith.minimumf %170, %169 : vector<64x16xf32>
    %c0_142 = arith.constant 0 : index
    %c0_143 = arith.constant 0 : index
    %172 = vector.load %arg17[%c0_142, %c0_143] : memref<16x16xf32, #tpu.memory_space<vmem>>, vector<16x16xf32>
    %cst_144 = arith.constant dense<0.000000e+00> : vector<64x16xf32>
    %173 = tpu.matmul %159, %172, %cst_144 {dimension_numbers = #tpu.dot_dimension_numbers<[1], [0], [0], [1], [0, 0, 1, 1], [], []>} : vector<64x16xf32>, vector<16x16xf32>, vector<64x16xf32> -> vector<64x16xf32>
    %cst_145 = arith.constant 0.000000e+00 : f32
    %174 = vector.broadcast %cst_145 : f32 to vector<64x16xf32>
    %175 = arith.subf %174, %173 : vector<64x16xf32>
    %176 = math.exp %175 : vector<64x16xf32>
    %cst_146 = arith.constant 1.000000e+00 : f32
    %177 = vector.broadcast %cst_146 : f32 to vector<64x16xf32>
    %178 = arith.addf %177, %176 : vector<64x16xf32>
    %cst_147 = arith.constant 1.000000e+00 : f32
    %179 = vector.broadcast %cst_147 : f32 to vector<64x16xf32>
    %180 = arith.divf %179, %178 : vector<64x16xf32>
    %cst_148 = arith.constant 2.000000e+00 : f32
    %181 = vector.broadcast %cst_148 : f32 to vector<64x16xf32>
    %182 = arith.mulf %181, %180 : vector<64x16xf32>
    %183 = tpu.iota {dimensions = array<i32: 1>} : vector<1x64xi32>
    %184 = arith.sitofp %183 : vector<1x64xi32> to vector<1x64xf32>
    %cst_149 = arith.constant 5.000000e-01 : f32
    %185 = vector.broadcast %cst_149 : f32 to vector<1x64xf32>
    %186 = arith.addf %184, %185 : vector<1x64xf32>
    %cst_150 = arith.constant 8.000000e+00 : f32
    %187 = vector.broadcast %cst_150 : f32 to vector<1x64xf32>
    %188 = arith.divf %186, %187 : vector<1x64xf32>
    %189 = math.floor %188 : vector<1x64xf32>
    %cst_151 = arith.constant 8.000000e+00 : f32
    %190 = vector.broadcast %cst_151 : f32 to vector<1x64xf32>
    %191 = arith.mulf %189, %190 : vector<1x64xf32>
    %192 = arith.subf %184, %191 : vector<1x64xf32>
    %193 = tpu.transpose %165, [1, 0] : vector<64x16xf32> -> vector<16x64xf32>
    %194 = vector.broadcast %189 : vector<1x64xf32> to vector<16x64xf32>
    %195 = arith.addf %194, %193 : vector<16x64xf32>
    %196 = tpu.transpose %171, [1, 0] : vector<64x16xf32> -> vector<16x64xf32>
    %197 = vector.broadcast %192 : vector<1x64xf32> to vector<16x64xf32>
    %198 = arith.addf %197, %196 : vector<16x64xf32>
    %199 = math.floor %195 : vector<16x64xf32>
    %200 = math.floor %198 : vector<16x64xf32>
    %201 = arith.subf %195, %199 : vector<16x64xf32>
    %202 = vector.shape_cast %201 : vector<16x64xf32> to vector<16x1x64xf32>
    %203 = arith.subf %198, %200 : vector<16x64xf32>
    %204 = vector.shape_cast %203 : vector<16x64xf32> to vector<16x1x64xf32>
    %205 = arith.fptosi %199 : vector<16x64xf32> to vector<16x64xi32>
    %206 = vector.shape_cast %205 : vector<16x64xi32> to vector<16x1x64xi32>
    %207 = arith.fptosi %200 : vector<16x64xf32> to vector<16x64xi32>
    %208 = vector.shape_cast %207 : vector<16x64xi32> to vector<16x1x64xi32>
    %209 = tpu.iota {dimensions = array<i32: 1>} : vector<1x8x64xi32>
    %210 = tpu.iota {dimensions = array<i32: 1>} : vector<1x8x64xi32>
    %211 = vector.broadcast %209 : vector<1x8x64xi32> to vector<16x8x64xi32>
    %212 = vector.broadcast %206 : vector<16x1x64xi32> to vector<16x8x64xi32>
    %213 = arith.cmpi eq, %211, %212 : vector<16x8x64xi32>
    %cst_152 = arith.constant 1.000000e+00 : f32
    %214 = vector.broadcast %cst_152 : f32 to vector<16x1x64xf32>
    %215 = arith.subf %214, %202 : vector<16x1x64xf32>
    %cst_153 = arith.constant 0.000000e+00 : f32
    %216 = vector.shape_cast %215 : vector<16x1x64xf32> to vector<16x1x64xf32>
    %217 = vector.broadcast %216 : vector<16x1x64xf32> to vector<16x8x64xf32>
    %218 = vector.broadcast %cst_153 : f32 to vector<16x8x64xf32>
    %219 = arith.select %213, %217, %218 : vector<16x8x64xi1>, vector<16x8x64xf32>
    %c1_i32 = arith.constant 1 : i32
    %220 = vector.broadcast %c1_i32 : i32 to vector<16x1x64xi32>
    %221 = arith.addi %206, %220 : vector<16x1x64xi32>
    %222 = vector.broadcast %209 : vector<1x8x64xi32> to vector<16x8x64xi32>
    %223 = vector.broadcast %221 : vector<16x1x64xi32> to vector<16x8x64xi32>
    %224 = arith.cmpi eq, %222, %223 : vector<16x8x64xi32>
    %cst_154 = arith.constant 0.000000e+00 : f32
    %225 = vector.shape_cast %202 : vector<16x1x64xf32> to vector<16x1x64xf32>
    %226 = vector.broadcast %225 : vector<16x1x64xf32> to vector<16x8x64xf32>
    %227 = vector.broadcast %cst_154 : f32 to vector<16x8x64xf32>
    %228 = arith.select %224, %226, %227 : vector<16x8x64xi1>, vector<16x8x64xf32>
    %229 = arith.addf %219, %228 : vector<16x8x64xf32>
    %230 = vector.broadcast %210 : vector<1x8x64xi32> to vector<16x8x64xi32>
    %231 = vector.broadcast %208 : vector<16x1x64xi32> to vector<16x8x64xi32>
    %232 = arith.cmpi eq, %230, %231 : vector<16x8x64xi32>
    %cst_155 = arith.constant 1.000000e+00 : f32
    %233 = vector.broadcast %cst_155 : f32 to vector<16x1x64xf32>
    %234 = arith.subf %233, %204 : vector<16x1x64xf32>
    %cst_156 = arith.constant 0.000000e+00 : f32
    %235 = vector.shape_cast %234 : vector<16x1x64xf32> to vector<16x1x64xf32>
    %236 = vector.broadcast %235 : vector<16x1x64xf32> to vector<16x8x64xf32>
    %237 = vector.broadcast %cst_156 : f32 to vector<16x8x64xf32>
    %238 = arith.select %232, %236, %237 : vector<16x8x64xi1>, vector<16x8x64xf32>
    %c1_i32_157 = arith.constant 1 : i32
    %239 = vector.broadcast %c1_i32_157 : i32 to vector<16x1x64xi32>
    %240 = arith.addi %208, %239 : vector<16x1x64xi32>
    %241 = vector.broadcast %210 : vector<1x8x64xi32> to vector<16x8x64xi32>
    %242 = vector.broadcast %240 : vector<16x1x64xi32> to vector<16x8x64xi32>
    %243 = arith.cmpi eq, %241, %242 : vector<16x8x64xi32>
    %cst_158 = arith.constant 0.000000e+00 : f32
    %244 = vector.shape_cast %204 : vector<16x1x64xf32> to vector<16x1x64xf32>
    %245 = vector.broadcast %244 : vector<16x1x64xf32> to vector<16x8x64xf32>
    %246 = vector.broadcast %cst_158 : f32 to vector<16x8x64xf32>
    %247 = arith.select %243, %245, %246 : vector<16x8x64xi1>, vector<16x8x64xf32>
    %248 = arith.addf %238, %247 : vector<16x8x64xf32>
    %c0_159 = arith.constant 0 : index
    %c0_160 = arith.constant 0 : index
    %c0_161 = arith.constant 0 : index
    %c0_162 = arith.constant 0 : index
    %249 = vector.load %arg2[%c0_159, %c0_160, %c0_161, %c0_162] : memref<1x16x8x8xf32, #tpu.memory_space<vmem>>, vector<1x16x8x8xf32>
    %250 = vector.shape_cast %249 : vector<1x16x8x8xf32> to vector<16x8x8xf32>
    "tpu.trace_start"() <{level = 10 : i32, message = "chw,cwn->chn"}> : () -> ()
    %cst_163 = arith.constant dense<0.000000e+00> : vector<16x8x64xf32>
    %251 = tpu.matmul %250, %248, %cst_163 {dimension_numbers = #tpu.dot_dimension_numbers<[2], [1], [1], [2], [0, 0, 0, 1, 1, 2], [0], [0]>} : vector<16x8x8xf32>, vector<16x8x64xf32>, vector<16x8x64xf32> -> vector<16x8x64xf32>
    "tpu.trace_stop"() : () -> ()
    %252 = arith.mulf %251, %229 : vector<16x8x64xf32>
    %cst_164 = arith.constant dense<0.000000e+00> : vector<16x64xf32>
    %253 = vector.multi_reduction <add>, %252, %cst_164 [1] : vector<16x8x64xf32> to vector<16x64xf32>
    %254 = tpu.transpose %253, [1, 0] : vector<16x64xf32> -> vector<64x16xf32>
    %255 = arith.mulf %254, %182 : vector<64x16xf32>
    %c0_165 = arith.constant 0 : index
    %c0_166 = arith.constant 0 : index
    %256 = vector.load %arg18[%c0_165, %c0_166] : memref<16x16xf32, #tpu.memory_space<vmem>>, vector<16x16xf32>
    %cst_167 = arith.constant dense<0.000000e+00> : vector<64x16xf32>
    %257 = tpu.matmul %255, %256, %cst_167 {dimension_numbers = #tpu.dot_dimension_numbers<[1], [0], [0], [1], [0, 0, 1, 1], [], []>} : vector<64x16xf32>, vector<16x16xf32>, vector<64x16xf32> -> vector<64x16xf32>
    %c0_168 = arith.constant 0 : index
    %c0_169 = arith.constant 0 : index
    %258 = vector.load %arg19[%c0_168, %c0_169] : memref<1x16xf32, #tpu.memory_space<vmem>>, vector<1x16xf32>
    %259 = vector.broadcast %258 : vector<1x16xf32> to vector<64x16xf32>
    %260 = arith.addf %257, %259 : vector<64x16xf32>
    %cst_170 = arith.constant 5.000000e-01 : f32
    %261 = vector.broadcast %cst_170 : f32 to vector<64x16xf32>
    %262 = arith.mulf %261, %260 : vector<64x16xf32>
    %cst_171 = arith.constant 0.707106769 : f32
    %263 = vector.broadcast %cst_171 : f32 to vector<64x16xf32>
    %264 = arith.mulf %260, %263 : vector<64x16xf32>
    %cst_172 = arith.constant 0.000000e+00 : f32
    %265 = vector.broadcast %cst_172 : f32 to vector<64x16xf32>
    %266 = arith.cmpf olt, %264, %265 : vector<64x16xf32>
    %cst_173 = arith.constant -1.000000e+00 : f32
    %cst_174 = arith.constant 1.000000e+00 : f32
    %267 = vector.broadcast %cst_173 : f32 to vector<64x16xf32>
    %268 = vector.broadcast %cst_174 : f32 to vector<64x16xf32>
    %269 = arith.select %266, %267, %268 : vector<64x16xi1>, vector<64x16xf32>
    %270 = math.absf %264 : vector<64x16xf32>
    %cst_175 = arith.constant 0.327591091 : f32
    %271 = vector.broadcast %cst_175 : f32 to vector<64x16xf32>
    %272 = arith.mulf %271, %270 : vector<64x16xf32>
    %cst_176 = arith.constant 1.000000e+00 : f32
    %273 = vector.broadcast %cst_176 : f32 to vector<64x16xf32>
    %274 = arith.addf %273, %272 : vector<64x16xf32>
    %cst_177 = arith.constant 1.000000e+00 : f32
    %275 = vector.broadcast %cst_177 : f32 to vector<64x16xf32>
    %276 = arith.divf %275, %274 : vector<64x16xf32>
    %cst_178 = arith.constant 1.06140542 : f32
    %277 = vector.broadcast %cst_178 : f32 to vector<64x16xf32>
    %278 = arith.mulf %276, %277 : vector<64x16xf32>
    %cst_179 = arith.constant -1.45315206 : f32
    %279 = vector.broadcast %cst_179 : f32 to vector<64x16xf32>
    %280 = arith.addf %279, %278 : vector<64x16xf32>
    %281 = arith.mulf %276, %280 : vector<64x16xf32>
    %cst_180 = arith.constant 1.42141378 : f32
    %282 = vector.broadcast %cst_180 : f32 to vector<64x16xf32>
    %283 = arith.addf %282, %281 : vector<64x16xf32>
    %284 = arith.mulf %276, %283 : vector<64x16xf32>
    %cst_181 = arith.constant -0.284496725 : f32
    %285 = vector.broadcast %cst_181 : f32 to vector<64x16xf32>
    %286 = arith.addf %285, %284 : vector<64x16xf32>
    %287 = arith.mulf %276, %286 : vector<64x16xf32>
    %cst_182 = arith.constant 0.254829586 : f32
    %288 = vector.broadcast %cst_182 : f32 to vector<64x16xf32>
    %289 = arith.addf %288, %287 : vector<64x16xf32>
    %290 = arith.mulf %276, %289 : vector<64x16xf32>
    %cst_183 = arith.constant 0.000000e+00 : f32
    %291 = vector.broadcast %cst_183 : f32 to vector<64x16xf32>
    %292 = arith.subf %291, %270 : vector<64x16xf32>
    %293 = arith.mulf %292, %270 : vector<64x16xf32>
    %294 = math.exp %293 : vector<64x16xf32>
    %295 = arith.mulf %290, %294 : vector<64x16xf32>
    %cst_184 = arith.constant 1.000000e+00 : f32
    %296 = vector.broadcast %cst_184 : f32 to vector<64x16xf32>
    %297 = arith.subf %296, %295 : vector<64x16xf32>
    %298 = arith.mulf %269, %297 : vector<64x16xf32>
    %cst_185 = arith.constant 1.000000e+00 : f32
    %299 = vector.broadcast %cst_185 : f32 to vector<64x16xf32>
    %300 = arith.addf %299, %298 : vector<64x16xf32>
    %301 = arith.mulf %262, %300 : vector<64x16xf32>
    %302 = arith.addf %301, %103 : vector<64x16xf32>
    %303 = tpu.transpose %302, [1, 0] : vector<64x16xf32> -> vector<16x64xf32>
    %c0_186 = arith.constant 0 : index
    %c0_187 = arith.constant 0 : index
    %c0_188 = arith.constant 0 : index
    %304 = vector.load %arg20[%c0_186, %c0_187, %c0_188] : memref<1x16x64xf32, #tpu.memory_space<vmem>>, vector<1x16x64xf32>
    %305 = vector.shape_cast %304 : vector<1x16x64xf32> to vector<16x64xf32>
    %306 = vector.shape_cast %303 : vector<16x64xf32> to vector<1x16x64xf32>
    tpu.vector_store %arg20[%c0_186, %c0_187, %c0_188], %306 {strides = array<i32>} : memref<1x16x64xf32, #tpu.memory_space<vmem>>, vector<1x16x64xf32>,
    return
  }
  func.func @transform_0(%arg0: i32) -> (i32, i32, i32) {
    %c0_i32 = arith.constant 0 : i32
    %c0_i32_0 = arith.constant 0 : i32
    %c0_i32_1 = arith.constant 0 : i32
    return %arg0, %c0_i32, %c0_i32_0 : i32, i32, i32
  }
  func.func @transform_1(%arg0: i32) -> (i32, i32, i32, i32) {
    %c0_i32 = arith.constant 0 : i32
    %c0_i32_0 = arith.constant 0 : i32
    %c0_i32_1 = arith.constant 0 : i32
    %c0_i32_2 = arith.constant 0 : i32
    return %arg0, %c0_i32, %c0_i32_0, %c0_i32_1 : i32, i32, i32, i32
  }
  func.func @transform_2(%arg0: i32) -> (i32, i32) {
    %c0_i32 = arith.constant 0 : i32
    %c0_i32_0 = arith.constant 0 : i32
    %c0_i32_1 = arith.constant 0 : i32
    return %c0_i32, %c0_i32_0 : i32, i32
  }
  func.func @transform_3(%arg0: i32) -> (i32, i32) {
    %c0_i32 = arith.constant 0 : i32
    %c0_i32_0 = arith.constant 0 : i32
    %c0_i32_1 = arith.constant 0 : i32
    return %c0_i32, %c0_i32_0 : i32, i32
  }
  func.func @transform_4(%arg0: i32) -> (i32, i32) {
    %c0_i32 = arith.constant 0 : i32
    %c0_i32_0 = arith.constant 0 : i32
    %c0_i32_1 = arith.constant 0 : i32
    return %c0_i32, %c0_i32_0 : i32, i32
  }
  func.func @transform_5(%arg0: i32) -> (i32, i32) {
    %c0_i32 = arith.constant 0 : i32
    %c0_i32_0 = arith.constant 0 : i32
    %c0_i32_1 = arith.constant 0 : i32
    return %c0_i32, %c0_i32_0 : i32, i32
  }
  func.func @transform_6(%arg0: i32) -> (i32, i32) {
    %c0_i32 = arith.constant 0 : i32
    %c0_i32_0 = arith.constant 0 : i32
    %c0_i32_1 = arith.constant 0 : i32
    return %c0_i32, %c0_i32_0 : i32, i32
  }
  func.func @transform_7(%arg0: i32) -> (i32, i32) {
    %c0_i32 = arith.constant 0 : i32
    %c0_i32_0 = arith.constant 0 : i32
    %c0_i32_1 = arith.constant 0 : i32
    return %c0_i32, %c0_i32_0 : i32, i32
  }
  func.func @transform_8(%arg0: i32) -> (i32, i32) {
    %c0_i32 = arith.constant 0 : i32
    %c0_i32_0 = arith.constant 0 : i32
    %c0_i32_1 = arith.constant 0 : i32
    return %c0_i32, %c0_i32_0 : i32, i32
  }
  func.func @transform_9(%arg0: i32) -> (i32, i32) {
    %c0_i32 = arith.constant 0 : i32
    %c0_i32_0 = arith.constant 0 : i32
    %c0_i32_1 = arith.constant 0 : i32
    return %c0_i32, %c0_i32_0 : i32, i32
  }
  func.func @transform_10(%arg0: i32) -> (i32, i32) {
    %c0_i32 = arith.constant 0 : i32
    %c0_i32_0 = arith.constant 0 : i32
    %c0_i32_1 = arith.constant 0 : i32
    return %c0_i32, %c0_i32_0 : i32, i32
  }
  func.func @transform_11(%arg0: i32) -> (i32, i32) {
    %c0_i32 = arith.constant 0 : i32
    %c0_i32_0 = arith.constant 0 : i32
    %c0_i32_1 = arith.constant 0 : i32
    return %c0_i32, %c0_i32_0 : i32, i32
  }
  func.func @transform_12(%arg0: i32) -> (i32, i32) {
    %c0_i32 = arith.constant 0 : i32
    %c0_i32_0 = arith.constant 0 : i32
    %c0_i32_1 = arith.constant 0 : i32
    return %c0_i32, %c0_i32_0 : i32, i32
  }
  func.func @transform_13(%arg0: i32) -> (i32, i32) {
    %c0_i32 = arith.constant 0 : i32
    %c0_i32_0 = arith.constant 0 : i32
    %c0_i32_1 = arith.constant 0 : i32
    return %c0_i32, %c0_i32_0 : i32, i32
  }
  func.func @transform_14(%arg0: i32) -> (i32, i32) {
    %c0_i32 = arith.constant 0 : i32
    %c0_i32_0 = arith.constant 0 : i32
    %c0_i32_1 = arith.constant 0 : i32
    return %c0_i32, %c0_i32_0 : i32, i32
  }
  func.func @transform_15(%arg0: i32) -> (i32, i32) {
    %c0_i32 = arith.constant 0 : i32
    %c0_i32_0 = arith.constant 0 : i32
    %c0_i32_1 = arith.constant 0 : i32
    return %c0_i32, %c0_i32_0 : i32, i32
  }
  func.func @transform_16(%arg0: i32) -> (i32, i32) {
    %c0_i32 = arith.constant 0 : i32
    %c0_i32_0 = arith.constant 0 : i32
    %c0_i32_1 = arith.constant 0 : i32
    return %c0_i32, %c0_i32_0 : i32, i32
  }
  func.func @transform_17(%arg0: i32) -> (i32, i32) {
    %c0_i32 = arith.constant 0 : i32
    %c0_i32_0 = arith.constant 0 : i32
    %c0_i32_1 = arith.constant 0 : i32
    return %c0_i32, %c0_i32_0 : i32, i32
  }
  func.func @transform_18(%arg0: i32) -> (i32, i32) {
    %c0_i32 = arith.constant 0 : i32
    %c0_i32_0 = arith.constant 0 : i32
    %c0_i32_1 = arith.constant 0 : i32
    return %c0_i32, %c0_i32_0 : i32, i32
  }
  func.func @transform_19(%arg0: i32) -> (i32, i32, i32) {
    %c0_i32 = arith.constant 0 : i32
    %c0_i32_0 = arith.constant 0 : i32
    %c0_i32_1 = arith.constant 0 : i32
    return %arg0, %c0_i32, %c0_i32_0 : i32, i32, i32
  }
}

module attributes {stable_mosaic.version = 11 : i64} {
  func.func @kernel(%arg0: i32, %arg1: memref<1x8x8x8xf32, #tpu.memory_space<vmem>>, %arg2: memref<9x8x16xf32, #tpu.memory_space<vmem>>, %arg3: memref<1x16xf32, #tpu.memory_space<vmem>>, %arg4: memref<16x16xf32, #tpu.memory_space<vmem>>, %arg5: memref<1x16xf32, #tpu.memory_space<vmem>>, %arg6: memref<9x16xf32, #tpu.memory_space<vmem>>, %arg7: memref<1x16xf32, #tpu.memory_space<vmem>>, %arg8: memref<1x16xf32, #tpu.memory_space<vmem>>, %arg9: memref<16x16xf32, #tpu.memory_space<vmem>>, %arg10: memref<1x16xf32, #tpu.memory_space<vmem>>, %arg11: memref<16x4xf32, #tpu.memory_space<vmem>>, %arg12: memref<1x4xf32, #tpu.memory_space<vmem>>, %arg13: memref<4x16xf32, #tpu.memory_space<vmem>>, %arg14: memref<1x16xf32, #tpu.memory_space<vmem>>, %arg15: memref<1x16xf32, #tpu.memory_space<vmem>>, %arg16: memref<1x16xf32, #tpu.memory_space<vmem>>, %arg17: memref<1x64x16xf32, #tpu.memory_space<vmem>>, %arg18: memref<10x10x8xf32, #tpu.memory_space<vmem>>, %arg19: memref<10x10x16xf32, #tpu.memory_space<vmem>>) attributes {dimension_semantics = [#tpu.dimension_semantics<parallel>], iteration_bounds = array<i64: 2>, scalar_prefetch = 0 : i64, scratch_operands = 2 : i64, tpu.core_type = #tpu.core_type<tc>, window_params = [{transform_indices = @transform_0, window_bounds = array<i64: 1, 8, 8, 8>}, {pipeline_mode = #tpu.pipeline_mode<synchronous>, transform_indices = @transform_1, window_bounds = array<i64: 9, 8, 16>}, {pipeline_mode = #tpu.pipeline_mode<synchronous>, transform_indices = @transform_2, window_bounds = array<i64: 1, 16>}, {pipeline_mode = #tpu.pipeline_mode<synchronous>, transform_indices = @transform_3, window_bounds = array<i64: 16, 16>}, {pipeline_mode = #tpu.pipeline_mode<synchronous>, transform_indices = @transform_4, window_bounds = array<i64: 1, 16>}, {pipeline_mode = #tpu.pipeline_mode<synchronous>, transform_indices = @transform_5, window_bounds = array<i64: 9, 16>}, {pipeline_mode = #tpu.pipeline_mode<synchronous>, transform_indices = @transform_6, window_bounds = array<i64: 1, 16>}, {pipeline_mode = #tpu.pipeline_mode<synchronous>, transform_indices = @transform_7, window_bounds = array<i64: 1, 16>}, {pipeline_mode = #tpu.pipeline_mode<synchronous>, transform_indices = @transform_8, window_bounds = array<i64: 16, 16>}, {pipeline_mode = #tpu.pipeline_mode<synchronous>, transform_indices = @transform_9, window_bounds = array<i64: 1, 16>}, {pipeline_mode = #tpu.pipeline_mode<synchronous>, transform_indices = @transform_10, window_bounds = array<i64: 16, 4>}, {pipeline_mode = #tpu.pipeline_mode<synchronous>, transform_indices = @transform_11, window_bounds = array<i64: 1, 4>}, {pipeline_mode = #tpu.pipeline_mode<synchronous>, transform_indices = @transform_12, window_bounds = array<i64: 4, 16>}, {pipeline_mode = #tpu.pipeline_mode<synchronous>, transform_indices = @transform_13, window_bounds = array<i64: 1, 16>}, {pipeline_mode = #tpu.pipeline_mode<synchronous>, transform_indices = @transform_14, window_bounds = array<i64: 1, 16>}, {pipeline_mode = #tpu.pipeline_mode<synchronous>, transform_indices = @transform_15, window_bounds = array<i64: 1, 16>}, {transform_indices = @transform_16, window_bounds = array<i64: 1, 64, 16>}]} {
    %c0 = arith.constant 0 : index
    %c0_0 = arith.constant 0 : index
    %c0_1 = arith.constant 0 : index
    %c0_2 = arith.constant 0 : index
    %0 = vector.load %arg1[%c0, %c0_0, %c0_1, %c0_2] : memref<1x8x8x8xf32, #tpu.memory_space<vmem>>, vector<1x8x8x8xf32>
    %1 = vector.shape_cast %0 : vector<1x8x8x8xf32> to vector<8x8x8xf32>
    %cst = arith.constant 0.000000e+00 : f32
    %2 = vector.broadcast %cst : f32 to vector<1x10x8xf32>
    %cst_3 = arith.constant 0.000000e+00 : f32
    %3 = vector.broadcast %cst_3 : f32 to vector<10x1x8xf32>
    %c0_4 = arith.constant 0 : index
    %c0_5 = arith.constant 0 : index
    %c0_6 = arith.constant 0 : index
    %4 = vector.load %arg18[%c0_4, %c0_5, %c0_6] : memref<10x10x8xf32, #tpu.memory_space<vmem>>, vector<1x10x8xf32>
    tpu.vector_store %arg18[%c0_4, %c0_5, %c0_6], %2 {strides = array<i32>} : memref<10x10x8xf32, #tpu.memory_space<vmem>>, vector<1x10x8xf32>,
    %c9 = arith.constant 9 : index
    %c0_7 = arith.constant 0 : index
    %c0_8 = arith.constant 0 : index
    %5 = vector.load %arg18[%c9, %c0_7, %c0_8] : memref<10x10x8xf32, #tpu.memory_space<vmem>>, vector<1x10x8xf32>
    tpu.vector_store %arg18[%c9, %c0_7, %c0_8], %2 {strides = array<i32>} : memref<10x10x8xf32, #tpu.memory_space<vmem>>, vector<1x10x8xf32>,
    %c0_9 = arith.constant 0 : index
    %c0_10 = arith.constant 0 : index
    %c0_11 = arith.constant 0 : index
    %6 = vector.load %arg18[%c0_9, %c0_10, %c0_11] : memref<10x10x8xf32, #tpu.memory_space<vmem>>, vector<10x1x8xf32>
    tpu.vector_store %arg18[%c0_9, %c0_10, %c0_11], %3 {strides = array<i32>} : memref<10x10x8xf32, #tpu.memory_space<vmem>>, vector<10x1x8xf32>,
    %c0_12 = arith.constant 0 : index
    %c9_13 = arith.constant 9 : index
    %c0_14 = arith.constant 0 : index
    %7 = vector.load %arg18[%c0_12, %c9_13, %c0_14] : memref<10x10x8xf32, #tpu.memory_space<vmem>>, vector<10x1x8xf32>
    tpu.vector_store %arg18[%c0_12, %c9_13, %c0_14], %3 {strides = array<i32>} : memref<10x10x8xf32, #tpu.memory_space<vmem>>, vector<10x1x8xf32>,
    %c1 = arith.constant 1 : index
    %c1_15 = arith.constant 1 : index
    %c0_16 = arith.constant 0 : index
    %8 = vector.load %arg18[%c1, %c1_15, %c0_16] : memref<10x10x8xf32, #tpu.memory_space<vmem>>, vector<8x8x8xf32>
    tpu.vector_store %arg18[%c1, %c1_15, %c0_16], %1 {strides = array<i32>} : memref<10x10x8xf32, #tpu.memory_space<vmem>>, vector<8x8x8xf32>,
    %cst_17 = arith.constant 0.000000e+00 : f32
    %9 = vector.broadcast %cst_17 : f32 to vector<64x16xf32>
    %c0_18 = arith.constant 0 : index
    %c0_19 = arith.constant 0 : index
    %c0_20 = arith.constant 0 : index
    %10 = vector.load %arg18[%c0_18, %c0_19, %c0_20] : memref<10x10x8xf32, #tpu.memory_space<vmem>>, vector<8x8x8xf32>
    %11 = vector.shape_cast %10 : vector<8x8x8xf32> to vector<64x8xf32>
    %c0_21 = arith.constant 0 : index
    %c0_22 = arith.constant 0 : index
    %c0_23 = arith.constant 0 : index
    %12 = vector.load %arg2[%c0_21, %c0_22, %c0_23] : memref<9x8x16xf32, #tpu.memory_space<vmem>>, vector<1x8x16xf32>
    %13 = vector.shape_cast %12 : vector<1x8x16xf32> to vector<8x16xf32>
    %cst_24 = arith.constant dense<0.000000e+00> : vector<64x16xf32>
    %14 = tpu.matmul %11, %13, %cst_24 {dimension_numbers = #tpu.dot_dimension_numbers<[1], [0], [0], [1], [0, 0, 1, 1], [], []>} : vector<64x8xf32>, vector<8x16xf32>, vector<64x16xf32> -> vector<64x16xf32>
    %15 = arith.addf %9, %14 : vector<64x16xf32>
    %c0_25 = arith.constant 0 : index
    %c1_26 = arith.constant 1 : index
    %c0_27 = arith.constant 0 : index
    %16 = vector.load %arg18[%c0_25, %c1_26, %c0_27] : memref<10x10x8xf32, #tpu.memory_space<vmem>>, vector<8x8x8xf32>
    %17 = vector.shape_cast %16 : vector<8x8x8xf32> to vector<64x8xf32>
    %c1_28 = arith.constant 1 : index
    %c0_29 = arith.constant 0 : index
    %c0_30 = arith.constant 0 : index
    %18 = vector.load %arg2[%c1_28, %c0_29, %c0_30] : memref<9x8x16xf32, #tpu.memory_space<vmem>>, vector<1x8x16xf32>
    %19 = vector.shape_cast %18 : vector<1x8x16xf32> to vector<8x16xf32>
    %cst_31 = arith.constant dense<0.000000e+00> : vector<64x16xf32>
    %20 = tpu.matmul %17, %19, %cst_31 {dimension_numbers = #tpu.dot_dimension_numbers<[1], [0], [0], [1], [0, 0, 1, 1], [], []>} : vector<64x8xf32>, vector<8x16xf32>, vector<64x16xf32> -> vector<64x16xf32>
    %21 = arith.addf %15, %20 : vector<64x16xf32>
    %c0_32 = arith.constant 0 : index
    %c2 = arith.constant 2 : index
    %c0_33 = arith.constant 0 : index
    %22 = vector.load %arg18[%c0_32, %c2, %c0_33] : memref<10x10x8xf32, #tpu.memory_space<vmem>>, vector<8x8x8xf32>
    %23 = vector.shape_cast %22 : vector<8x8x8xf32> to vector<64x8xf32>
    %c2_34 = arith.constant 2 : index
    %c0_35 = arith.constant 0 : index
    %c0_36 = arith.constant 0 : index
    %24 = vector.load %arg2[%c2_34, %c0_35, %c0_36] : memref<9x8x16xf32, #tpu.memory_space<vmem>>, vector<1x8x16xf32>
    %25 = vector.shape_cast %24 : vector<1x8x16xf32> to vector<8x16xf32>
    %cst_37 = arith.constant dense<0.000000e+00> : vector<64x16xf32>
    %26 = tpu.matmul %23, %25, %cst_37 {dimension_numbers = #tpu.dot_dimension_numbers<[1], [0], [0], [1], [0, 0, 1, 1], [], []>} : vector<64x8xf32>, vector<8x16xf32>, vector<64x16xf32> -> vector<64x16xf32>
    %27 = arith.addf %21, %26 : vector<64x16xf32>
    %c1_38 = arith.constant 1 : index
    %c0_39 = arith.constant 0 : index
    %c0_40 = arith.constant 0 : index
    %28 = vector.load %arg18[%c1_38, %c0_39, %c0_40] : memref<10x10x8xf32, #tpu.memory_space<vmem>>, vector<8x8x8xf32>
    %29 = vector.shape_cast %28 : vector<8x8x8xf32> to vector<64x8xf32>
    %c3 = arith.constant 3 : index
    %c0_41 = arith.constant 0 : index
    %c0_42 = arith.constant 0 : index
    %30 = vector.load %arg2[%c3, %c0_41, %c0_42] : memref<9x8x16xf32, #tpu.memory_space<vmem>>, vector<1x8x16xf32>
    %31 = vector.shape_cast %30 : vector<1x8x16xf32> to vector<8x16xf32>
    %cst_43 = arith.constant dense<0.000000e+00> : vector<64x16xf32>
    %32 = tpu.matmul %29, %31, %cst_43 {dimension_numbers = #tpu.dot_dimension_numbers<[1], [0], [0], [1], [0, 0, 1, 1], [], []>} : vector<64x8xf32>, vector<8x16xf32>, vector<64x16xf32> -> vector<64x16xf32>
    %33 = arith.addf %27, %32 : vector<64x16xf32>
    %c1_44 = arith.constant 1 : index
    %c1_45 = arith.constant 1 : index
    %c0_46 = arith.constant 0 : index
    %34 = vector.load %arg18[%c1_44, %c1_45, %c0_46] : memref<10x10x8xf32, #tpu.memory_space<vmem>>, vector<8x8x8xf32>
    %35 = vector.shape_cast %34 : vector<8x8x8xf32> to vector<64x8xf32>
    %c4 = arith.constant 4 : index
    %c0_47 = arith.constant 0 : index
    %c0_48 = arith.constant 0 : index
    %36 = vector.load %arg2[%c4, %c0_47, %c0_48] : memref<9x8x16xf32, #tpu.memory_space<vmem>>, vector<1x8x16xf32>
    %37 = vector.shape_cast %36 : vector<1x8x16xf32> to vector<8x16xf32>
    %cst_49 = arith.constant dense<0.000000e+00> : vector<64x16xf32>
    %38 = tpu.matmul %35, %37, %cst_49 {dimension_numbers = #tpu.dot_dimension_numbers<[1], [0], [0], [1], [0, 0, 1, 1], [], []>} : vector<64x8xf32>, vector<8x16xf32>, vector<64x16xf32> -> vector<64x16xf32>
    %39 = arith.addf %33, %38 : vector<64x16xf32>
    %c1_50 = arith.constant 1 : index
    %c2_51 = arith.constant 2 : index
    %c0_52 = arith.constant 0 : index
    %40 = vector.load %arg18[%c1_50, %c2_51, %c0_52] : memref<10x10x8xf32, #tpu.memory_space<vmem>>, vector<8x8x8xf32>
    %41 = vector.shape_cast %40 : vector<8x8x8xf32> to vector<64x8xf32>
    %c5 = arith.constant 5 : index
    %c0_53 = arith.constant 0 : index
    %c0_54 = arith.constant 0 : index
    %42 = vector.load %arg2[%c5, %c0_53, %c0_54] : memref<9x8x16xf32, #tpu.memory_space<vmem>>, vector<1x8x16xf32>
    %43 = vector.shape_cast %42 : vector<1x8x16xf32> to vector<8x16xf32>
    %cst_55 = arith.constant dense<0.000000e+00> : vector<64x16xf32>
    %44 = tpu.matmul %41, %43, %cst_55 {dimension_numbers = #tpu.dot_dimension_numbers<[1], [0], [0], [1], [0, 0, 1, 1], [], []>} : vector<64x8xf32>, vector<8x16xf32>, vector<64x16xf32> -> vector<64x16xf32>
    %45 = arith.addf %39, %44 : vector<64x16xf32>
    %c2_56 = arith.constant 2 : index
    %c0_57 = arith.constant 0 : index
    %c0_58 = arith.constant 0 : index
    %46 = vector.load %arg18[%c2_56, %c0_57, %c0_58] : memref<10x10x8xf32, #tpu.memory_space<vmem>>, vector<8x8x8xf32>
    %47 = vector.shape_cast %46 : vector<8x8x8xf32> to vector<64x8xf32>
    %c6 = arith.constant 6 : index
    %c0_59 = arith.constant 0 : index
    %c0_60 = arith.constant 0 : index
    %48 = vector.load %arg2[%c6, %c0_59, %c0_60] : memref<9x8x16xf32, #tpu.memory_space<vmem>>, vector<1x8x16xf32>
    %49 = vector.shape_cast %48 : vector<1x8x16xf32> to vector<8x16xf32>
    %cst_61 = arith.constant dense<0.000000e+00> : vector<64x16xf32>
    %50 = tpu.matmul %47, %49, %cst_61 {dimension_numbers = #tpu.dot_dimension_numbers<[1], [0], [0], [1], [0, 0, 1, 1], [], []>} : vector<64x8xf32>, vector<8x16xf32>, vector<64x16xf32> -> vector<64x16xf32>
    %51 = arith.addf %45, %50 : vector<64x16xf32>
    %c2_62 = arith.constant 2 : index
    %c1_63 = arith.constant 1 : index
    %c0_64 = arith.constant 0 : index
    %52 = vector.load %arg18[%c2_62, %c1_63, %c0_64] : memref<10x10x8xf32, #tpu.memory_space<vmem>>, vector<8x8x8xf32>
    %53 = vector.shape_cast %52 : vector<8x8x8xf32> to vector<64x8xf32>
    %c7 = arith.constant 7 : index
    %c0_65 = arith.constant 0 : index
    %c0_66 = arith.constant 0 : index
    %54 = vector.load %arg2[%c7, %c0_65, %c0_66] : memref<9x8x16xf32, #tpu.memory_space<vmem>>, vector<1x8x16xf32>
    %55 = vector.shape_cast %54 : vector<1x8x16xf32> to vector<8x16xf32>
    %cst_67 = arith.constant dense<0.000000e+00> : vector<64x16xf32>
    %56 = tpu.matmul %53, %55, %cst_67 {dimension_numbers = #tpu.dot_dimension_numbers<[1], [0], [0], [1], [0, 0, 1, 1], [], []>} : vector<64x8xf32>, vector<8x16xf32>, vector<64x16xf32> -> vector<64x16xf32>
    %57 = arith.addf %51, %56 : vector<64x16xf32>
    %c2_68 = arith.constant 2 : index
    %c2_69 = arith.constant 2 : index
    %c0_70 = arith.constant 0 : index
    %58 = vector.load %arg18[%c2_68, %c2_69, %c0_70] : memref<10x10x8xf32, #tpu.memory_space<vmem>>, vector<8x8x8xf32>
    %59 = vector.shape_cast %58 : vector<8x8x8xf32> to vector<64x8xf32>
    %c8 = arith.constant 8 : index
    %c0_71 = arith.constant 0 : index
    %c0_72 = arith.constant 0 : index
    %60 = vector.load %arg2[%c8, %c0_71, %c0_72] : memref<9x8x16xf32, #tpu.memory_space<vmem>>, vector<1x8x16xf32>
    %61 = vector.shape_cast %60 : vector<1x8x16xf32> to vector<8x16xf32>
    %cst_73 = arith.constant dense<0.000000e+00> : vector<64x16xf32>
    %62 = tpu.matmul %59, %61, %cst_73 {dimension_numbers = #tpu.dot_dimension_numbers<[1], [0], [0], [1], [0, 0, 1, 1], [], []>} : vector<64x8xf32>, vector<8x16xf32>, vector<64x16xf32> -> vector<64x16xf32>
    %63 = arith.addf %57, %62 : vector<64x16xf32>
    %c0_74 = arith.constant 0 : index
    %c0_75 = arith.constant 0 : index
    %64 = vector.load %arg3[%c0_74, %c0_75] : memref<1x16xf32, #tpu.memory_space<vmem>>, vector<1x16xf32>
    %65 = vector.broadcast %64 : vector<1x16xf32> to vector<64x16xf32>
    %66 = arith.addf %63, %65 : vector<64x16xf32>
    %cst_76 = arith.constant 5.000000e-01 : f32
    %67 = vector.broadcast %cst_76 : f32 to vector<64x16xf32>
    %68 = arith.mulf %67, %66 : vector<64x16xf32>
    %cst_77 = arith.constant 0.707106769 : f32
    %69 = vector.broadcast %cst_77 : f32 to vector<64x16xf32>
    %70 = arith.mulf %66, %69 : vector<64x16xf32>
    %cst_78 = arith.constant 0.000000e+00 : f32
    %71 = vector.broadcast %cst_78 : f32 to vector<64x16xf32>
    %72 = arith.cmpf olt, %70, %71 : vector<64x16xf32>
    %cst_79 = arith.constant -1.000000e+00 : f32
    %cst_80 = arith.constant 1.000000e+00 : f32
    %73 = vector.broadcast %cst_79 : f32 to vector<64x16xf32>
    %74 = vector.broadcast %cst_80 : f32 to vector<64x16xf32>
    %75 = arith.select %72, %73, %74 : vector<64x16xi1>, vector<64x16xf32>
    %76 = math.absf %70 : vector<64x16xf32>
    %cst_81 = arith.constant 0.327591091 : f32
    %77 = vector.broadcast %cst_81 : f32 to vector<64x16xf32>
    %78 = arith.mulf %77, %76 : vector<64x16xf32>
    %cst_82 = arith.constant 1.000000e+00 : f32
    %79 = vector.broadcast %cst_82 : f32 to vector<64x16xf32>
    %80 = arith.addf %79, %78 : vector<64x16xf32>
    %cst_83 = arith.constant 1.000000e+00 : f32
    %81 = vector.broadcast %cst_83 : f32 to vector<64x16xf32>
    %82 = arith.divf %81, %80 : vector<64x16xf32>
    %cst_84 = arith.constant 1.06140542 : f32
    %83 = vector.broadcast %cst_84 : f32 to vector<64x16xf32>
    %84 = arith.mulf %82, %83 : vector<64x16xf32>
    %cst_85 = arith.constant -1.45315206 : f32
    %85 = vector.broadcast %cst_85 : f32 to vector<64x16xf32>
    %86 = arith.addf %85, %84 : vector<64x16xf32>
    %87 = arith.mulf %82, %86 : vector<64x16xf32>
    %cst_86 = arith.constant 1.42141378 : f32
    %88 = vector.broadcast %cst_86 : f32 to vector<64x16xf32>
    %89 = arith.addf %88, %87 : vector<64x16xf32>
    %90 = arith.mulf %82, %89 : vector<64x16xf32>
    %cst_87 = arith.constant -0.284496725 : f32
    %91 = vector.broadcast %cst_87 : f32 to vector<64x16xf32>
    %92 = arith.addf %91, %90 : vector<64x16xf32>
    %93 = arith.mulf %82, %92 : vector<64x16xf32>
    %cst_88 = arith.constant 0.254829586 : f32
    %94 = vector.broadcast %cst_88 : f32 to vector<64x16xf32>
    %95 = arith.addf %94, %93 : vector<64x16xf32>
    %96 = arith.mulf %82, %95 : vector<64x16xf32>
    %cst_89 = arith.constant 0.000000e+00 : f32
    %97 = vector.broadcast %cst_89 : f32 to vector<64x16xf32>
    %98 = arith.subf %97, %76 : vector<64x16xf32>
    %99 = arith.mulf %98, %76 : vector<64x16xf32>
    %100 = math.exp %99 : vector<64x16xf32>
    %101 = arith.mulf %96, %100 : vector<64x16xf32>
    %cst_90 = arith.constant 1.000000e+00 : f32
    %102 = vector.broadcast %cst_90 : f32 to vector<64x16xf32>
    %103 = arith.subf %102, %101 : vector<64x16xf32>
    %104 = arith.mulf %75, %103 : vector<64x16xf32>
    %cst_91 = arith.constant 1.000000e+00 : f32
    %105 = vector.broadcast %cst_91 : f32 to vector<64x16xf32>
    %106 = arith.addf %105, %104 : vector<64x16xf32>
    %107 = arith.mulf %68, %106 : vector<64x16xf32>
    %c0_92 = arith.constant 0 : index
    %c0_93 = arith.constant 0 : index
    %108 = vector.load %arg4[%c0_92, %c0_93] : memref<16x16xf32, #tpu.memory_space<vmem>>, vector<16x16xf32>
    %cst_94 = arith.constant dense<0.000000e+00> : vector<64x16xf32>
    %109 = tpu.matmul %107, %108, %cst_94 {dimension_numbers = #tpu.dot_dimension_numbers<[1], [0], [0], [1], [0, 0, 1, 1], [], []>} : vector<64x16xf32>, vector<16x16xf32>, vector<64x16xf32> -> vector<64x16xf32>
    %c0_95 = arith.constant 0 : index
    %c0_96 = arith.constant 0 : index
    %110 = vector.load %arg5[%c0_95, %c0_96] : memref<1x16xf32, #tpu.memory_space<vmem>>, vector<1x16xf32>
    %111 = vector.broadcast %110 : vector<1x16xf32> to vector<64x16xf32>
    %112 = arith.addf %109, %111 : vector<64x16xf32>
    %c0_97 = arith.constant 0 : index
    %c0_98 = arith.constant 0 : index
    %113 = vector.load %arg6[%c0_97, %c0_98] : memref<9x16xf32, #tpu.memory_space<vmem>>, vector<1x16xf32>
    %114 = vector.shape_cast %113 : vector<1x16xf32> to vector<1x1x16xf32>
    %c1_99 = arith.constant 1 : index
    %c0_100 = arith.constant 0 : index
    %115 = vector.load %arg6[%c1_99, %c0_100] : memref<9x16xf32, #tpu.memory_space<vmem>>, vector<1x16xf32>
    %116 = vector.shape_cast %115 : vector<1x16xf32> to vector<1x1x16xf32>
    %c2_101 = arith.constant 2 : index
    %c0_102 = arith.constant 0 : index
    %117 = vector.load %arg6[%c2_101, %c0_102] : memref<9x16xf32, #tpu.memory_space<vmem>>, vector<1x16xf32>
    %118 = vector.shape_cast %117 : vector<1x16xf32> to vector<1x1x16xf32>
    %c3_103 = arith.constant 3 : index
    %c0_104 = arith.constant 0 : index
    %119 = vector.load %arg6[%c3_103, %c0_104] : memref<9x16xf32, #tpu.memory_space<vmem>>, vector<1x16xf32>
    %120 = vector.shape_cast %119 : vector<1x16xf32> to vector<1x1x16xf32>
    %c4_105 = arith.constant 4 : index
    %c0_106 = arith.constant 0 : index
    %121 = vector.load %arg6[%c4_105, %c0_106] : memref<9x16xf32, #tpu.memory_space<vmem>>, vector<1x16xf32>
    %122 = vector.shape_cast %121 : vector<1x16xf32> to vector<1x1x16xf32>
    %c5_107 = arith.constant 5 : index
    %c0_108 = arith.constant 0 : index
    %123 = vector.load %arg6[%c5_107, %c0_108] : memref<9x16xf32, #tpu.memory_space<vmem>>, vector<1x16xf32>
    %124 = vector.shape_cast %123 : vector<1x16xf32> to vector<1x1x16xf32>
    %c6_109 = arith.constant 6 : index
    %c0_110 = arith.constant 0 : index
    %125 = vector.load %arg6[%c6_109, %c0_110] : memref<9x16xf32, #tpu.memory_space<vmem>>, vector<1x16xf32>
    %126 = vector.shape_cast %125 : vector<1x16xf32> to vector<1x1x16xf32>
    %c7_111 = arith.constant 7 : index
    %c0_112 = arith.constant 0 : index
    %127 = vector.load %arg6[%c7_111, %c0_112] : memref<9x16xf32, #tpu.memory_space<vmem>>, vector<1x16xf32>
    %128 = vector.shape_cast %127 : vector<1x16xf32> to vector<1x1x16xf32>
    %c8_113 = arith.constant 8 : index
    %c0_114 = arith.constant 0 : index
    %129 = vector.load %arg6[%c8_113, %c0_114] : memref<9x16xf32, #tpu.memory_space<vmem>>, vector<1x16xf32>
    %130 = vector.shape_cast %129 : vector<1x16xf32> to vector<1x1x16xf32>
    %131 = vector.shape_cast %112 : vector<64x16xf32> to vector<8x8x16xf32>
    %cst_115 = arith.constant 0.000000e+00 : f32
    %132 = vector.broadcast %cst_115 : f32 to vector<1x10x16xf32>
    %cst_116 = arith.constant 0.000000e+00 : f32
    %133 = vector.broadcast %cst_116 : f32 to vector<10x1x16xf32>
    %c0_117 = arith.constant 0 : index
    %c0_118 = arith.constant 0 : index
    %c0_119 = arith.constant 0 : index
    %134 = vector.load %arg19[%c0_117, %c0_118, %c0_119] : memref<10x10x16xf32, #tpu.memory_space<vmem>>, vector<1x10x16xf32>
    tpu.vector_store %arg19[%c0_117, %c0_118, %c0_119], %132 {strides = array<i32>} : memref<10x10x16xf32, #tpu.memory_space<vmem>>, vector<1x10x16xf32>,
    %c9_120 = arith.constant 9 : index
    %c0_121 = arith.constant 0 : index
    %c0_122 = arith.constant 0 : index
    %135 = vector.load %arg19[%c9_120, %c0_121, %c0_122] : memref<10x10x16xf32, #tpu.memory_space<vmem>>, vector<1x10x16xf32>
    tpu.vector_store %arg19[%c9_120, %c0_121, %c0_122], %132 {strides = array<i32>} : memref<10x10x16xf32, #tpu.memory_space<vmem>>, vector<1x10x16xf32>,
    %c0_123 = arith.constant 0 : index
    %c0_124 = arith.constant 0 : index
    %c0_125 = arith.constant 0 : index
    %136 = vector.load %arg19[%c0_123, %c0_124, %c0_125] : memref<10x10x16xf32, #tpu.memory_space<vmem>>, vector<10x1x16xf32>
    tpu.vector_store %arg19[%c0_123, %c0_124, %c0_125], %133 {strides = array<i32>} : memref<10x10x16xf32, #tpu.memory_space<vmem>>, vector<10x1x16xf32>,
    %c0_126 = arith.constant 0 : index
    %c9_127 = arith.constant 9 : index
    %c0_128 = arith.constant 0 : index
    %137 = vector.load %arg19[%c0_126, %c9_127, %c0_128] : memref<10x10x16xf32, #tpu.memory_space<vmem>>, vector<10x1x16xf32>
    tpu.vector_store %arg19[%c0_126, %c9_127, %c0_128], %133 {strides = array<i32>} : memref<10x10x16xf32, #tpu.memory_space<vmem>>, vector<10x1x16xf32>,
    %c1_129 = arith.constant 1 : index
    %c1_130 = arith.constant 1 : index
    %c0_131 = arith.constant 0 : index
    %138 = vector.load %arg19[%c1_129, %c1_130, %c0_131] : memref<10x10x16xf32, #tpu.memory_space<vmem>>, vector<8x8x16xf32>
    tpu.vector_store %arg19[%c1_129, %c1_130, %c0_131], %131 {strides = array<i32>} : memref<10x10x16xf32, #tpu.memory_space<vmem>>, vector<8x8x16xf32>,
    %c0_132 = arith.constant 0 : index
    %c0_133 = arith.constant 0 : index
    %c0_134 = arith.constant 0 : index
    %139 = vector.load %arg19[%c0_132, %c0_133, %c0_134] : memref<10x10x16xf32, #tpu.memory_space<vmem>>, vector<8x8x16xf32>
    %140 = vector.broadcast %114 : vector<1x1x16xf32> to vector<8x8x16xf32>
    %141 = arith.mulf %139, %140 : vector<8x8x16xf32>
    %c0_135 = arith.constant 0 : index
    %c1_136 = arith.constant 1 : index
    %c0_137 = arith.constant 0 : index
    %142 = vector.load %arg19[%c0_135, %c1_136, %c0_137] : memref<10x10x16xf32, #tpu.memory_space<vmem>>, vector<8x8x16xf32>
    %143 = vector.broadcast %116 : vector<1x1x16xf32> to vector<8x8x16xf32>
    %144 = arith.mulf %142, %143 : vector<8x8x16xf32>
    %145 = arith.addf %141, %144 : vector<8x8x16xf32>
    %c0_138 = arith.constant 0 : index
    %c2_139 = arith.constant 2 : index
    %c0_140 = arith.constant 0 : index
    %146 = vector.load %arg19[%c0_138, %c2_139, %c0_140] : memref<10x10x16xf32, #tpu.memory_space<vmem>>, vector<8x8x16xf32>
    %147 = vector.broadcast %118 : vector<1x1x16xf32> to vector<8x8x16xf32>
    %148 = arith.mulf %146, %147 : vector<8x8x16xf32>
    %149 = arith.addf %145, %148 : vector<8x8x16xf32>
    %c1_141 = arith.constant 1 : index
    %c0_142 = arith.constant 0 : index
    %c0_143 = arith.constant 0 : index
    %150 = vector.load %arg19[%c1_141, %c0_142, %c0_143] : memref<10x10x16xf32, #tpu.memory_space<vmem>>, vector<8x8x16xf32>
    %151 = vector.broadcast %120 : vector<1x1x16xf32> to vector<8x8x16xf32>
    %152 = arith.mulf %150, %151 : vector<8x8x16xf32>
    %153 = arith.addf %149, %152 : vector<8x8x16xf32>
    %c1_144 = arith.constant 1 : index
    %c1_145 = arith.constant 1 : index
    %c0_146 = arith.constant 0 : index
    %154 = vector.load %arg19[%c1_144, %c1_145, %c0_146] : memref<10x10x16xf32, #tpu.memory_space<vmem>>, vector<8x8x16xf32>
    %155 = vector.broadcast %122 : vector<1x1x16xf32> to vector<8x8x16xf32>
    %156 = arith.mulf %154, %155 : vector<8x8x16xf32>
    %157 = arith.addf %153, %156 : vector<8x8x16xf32>
    %c1_147 = arith.constant 1 : index
    %c2_148 = arith.constant 2 : index
    %c0_149 = arith.constant 0 : index
    %158 = vector.load %arg19[%c1_147, %c2_148, %c0_149] : memref<10x10x16xf32, #tpu.memory_space<vmem>>, vector<8x8x16xf32>
    %159 = vector.broadcast %124 : vector<1x1x16xf32> to vector<8x8x16xf32>
    %160 = arith.mulf %158, %159 : vector<8x8x16xf32>
    %161 = arith.addf %157, %160 : vector<8x8x16xf32>
    %c2_150 = arith.constant 2 : index
    %c0_151 = arith.constant 0 : index
    %c0_152 = arith.constant 0 : index
    %162 = vector.load %arg19[%c2_150, %c0_151, %c0_152] : memref<10x10x16xf32, #tpu.memory_space<vmem>>, vector<8x8x16xf32>
    %163 = vector.broadcast %126 : vector<1x1x16xf32> to vector<8x8x16xf32>
    %164 = arith.mulf %162, %163 : vector<8x8x16xf32>
    %165 = arith.addf %161, %164 : vector<8x8x16xf32>
    %c2_153 = arith.constant 2 : index
    %c1_154 = arith.constant 1 : index
    %c0_155 = arith.constant 0 : index
    %166 = vector.load %arg19[%c2_153, %c1_154, %c0_155] : memref<10x10x16xf32, #tpu.memory_space<vmem>>, vector<8x8x16xf32>
    %167 = vector.broadcast %128 : vector<1x1x16xf32> to vector<8x8x16xf32>
    %168 = arith.mulf %166, %167 : vector<8x8x16xf32>
    %169 = arith.addf %165, %168 : vector<8x8x16xf32>
    %c2_156 = arith.constant 2 : index
    %c2_157 = arith.constant 2 : index
    %c0_158 = arith.constant 0 : index
    %170 = vector.load %arg19[%c2_156, %c2_157, %c0_158] : memref<10x10x16xf32, #tpu.memory_space<vmem>>, vector<8x8x16xf32>
    %171 = vector.broadcast %130 : vector<1x1x16xf32> to vector<8x8x16xf32>
    %172 = arith.mulf %170, %171 : vector<8x8x16xf32>
    %173 = arith.addf %169, %172 : vector<8x8x16xf32>
    %174 = vector.shape_cast %173 : vector<8x8x16xf32> to vector<64x16xf32>
    %c0_159 = arith.constant 0 : index
    %c0_160 = arith.constant 0 : index
    %175 = vector.load %arg7[%c0_159, %c0_160] : memref<1x16xf32, #tpu.memory_space<vmem>>, vector<1x16xf32>
    %176 = vector.broadcast %175 : vector<1x16xf32> to vector<64x16xf32>
    %177 = arith.addf %174, %176 : vector<64x16xf32>
    %c0_161 = arith.constant 0 : index
    %c0_162 = arith.constant 0 : index
    %178 = vector.load %arg8[%c0_161, %c0_162] : memref<1x16xf32, #tpu.memory_space<vmem>>, vector<1x16xf32>
    %179 = vector.broadcast %178 : vector<1x16xf32> to vector<64x16xf32>
    %180 = arith.mulf %179, %177 : vector<64x16xf32>
    %181 = arith.addf %180, %112 : vector<64x16xf32>
    %c0_163 = arith.constant 0 : index
    %c0_164 = arith.constant 0 : index
    %182 = vector.load %arg9[%c0_163, %c0_164] : memref<16x16xf32, #tpu.memory_space<vmem>>, vector<16x16xf32>
    %cst_165 = arith.constant dense<0.000000e+00> : vector<64x16xf32>
    %183 = tpu.matmul %181, %182, %cst_165 {dimension_numbers = #tpu.dot_dimension_numbers<[1], [0], [0], [1], [0, 0, 1, 1], [], []>} : vector<64x16xf32>, vector<16x16xf32>, vector<64x16xf32> -> vector<64x16xf32>
    %c0_166 = arith.constant 0 : index
    %c0_167 = arith.constant 0 : index
    %184 = vector.load %arg10[%c0_166, %c0_167] : memref<1x16xf32, #tpu.memory_space<vmem>>, vector<1x16xf32>
    %185 = vector.broadcast %184 : vector<1x16xf32> to vector<64x16xf32>
    %186 = arith.addf %183, %185 : vector<64x16xf32>
    %cst_168 = arith.constant dense<0.000000e+00> : vector<16xf32>
    %187 = vector.multi_reduction <add>, %186, %cst_168 [0] : vector<64x16xf32> to vector<16xf32>
    %188 = vector.shape_cast %187 : vector<16xf32> to vector<1x16xf32>
    %cst_169 = arith.constant 6.400000e+01 : f32
    %189 = vector.broadcast %cst_169 : f32 to vector<1x16xf32>
    %190 = arith.divf %188, %189 : vector<1x16xf32>
    %c0_170 = arith.constant 0 : index
    %c0_171 = arith.constant 0 : index
    %191 = vector.load %arg11[%c0_170, %c0_171] : memref<16x4xf32, #tpu.memory_space<vmem>>, vector<16x4xf32>
    %cst_172 = arith.constant dense<0.000000e+00> : vector<1x4xf32>
    %192 = tpu.matmul %190, %191, %cst_172 {dimension_numbers = #tpu.dot_dimension_numbers<[1], [0], [0], [1], [0, 0, 1, 1], [], []>} : vector<1x16xf32>, vector<16x4xf32>, vector<1x4xf32> -> vector<1x4xf32>
    %c0_173 = arith.constant 0 : index
    %c0_174 = arith.constant 0 : index
    %193 = vector.load %arg12[%c0_173, %c0_174] : memref<1x4xf32, #tpu.memory_space<vmem>>, vector<1x4xf32>
    %194 = arith.addf %192, %193 : vector<1x4xf32>
    %cst_175 = arith.constant 0.000000e+00 : f32
    %195 = vector.broadcast %cst_175 : f32 to vector<1x4xf32>
    %196 = arith.maximumf %194, %195 : vector<1x4xf32>
    %c0_176 = arith.constant 0 : index
    %c0_177 = arith.constant 0 : index
    %197 = vector.load %arg13[%c0_176, %c0_177] : memref<4x16xf32, #tpu.memory_space<vmem>>, vector<4x16xf32>
    %cst_178 = arith.constant dense<0.000000e+00> : vector<1x16xf32>
    %198 = tpu.matmul %196, %197, %cst_178 {dimension_numbers = #tpu.dot_dimension_numbers<[1], [0], [0], [1], [0, 0, 1, 1], [], []>} : vector<1x4xf32>, vector<4x16xf32>, vector<1x16xf32> -> vector<1x16xf32>
    %c0_179 = arith.constant 0 : index
    %c0_180 = arith.constant 0 : index
    %199 = vector.load %arg14[%c0_179, %c0_180] : memref<1x16xf32, #tpu.memory_space<vmem>>, vector<1x16xf32>
    %200 = arith.addf %198, %199 : vector<1x16xf32>
    %cst_181 = arith.constant 0.000000e+00 : f32
    %201 = vector.broadcast %cst_181 : f32 to vector<1x16xf32>
    %202 = arith.subf %201, %200 : vector<1x16xf32>
    %203 = math.exp %202 : vector<1x16xf32>
    %cst_182 = arith.constant 1.000000e+00 : f32
    %204 = vector.broadcast %cst_182 : f32 to vector<1x16xf32>
    %205 = arith.addf %204, %203 : vector<1x16xf32>
    %cst_183 = arith.constant 1.000000e+00 : f32
    %206 = vector.broadcast %cst_183 : f32 to vector<1x16xf32>
    %207 = arith.divf %206, %205 : vector<1x16xf32>
    %208 = vector.broadcast %207 : vector<1x16xf32> to vector<64x16xf32>
    %209 = arith.mulf %186, %208 : vector<64x16xf32>
    %cst_184 = arith.constant dense<0.000000e+00> : vector<64xf32>
    %210 = vector.multi_reduction <add>, %107, %cst_184 [1] : vector<64x16xf32> to vector<64xf32>
    %211 = vector.shape_cast %210 : vector<64xf32> to vector<64x1xf32>
    %cst_185 = arith.constant dense<0.000000e+00> : vector<1xf32>
    %212 = vector.multi_reduction <add>, %211, %cst_185 [0] : vector<64x1xf32> to vector<1xf32>
    %213 = vector.shape_cast %212 : vector<1xf32> to vector<1x1xf32>
    %cst_186 = arith.constant 1.024000e+03 : f32
    %214 = vector.broadcast %cst_186 : f32 to vector<1x1xf32>
    %215 = arith.divf %213, %214 : vector<1x1xf32>
    %216 = vector.broadcast %215 : vector<1x1xf32> to vector<64x16xf32>
    %217 = arith.subf %107, %216 : vector<64x16xf32>
    %218 = arith.mulf %217, %217 : vector<64x16xf32>
    %cst_187 = arith.constant dense<0.000000e+00> : vector<64xf32>
    %219 = vector.multi_reduction <add>, %218, %cst_187 [1] : vector<64x16xf32> to vector<64xf32>
    %220 = vector.shape_cast %219 : vector<64xf32> to vector<64x1xf32>
    %cst_188 = arith.constant dense<0.000000e+00> : vector<1xf32>
    %221 = vector.multi_reduction <add>, %220, %cst_188 [0] : vector<64x1xf32> to vector<1xf32>
    %222 = vector.shape_cast %221 : vector<1xf32> to vector<1x1xf32>
    %cst_189 = arith.constant 1.024000e+03 : f32
    %223 = vector.broadcast %cst_189 : f32 to vector<1x1xf32>
    %224 = arith.divf %222, %223 : vector<1x1xf32>
    %cst_190 = arith.constant 9.99999974E-6 : f32
    %225 = vector.broadcast %cst_190 : f32 to vector<1x1xf32>
    %226 = arith.addf %224, %225 : vector<1x1xf32>
    %227 = math.rsqrt %226 : vector<1x1xf32>
    %228 = vector.broadcast %227 : vector<1x1xf32> to vector<64x16xf32>
    %229 = arith.mulf %217, %228 : vector<64x16xf32>
    %c0_191 = arith.constant 0 : index
    %c0_192 = arith.constant 0 : index
    %230 = vector.load %arg15[%c0_191, %c0_192] : memref<1x16xf32, #tpu.memory_space<vmem>>, vector<1x16xf32>
    %231 = vector.broadcast %230 : vector<1x16xf32> to vector<64x16xf32>
    %232 = arith.mulf %229, %231 : vector<64x16xf32>
    %c0_193 = arith.constant 0 : index
    %c0_194 = arith.constant 0 : index
    %233 = vector.load %arg16[%c0_193, %c0_194] : memref<1x16xf32, #tpu.memory_space<vmem>>, vector<1x16xf32>
    %234 = vector.broadcast %233 : vector<1x16xf32> to vector<64x16xf32>
    %235 = arith.addf %232, %234 : vector<64x16xf32>
    %236 = vector.shape_cast %235 : vector<64x16xf32> to vector<8x8x16xf32>
    %c1_195 = arith.constant 1 : index
    %c1_196 = arith.constant 1 : index
    %c0_197 = arith.constant 0 : index
    %237 = vector.load %arg19[%c1_195, %c1_196, %c0_197] : memref<10x10x16xf32, #tpu.memory_space<vmem>>, vector<8x8x16xf32>
    tpu.vector_store %arg19[%c1_195, %c1_196, %c0_197], %236 {strides = array<i32>} : memref<10x10x16xf32, #tpu.memory_space<vmem>>, vector<8x8x16xf32>,
    %c0_198 = arith.constant 0 : index
    %c0_199 = arith.constant 0 : index
    %c0_200 = arith.constant 0 : index
    %238 = vector.load %arg19[%c0_198, %c0_199, %c0_200] : memref<10x10x16xf32, #tpu.memory_space<vmem>>, vector<8x8x16xf32>
    %c0_201 = arith.constant 0 : index
    %c1_202 = arith.constant 1 : index
    %c0_203 = arith.constant 0 : index
    %239 = vector.load %arg19[%c0_201, %c1_202, %c0_203] : memref<10x10x16xf32, #tpu.memory_space<vmem>>, vector<8x8x16xf32>
    %240 = arith.addf %238, %239 : vector<8x8x16xf32>
    %c0_204 = arith.constant 0 : index
    %c2_205 = arith.constant 2 : index
    %c0_206 = arith.constant 0 : index
    %241 = vector.load %arg19[%c0_204, %c2_205, %c0_206] : memref<10x10x16xf32, #tpu.memory_space<vmem>>, vector<8x8x16xf32>
    %242 = arith.addf %240, %241 : vector<8x8x16xf32>
    %c1_207 = arith.constant 1 : index
    %c0_208 = arith.constant 0 : index
    %c0_209 = arith.constant 0 : index
    %243 = vector.load %arg19[%c1_207, %c0_208, %c0_209] : memref<10x10x16xf32, #tpu.memory_space<vmem>>, vector<8x8x16xf32>
    %244 = arith.addf %242, %243 : vector<8x8x16xf32>
    %c1_210 = arith.constant 1 : index
    %c1_211 = arith.constant 1 : index
    %c0_212 = arith.constant 0 : index
    %245 = vector.load %arg19[%c1_210, %c1_211, %c0_212] : memref<10x10x16xf32, #tpu.memory_space<vmem>>, vector<8x8x16xf32>
    %246 = arith.addf %244, %245 : vector<8x8x16xf32>
    %c1_213 = arith.constant 1 : index
    %c2_214 = arith.constant 2 : index
    %c0_215 = arith.constant 0 : index
    %247 = vector.load %arg19[%c1_213, %c2_214, %c0_215] : memref<10x10x16xf32, #tpu.memory_space<vmem>>, vector<8x8x16xf32>
    %248 = arith.addf %246, %247 : vector<8x8x16xf32>
    %c2_216 = arith.constant 2 : index
    %c0_217 = arith.constant 0 : index
    %c0_218 = arith.constant 0 : index
    %249 = vector.load %arg19[%c2_216, %c0_217, %c0_218] : memref<10x10x16xf32, #tpu.memory_space<vmem>>, vector<8x8x16xf32>
    %250 = arith.addf %248, %249 : vector<8x8x16xf32>
    %c2_219 = arith.constant 2 : index
    %c1_220 = arith.constant 1 : index
    %c0_221 = arith.constant 0 : index
    %251 = vector.load %arg19[%c2_219, %c1_220, %c0_221] : memref<10x10x16xf32, #tpu.memory_space<vmem>>, vector<8x8x16xf32>
    %252 = arith.addf %250, %251 : vector<8x8x16xf32>
    %c2_222 = arith.constant 2 : index
    %c2_223 = arith.constant 2 : index
    %c0_224 = arith.constant 0 : index
    %253 = vector.load %arg19[%c2_222, %c2_223, %c0_224] : memref<10x10x16xf32, #tpu.memory_space<vmem>>, vector<8x8x16xf32>
    %254 = arith.addf %252, %253 : vector<8x8x16xf32>
    %255 = tpu.iota {dimensions = array<i32: 0>} : vector<8x8x1xi32>
    %256 = tpu.iota {dimensions = array<i32: 1>} : vector<8x8x1xi32>
    %c0_i32 = arith.constant 0 : i32
    %257 = vector.broadcast %c0_i32 : i32 to vector<8x8x1xi32>
    %258 = arith.cmpi eq, %255, %257 : vector<8x8x1xi32>
    %259 = arith.extui %258 : vector<8x8x1xi1> to vector<8x8x1xi32>
    %260 = arith.sitofp %259 : vector<8x8x1xi32> to vector<8x8x1xf32>
    %cst_225 = arith.constant 3.000000e+00 : f32
    %261 = vector.broadcast %cst_225 : f32 to vector<8x8x1xf32>
    %262 = arith.subf %261, %260 : vector<8x8x1xf32>
    %c7_i32 = arith.constant 7 : i32
    %263 = vector.broadcast %c7_i32 : i32 to vector<8x8x1xi32>
    %264 = arith.cmpi eq, %255, %263 : vector<8x8x1xi32>
    %265 = arith.extui %264 : vector<8x8x1xi1> to vector<8x8x1xi32>
    %266 = arith.sitofp %265 : vector<8x8x1xi32> to vector<8x8x1xf32>
    %267 = arith.subf %262, %266 : vector<8x8x1xf32>
    %c0_i32_226 = arith.constant 0 : i32
    %268 = vector.broadcast %c0_i32_226 : i32 to vector<8x8x1xi32>
    %269 = arith.cmpi eq, %256, %268 : vector<8x8x1xi32>
    %270 = arith.extui %269 : vector<8x8x1xi1> to vector<8x8x1xi32>
    %271 = arith.sitofp %270 : vector<8x8x1xi32> to vector<8x8x1xf32>
    %cst_227 = arith.constant 3.000000e+00 : f32
    %272 = vector.broadcast %cst_227 : f32 to vector<8x8x1xf32>
    %273 = arith.subf %272, %271 : vector<8x8x1xf32>
    %c7_i32_228 = arith.constant 7 : i32
    %274 = vector.broadcast %c7_i32_228 : i32 to vector<8x8x1xi32>
    %275 = arith.cmpi eq, %256, %274 : vector<8x8x1xi32>
    %276 = arith.extui %275 : vector<8x8x1xi1> to vector<8x8x1xi32>
    %277 = arith.sitofp %276 : vector<8x8x1xi32> to vector<8x8x1xf32>
    %278 = arith.subf %273, %277 : vector<8x8x1xf32>
    %279 = arith.mulf %267, %278 : vector<8x8x1xf32>
    %280 = vector.broadcast %279 : vector<8x8x1xf32> to vector<8x8x16xf32>
    %281 = arith.divf %254, %280 : vector<8x8x16xf32>
    %282 = vector.shape_cast %281 : vector<8x8x16xf32> to vector<64x16xf32>
    %283 = arith.addf %209, %282 : vector<64x16xf32>
    %c0_229 = arith.constant 0 : index
    %c0_230 = arith.constant 0 : index
    %c0_231 = arith.constant 0 : index
    %284 = vector.load %arg17[%c0_229, %c0_230, %c0_231] : memref<1x64x16xf32, #tpu.memory_space<vmem>>, vector<1x64x16xf32>
    %285 = vector.shape_cast %284 : vector<1x64x16xf32> to vector<64x16xf32>
    %286 = vector.shape_cast %283 : vector<64x16xf32> to vector<1x64x16xf32>
    tpu.vector_store %arg17[%c0_229, %c0_230, %c0_231], %286 {strides = array<i32>} : memref<1x64x16xf32, #tpu.memory_space<vmem>>, vector<1x64x16xf32>,
    return
  }
  func.func @transform_0(%arg0: i32) -> (i32, i32, i32, i32) {
    %c0_i32 = arith.constant 0 : i32
    %c0_i32_0 = arith.constant 0 : i32
    %c0_i32_1 = arith.constant 0 : i32
    %c0_i32_2 = arith.constant 0 : i32
    return %arg0, %c0_i32, %c0_i32_0, %c0_i32_1 : i32, i32, i32, i32
  }
  func.func @transform_1(%arg0: i32) -> (i32, i32, i32) {
    %c0_i32 = arith.constant 0 : i32
    %c0_i32_0 = arith.constant 0 : i32
    %c0_i32_1 = arith.constant 0 : i32
    %c0_i32_2 = arith.constant 0 : i32
    return %c0_i32, %c0_i32_0, %c0_i32_1 : i32, i32, i32
  }
  func.func @transform_2(%arg0: i32) -> (i32, i32) {
    %c0_i32 = arith.constant 0 : i32
    %c0_i32_0 = arith.constant 0 : i32
    %c0_i32_1 = arith.constant 0 : i32
    return %c0_i32, %c0_i32_0 : i32, i32
  }
  func.func @transform_3(%arg0: i32) -> (i32, i32) {
    %c0_i32 = arith.constant 0 : i32
    %c0_i32_0 = arith.constant 0 : i32
    %c0_i32_1 = arith.constant 0 : i32
    return %c0_i32, %c0_i32_0 : i32, i32
  }
  func.func @transform_4(%arg0: i32) -> (i32, i32) {
    %c0_i32 = arith.constant 0 : i32
    %c0_i32_0 = arith.constant 0 : i32
    %c0_i32_1 = arith.constant 0 : i32
    return %c0_i32, %c0_i32_0 : i32, i32
  }
  func.func @transform_5(%arg0: i32) -> (i32, i32) {
    %c0_i32 = arith.constant 0 : i32
    %c0_i32_0 = arith.constant 0 : i32
    %c0_i32_1 = arith.constant 0 : i32
    return %c0_i32, %c0_i32_0 : i32, i32
  }
  func.func @transform_6(%arg0: i32) -> (i32, i32) {
    %c0_i32 = arith.constant 0 : i32
    %c0_i32_0 = arith.constant 0 : i32
    %c0_i32_1 = arith.constant 0 : i32
    return %c0_i32, %c0_i32_0 : i32, i32
  }
  func.func @transform_7(%arg0: i32) -> (i32, i32) {
    %c0_i32 = arith.constant 0 : i32
    %c0_i32_0 = arith.constant 0 : i32
    %c0_i32_1 = arith.constant 0 : i32
    return %c0_i32, %c0_i32_0 : i32, i32
  }
  func.func @transform_8(%arg0: i32) -> (i32, i32) {
    %c0_i32 = arith.constant 0 : i32
    %c0_i32_0 = arith.constant 0 : i32
    %c0_i32_1 = arith.constant 0 : i32
    return %c0_i32, %c0_i32_0 : i32, i32
  }
  func.func @transform_9(%arg0: i32) -> (i32, i32) {
    %c0_i32 = arith.constant 0 : i32
    %c0_i32_0 = arith.constant 0 : i32
    %c0_i32_1 = arith.constant 0 : i32
    return %c0_i32, %c0_i32_0 : i32, i32
  }
  func.func @transform_10(%arg0: i32) -> (i32, i32) {
    %c0_i32 = arith.constant 0 : i32
    %c0_i32_0 = arith.constant 0 : i32
    %c0_i32_1 = arith.constant 0 : i32
    return %c0_i32, %c0_i32_0 : i32, i32
  }
  func.func @transform_11(%arg0: i32) -> (i32, i32) {
    %c0_i32 = arith.constant 0 : i32
    %c0_i32_0 = arith.constant 0 : i32
    %c0_i32_1 = arith.constant 0 : i32
    return %c0_i32, %c0_i32_0 : i32, i32
  }
  func.func @transform_12(%arg0: i32) -> (i32, i32) {
    %c0_i32 = arith.constant 0 : i32
    %c0_i32_0 = arith.constant 0 : i32
    %c0_i32_1 = arith.constant 0 : i32
    return %c0_i32, %c0_i32_0 : i32, i32
  }
  func.func @transform_13(%arg0: i32) -> (i32, i32) {
    %c0_i32 = arith.constant 0 : i32
    %c0_i32_0 = arith.constant 0 : i32
    %c0_i32_1 = arith.constant 0 : i32
    return %c0_i32, %c0_i32_0 : i32, i32
  }
  func.func @transform_14(%arg0: i32) -> (i32, i32) {
    %c0_i32 = arith.constant 0 : i32
    %c0_i32_0 = arith.constant 0 : i32
    %c0_i32_1 = arith.constant 0 : i32
    return %c0_i32, %c0_i32_0 : i32, i32
  }
  func.func @transform_15(%arg0: i32) -> (i32, i32) {
    %c0_i32 = arith.constant 0 : i32
    %c0_i32_0 = arith.constant 0 : i32
    %c0_i32_1 = arith.constant 0 : i32
    return %c0_i32, %c0_i32_0 : i32, i32
  }
  func.func @transform_16(%arg0: i32) -> (i32, i32, i32) {
    %c0_i32 = arith.constant 0 : i32
    %c0_i32_0 = arith.constant 0 : i32
    %c0_i32_1 = arith.constant 0 : i32
    return %arg0, %c0_i32, %c0_i32_0 : i32, i32, i32
  }
}

</mosaic_0001>

<bundles_post_ra>
// kernel: deformable_mlp_block_forward.2
= control target key start
LH: loop header
LB: loop body
LE: loop exit
PB: predicated region body
PF: predicated region fallthrough
CT: control target
= control target key end

     0   :  { %s3844_s21 = smov 0   ;;  %s4920_s0 = inlined_call_operand.vmem [shape: f32[2,8,8,8], index: 0, kind: input, shape index: {}]   ;;  %s4921_s1 = inlined_call_operand.vmem [shape: f32[9,8,16], index: 1, kind: input, shape index: {}]   ;;  %s4922_s2 = inlined_call_operand.vmem [shape: f32[1,16], index: 2, kind: input, shape index: {}]   ;;  %s4923_s3 = inlined_call_operand.vmem [shape: f32[16,16], index: 3, kind: input, shape index: {}]   ;;  %s4924_s4 = inlined_call_operand.vmem [shape: f32[1,16], index: 4, kind: input, shape index: {}]   ;;  %s4925_s5 = inlined_call_operand.vmem [shape: f32[9,16], index: 5, kind: input, shape index: {}]   ;;  %s4926_s6 = inlined_call_operand.vmem [shape: f32[1,16], index: 6, kind: input, shape index: {}]   ;;  %s4927_s7 = inlined_call_operand.vmem [shape: f32[1,16], index: 7, kind: input, shape index: {}]   ;;  %s4928_s8 = inlined_call_operand.vmem [shape: f32[16,16], index: 8, kind: input, shape index: {}]   ;;  %s4929_s9 = inlined_call_operand.vmem [shape: f32[1,16], index: 9, kind: input, shape index: {}]   ;;  %s4930_s10 = inlined_call_operand.vmem [shape: f32[16,4], index: 10, kind: input, shape index: {}]   ;;  %s4931_s11 = inlined_call_operand.vmem [shape: f32[1,4], index: 11, kind: input, shape index: {}]   ;;  %s4932_s12 = inlined_call_operand.vmem [shape: f32[4,16], index: 12, kind: input, shape index: {}]   ;;  %s4933_s13 = inlined_call_operand.vmem [shape: f32[1,16], index: 13, kind: input, shape index: {}]   ;;  %s4934_s14 = inlined_call_operand.vmem [shape: f32[1,16], index: 14, kind: input, shape index: {}]   ;;  %s4935_s15 = inlined_call_operand.vmem [shape: f32[1,16], index: 15, kind: input, shape index: {}]   ;;  %s4936_s16 = inlined_call_operand.vmem [shape: f32[2,64,16], index: 16, kind: output, shape index: {}]  }
   0x1   :  { %4941 = sst [smem:[#allocation6_spill]] %s4920_s0 }
   0x2 LB: > { %s3287_s22 = sadd.s32 4294967295, %s3754_s21   ;;  %p3291_p0 = scmp.ge.s32.totalorder %s3754_s21, 1  ;;  %s3754_s21 = sphi %s3844_s21, %s26_s21  }
   0x3   : > { %p462_p1 = scmp.lt.s32.totalorder %s3754_s21, 3 }
   0x5   : > { %p463_p2 = pnand %p3291_p0, %p462_p1 }
   0x7   : > { %466 = sbr.rel (%p463_p2) target bundleno = 1250 (0x4e2), region = 84 }
   0xc   : > { %v3296_v0 = vld [vmem:[%s4921_s1 + $0x8] sm:$0xff]  ;;  %vm530_vm0 = vcmask 64512   ;;  %vm532_vm1 = vcmask 58368   ;;  %vm537_vm2 = vcmask 57344   ;;  %v3313_v1 = vld [vmem:[%s4921_s1 + $0x10] sm:$0xff]  ;;  %v4937_v2 = vmov 0.0  }
   0xd   : > { %3523 = vmatprep.subr.mxu0 %v3296_v0  ;;  %3693 = vmatprep.subr.mxu1 %v3296_v0  ;;  %531 = vst.msk [vmem:[#allocation2] sm:$0xff] %vm530_vm0, %v4937_v2  ;;  %535 = vst.msk [vmem:[#allocation2 + $0x90] sm:$0xff] %vm530_vm0, %v4937_v2  ;;  %p512_p3 = scmp.lt.s32.totalorder %s3287_s22, 1  ;;  %v575_v3 = vld [vmem:[%s4921_s1] sm:$0xff]  ;;  %s4942_s17 = sld [smem:[#allocation6_spill]]  ;;  %v3322_v18 = vld [vmem:[%s4921_s1 + $0x18] sm:$0xff] }
   0xe   : > { %533 = vst.msk [vmem:[#allocation2 + $0x8] sm:$0x3] %vm532_vm1, %v4937_v2  ;;  %536 = vst.msk [vmem:[#allocation2 + $0x98] sm:$0x3] %vm532_vm1, %v4937_v2  ;;  %3524 = vmatpush3.msra.mxu0 %v3296_v0  ;;  %3694 = vmatpush3.msra.mxu1 %v3296_v0  ;;  %v3331_v20 = vld [vmem:[%s4921_s1 + $0x20] sm:$0xff]  ;;  %v3340_v24 = vld [vmem:[%s4921_s1 + $0x28] sm:$0xff] }
   0xf   : > { %539 = vst.msk [vmem:[#allocation2 + $0x10] sm:$0x1] %vm537_vm2, %v4937_v2  ;;  %540 = vst.msk [vmem:[#allocation2 + $0x20] sm:$0x1] %vm537_vm2, %v4937_v2  ;;  %3551 = vmatprep.subr.mxu0 %v3313_v1  ;;  %s4951_s22 = smov (!%p512_p3, %s3287_s22), 1  ;;  %3537 = vmatprep.subr.mxu1 %v575_v3  ;;  %v3349_v33 = vld [vmem:[%s4921_s1 + $0x30] sm:$0xff] }
  0x10   : > { %541 = vst.msk [vmem:[#allocation2 + $0x30] sm:$0x1] %vm537_vm2, %v4937_v2  ;;  %542 = vst.msk [vmem:[#allocation2 + $0x40] sm:$0x1] %vm537_vm2, %v4937_v2  ;;  %s3415_s29 = sshll.u32 %s4951_s22, 6  ;;  %v3358_v39 = vld [vmem:[%s4921_s1 + $0x38] sm:$0xff] }
  0x11   : > { %543 = vst.msk [vmem:[#allocation2 + $0x50] sm:$0x1] %vm537_vm2, %v4937_v2  ;;  %544 = vst.msk [vmem:[#allocation2 + $0x60] sm:$0x1] %vm537_vm2, %v4937_v2  ;;  %v3367_v41 = vld [vmem:[%s4921_s1 + $0x40] sm:$0xff]  ;;  %v2106_v48 = vld [vmem:[%s4923_s3 + $0x8] sm:$0xff]  ;;  %s521_s25 = scalar_lea.vmem %s4936_s16, %s3415_s29 }
  0x12   : > { %545 = vst.msk [vmem:[#allocation2 + $0x70] sm:$0x1] %vm537_vm2, %v4937_v2  ;;  %546 = vst.msk [vmem:[#allocation2 + $0x80] sm:$0x1] %vm537_vm2, %v4937_v2  ;;  %vm2114_vm3 = vcmask 130048   ;;  %v2105_v49 = vld [vmem:[%s4923_s3] sm:$0xff] }
  0x13   : > { %549 = vst.msk [vmem:[#allocation2 + $0x19] sm:$0x1] %vm537_vm2, %v4937_v2  ;;  %550 = vst.msk [vmem:[#allocation2 + $0x29] sm:$0x1] %vm537_vm2, %v4937_v2  ;;  %s516_s18 = scalar_lea.vmem %s4942_s17, %s3415_s29  ;;  %vm2259_vm12 = vcmask 122880   ;;  %vm2254_vm13 = vcmask 123904  }
  0x14   : > { %551 = vst.msk [vmem:[#allocation2 + $0x39] sm:$0x1] %vm537_vm2, %v4937_v2  ;;  %552 = vst.msk [vmem:[#allocation2 + $0x49] sm:$0x1] %vm537_vm2, %v4937_v2  ;;  %v522_v4 = vld [vmem:[%s516_s18] sm:$0xff]  ;;  %v527_v5 = vld [vmem:[%s516_s18 + $0x28] sm:$0xff] }
  0x15   : > { %553 = vst.msk [vmem:[#allocation2 + $0x59] sm:$0x1] %vm537_vm2, %v4937_v2  ;;  %554 = vst.msk [vmem:[#allocation2 + $0x69] sm:$0x1] %vm537_vm2, %v4937_v2  ;;  %v528_v6 = vld [vmem:[%s516_s18 + $0x30] sm:$0xff]  ;;  %v576_v7 = vld [vmem:[#allocation2 + $0x1] sm:$0xff] }
  0x16   : > { %555 = vst.msk [vmem:[#allocation2 + $0x79] sm:$0x1] %vm537_vm2, %v4937_v2  ;;  %556 = vst.msk [vmem:[#allocation2 + $0x89] sm:$0x1] %vm537_vm2, %v4937_v2  ;;  %v523_v8 = vld [vmem:[%s516_s18 + $0x8] sm:$0xff]  ;;  %v524_v9 = vld [vmem:[%s516_s18 + $0x10] sm:$0xff]  ;;  %3525 = vmatprep.mubr.msk.f32.mxu0 %vm530_vm0, %v576_v7 }
  0x17   : > { %548 = vst.msk [vmem:[#allocation2 + $0x9] sm:$0x1] %vm537_vm2, %v4937_v2  ;;  %538 = vst.msk [vmem:[#allocation2] sm:$0x1] %vm537_vm2, %v4937_v2  ;;  %v525_v10 = vld [vmem:[%s516_s18 + $0x18] sm:$0xff]  ;;  %v526_v11 = vld [vmem:[%s516_s18 + $0x20] sm:$0xff] }
  0x18   : > { %557 = vst.msk [vmem:[#allocation2 + $0x99] sm:$0x1] %vm537_vm2, %v4937_v2  ;;  %547 = vst.msk [vmem:[#allocation2 + $0x90] sm:$0x1] %vm537_vm2, %v4937_v2  ;;  %v529_v12 = vld [vmem:[%s516_s18 + $0x38] sm:$0xff]  ;;  %vm3758_vm14 = vmmov 0  }
  0x19   : > { %559 = vst.msk [vmem:[#allocation2 + $0x11] sm:$0xff] %vm530_vm0, %v522_v4  ;;  %564 = vst.msk [vmem:[#allocation2 + $0x61] sm:$0xff] %vm530_vm0, %v527_v5  ;;  %v1587_v46 = vld [vmem:[#allocation2 + $0x91] sm:$0xff]  ;;  %vm2816_vm15 = vcmask 1043456  }
  0x1a   : > { %565 = vst.msk [vmem:[#allocation2 + $0x71] sm:$0xff] %vm530_vm0, %v528_v6  ;;  %560 = vst.msk [vmem:[#allocation2 + $0x21] sm:$0xff] %vm530_vm0, %v523_v8 }
  0x1b   : > { %561 = vst.msk [vmem:[#allocation2 + $0x31] sm:$0xff] %vm530_vm0, %v524_v9  ;;  %562 = vst.msk [vmem:[#allocation2 + $0x41] sm:$0xff] %vm530_vm0, %v525_v10 }
  0x1c   : > { %563 = vst.msk [vmem:[#allocation2 + $0x51] sm:$0xff] %vm530_vm0, %v526_v11  ;;  %566 = vst.msk [vmem:[#allocation2 + $0x81] sm:$0xff] %vm530_vm0, %v529_v12 }
  0x1d   : > { %2253 = vst.msk [vmem:[#allocation3] sm:$0xff] %vm2114_vm3, %v4937_v2  ;;  %2257 = vst.msk [vmem:[#allocation3 + $0x90] sm:$0xff] %vm2114_vm3, %v4937_v2 }
  0x1e   : > { %v567_v17 = vld [vmem:[#allocation2] sm:$0xff] }
  0x1f   : > { %v844_v27 = vld [vmem:[#allocation2 + $0x2] sm:$0xff]  ;;  %v1440_v45 = vld [vmem:[#allocation2 + $0x90] sm:$0xff] }
  0x20   : > { %v3928_v13 = vld [vmem:[#allocation2 + $0x11] sm:$0xff]  ;;  %v3930_v14 = vld [vmem:[#allocation2 + $0x61] sm:$0xff] }
  0x21   : > { %v3932_v15 = vld [vmem:[#allocation2 + $0x71] sm:$0xff]  ;;  %3526 = vmatmul.mubr.msk.f32.vlgmr.msra.gmra.mxu0 %vm530_vm0, %v3928_v13  ;;  %3534 = vmatprep.mubr.msk.f32.mxu1 %vm530_vm0, %v3930_v14  ;;  %v3938_v16 = vld [vmem:[#allocation2 + $0x21] sm:$0xff] }
  0x22   : > { %3552 = vmatpush3.msra.mxu0 %v3313_v1  ;;  %3535 = vmatmul.mubr.msk.f32.vlgmr.msra.gmra.mxu1 %vm530_vm0, %v3932_v15  ;;  %v3945_v19 = vld [vmem:[#allocation2 + $0x31] sm:$0xff]  ;;  %v3952_v22 = vld [vmem:[#allocation2 + $0x41] sm:$0xff] }
  0x23   : > { %3528 = vmatprep.mubr.msk.f32.mxu0 %vm530_vm0, %v3938_v16  ;;  %3538 = vmatpush3.msra.mxu1 %v575_v3  ;;  %v568_v21 = vld [vmem:[#allocation2 + $0x10] sm:$0xff]  ;;  %v3955_v23 = vld [vmem:[#allocation2 + $0x20] sm:$0xff] }
  0x24   : > { %3539 = vmatprep.mubr.msk.f32.mxu1 %vm530_vm0, %v567_v17  ;;  %3565 = vmatprep.subr.mxu1 %v3322_v18  ;;  %v3965_v25 = vld [vmem:[#allocation2 + $0x51] sm:$0xff]  ;;  %v3971_v28 = vld [vmem:[#allocation2 + $0x40] sm:$0xff] }
  0x25   : > { %3529 = vmatmul.mubr.msk.f32.gmra.mxu0 %vm530_vm0, %v3945_v19  ;;  %3579 = vmatprep.subr.mxu0 %v3331_v20  ;;  %v3969_v26 = vld [vmem:[#allocation2 + $0x30] sm:$0xff]  ;;  %v3980_v31 = vld [vmem:[#allocation2 + $0x22] sm:$0xff] }
  0x26   : > { %3540 = vmatmul.mubr.msk.f32.vlgmr.msra.gmra.mxu1 %vm530_vm0, %v568_v21  ;;  %3531 = vmatprep.mubr.msk.f32.mxu0 %vm530_vm0, %v3952_v22  ;;  %v845_v29 = vld [vmem:[#allocation2 + $0x12] sm:$0xff]  ;;  %v573_v32 = vld [vmem:[#allocation2 + $0x60] sm:$0xff] }
  0x27   : > { %3542 = vmatprep.mubr.msk.f32.mxu1 %vm530_vm0, %v3955_v23  ;;  %3566 = vmatpush3.msra.mxu1 %v3322_v18  ;;  %v572_v30 = vld [vmem:[#allocation2 + $0x50] sm:$0xff]  ;;  %v3992_v36 = vld [vmem:[#allocation2 + $0x42] sm:$0xff] }
  0x28   : > { %3593 = vmatprep.subr.mxu1 %v3340_v24  ;;  %v3987_v34 = vld [vmem:[#allocation2 + $0x32] sm:$0xff]  ;;  %v850_v38 = vld [vmem:[#allocation2 + $0x62] sm:$0xff] }
  0x29   : > { %3532 = vmatmul.mubr.msk.f32.gmra.mxu0 %vm530_vm0, %v3965_v25  ;;  %v574_v35 = vld [vmem:[#allocation2 + $0x70] sm:$0xff]  ;;  %v998_v42 = vld [vmem:[#allocation2 + $0x80] sm:$0xff] }
  0x2a   : > { %3543 = vmatmul.mubr.msk.f32.gmra.mxu1 %vm530_vm0, %v3969_v26  ;;  %3553 = vmatprep.mubr.msk.f32.mxu0 %vm530_vm0, %v844_v27  ;;  %v849_v37 = vld [vmem:[#allocation2 + $0x52] sm:$0xff]  ;;  %v1145_v43 = vld [vmem:[#allocation2 + $0x81] sm:$0xff] }
  0x2b   : > { %3545 = vmatprep.mubr.msk.f32.mxu1 %vm530_vm0, %v3971_v28  ;;  %v851_v40 = vld [vmem:[#allocation2 + $0x72] sm:$0xff]  ;;  %v1292_v44 = vld [vmem:[#allocation2 + $0x82] sm:$0xff] }
  0x2c   : > { %v1734_v47 = vld [vmem:[#allocation2 + $0x92] sm:$0xff] }
  0x2d   : > { %3554 = vmatmul.mubr.msk.f32.vlgmr.msra.gmra.mxu0 %vm530_vm0, %v845_v29 }
  0x2e   : > { %3580 = vmatpush3.msra.mxu0 %v3331_v20  ;;  %3546 = vmatmul.mubr.msk.f32.gmra.mxu1 %vm530_vm0, %v572_v30 }
  0x2f   : > { %3556 = vmatprep.mubr.msk.f32.mxu0 %vm530_vm0, %v3980_v31  ;;  %3548 = vmatprep.mubr.msk.f32.mxu1 %vm530_vm0, %v573_v32 }
  0x30   : > { %3607 = vmatprep.subr.mxu0 %v3349_v33 }
  0x31   : > { %3557 = vmatmul.mubr.msk.f32.gmra.mxu0 %vm530_vm0, %v3987_v34 }
  0x32   : > { %3549 = vmatmul.mubr.msk.f32.gmra.mxu1 %vm530_vm0, %v574_v35  ;;  %3559 = vmatprep.mubr.msk.f32.mxu0 %vm530_vm0, %v3992_v36 }
  0x33   : > { %3567 = vmatprep.mubr.msk.f32.mxu1 %vm530_vm0, %v568_v21 }
  0x35   : > { %3560 = vmatmul.mubr.msk.f32.gmra.mxu0 %vm530_vm0, %v849_v37 }
  0x36   : > { %3568 = vmatmul.mubr.msk.f32.vlgmr.msra.gmra.mxu1 %vm530_vm0, %v3955_v23  ;;  %3562 = vmatprep.mubr.msk.f32.mxu0 %vm530_vm0, %v850_v38 }
  0x37   : > { %3570 = vmatprep.mubr.msk.f32.mxu1 %vm530_vm0, %v3969_v26  ;;  %3594 = vmatpush3.msra.mxu1 %v3340_v24 }
  0x38   : > { %3621 = vmatprep.subr.mxu1 %v3358_v39 }
  0x39   : > { %3563 = vmatmul.mubr.msk.f32.gmra.mxu0 %vm530_vm0, %v851_v40 }
  0x3a   : > { %3571 = vmatmul.mubr.msk.f32.gmra.mxu1 %vm530_vm0, %v3971_v28  ;;  %3581 = vmatprep.mubr.msk.f32.mxu0 %vm530_vm0, %v3928_v13 }
  0x3b   : > { %3573 = vmatprep.mubr.msk.f32.mxu1 %vm530_vm0, %v572_v30 }
  0x3d   : > { %3582 = vmatmul.mubr.msk.f32.vlgmr.msra.gmra.mxu0 %vm530_vm0, %v3938_v16 }
  0x3e   : > { %3608 = vmatpush3.msra.mxu0 %v3349_v33  ;;  %3574 = vmatmul.mubr.msk.f32.gmra.mxu1 %vm530_vm0, %v573_v32 }
  0x3f   : > { %3584 = vmatprep.mubr.msk.f32.mxu0 %vm530_vm0, %v3945_v19  ;;  %3576 = vmatprep.mubr.msk.f32.mxu1 %vm530_vm0, %v574_v35 }
  0x40   : > { %3635 = vmatprep.subr.mxu0 %v3367_v41 }
  0x41   : > { %3585 = vmatmul.mubr.msk.f32.gmra.mxu0 %vm530_vm0, %v3952_v22 }
  0x42   : > { %3577 = vmatmul.mubr.msk.f32.gmra.mxu1 %vm530_vm0, %v998_v42  ;;  %3587 = vmatprep.mubr.msk.f32.mxu0 %vm530_vm0, %v3965_v25 }
  0x43   : > { %3595 = vmatprep.mubr.msk.f32.mxu1 %vm530_vm0, %v845_v29 }
  0x45   : > { %3588 = vmatmul.mubr.msk.f32.gmra.mxu0 %vm530_vm0, %v3930_v14 }
  0x46   : > { %3596 = vmatmul.mubr.msk.f32.vlgmr.msra.gmra.mxu1 %vm530_vm0, %v3980_v31  ;;  %3590 = vmatprep.mubr.msk.f32.mxu0 %vm530_vm0, %v3932_v15 }
  0x47   : > { %3598 = vmatprep.mubr.msk.f32.mxu1 %vm530_vm0, %v3987_v34  ;;  %3622 = vmatpush3.msra.mxu1 %v3358_v39 }
  0x48   : > { %3649 = vmatprep.subr.mxu1 %v2106_v48 }
  0x49   : > { %3591 = vmatmul.mubr.msk.f32.gmra.mxu0 %vm530_vm0, %v1145_v43 }
  0x4a   : > { %3599 = vmatmul.mubr.msk.f32.gmra.mxu1 %vm530_vm0, %v3992_v36  ;;  %3609 = vmatprep.mubr.msk.f32.mxu0 %vm530_vm0, %v3955_v23 }
  0x4b   : > { %3601 = vmatprep.mubr.msk.f32.mxu1 %vm530_vm0, %v849_v37 }
  0x4d   : > { %3610 = vmatmul.mubr.msk.f32.vlgmr.msra.gmra.mxu0 %vm530_vm0, %v3969_v26 }
  0x4e   : > { %3636 = vmatpush3.msra.mxu0 %v3367_v41  ;;  %3602 = vmatmul.mubr.msk.f32.gmra.mxu1 %vm530_vm0, %v850_v38 }
  0x4f   : > { %3612 = vmatprep.mubr.msk.f32.mxu0 %vm530_vm0, %v3971_v28  ;;  %3604 = vmatprep.mubr.msk.f32.mxu1 %vm530_vm0, %v851_v40 }
  0x51   : > { %3613 = vmatmul.mubr.msk.f32.gmra.mxu0 %vm530_vm0, %v572_v30 }
  0x52   : > { %3605 = vmatmul.mubr.msk.f32.gmra.mxu1 %vm530_vm0, %v1292_v44  ;;  %3615 = vmatprep.mubr.msk.f32.mxu0 %vm530_vm0, %v573_v32 }
  0x53   : > { %3623 = vmatprep.mubr.msk.f32.mxu1 %vm530_vm0, %v3938_v16 }
  0x55   : > { %3616 = vmatmul.mubr.msk.f32.gmra.mxu0 %vm530_vm0, %v574_v35 }
  0x56   : > { %3624 = vmatmul.mubr.msk.f32.vlgmr.msra.gmra.mxu1 %vm530_vm0, %v3945_v19  ;;  %3618 = vmatprep.mubr.msk.f32.mxu0 %vm530_vm0, %v998_v42 }
  0x57   : > { %3626 = vmatprep.mubr.msk.f32.mxu1 %vm530_vm0, %v3952_v22  ;;  %3650 = vmatpush3.msra.mxu1 %v2106_v48 }
  0x58   : > { %3651 = vmatprep.subr.mxu1 %v2105_v49 }
  0x59   : > { %3619 = vmatmul.mubr.msk.f32.gmra.mxu0 %vm530_vm0, %v1440_v45  ;;  %3652 = vmatpush3.msra.mxu1 %v2105_v49 }
  0x5a   : > { %3627 = vmatmul.mubr.msk.f32.gmra.mxu1 %vm530_vm0, %v3965_v25  ;;  %3637 = vmatprep.mubr.msk.f32.mxu0 %vm530_vm0, %v3980_v31 }
  0x5b   : > { %3629 = vmatprep.mubr.msk.f32.mxu1 %vm530_vm0, %v3930_v14  ;;  %3681 = vmatprep.subr.mxu1 %v4937_v2 }
  0x5d   : > { %3638 = vmatmul.mubr.msk.f32.vlgmr.msra.gmra.mxu0 %vm530_vm0, %v3987_v34 }
  0x5e   : > { %3630 = vmatmul.mubr.msk.f32.gmra.mxu1 %vm530_vm0, %v3932_v15  ;;  %3640 = vmatprep.mubr.msk.f32.mxu0 %vm530_vm0, %v3992_v36 }
  0x5f   : > { %3632 = vmatprep.mubr.msk.f32.mxu1 %vm530_vm0, %v1145_v43 }
  0x61   : > { %3641 = vmatmul.mubr.msk.f32.gmra.mxu0 %vm530_vm0, %v849_v37 }
  0x62   : > { %3633 = vmatmul.mubr.msk.f32.gmra.mxu1 %vm530_vm0, %v1587_v46  ;;  %3643 = vmatprep.mubr.msk.f32.mxu0 %vm530_vm0, %v850_v38 }
  0x65   : > { %3644 = vmatmul.mubr.msk.f32.gmra.mxu0 %vm530_vm0, %v851_v40 }
  0x66   : > { %3646 = vmatprep.mubr.msk.f32.mxu0 %vm530_vm0, %v1292_v44 }
  0x69   : > { %3647 = vmatmul.mubr.msk.f32.gmra.mxu0 %vm530_vm0, %v1734_v47  ;;  %vm2812_vm0 = vcmask 31744  }
  0xe1   : > { %v3527_v50 = vpop.f32.mrf.mxu0 }
  0xe2   : > { %v4091_v51 = vpop.f32.mrf.mxu1 }
  0xe3   : > { %v676_v52 = vpop.f32.mrf.mxu0 }
  0xe4   : > { %v4094_v53 = vpop.f32.mrf.mxu1 }
  0xe5   : > { %v3530_v54 = vpop.f32.mrf.mxu0 }
  0xe6   : > { %v3541_v55 = vpop.f32.mrf.mxu1 }
  0xe7   : > { %v686_v56 = vpop.f32.mrf.mxu0  ;;  %v811_v34 = vadd.f32 %v3541_v55, %v3527_v50 }
  0xe8   : > { %v805_v57 = vpop.f32.mrf.mxu1 }
  0xe9   : > { %v4096_v58 = vpop.f32.mrf.mxu0  ;;  %v806_v37 = vadd.f32 %v805_v57, %v676_v52 }
  0xea   : > { %v3544_v59 = vpop.f32.mrf.mxu1 }
  0xeb   : > { %v4098_v60 = vpop.f32.mrf.mxu0  ;;  %v821_v41 = vadd.f32 %v3544_v59, %v3530_v54 }
  0xec   : > { %v815_v61 = vpop.f32.mrf.mxu1 }
  0xed   : > { %v3555_v62 = vpop.f32.mrf.mxu0  ;;  %v816_v50 = vadd.f32 %v815_v61, %v686_v56 }
  0xee   : > { %v4100_v63 = vpop.f32.mrf.mxu1  ;;  %v984_v38 = vadd.f32 %v3555_v62, %v811_v34 }
  0xef   : > { %v944_v0 = vpop.f32.mrf.mxu0 }
  0xf0   : > { %v4102_v1 = vpop.f32.mrf.mxu1  ;;  %v983_v42 = vadd.f32 %v944_v0, %v806_v37 }
  0xf1   : > { %v3558_v3 = vpop.f32.mrf.mxu0 }
  0xf2   : > { %v4104_v4 = vpop.f32.mrf.mxu1  ;;  %v986_v46 = vadd.f32 %v3558_v3, %v821_v41 }
  0xf3   : > { %v954_v5 = vpop.f32.mrf.mxu0  ;;  %v841_v41 = vadd.f32 %v4104_v4, %v4091_v51 }
  0xf4   : > { %v4106_v6 = vpop.f32.mrf.mxu1  ;;  %v985_v34 = vadd.f32 %v954_v5, %v816_v50 }
  0xf5   : > { %v4108_v7 = vpop.f32.mrf.mxu0  ;;  %v836_v4 = vadd.f32 %v4106_v6, %v4094_v53 }
  0xf6   : > { %v3569_v8 = vpop.f32.mrf.mxu1 }
  0xf7   : > { %v4110_v9 = vpop.f32.mrf.mxu0  ;;  %v1131_v43 = vadd.f32 %v3569_v8, %v984_v38 }
  0xf8   : > { %v1091_v10 = vpop.f32.mrf.mxu1 }
  0xf9   : > { %v4112_v11 = vpop.f32.mrf.mxu0  ;;  %v1130_v47 = vadd.f32 %v1091_v10, %v983_v42 }
  0xfa   : > { %v3572_v12 = vpop.f32.mrf.mxu1 }
  0xfb   : > { %v4114_v13 = vpop.f32.mrf.mxu0  ;;  %v1133_v2 = vadd.f32 %v3572_v12, %v986_v46  ;;  %v4151_v12 = vld [vmem:[%s4922_s2] ss:$0 sm:$0xff] }
  0xfc   : > { %v1101_v14 = vpop.f32.mrf.mxu1 }
  0xfd   : > { %v3583_v15 = vpop.f32.mrf.mxu0  ;;  %v1132_v37 = vadd.f32 %v1101_v14, %v985_v34 }
  0xfe   : > { %v4116_v16 = vpop.f32.mrf.mxu1  ;;  %v1278_v48 = vadd.f32 %v3583_v15, %v1131_v43 }
  0xff   : > { %v1238_v17 = vpop.f32.mrf.mxu0 }
 0x100   : > { %v4118_v18 = vpop.f32.mrf.mxu1  ;;  %v1277_v52 = vadd.f32 %v1238_v17, %v1130_v47 }
 0x101   : > { %v3586_v19 = vpop.f32.mrf.mxu0 }
 0x102   : > { %v4120_v20 = vpop.f32.mrf.mxu1  ;;  %v1280_v54 = vadd.f32 %v3586_v19, %v1133_v2  ;;  %v831_v19 = vadd.f32 %v4100_v63, %v4096_v58 }
 0x103   : > { %v1248_v21 = vpop.f32.mrf.mxu0 }
 0x104   : > { %v4122_v22 = vpop.f32.mrf.mxu1  ;;  %v1279_v56 = vadd.f32 %v1248_v21, %v1132_v37 }
 0x105   : > { %v4124_v23 = vpop.f32.mrf.mxu0 }
 0x106   : > { %v3597_v24 = vpop.f32.mrf.mxu1 }
 0x107   : > { %v4126_v25 = vpop.f32.mrf.mxu0  ;;  %v1425_v57 = vadd.f32 %v3597_v24, %v1278_v48 }
 0x108   : > { %v1385_v26 = vpop.f32.mrf.mxu1 }
 0x109   : > { %v4128_v27 = vpop.f32.mrf.mxu0  ;;  %v1424_v59 = vadd.f32 %v1385_v26, %v1277_v52 }
 0x10a   : > { %v3600_v28 = vpop.f32.mrf.mxu1 }
 0x10b   : > { %v4130_v29 = vpop.f32.mrf.mxu0  ;;  %v1427_v3 = vadd.f32 %v3600_v28, %v1280_v54  ;;  %v826_v28 = vadd.f32 %v4102_v1, %v4098_v60 }
 0x10c   : > { %4943 = vst [vmem:[#allocation4_spill] sm:$0xff] %v4130_v29  ;;  %v1395_v30 = vpop.f32.mrf.mxu1 }
 0x10d   : > { %v3611_v31 = vpop.f32.mrf.mxu0  ;;  %v1426_v14 = vadd.f32 %v1395_v30, %v1279_v56  ;;  %v987_v46 = vadd.f32 %v4110_v9, %v826_v28  ;;  %v990_v30 = vadd.f32 %v4112_v11, %v841_v41 }
 0x10e   : > { %v4132_v32 = vpop.f32.mrf.mxu1  ;;  %v1573_v0 = vadd.f32 %v3611_v31, %v1425_v57  ;;  %v989_v57 = vadd.f32 %v4114_v13, %v836_v4 }
 0x10f   : > { %v1533_v33 = vpop.f32.mrf.mxu0 }
 0x110   : > { %v4134_v35 = vpop.f32.mrf.mxu1  ;;  %v1572_v10 = vadd.f32 %v1533_v33, %v1424_v59  ;;  %v1136_v59 = vadd.f32 %v4122_v22, %v989_v57 }
 0x111   : > { %v3614_v36 = vpop.f32.mrf.mxu0 }
 0x112   : > { %v4136_v39 = vpop.f32.mrf.mxu1  ;;  %v1575_v5 = vadd.f32 %v3614_v36, %v1427_v3  ;;  %v988_v36 = vadd.f32 %v4108_v7, %v831_v19  ;;  %v1134_v7 = vadd.f32 %v4118_v18, %v987_v46 }
 0x113   : > { %v1543_v40 = vpop.f32.mrf.mxu0 }
 0x114   : > { %v4138_v44 = vpop.f32.mrf.mxu1  ;;  %v1574_v42 = vadd.f32 %v1543_v40, %v1426_v14  ;;  %v1135_v47 = vadd.f32 %v4116_v16, %v988_v36  ;;  %v1281_v53 = vadd.f32 %v4126_v25, %v1134_v7 }
 0x115   : > { %v4140_v45 = vpop.f32.mrf.mxu0 }
 0x116   : > { %v3625_v49 = vpop.f32.mrf.mxu1  ;;  %v1282_v50 = vadd.f32 %v4124_v23, %v1135_v47  ;;  %v1428_v13 = vadd.f32 %v4134_v35, %v1281_v53 }
 0x117   : > { %v4142_v55 = vpop.f32.mrf.mxu0  ;;  %v1720_v15 = vadd.f32 %v3625_v49, %v1573_v0  ;;  %v1137_v49 = vadd.f32 %v4120_v20, %v990_v30 }
 0x118   : > { %v1680_v62 = vpop.f32.mrf.mxu1  ;;  %v1429_v54 = vadd.f32 %v4132_v32, %v1282_v50  ;;  %v1576_v56 = vadd.f32 %v4142_v55, %v1428_v13 }
 0x119   : > { %v4144_v29 = vpop.f32.mrf.mxu0  ;;  %v1719_v17 = vadd.f32 %v1680_v62, %v1572_v10  ;;  %v1284_v34 = vadd.f32 %v4128_v27, %v1137_v49  ;;  %v4944_v10 = vld [vmem:[#allocation4_spill] sm:$0xff] }
 0x11a   : > { %v3628_v8 = vpop.f32.mrf.mxu1  ;;  %v1577_v3 = vadd.f32 %v4140_v45, %v1429_v54 }
 0x11b   : > { %v4146_v38 = vpop.f32.mrf.mxu0  ;;  %v1722_v31 = vadd.f32 %v3628_v8, %v1575_v5  ;;  %v1431_v37 = vadd.f32 %v4136_v39, %v1284_v34 }
 0x11c   : > { %v1690_v24 = vpop.f32.mrf.mxu1 }
 0x11d   : > { %v3639_v61 = vpop.f32.mrf.mxu0  ;;  %v1721_v48 = vadd.f32 %v1690_v24, %v1574_v42  ;;  %v1579_v35 = vadd.f32 %v4144_v29, %v1431_v37 }
 0x11e   : > { %v1867_v2 = vadd.f32 %v3639_v61, %v1720_v15  ;;  %v3631_v63 = vpop.f32.mrf.mxu1  ;;  %v1283_v15 = vadd.f32 %v4944_v10, %v1136_v59 }
 0x11f   : > { %v1827_v26 = vpop.f32.mrf.mxu0  ;;  %v1724_v5 = vadd.f32 %v3631_v63, %v1577_v3 }
 0x120   : > { %v4158_v21 = vadd.f32 %v4151_v12, %v1867_v2  ;;  %v1866_v33 = vadd.f32 %v1827_v26, %v1719_v17  ;;  %v1700_v62 = vpop.f32.mrf.mxu1  ;;  %v1430_v39 = vadd.f32 %v4138_v44, %v1283_v15 }
 0x121   : > { %v3642_v43 = vpop.f32.mrf.mxu0  ;;  %v1723_v24 = vadd.f32 %v1700_v62, %v1576_v56 }
 0x122   : > { %v4165_v58 = vmul.f32 0.70710677, %v4158_v21  ;;  %v4168_v60 = vadd.f32 %v4151_v12, %v1866_v33  ;;  %v1869_v1 = vadd.f32 %v3642_v43, %v1722_v31  ;;  %v3634_v61 = vpop.f32.mrf.mxu1  ;;  %v1578_v28 = vadd.f32 %v4146_v38, %v1430_v39 }
 0x123   : > { %v1837_v51 = vpop.f32.mrf.mxu0  ;;  %v1726_v14 = vadd.f32 %v3634_v61, %v1579_v35 }
 0x124   : > { %v1922_v9 = vand.u32 2147483647, %v4165_v58  ;;  %v4177_v40 = vmul.f32 0.70710677, %v4168_v60  ;;  %v4182_v11 = vadd.f32 %v4151_v12, %v1869_v1  ;;  %v1868_v16 = vadd.f32 %v1837_v51, %v1721_v48  ;;  %v1710_v31 = vpop.f32.mrf.mxu1 }
 0x125   : > { %v3645_v52 = vpop.f32.mrf.mxu0  ;;  %v1725_v46 = vadd.f32 %v1710_v31, %v1578_v28  ;;  %vm1906_vm4 = vcmp.lt.f32.partialorder %v4165_v58, 0.0 }
 0x126   : > { %v1930_v6 = vmul.f32 0.3275911, %v1922_v9  ;;  %v1921_v18 = vand.u32 2147483647, %v4177_v40  ;;  %v4190_v20 = vmul.f32 0.70710677, %v4182_v11  ;;  %v4193_v23 = vadd.f32 %v4151_v12, %v1868_v16 }
 0x127   : > { %v1847_v8 = vpop.f32.mrf.mxu0  ;;  %v1871_v26 = vadd.f32 %v3645_v52, %v1724_v5  ;;  %v2034_v41 = vsub.f32 0.0, %v1922_v9  ;;  %vm1905_vm5 = vcmp.lt.f32.partialorder %v4177_v40, 0.0 }
 0x128   : > { %v1938_v0 = vadd.f32 1.0, %v1930_v6  ;;  %v1929_v25 = vmul.f32 0.3275911, %v1921_v18  ;;  %v1924_v27 = vand.u32 2147483647, %v4190_v20  ;;  %v1870_v33 = vadd.f32 %v1847_v8, %v1723_v24 }
 0x129   : > { %v4201_v32 = vmul.f32 0.70710677, %v4193_v23  ;;  %v3648_v2 = vpop.f32.mrf.mxu0  ;;  %v4210_v29 = vadd.f32 %v4151_v12, %v1871_v26  ;;  %v2033_v1 = vsub.f32 0.0, %v1921_v18  ;;  %v2042_v47 = vmul.f32 %v2034_v41, %v1922_v9 }
 0x12a   : > { %3706 = vrcp.f32 %v1938_v0  ;;  %v1937_v22 = vadd.f32 1.0, %v1929_v25  ;;  %v1932_v17 = vmul.f32 0.3275911, %v1924_v27  ;;  %v1873_v36 = vadd.f32 %v3648_v2, %v1726_v14 }
 0x12b   : > { %v1923_v45 = vand.u32 2147483647, %v4201_v32  ;;  %v4213_v42 = vadd.f32 %v4151_v12, %v1870_v33  ;;  %v1857_v43 = vpop.f32.mrf.mxu0  ;;  %v4216_v63 = vmul.f32 0.70710677, %v4210_v29  ;;  %v2036_v7 = vsub.f32 0.0, %v1924_v27 }
 0x12c   : > { %3708 = vrcp.f32 %v1937_v22  ;;  %v1940_v19 = vadd.f32 1.0, %v1932_v17  ;;  %v4219_v38 = vadd.f32 %v4151_v12, %v1873_v36  ;;  %v1872_v4 = vadd.f32 %v1857_v43, %v1725_v46 }
 0x12d   : > { %v1931_v55 = vmul.f32 0.3275911, %v1923_v45  ;;  %v4222_v30 = vmul.f32 0.70710677, %v4213_v42  ;;  %v1926_v48 = vand.u32 2147483647, %v4216_v63  ;;  %v2041_v16 = vmul.f32 %v2033_v1, %v1921_v18 }
 0x12e   : > { %3710 = vrcp.f32 %v1940_v19  ;;  %v4226_v51 = vmul.f32 0.70710677, %v4219_v38  ;;  %v2051_v6 = vmul.f32 1.442695, %v2042_v47  ;;  %v2035_v62 = vsub.f32 0.0, %v1923_v45 }
 0x12f   : > { %v1939_v44 = vadd.f32 1.0, %v1931_v55  ;;  %v1925_v49 = vand.u32 2147483647, %v4222_v30  ;;  %v1934_v50 = vmul.f32 0.3275911, %v1926_v48  ;;  %v4235_v34 = vadd.f32 %v4151_v12, %v1872_v4 }
 0x130   : > { %v4230_v57 = vand.u32 2147483647, %v4226_v51  ;;  %v2044_v59 = vmul.f32 %v2036_v7, %v1924_v27  ;;  %v4240_v18 = vmul.f32 0.5, %v4158_v21  ;;  %v2049_v37 = vmul.f32 1.442695, %v2041_v16 }
 0x131   : > { %3712 = vrcp.f32 %v1939_v44  ;;  %v1933_v52 = vmul.f32 0.3275911, %v1925_v49  ;;  %v1942_v9 = vadd.f32 1.0, %v1934_v50  ;;  %v2043_v10 = vmul.f32 %v2035_v62, %v1923_v45 }
 0x132   : > { %v1936_v0 = vmul.f32 0.3275911, %v4230_v57  ;;  %v2038_v15 = vsub.f32 0.0, %v1926_v48  ;;  %v4247_v27 = vmul.f32 0.70710677, %v4235_v34  ;;  %v4253_v22 = vmul.f32 0.5, %v4168_v60 }
 0x133   : > { %v1941_v13 = vadd.f32 1.0, %v1933_v52  ;;  %3714 = vrcp.f32 %v1942_v9  ;;  %v2055_v61 = vmul.f32 1.442695, %v2044_v59  ;;  %v2037_v17 = vsub.f32 0.0, %v1925_v49 }
 0x134   : > { %v1944_v3 = vadd.f32 1.0, %v1936_v0  ;;  %v4258_v24 = vand.u32 2147483647, %v4247_v27  ;;  %v2053_v60 = vmul.f32 1.442695, %v2043_v10  ;;  %v2046_v14 = vmul.f32 %v2038_v15, %v1926_v48 }
 0x135   : > { %3716 = vrcp.f32 %v1941_v13  ;;  %vm1908_vm6 = vcmp.lt.f32.partialorder %v4190_v20, 0.0  ;;  %v2045_v41 = vmul.f32 %v2037_v17, %v1925_v49  ;;  %v2040_v43 = vsub.f32 0.0, %v4230_v57 }
 0x136   : > { %3718 = vpow2.f32 %v2051_v6  ;;  %v1935_v55 = vmul.f32 0.3275911, %v4258_v24  ;;  %v2059_v48 = vmul.f32 1.442695, %v2046_v14  ;;  %v3757_v4 = vmov 1.0  }
 0x137   : > { %v4232_v53 = vpop.eup %3706  ;;  %3720 = vrcp.f32 %v1944_v3  ;;  %v1914_v7 = vsel %vm1906_vm4, -1.0, %v3757_v4  ;;  %v1913_v49 = vsel %vm1905_vm5, -1.0, %v3757_v4  ;;  %v2057_v62 = vmul.f32 1.442695, %v2045_v41 }
 0x138   : > { %v1962_v54 = vmul.f32 1.0614054, %v4232_v53  ;;  %3722 = vpow2.f32 %v2049_v37  ;;  %v1943_v46 = vadd.f32 1.0, %v1935_v55  ;;  %v1916_v58 = vsel %vm1908_vm6, -1.0, %v3757_v4 }
 0x139   : > { %v4243_v25 = vpop.eup %3708  ;;  %3724 = vpow2.f32 %v2055_v61  ;;  %v2048_v13 = vmul.f32 %v2040_v43, %v4230_v57  ;;  %v2039_v20 = vsub.f32 0.0, %v4258_v24  ;;  %vm1907_vm7 = vcmp.lt.f32.partialorder %v4201_v32, 0.0 }
 0x13a   : > { %v1970_v8 = vadd.f32 -1.4531521, %v1962_v54  ;;  %v1961_v12 = vmul.f32 1.0614054, %v4243_v25  ;;  %3726 = vpow2.f32 %v2053_v60  ;;  %vm1910_vm8 = vcmp.lt.f32.partialorder %v4216_v63, 0.0 }
 0x13b   : > { %v4249_v56 = vpop.eup %3710  ;;  %3728 = vrcp.f32 %v1943_v46  ;;  %vm1909_vm9 = vcmp.lt.f32.partialorder %v4222_v30, 0.0  ;;  %v1918_v63 = vsel %vm1910_vm8, -1.0, %v3757_v4  ;;  %vm1912_vm10 = vcmp.lt.f32.partialorder %v4226_v51, 0.0 }
 0x13c   : > { %v1978_v21 = vmul.f32 %v4232_v53, %v1970_v8  ;;  %v1969_v35 = vadd.f32 -1.4531521, %v1961_v12  ;;  %v1964_v5 = vmul.f32 1.0614054, %v4249_v56  ;;  %3730 = vpow2.f32 %v2059_v48 }
 0x13d   : > { %3732 = vpow2.f32 %v2057_v62  ;;  %vm1911_vm11 = vcmp.lt.f32.partialorder %v4247_v27, 0.0 }
 0x13e   : > { %v1986_v39 = vadd.f32 1.4214138, %v1978_v21  ;;  %v4260_v45 = vpop.eup %3712  ;;  %v1977_v2 = vmul.f32 %v4243_v25, %v1969_v35  ;;  %v1972_v19 = vadd.f32 -1.4531521, %v1964_v5  ;;  %v1919_v27 = vsel %vm1911_vm11, -1.0, %v3757_v4 }
 0x13f   : > { %v1963_v28 = vmul.f32 1.0614054, %v4260_v45 }
 0x140   : > { %v1994_v26 = vmul.f32 %v4232_v53, %v1986_v39  ;;  %v1985_v31 = vadd.f32 1.4214138, %v1977_v2  ;;  %v1980_v33 = vmul.f32 %v4249_v56, %v1972_v19  ;;  %v4279_v9 = vpop.eup %3714  ;;  %v2063_v2 = vmul.f32 1.442695, %v2048_v13 }
 0x141   : > { %v1971_v44 = vadd.f32 -1.4531521, %v1963_v28  ;;  %v1966_v37 = vmul.f32 1.0614054, %v4279_v9 }
 0x142   : > { %v2002_v36 = vadd.f32 -0.28449672, %v1994_v26  ;;  %v1993_v1 = vmul.f32 %v4243_v25, %v1985_v31  ;;  %v1988_v47 = vadd.f32 1.4214138, %v1980_v33  ;;  %v4285_v0 = vpop.eup %3716  ;;  %v2047_v33 = vmul.f32 %v2039_v20, %v4258_v24 }
 0x143   : > { %v1979_v16 = vmul.f32 %v4260_v45, %v1971_v44  ;;  %v1965_v10 = vmul.f32 1.0614054, %v4285_v0  ;;  %v3719_v15 = vpop.eup %3718  ;;  %v1974_v61 = vadd.f32 -1.4531521, %v1966_v37  ;;  %3734 = vpow2.f32 %v2063_v2 }
 0x144   : > { %v2010_v50 = vmul.f32 %v4232_v53, %v2002_v36  ;;  %v2001_v52 = vadd.f32 -0.28449672, %v1993_v1  ;;  %v1996_v6 = vmul.f32 %v4249_v56, %v1988_v47  ;;  %v4294_v35 = vpop.eup %3720  ;;  %v2061_v62 = vmul.f32 1.442695, %v2047_v33 }
 0x145   : > { %v1987_v59 = vadd.f32 1.4214138, %v1979_v16  ;;  %v1973_v39 = vadd.f32 -1.4531521, %v1965_v10  ;;  %v3723_v19 = vpop.eup %3722  ;;  %v1982_v14 = vmul.f32 %v4279_v9, %v1974_v61  ;;  %v1968_v26 = vmul.f32 1.0614054, %v4294_v35 }
 0x146   : > { %v2018_v54 = vadd.f32 0.2548296, %v2010_v50  ;;  %v2009_v8 = vmul.f32 %v4243_v25, %v2001_v52  ;;  %v2004_v40 = vadd.f32 -0.28449672, %v1996_v6  ;;  %v3725_v46 = vpop.eup %3724  ;;  %3736 = vpow2.f32 %v2061_v62 }
 0x147   : > { %v1995_v12 = vmul.f32 %v4260_v45, %v1987_v59  ;;  %v1981_v31 = vmul.f32 %v4285_v0, %v1973_v39  ;;  %v1990_v44 = vadd.f32 1.4214138, %v1982_v14  ;;  %v1976_v43 = vadd.f32 -1.4531521, %v1968_v26  ;;  %v3727_v6 = vpop.eup %3726 }
 0x148   : > { %v2026_v3 = vmul.f32 %v4232_v53, %v2018_v54  ;;  %v2017_v21 = vadd.f32 0.2548296, %v2009_v8  ;;  %v2012_v57 = vmul.f32 %v4249_v56, %v2004_v40  ;;  %v4308_v54 = vpop.eup %3728  ;;  %v1893_v62 = vmul.f32 0.5, %v4213_v42 }
 0x149   : > { %v2003_v17 = vadd.f32 -0.28449672, %v1995_v12  ;;  %v1989_v47 = vadd.f32 1.4214138, %v1981_v31  ;;  %v1998_v16 = vmul.f32 %v4279_v9, %v1990_v44  ;;  %v1984_v52 = vmul.f32 %v4294_v35, %v1976_v43 }
 0x14a   : > { %v2066_v5 = vmul.f32 %v3719_v15, %v2026_v3  ;;  %v2025_v53 = vmul.f32 %v4243_v25, %v2017_v21  ;;  %v2020_v60 = vadd.f32 0.2548296, %v2012_v57  ;;  %v1967_v12 = vmul.f32 1.0614054, %v4308_v54  ;;  %v3731_v21 = vpop.eup %3730 }
 0x14b   : > { %v2011_v55 = vmul.f32 %v4260_v45, %v2003_v17  ;;  %v2006_v13 = vadd.f32 -0.28449672, %v1998_v16  ;;  %v1992_v8 = vadd.f32 1.4214138, %v1984_v52  ;;  %v1915_v57 = vsel %vm1907_vm7, -1.0, %v3757_v4 }
 0x14c   : > { %v2074_v28 = vsub.f32 1.0, %v2066_v5  ;;  %v2065_v41 = vmul.f32 %v3723_v19, %v2025_v53  ;;  %v2028_v36 = vmul.f32 %v4249_v56, %v2020_v60  ;;  %v1997_v56 = vmul.f32 %v4285_v0, %v1989_v47 }
 0x14d   : > { %v2019_v25 = vadd.f32 0.2548296, %v2011_v55  ;;  %v2014_v15 = vmul.f32 %v4279_v9, %v2006_v13  ;;  %v1975_v5 = vadd.f32 -1.4531521, %v1967_v12  ;;  %v1891_v55 = vmul.f32 0.5, %v4193_v23 }
 0x14e   : > { %v2082_v1 = vmul.f32 %v2074_v28, %v1914_v7  ;;  %v2073_v48 = vsub.f32 1.0, %v2065_v41  ;;  %v2068_v50 = vmul.f32 %v3725_v46, %v2028_v36  ;;  %v2005_v3 = vadd.f32 -0.28449672, %v1997_v56 }
 0x14f   : > { %v2027_v24 = vmul.f32 %v4260_v45, %v2019_v25  ;;  %v2000_v45 = vmul.f32 %v4294_v35, %v1992_v8  ;;  %v2022_v39 = vadd.f32 0.2548296, %v2014_v15  ;;  %v1983_v14 = vmul.f32 %v4308_v54, %v1975_v5 }
 0x150   : > { %v2081_v7 = vmul.f32 %v2073_v48, %v1913_v49  ;;  %v2076_v59 = vsub.f32 1.0, %v2068_v50  ;;  %v2090_v40 = vadd.f32 1.0, %v2082_v1  ;;  %v2013_v61 = vmul.f32 %v4285_v0, %v2005_v3 }
 0x151   : > { %v2067_v37 = vmul.f32 %v3727_v6, %v2027_v24  ;;  %v2008_v2 = vadd.f32 -0.28449672, %v2000_v45  ;;  %v2030_v26 = vmul.f32 %v4279_v9, %v2022_v39  ;;  %v1991_v33 = vadd.f32 1.4214138, %v1983_v14 }
 0x152   : > { %v2089_v10 = vadd.f32 1.0, %v2081_v7  ;;  %v2084_v20 = vmul.f32 %v2076_v59, %v1916_v58  ;;  %v3733_v58 = vpop.eup %3732  ;;  %v4321_v19 = vmul.f32 %v2090_v40, %v4240_v18  ;;  %v2021_v60 = vadd.f32 0.2548296, %v2013_v61 }
 0x153   : > { %v2075_v49 = vsub.f32 1.0, %v2067_v37  ;;  %v2016_v28 = vmul.f32 %v4294_v35, %v2008_v2  ;;  %v1892_v9 = vmul.f32 0.5, %v4182_v11  ;;  %v2070_v41 = vmul.f32 %v3731_v21, %v2030_v26  ;;  %v3735_v46 = vpop.eup %3734  ;;  %v2572_v2 = vld [vmem:[%s4928_s8] sm:$0xff] }
 0x154   : > { %v4318_v17 = vmul.f32 %v2089_v10, %v4253_v22  ;;  %v2092_v32 = vadd.f32 1.0, %v2084_v20  ;;  %v2029_v18 = vmul.f32 %v4285_v0, %v2021_v60  ;;  %v1999_v23 = vmul.f32 %v4308_v54, %v1991_v33  ;;  %v3737_v3 = vpop.eup %3736 }
 0x155   : > { %v2083_v53 = vmul.f32 %v2075_v49, %v1915_v57  ;;  %v2024_v36 = vadd.f32 0.2548296, %v2016_v28  ;;  %v2078_v1 = vsub.f32 1.0, %v2070_v41  ;;  %v2911_v11 = vsel %vm2114_vm3, %v4321_v19, 0.0 }
 0x156   : > { %3653 = vmatprep.mubr.msk.f32.mxu1 %vm2114_vm3, %v4318_v17  ;;  %v2908_v22 = vsel %vm2114_vm3, %v4318_v17, 0.0  ;;  %v2069_v43 = vmul.f32 %v3733_v58, %v2029_v18  ;;  %v4340_v0 = vmul.f32 %v2092_v32, %v1892_v9  ;;  %v2007_v48 = vadd.f32 -0.28449672, %v1999_v23 }
 0x157   : > { %v2091_v31 = vadd.f32 1.0, %v2083_v53  ;;  %2909 = vadd.xlane.f32.xlu0 %v2908_v22  ;;  %3654 = vmatmul.mubr.msk.f32.vlgmr.msra.gmra.mxu1 %vm2114_vm3, %v4321_v19  ;;  %v2032_v25 = vmul.f32 %v4294_v35, %v2024_v36  ;;  %v2086_v50 = vmul.f32 %v2078_v1, %v1918_v63  ;;  %v1917_v16 = vsel %vm1909_vm9, -1.0, %v3757_v4 }
 0x158   : > { %v2077_v47 = vsub.f32 1.0, %v2069_v43  ;;  %v2015_v6 = vmul.f32 %v4308_v54, %v2007_v48  ;;  %v1894_v24 = vmul.f32 0.5, %v4210_v29  ;;  %v1920_v13 = vsel %vm1912_vm10, -1.0, %v3757_v4 }
 0x159   : > { %v4336_v44 = vmul.f32 %v2091_v31, %v1891_v55  ;;  %v2072_v35 = vmul.f32 %v3735_v46, %v2032_v25  ;;  %v2094_v56 = vadd.f32 1.0, %v2086_v50  ;;  %v2917_v51 = vsel %vm2114_vm3, %v4340_v0, 0.0 }
 0x15a   : > { %v2085_v52 = vmul.f32 %v2077_v47, %v1917_v16  ;;  %v2023_v8 = vadd.f32 0.2548296, %v2015_v6  ;;  %v1896_v10 = vmul.f32 0.5, %v4219_v38  ;;  %v1895_v49 = vmul.f32 0.5, %v4235_v34  ;;  %v2573_v34 = vld [vmem:[%s4928_s8 + $0x8] sm:$0xff] }
 0x15b   : > { %3656 = vmatprep.mubr.msk.f32.mxu1 %vm2114_vm3, %v4336_v44  ;;  %v2914_v30 = vsel %vm2114_vm3, %v4336_v44, 0.0  ;;  %2912 = vadd.xlane.f32.xlu0 %v2911_v11  ;;  %v2080_v7 = vsub.f32 1.0, %v2072_v35  ;;  %v4360_v40 = vmul.f32 %v2094_v56, %v1894_v24  ;;  %v4945_v4 = vmov 0.0  }
 0x15c   : > { %2915 = vadd.xlane.f32.xlu1 %v2914_v30  ;;  %3657 = vmatmul.mubr.msk.f32.gmra.mxu1 %vm2114_vm3, %v4340_v0  ;;  %v2093_v59 = vadd.f32 1.0, %v2085_v52  ;;  %v2031_v29 = vmul.f32 %v4308_v54, %v2023_v8  ;;  %2262 = vst.msk [vmem:[#allocation3 + $0x20] sm:$0x1] %vm2259_vm12, %v4945_v4  ;;  %2260 = vst.msk [vmem:[#allocation3] sm:$0x1] %vm2259_vm12, %v4945_v4 }
 0x15d   : > { %v2088_v37 = vmul.f32 %v2080_v7, %v1920_v13  ;;  %v2923_v54 = vsel %vm2114_vm3, %v4360_v40, 0.0  ;;  %2261 = vst.msk [vmem:[#allocation3 + $0x10] sm:$0x1] %vm2259_vm12, %v4945_v4  ;;  %2263 = vst.msk [vmem:[#allocation3 + $0x30] sm:$0x1] %vm2259_vm12, %v4945_v4  ;;  %3665 = vmatprep.subr.mxu0 %v2573_v34 }
 0x15e   : > { %v4362_v12 = vmul.f32 %v2093_v59, %v1893_v62  ;;  %v2071_v20 = vmul.f32 %v3737_v3, %v2031_v29  ;;  %2264 = vst.msk [vmem:[#allocation3 + $0x40] sm:$0x1] %vm2259_vm12, %v4945_v4  ;;  %2265 = vst.msk [vmem:[#allocation3 + $0x50] sm:$0x1] %vm2259_vm12, %v4945_v4  ;;  %3666 = vmatpush3.msra.mxu0 %v2573_v34  ;;  %v4480_v8 = vld [vmem:[%s4924_s4] ss:$0 sm:$0xff] }
 0x15f   : > { %v2096_v42 = vadd.f32 1.0, %v2088_v37  ;;  %2266 = vst.msk [vmem:[#allocation3 + $0x60] sm:$0x1] %vm2259_vm12, %v4945_v4  ;;  %2267 = vst.msk [vmem:[#allocation3 + $0x70] sm:$0x1] %vm2259_vm12, %v4945_v4  ;;  %3667 = vmatprep.subr.mxu0 %v2572_v2 }
 0x160   : > { %2918 = vadd.xlane.f32.xlu1 %v2917_v51  ;;  %3659 = vmatprep.mubr.msk.f32.mxu1 %vm2114_vm3, %v4362_v12  ;;  %v2920_v15 = vsel %vm2114_vm3, %v4362_v12, 0.0  ;;  %v2079_v38 = vsub.f32 1.0, %v2071_v20  ;;  %2268 = vst.msk [vmem:[#allocation3 + $0x80] sm:$0x1] %vm2259_vm12, %v4945_v4  ;;  %2269 = vst.msk [vmem:[#allocation3 + $0x90] sm:$0x1] %vm2259_vm12, %v4945_v4 }
 0x161   : > { %v4371_v45 = vmul.f32 %v2096_v42, %v1896_v10  ;;  %2921 = vadd.xlane.f32.xlu0 %v2920_v15  ;;  %3660 = vmatmul.mubr.msk.f32.gmra.mxu1 %vm2114_vm3, %v4360_v40  ;;  %2271 = vst.msk [vmem:[#allocation3 + $0x19] sm:$0x1] %vm2259_vm12, %v4945_v4  ;;  %2272 = vst.msk [vmem:[#allocation3 + $0x29] sm:$0x1] %vm2259_vm12, %v4945_v4  ;;  %v4498_v42 = vld [vmem:[%s4925_s5 + $0x1] ss:$0 sm:$0xff] }
 0x162   : > { %v2087_v21 = vmul.f32 %v2079_v38, %v1919_v27  ;;  %2273 = vst.msk [vmem:[#allocation3 + $0x39] sm:$0x1] %vm2259_vm12, %v4945_v4  ;;  %2274 = vst.msk [vmem:[#allocation3 + $0x49] sm:$0x1] %vm2259_vm12, %v4945_v4  ;;  %3668 = vmatpush3.msra.mxu0 %v2572_v2 }
 0x163   : > { %v2929_v57 = vsel %vm2114_vm3, %v4371_v45, 0.0  ;;  %2275 = vst.msk [vmem:[#allocation3 + $0x59] sm:$0x1] %vm2259_vm12, %v4945_v4  ;;  %2276 = vst.msk [vmem:[#allocation3 + $0x69] sm:$0x1] %vm2259_vm12, %v4945_v4  ;;  %v4493_v29 = vld [vmem:[#allocation3] sm:$0xff] }
 0x164   : > { %2924 = vadd.xlane.f32.xlu1 %v2923_v54  ;;  %v2095_v61 = vadd.f32 1.0, %v2087_v21  ;;  %2277 = vst.msk [vmem:[#allocation3 + $0x79] sm:$0x1] %vm2259_vm12, %v4945_v4  ;;  %2278 = vst.msk [vmem:[#allocation3 + $0x89] sm:$0x1] %vm2259_vm12, %v4945_v4 }
 0x165   : > { %2255 = vst.msk [vmem:[#allocation3 + $0x8] sm:$0x3] %vm2254_vm13, %v4945_v4  ;;  %2258 = vst.msk [vmem:[#allocation3 + $0x98] sm:$0x3] %vm2254_vm13, %v4945_v4 }
 0x166   : > { %v4381_v5 = vmul.f32 %v2095_v61, %v1895_v49  ;;  %2270 = vst.msk [vmem:[#allocation3 + $0x9] sm:$0x1] %vm2259_vm12, %v4945_v4  ;;  %2279 = vst.msk [vmem:[#allocation3 + $0x99] sm:$0x1] %vm2259_vm12, %v4945_v4  ;;  %v4519_v49 = vld [vmem:[%s4925_s5 + $0x2] ss:$0 sm:$0xff] }
 0x168   : > { %2930 = vadd.xlane.f32.xlu1 %v2929_v57  ;;  %3662 = vmatprep.mubr.msk.f32.mxu1 %vm2114_vm3, %v4381_v5  ;;  %v2926_v39 = vsel %vm2114_vm3, %v4381_v5, 0.0 }
 0x169   : > { %2927 = vadd.xlane.f32.xlu0 %v2926_v39  ;;  %3663 = vmatmul.mubr.msk.f32.gmra.mxu1 %vm2114_vm3, %v4371_v45 }
 0x16a   : > { %3685 = vmatprep.mubr.msk.f32.mxu1 %vm3758_vm14, %v4945_v4 }
 0x16c   : > { %v4500_v20 = vld [vmem:[#allocation3 + $0x1] sm:$0xff] }
 0x16d   : > { %4946 = vst [vmem:[#allocation4_spill] sm:$0xff] %v4500_v20  ;;  %v2321_v57 = vmul.f32 %v4498_v42, %v4500_v20  ;;  %v4521_v61 = vld [vmem:[#allocation3 + $0x2] sm:$0xff] }
 0x16e   : > { %4947 = vst [vmem:[#allocation5_spill] sm:$0xff] %v4521_v61  ;;  %v2349_v2 = vmul.f32 %v4519_v49, %v4521_v61 }
 0x1e0   : > { %v2910_v58 = vpop.xlane.xlu0 %2909 }
 0x1e4   : > { %v2913_v53 = vpop.xlane.xlu0 %2912 }
 0x1e5   : > { %v2916_v60 = vpop.xlane.xlu1 %2915  ;;  %v2932_v14 = vadd.f32 %v2913_v53, %v2910_v58 }
 0x1e7   : > { %v2933_v32 = vadd.f32 %v2932_v14, %v2916_v60 }
 0x1e9   : > { %v2919_v26 = vpop.xlane.xlu1 %2918 }
 0x1ea   : > { %v2934_v28 = vadd.f32 %v2933_v32, %v2919_v26  ;;  %v2922_v22 = vpop.xlane.xlu0 %2921  ;;  %v4540_v32 = vld [vmem:[%s4925_s5 + $0x3] ss:$0 sm:$0xff]  ;;  %v4545_v26 = vld [vmem:[%s4925_s5 + $0x6] ss:$0 sm:$0xff] }
 0x1ec   : > { %v2935_v55 = vadd.f32 %v2934_v28, %v2922_v22 }
 0x1ed   : > { %v2925_v31 = vpop.xlane.xlu1 %2924 }
 0x1ee   : > { %v2936_v18 = vadd.f32 %v2935_v55, %v2925_v31  ;;  %v4551_v55 = vld [vmem:[%s4925_s5 + $0x7] ss:$0 sm:$0xff] }
 0x1f1   : > { %v2931_v9 = vpop.xlane.xlu1 %2930 }
 0x1f2   : > { %v2928_v33 = vpop.xlane.xlu0 %2927 }
 0x1f3   : > { %v2937_v41 = vadd.f32 %v2936_v18, %v2928_v33 }
 0x1f5   : > { %v2938_v36 = vadd.f32 %v2937_v41, %v2931_v9  ;;  %v4557_v9 = vld [vmem:[%s4925_s5 + $0x8] ss:$0 sm:$0xff] }
 0x1f7   : > { %v2939_v43 = vrot.slane %v2938_v36, 4 }
 0x1f9   : > { %v2940_v23 = vadd.f32 %v2939_v43, %v2938_v36 }
 0x1fb   : > { %v2941_v46 = vrot.slane %v2940_v23, 2 }
 0x1fd   : > { %v2942_v1 = vadd.f32 %v2941_v46, %v2940_v23 }
 0x1ff   : > { %v2943_v25 = vrot.slane %v2942_v1, 1 }
 0x201   : > { %v2944_v11 = vadd.f32 %v2943_v25, %v2942_v1  ;;  %v4565_v25 = vld [vmem:[%s4925_s5 + $0x4] ss:$0 sm:$0xff] }
 0x203   : > { %v2946_v63 = vmul.f32 0.0009765625, %v2944_v11 }
 0x205   : > { %v4438_v47 = vsub.f32 %v4321_v19, %v2946_v63  ;;  %v4441_v48 = vsub.f32 %v4318_v17, %v2946_v63  ;;  %v4444_v30 = vsub.f32 %v4340_v0, %v2946_v63  ;;  %v4447_v50 = vsub.f32 %v4336_v44, %v2946_v63 }
 0x206   : > { %v4454_v52 = vsub.f32 %v4360_v40, %v2946_v63  ;;  %v4457_v19 = vsub.f32 %v4362_v12, %v2946_v63  ;;  %v4466_v24 = vsub.f32 %v4371_v45, %v2946_v63  ;;  %v4469_v56 = vsub.f32 %v4381_v5, %v2946_v63  ;;  %v4491_v12 = vld [vmem:[%s4925_s5] ss:$0 sm:$0xff] }
 0x207   : > { %v2956_v16 = vmul.f32 %v4438_v47, %v4438_v47  ;;  %v2955_v35 = vmul.f32 %v4441_v48, %v4441_v48  ;;  %v2958_v44 = vmul.f32 %v4444_v30, %v4444_v30  ;;  %v2957_v6 = vmul.f32 %v4447_v50, %v4447_v50 }
 0x208   : > { %v2960_v59 = vmul.f32 %v4454_v52, %v4454_v52  ;;  %v2959_v13 = vmul.f32 %v4457_v19, %v4457_v19  ;;  %v2962_v37 = vmul.f32 %v4466_v24, %v4466_v24  ;;  %v2961_v3 = vmul.f32 %v4469_v56, %v4469_v56 }
 0x209   : > { %v2966_v17 = vsel %vm2114_vm3, %v2956_v16, 0.0  ;;  %v2963_v0 = vsel %vm2114_vm3, %v2955_v35, 0.0  ;;  %v2972_v62 = vsel %vm2114_vm3, %v2958_v44, 0.0  ;;  %v2969_v7 = vsel %vm2114_vm3, %v2957_v6, 0.0  ;;  %v4574_v35 = vld [vmem:[%s4925_s5 + $0x5] ss:$0 sm:$0xff] }
 0x20a   : > { %2967 = vadd.xlane.f32.xlu1 %v2966_v17  ;;  %2964 = vadd.xlane.f32.xlu0 %v2963_v0  ;;  %v2978_v51 = vsel %vm2114_vm3, %v2960_v59, 0.0  ;;  %v2975_v40 = vsel %vm2114_vm3, %v2959_v13, 0.0  ;;  %v2301_v54 = vmul.f32 %v4491_v12, %v4493_v29  ;;  %v2984_v38 = vsel %vm2114_vm3, %v2962_v37, 0.0 }
 0x20b   : > { %v2981_v27 = vsel %vm2114_vm3, %v2961_v3, 0.0 }
 0x20c   : > { %v2329_v34 = vadd.f32 %v2321_v57, %v2301_v54 }
 0x20e   : > { %2973 = vadd.xlane.f32.xlu1 %v2972_v62  ;;  %2970 = vadd.xlane.f32.xlu0 %v2969_v7  ;;  %v2357_v28 = vadd.f32 %v2349_v2, %v2329_v34 }
 0x212   : > { %2979 = vadd.xlane.f32.xlu1 %v2978_v51  ;;  %2976 = vadd.xlane.f32.xlu0 %v2975_v40 }
 0x216   : > { %2985 = vadd.xlane.f32.xlu1 %v2984_v38  ;;  %2982 = vadd.xlane.f32.xlu0 %v2981_v27 }
 0x217   : > { %v3655_v10 = vpop.f32.mrf.mxu1 }
 0x218   : > { %v4503_v15 = vadd.f32 %v3655_v10, %v4480_v8 }
 0x219   : > { %v2205_v45 = vpop.f32.mrf.mxu1 }
 0x21a   : > { %2282 = vst.msk [vmem:[#allocation3 + $0x21] sm:$0xff] %vm2114_vm3, %v4503_v15  ;;  %v4512_v21 = vadd.f32 %v4480_v8, %v2205_v45 }
 0x21c   : > { %2281 = vst.msk [vmem:[#allocation3 + $0x11] sm:$0xff] %vm2114_vm3, %v4512_v21  ;;  %v3658_v5 = vpop.f32.mrf.mxu1 }
 0x21d   : > { %v4526_v39 = vadd.f32 %v3658_v5, %v4480_v8 }
 0x21e   : > { %v2215_v58 = vpop.f32.mrf.mxu1 }
 0x21f   : > { %2284 = vst.msk [vmem:[#allocation3 + $0x41] sm:$0xff] %vm2114_vm3, %v4526_v39  ;;  %v4533_v53 = vadd.f32 %v4480_v8, %v2215_v58 }
 0x221   : > { %v2366_v60 = vld [vmem:[#allocation3 + $0x20] sm:$0xff]  ;;  %2283 = vst.msk [vmem:[#allocation3 + $0x31] sm:$0xff] %vm2114_vm3, %v4533_v53  ;;  %v3661_v1 = vpop.f32.mrf.mxu1 }
 0x222   : > { %v2478_v14 = vld [vmem:[#allocation3 + $0x21] sm:$0xff]  ;;  %v2303_v22 = vmul.f32 %v4491_v12, %v2366_v60  ;;  %v2462_v11 = vmul.f32 %v4545_v26, %v2366_v60  ;;  %v4569_v16 = vadd.f32 %v3661_v1, %v4480_v8  ;;  %v2378_v34 = vmul.f32 %v4540_v32, %v2366_v60 }
 0x223   : > { %v2290_v31 = vld [vmem:[#allocation3 + $0x10] sm:$0xff]  ;;  %v2323_v33 = vmul.f32 %v4498_v42, %v2478_v14  ;;  %v2506_v46 = vld [vmem:[#allocation3 + $0x22] sm:$0xff]  ;;  %v2490_v44 = vmul.f32 %v4551_v55, %v2478_v14  ;;  %v2225_v7 = vpop.f32.mrf.mxu1  ;;  %v2406_v2 = vmul.f32 %v4565_v25, %v2478_v14 }
 0x224   : > { %v2310_v18 = vld [vmem:[#allocation3 + $0x11] sm:$0xff]  ;;  %v2302_v41 = vmul.f32 %v4491_v12, %v2290_v31  ;;  %v2377_v23 = vmul.f32 %v4540_v32, %v2290_v31  ;;  %v2518_v40 = vmul.f32 %v4557_v9, %v2506_v46  ;;  %v2351_v37 = vmul.f32 %v4519_v49, %v2506_v46  ;;  %2286 = vst.msk [vmem:[#allocation3 + $0x61] sm:$0xff] %vm2114_vm3, %v4569_v16 }
 0x225   : > { %v2322_v36 = vmul.f32 %v4498_v42, %v2310_v18  ;;  %v2338_v43 = vld [vmem:[#allocation3 + $0x12] sm:$0xff]  ;;  %v2331_v63 = vadd.f32 %v2323_v33, %v2303_v22  ;;  %v2405_v0 = vmul.f32 %v4565_v25, %v2310_v18  ;;  %v4585_v54 = vadd.f32 %v4480_v8, %v2225_v7 }
 0x226   : > { %v2385_v17 = vadd.f32 %v2377_v23, %v2357_v28  ;;  %v2452_v6 = vld [vmem:[#allocation3 + $0x40] sm:$0xff]  ;;  %v2350_v13 = vmul.f32 %v4519_v49, %v2338_v43  ;;  %v2433_v51 = vmul.f32 %v4574_v35, %v2338_v43  ;;  %v2434_v33 = vmul.f32 %v4574_v35, %v2506_v46 }
 0x227   : > { %v2480_v62 = vld [vmem:[#allocation3 + $0x41] sm:$0xff]  ;;  %v2330_v59 = vadd.f32 %v2322_v36, %v2302_v41  ;;  %v2305_v38 = vmul.f32 %v4491_v12, %v2452_v6  ;;  %v2359_v57 = vadd.f32 %v2351_v37, %v2331_v63  ;;  %v2464_v22 = vmul.f32 %v4545_v26, %v2452_v6  ;;  %2285 = vst.msk [vmem:[#allocation3 + $0x51] sm:$0xff] %vm2114_vm3, %v4585_v54 }
 0x228   : > { %v2413_v3 = vadd.f32 %v2405_v0, %v2385_v17  ;;  %v2367_v10 = vld [vmem:[#allocation3 + $0x30] sm:$0xff]  ;;  %v2325_v27 = vmul.f32 %v4498_v42, %v2480_v62  ;;  %v2508_v31 = vld [vmem:[#allocation3 + $0x42] sm:$0xff]  ;;  %v2492_v14 = vmul.f32 %v4551_v55, %v2480_v62 }
 0x229   : > { %v2395_v45 = vld [vmem:[#allocation3 + $0x31] sm:$0xff]  ;;  %v2379_v5 = vmul.f32 %v4540_v32, %v2367_v10  ;;  %v2358_v18 = vadd.f32 %v2350_v13, %v2330_v59  ;;  %v2304_v23 = vmul.f32 %v4491_v12, %v2367_v10  ;;  %v2520_v7 = vmul.f32 %v4557_v9, %v2508_v31  ;;  %v3664_v13 = vpop.f32.mrf.mxu1 }
 0x22a   : > { %v2441_v58 = vadd.f32 %v2433_v51, %v2413_v3  ;;  %v2423_v28 = vld [vmem:[#allocation3 + $0x32] sm:$0xff]  ;;  %v2407_v36 = vmul.f32 %v4565_v25, %v2395_v45  ;;  %v2333_v43 = vadd.f32 %v2325_v27, %v2305_v38  ;;  %v2324_v63 = vmul.f32 %v4498_v42, %v2395_v45 }
 0x22b   : > { %v2387_v41 = vadd.f32 %v2379_v5, %v2359_v57  ;;  %v2386_v1 = vadd.f32 %v2378_v34, %v2358_v18  ;;  %v2435_v0 = vmul.f32 %v4574_v35, %v2423_v28  ;;  %v2353_v59 = vmul.f32 %v4519_v49, %v2508_v31  ;;  %v2454_v57 = vld [vmem:[#allocation3 + $0x60] sm:$0xff] }
 0x22c   : > { %v2470_v60 = vadd.f32 %v2462_v11, %v2441_v58  ;;  %v2463_v37 = vmul.f32 %v4545_v26, %v2367_v10  ;;  %v2491_v3 = vmul.f32 %v4551_v55, %v2395_v45  ;;  %v4608_v11 = vld [vmem:[%s4926_s6] ss:$0 sm:$0xff]  ;;  %v4610_v5 = vld [vmem:[#allocation3 + $0x61] sm:$0xff]  ;;  %v2519_v34 = vmul.f32 %v4557_v9, %v2423_v28  ;;  %v2235_v10 = vpop.f32.mrf.mxu1 }
 0x22d   : > { %v2415_v17 = vadd.f32 %v2407_v36, %v2387_v41  ;;  %v2414_v51 = vadd.f32 %v2406_v2, %v2386_v1  ;;  %v2361_v27 = vadd.f32 %v2353_v59, %v2333_v43  ;;  %v2332_v58 = vadd.f32 %v2324_v63, %v2304_v23  ;;  %v4621_v41 = vld [vmem:[%s4927_s7] ss:$0 sm:$0xff] }
 0x22e   : > { %v2498_v46 = vadd.f32 %v2490_v44, %v2470_v60  ;;  %v4614_v2 = vadd.f32 %v3664_v13, %v4480_v8  ;;  %v2352_v45 = vmul.f32 %v4519_v49, %v2423_v28  ;;  %v2380_v18 = vmul.f32 %v4540_v32, %v2452_v6  ;;  %v2369_v43 = vld [vmem:[#allocation3 + $0x50] sm:$0xff] }
 0x22f   : > { %v2443_v38 = vadd.f32 %v2435_v0, %v2415_v17  ;;  %v2397_v60 = vld [vmem:[#allocation3 + $0x51] sm:$0xff]  ;;  %v4624_v1 = vadd.f32 %v4480_v8, %v2235_v10  ;;  %v2408_v23 = vmul.f32 %v4565_v25, %v2480_v62  ;;  %v2381_v28 = vmul.f32 %v4540_v32, %v2369_v43  ;;  %v2510_v10 = vld [vmem:[#allocation3 + $0x62] sm:$0xff] }
 0x230   : > { %v2526_v44 = vadd.f32 %v2518_v40, %v2498_v46  ;;  %v2442_v40 = vadd.f32 %v2434_v33, %v2414_v51  ;;  %v2425_v17 = vld [vmem:[#allocation3 + $0x52] sm:$0xff]  ;;  %2288 = vst.msk [vmem:[#allocation3 + $0x81] sm:$0xff] %vm2114_vm3, %v4614_v2  ;;  %v2307_v6 = vmul.f32 %v4491_v12, %v2454_v57  ;;  %v2360_v33 = vadd.f32 %v2352_v45, %v2332_v58 }
 0x231   : > { %v2472_v36 = vadd.f32 %v2464_v22, %v2443_v38  ;;  %v2327_v22 = vmul.f32 %v4498_v42, %v4610_v5  ;;  %2287 = vst.msk [vmem:[#allocation3 + $0x71] sm:$0xff] %vm2114_vm3, %v4624_v1  ;;  %v2436_v62 = vmul.f32 %v4574_v35, %v2508_v31  ;;  %v2389_v46 = vadd.f32 %v2381_v28, %v2361_v27 }
 0x232   : > { %v2541_v63 = vadd.f32 %v4608_v11, %v2526_v44  ;;  %v2471_v8 = vadd.f32 %v2463_v37, %v2442_v40  ;;  %v2409_v13 = vmul.f32 %v4565_v25, %v2397_v60  ;;  %v2466_v51 = vmul.f32 %v4545_v26, %v2454_v57 }
 0x233   : > { %v2500_v0 = vadd.f32 %v2492_v14, %v2472_v36  ;;  %v2437_v44 = vmul.f32 %v4574_v35, %v2425_v17  ;;  %v2388_v14 = vadd.f32 %v2380_v18, %v2360_v33  ;;  %v2335_v37 = vadd.f32 %v2327_v22, %v2307_v6 }
 0x234   : > { %v2556_v59 = vmul.f32 %v4621_v41, %v2541_v63  ;;  %v2499_v61 = vadd.f32 %v2491_v3, %v2471_v8  ;;  %v2417_v20 = vadd.f32 %v2409_v13, %v2389_v46  ;;  %v2306_v58 = vmul.f32 %v4491_v12, %v2369_v43 }
 0x235   : > { %v2528_v38 = vadd.f32 %v2520_v7, %v2500_v0  ;;  %v2416_v27 = vadd.f32 %v2408_v23, %v2388_v14  ;;  %v2326_v40 = vmul.f32 %v4498_v42, %v2397_v60  ;;  %v2494_v7 = vmul.f32 %v4551_v55, %v4610_v5 }
 0x236   : > { %v2564_v36 = vadd.f32 %v2556_v59, %v4512_v21  ;;  %v2527_v45 = vadd.f32 %v2519_v34, %v2499_v61  ;;  %v2445_v63 = vadd.f32 %v2437_v44, %v2417_v20  ;;  %v2522_v28 = vmul.f32 %v4557_v9, %v2510_v10 }
 0x237   : > { %v2543_v31 = vadd.f32 %v4608_v11, %v2528_v38  ;;  %v2355_v3 = vmul.f32 %v4519_v49, %v2510_v10  ;;  %v2444_v6 = vadd.f32 %v2436_v62, %v2416_v27  ;;  %v2334_v22 = vadd.f32 %v2326_v40, %v2306_v58 }
 0x238   : > { %3669 = vmatprep.mubr.msk.f32.mxu0 %vm2114_vm3, %v2564_v36  ;;  %v2542_v18 = vadd.f32 %v4608_v11, %v2527_v45  ;;  %v2474_v61 = vadd.f32 %v2466_v51, %v2445_v63  ;;  %v2371_v34 = vld [vmem:[#allocation3 + $0x70] sm:$0xff]  ;;  %v2465_v20 = vmul.f32 %v4545_v26, %v2369_v43  ;;  %v2493_v0 = vmul.f32 %v4551_v55, %v2397_v60 }
 0x239   : > { %v2558_v21 = vmul.f32 %v4621_v41, %v2543_v31  ;;  %v2399_v23 = vld [vmem:[#allocation3 + $0x71] sm:$0xff]  ;;  %v2354_v8 = vmul.f32 %v4519_v49, %v2425_v17  ;;  %v2363_v33 = vadd.f32 %v2355_v3, %v2335_v37  ;;  %v2383_v59 = vmul.f32 %v4540_v32, %v2371_v34  ;;  %v2456_v31 = vld [vmem:[#allocation3 + $0x80] sm:$0xff] }
 0x23a   : > { %v2521_v46 = vmul.f32 %v4557_v9, %v2425_v17  ;;  %v2382_v13 = vmul.f32 %v4540_v32, %v2454_v57  ;;  %v2502_v38 = vadd.f32 %v2494_v7, %v2474_v61  ;;  %v2427_v44 = vld [vmem:[#allocation3 + $0x72] sm:$0xff]  ;;  %v2557_v62 = vmul.f32 %v4621_v41, %v2542_v18  ;;  %v2484_v3 = vld [vmem:[#allocation3 + $0x81] sm:$0xff] }
 0x23b   : > { %v2473_v51 = vadd.f32 %v2465_v20, %v2444_v6  ;;  %v2362_v14 = vadd.f32 %v2354_v8, %v2334_v22  ;;  %v2566_v36 = vadd.f32 %v2558_v21, %v4533_v53  ;;  %v2391_v43 = vadd.f32 %v2383_v59, %v2363_v33  ;;  %v2512_v6 = vld [vmem:[#allocation3 + $0x82] sm:$0xff] }
 0x23c   : > { %v2411_v60 = vmul.f32 %v4565_v25, %v2399_v23  ;;  %v2410_v37 = vmul.f32 %v4565_v25, %v4610_v5  ;;  %v2530_v58 = vadd.f32 %v2522_v28, %v2502_v38  ;;  %v2565_v17 = vadd.f32 %v2557_v62, %v4503_v15  ;;  %v4681_v62 = vld [vmem:[#allocation3 + $0x90] sm:$0xff] }
 0x23d   : > { %v2501_v45 = vadd.f32 %v2493_v0, %v2473_v51  ;;  %v2390_v57 = vadd.f32 %v2382_v13, %v2362_v14  ;;  %v2439_v40 = vmul.f32 %v4574_v35, %v2427_v44  ;;  %v2308_v63 = vmul.f32 %v4491_v12, %v2371_v34 }
 0x23e   : > { %v2419_v27 = vadd.f32 %v2411_v60, %v2391_v43  ;;  %v2328_v7 = vmul.f32 %v4498_v42, %v2399_v23  ;;  %v2545_v53 = vadd.f32 %v4608_v11, %v2530_v58  ;;  %3670 = vmatmul.mubr.msk.f32.vlgmr.msra.gmra.mxu0 %vm2114_vm3, %v2565_v17  ;;  %v2438_v28 = vmul.f32 %v4574_v35, %v2510_v10 }
 0x23f   : > { %v2529_v21 = vadd.f32 %v2521_v46, %v2501_v45  ;;  %v2418_v5 = vadd.f32 %v2410_v37, %v2390_v57  ;;  %v2468_v15 = vmul.f32 %v4545_v26, %v2456_v31  ;;  %3672 = vmatprep.mubr.msk.f32.mxu0 %vm2114_vm3, %v2566_v36  ;;  %v2356_v12 = vmul.f32 %v4519_v49, %v2427_v44  ;;  %v4687_v37 = vld [vmem:[#allocation3 + $0x91] sm:$0xff] }
 0x240   : > { %v2447_v18 = vadd.f32 %v2439_v40, %v2419_v27  ;;  %v2336_v22 = vadd.f32 %v2328_v7, %v2308_v63  ;;  %v2560_v42 = vmul.f32 %v4621_v41, %v2545_v53  ;;  %v2467_v0 = vmul.f32 %v4545_v26, %v2371_v34  ;;  %v4693_v45 = vld [vmem:[#allocation3 + $0x92] sm:$0xff] }
 0x241   : > { %v2544_v61 = vadd.f32 %v4608_v11, %v2529_v21  ;;  %v2446_v20 = vadd.f32 %v2438_v28, %v2418_v5  ;;  %v2496_v33 = vmul.f32 %v4551_v55, %v2484_v3  ;;  %v2384_v59 = vmul.f32 %v4540_v32, %v2456_v31 }
 0x242   : > { %v2476_v8 = vadd.f32 %v2468_v15, %v2447_v18  ;;  %v2364_v10 = vadd.f32 %v2356_v12, %v2336_v22  ;;  %v2524_v46 = vmul.f32 %v4557_v9, %v2512_v6  ;;  %v2495_v49 = vmul.f32 %v4551_v55, %v2399_v23 }
 0x243   : > { %v2559_v13 = vmul.f32 %v4621_v41, %v2544_v61  ;;  %v2475_v38 = vadd.f32 %v2467_v0, %v2446_v20  ;;  %v2568_v51 = vadd.f32 %v2560_v42, %v4585_v54  ;;  %v2412_v34 = vmul.f32 %v4565_v25, %v2484_v3 }
 0x244   : > { %v2504_v14 = vadd.f32 %v2496_v33, %v2476_v8  ;;  %v2392_v36 = vadd.f32 %v2384_v59, %v2364_v10  ;;  %v2523_v32 = vmul.f32 %v4557_v9, %v2427_v44  ;;  %v2440_v17 = vmul.f32 %v4574_v35, %v2512_v6  ;;  %v2734_v10 = vld [vmem:[%s4930_s10 + $0x8] sm:$0xff]  ;;  %v2733_v59 = vld [vmem:[%s4930_s10] sm:$0xff] }
 0x245   : > { %v2567_v43 = vadd.f32 %v2559_v13, %v4526_v39  ;;  %v2503_v60 = vadd.f32 %v2495_v49, %v2475_v38  ;;  %v2469_v23 = vmul.f32 %v4545_v26, %v4681_v62  ;;  %v2497_v44 = vmul.f32 %v4551_v55, %v4687_v37  ;;  %3682 = vmatpush3.msra.mxu1 %v2734_v10 }
 0x246   : > { %v2532_v58 = vadd.f32 %v2524_v46, %v2504_v14  ;;  %v2420_v31 = vadd.f32 %v2412_v34, %v2392_v36  ;;  %v2525_v26 = vmul.f32 %v4557_v9, %v4693_v45  ;;  %3683 = vmatprep.subr.mxu1 %v4945_v4  ;;  %v3409_v36 = vld [vmem:[%s4934_s14] ss:$0 sm:$0xff] }
 0x247   : > { %3673 = vmatmul.mubr.msk.f32.gmra.mxu0 %vm2114_vm3, %v2567_v43  ;;  %v2531_v54 = vadd.f32 %v2523_v32, %v2503_v60  ;;  %3684 = vmatpush3.msra.mxu1 %v2733_v59 }
 0x248   : > { %v2547_v25 = vadd.f32 %v4608_v11, %v2532_v58  ;;  %3675 = vmatprep.mubr.msk.f32.mxu0 %vm2114_vm3, %v2568_v51  ;;  %v2448_v39 = vadd.f32 %v2440_v17, %v2420_v31  ;;  %3688 = vmatprep.subr.mxu1 %v4945_v4 }
 0x249   : > { %v2546_v57 = vadd.f32 %v4608_v11, %v2531_v54  ;;  %v3410_v54 = vld [vmem:[%s4935_s15] ss:$0 sm:$0xff] }
 0x24a   : > { %v2562_v35 = vmul.f32 %v4621_v41, %v2547_v25  ;;  %v2477_v27 = vadd.f32 %v2469_v23, %v2448_v39 }
 0x24b   : > { %v2561_v40 = vmul.f32 %v4621_v41, %v2546_v57 }
 0x24c   : > { %v2570_v63 = vadd.f32 %v2562_v35, %v4624_v1  ;;  %v2505_v7 = vadd.f32 %v2497_v44, %v2477_v27 }
 0x24d   : > { %v2569_v53 = vadd.f32 %v2561_v40, %v4569_v16 }
 0x24e   : > { %v2533_v3 = vadd.f32 %v2525_v26, %v2505_v7 }
 0x24f   : > { %3676 = vmatmul.mubr.msk.f32.gmra.mxu0 %vm2114_vm3, %v2569_v53  ;;  %v3397_v53 = vld [vmem:[%s4929_s9] ss:$0 sm:$0xff] }
 0x250   : > { %3678 = vmatprep.mubr.msk.f32.mxu0 %vm2114_vm3, %v2570_v63  ;;  %v2548_v55 = vadd.f32 %v4608_v11, %v2533_v3 }
 0x252   : > { %v2563_v21 = vmul.f32 %v4621_v41, %v2548_v55 }
 0x254   : > { %v2571_v5 = vadd.f32 %v2563_v21, %v4614_v2 }
 0x256   : > { %3679 = vmatmul.mubr.msk.f32.gmra.mxu0 %vm2114_vm3, %v2571_v5 }
 0x293   : > { %v2968_v9 = vpop.xlane.xlu1 %2967  ;;  %v2965_v28 = vpop.xlane.xlu0 %2964 }
 0x294   : > { %v2987_v18 = vadd.f32 %v2968_v9, %v2965_v28 }
 0x297   : > { %v2974_v1 = vpop.xlane.xlu1 %2973  ;;  %v2971_v15 = vpop.xlane.xlu0 %2970 }
 0x298   : > { %v2988_v6 = vadd.f32 %v2987_v18, %v2971_v15 }
 0x29a   : > { %v2989_v16 = vadd.f32 %v2988_v6, %v2974_v1 }
 0x29b   : > { %v2980_v22 = vpop.xlane.xlu1 %2979  ;;  %v2977_v12 = vpop.xlane.xlu0 %2976 }
 0x29c   : > { %v2990_v42 = vadd.f32 %v2989_v16, %v2977_v12 }
 0x29e   : > { %v2991_v61 = vadd.f32 %v2990_v42, %v2980_v22 }
 0x29f   : > { %v2983_v20 = vpop.xlane.xlu0 %2982  ;;  %v2986_v11 = vpop.xlane.xlu1 %2985 }
 0x2a0   : > { %v2992_v0 = vadd.f32 %v2991_v61, %v2983_v20 }
 0x2a2   : > { %v2993_v8 = vadd.f32 %v2992_v0, %v2986_v11 }
 0x2a4   : > { %v2994_v41 = vrot.slane %v2993_v8, 4 }
 0x2a6   : > { %v2995_v33 = vadd.f32 %v2994_v41, %v2993_v8 }
 0x2a8   : > { %v2996_v2 = vrot.slane %v2995_v33, 2 }
 0x2aa   : > { %v2997_v46 = vadd.f32 %v2996_v2, %v2995_v33 }
 0x2ac   : > { %v2998_v13 = vrot.slane %v2997_v46, 1 }
 0x2ae   : > { %v2999_v38 = vadd.f32 %v2998_v13, %v2997_v46 }
 0x2b0   : > { %v3000_v49 = vmul.f32 0.0009765625, %v2999_v38 }
 0x2b2   : > { %v3001_v51 = vadd.f32 1e-05, %v3000_v49 }
 0x2b4   : > { %3738 = vrsqrt.f32 %v3001_v51 }
 0x2c1   : > { %v3739_v14 = vpop.eup %3738 }
 0x2c2   : > { %v3003_v34 = vmul.f32 %v3739_v14, %v4441_v48  ;;  %v3004_v43 = vmul.f32 %v3739_v14, %v4438_v47  ;;  %v3005_v60 = vmul.f32 %v3739_v14, %v4447_v50  ;;  %v3006_v32 = vmul.f32 %v3739_v14, %v4444_v30 }
 0x2c3   : > { %v3007_v58 = vmul.f32 %v3739_v14, %v4457_v19  ;;  %v3008_v31 = vmul.f32 %v3739_v14, %v4454_v52  ;;  %v3009_v17 = vmul.f32 %v3739_v14, %v4469_v56  ;;  %v3010_v23 = vmul.f32 %v3739_v14, %v4466_v24 }
 0x2c4   : > { %v3018_v25 = vmul.f32 %v3409_v36, %v3003_v34  ;;  %v3019_v48 = vmul.f32 %v3409_v36, %v3004_v43  ;;  %v3020_v39 = vmul.f32 %v3409_v36, %v3005_v60  ;;  %v3021_v47 = vmul.f32 %v3409_v36, %v3006_v32 }
 0x2c5   : > { %v3022_v44 = vmul.f32 %v3409_v36, %v3007_v58  ;;  %v3023_v50 = vmul.f32 %v3409_v36, %v3008_v31  ;;  %v3024_v57 = vmul.f32 %v3409_v36, %v3009_v17  ;;  %v3025_v30 = vmul.f32 %v3409_v36, %v3010_v23  ;;  %v2810_v31 = vld [vmem:[%s4932_s12] sm:$0xf] }
 0x2c6   : > { %v3033_v35 = vadd.f32 %v3410_v54, %v3018_v25  ;;  %v3034_v19 = vadd.f32 %v3410_v54, %v3019_v48  ;;  %v3035_v27 = vadd.f32 %v3410_v54, %v3020_v39  ;;  %v3036_v52 = vadd.f32 %v3410_v54, %v3021_v47  ;;  %v2735_v17 = vld [vmem:[%s4931_s11] sm:$0x1] }
 0x2c7   : > { %v3037_v26 = vadd.f32 %v3410_v54, %v3022_v44  ;;  %v3038_v56 = vadd.f32 %v3410_v54, %v3023_v50  ;;  %v3039_v40 = vadd.f32 %v3410_v54, %v3024_v57  ;;  %v3040_v24 = vadd.f32 %v3410_v54, %v3025_v30  ;;  %v2811_v44 = vld [vmem:[%s4933_s13] sm:$0x1] }
 0x2c8   : > { %3041 = vst.msk [vmem:[#allocation3 + $0x11] sm:$0xff] %vm2114_vm3, %v3033_v35  ;;  %3042 = vst.msk [vmem:[#allocation3 + $0x21] sm:$0xff] %vm2114_vm3, %v3034_v19  ;;  %v2896_v39 = vlaneseq }
 0x2c9   : > { %3043 = vst.msk [vmem:[#allocation3 + $0x31] sm:$0xff] %vm2114_vm3, %v3035_v27  ;;  %3044 = vst.msk [vmem:[#allocation3 + $0x41] sm:$0xff] %vm2114_vm3, %v3036_v52 }
 0x2ca   : > { %3045 = vst.msk [vmem:[#allocation3 + $0x51] sm:$0xff] %vm2114_vm3, %v3037_v26  ;;  %3046 = vst.msk [vmem:[#allocation3 + $0x61] sm:$0xff] %vm2114_vm3, %v3038_v56  ;;  %v4788_v47 = vshrl.u32 %v2896_v39, 7 }
 0x2cb   : > { %3047 = vst.msk [vmem:[#allocation3 + $0x71] sm:$0xff] %vm2114_vm3, %v3039_v40  ;;  %3048 = vst.msk [vmem:[#allocation3 + $0x81] sm:$0xff] %vm2114_vm3, %v3040_v24 }
 0x2cc   : > { %vm3194_vm1 = vcmp.eq.s32.totalorder %v4788_v47, 0  ;;  %vm3198_vm2 = vcmp.eq.s32.totalorder %v4788_v47, 7 }
 0x2cf   : > { %v3050_v57 = vld [vmem:[#allocation3 + $0x10] sm:$0xff]  ;;  %v4793_v30 = vld [vmem:[#allocation3 + $0x20] sm:$0xff] }
 0x2d0   : > { %v4795_v35 = vld [vmem:[#allocation3 + $0x30] sm:$0xff]  ;;  %v4797_v27 = vld [vmem:[#allocation3 + $0x40] sm:$0xff] }
 0x2d1   : > { %v4799_v52 = vld [vmem:[#allocation3 + $0x50] sm:$0xff]  ;;  %v4801_v26 = vld [vmem:[#allocation3 + $0x60] sm:$0xff] }
 0x2d2   : > { %v4803_v56 = vld [vmem:[#allocation3 + $0x70] sm:$0xff]  ;;  %v4806_v24 = vld [vmem:[#allocation3 + $0x21] sm:$0xff] }
 0x2d3   : > { %v3058_v40 = vld [vmem:[#allocation3 + $0x11] sm:$0xff] }
 0x2fe   : > { %v3671_v63 = vpop.f32.mrf.mxu0 }
 0x2ff   : > { %v4749_v55 = vadd.f32 %v3671_v63, %v3397_v53  ;;  %v4808_v63 = vld [vmem:[#allocation3 + $0x31] sm:$0xff] }
 0x300   : > { %v2671_v7 = vpop.f32.mrf.mxu0 }
 0x301   : > { %v4747_v3 = vadd.f32 %v3397_v53, %v2671_v7  ;;  %v2711_v28 = vsel %vm2114_vm3, %v4749_v55, 0.0  ;;  %v4810_v7 = vld [vmem:[#allocation3 + $0x41] sm:$0xff] }
 0x303   : > { %v2710_v5 = vsel %vm2114_vm3, %v4747_v3, 0.0 }
 0x304   : > { %v2712_v1 = vadd.f32 %v2711_v28, %v2710_v5  ;;  %v4812_v5 = vld [vmem:[#allocation3 + $0x51] sm:$0xff] }
 0x305   : > { %v4816_v28 = vld [vmem:[#allocation3 + $0x71] sm:$0xff] }
 0x307   : > { %v3674_v21 = vpop.f32.mrf.mxu0 }
 0x308   : > { %v4757_v15 = vadd.f32 %v3674_v21, %v3397_v53 }
 0x309   : > { %v2681_v9 = vpop.f32.mrf.mxu0 }
 0x30a   : > { %v4755_v18 = vadd.f32 %v3397_v53, %v2681_v9  ;;  %v2715_v12 = vsel %vm2114_vm3, %v4757_v15, 0.0  ;;  %v4814_v9 = vld [vmem:[#allocation3 + $0x61] sm:$0xff] }
 0x30c   : > { %v2713_v6 = vsel %vm2114_vm3, %v4755_v18, 0.0 }
 0x30d   : > { %v2714_v16 = vadd.f32 %v2713_v6, %v2712_v1  ;;  %v4948_v1 = vld [vmem:[#allocation4_spill] sm:$0xff] }
 0x30e   : > { %v3065_v6 = vadd.f32 %v4948_v1, %v4493_v29  ;;  %v3071_v29 = vadd.f32 %v4814_v9, %v4801_v26 }
 0x30f   : > { %v3677_v22 = vpop.f32.mrf.mxu0  ;;  %v2716_v61 = vadd.f32 %v2715_v12, %v2714_v16  ;;  %v3411_v16 = vsel %vm3194_vm1, 1.0, %v4945_v4  ;;  %v3066_v12 = vadd.f32 %v3058_v40, %v3050_v57 }
 0x310   : > { %v4765_v0 = vadd.f32 %v3677_v22, %v3397_v53 }
 0x311   : > { %v2691_v42 = vpop.f32.mrf.mxu0 }
 0x312   : > { %v4763_v20 = vadd.f32 %v3397_v53, %v2691_v42  ;;  %v2719_v33 = vsel %vm2114_vm3, %v4765_v0, 0.0  ;;  %v3067_v42 = vadd.f32 %v4806_v24, %v4793_v30 }
 0x314   : > { %v2717_v11 = vsel %vm2114_vm3, %v4763_v20, 0.0 }
 0x315   : > { %v2718_v8 = vadd.f32 %v2717_v11, %v2716_v61  ;;  %v3068_v61 = vadd.f32 %v4808_v63, %v4795_v35  ;;  %v3069_v11 = vadd.f32 %v4810_v7, %v4797_v27 }
 0x316   : > { %v3680_v41 = vpop.f32.mrf.mxu0 }
 0x317   : > { %v2720_v10 = vadd.f32 %v2719_v33, %v2718_v8  ;;  %v4771_v59 = vadd.f32 %v3680_v41, %v3397_v53  ;;  %v3070_v8 = vadd.f32 %v4812_v5, %v4799_v52  ;;  %v3072_v41 = vadd.f32 %v4816_v28, %v4803_v56  ;;  %v3074_v33 = vld [vmem:[#allocation3 + $0x12] sm:$0xff] }
 0x318   : > { %v2701_v2 = vpop.f32.mrf.mxu0 }
 0x319   : > { %v4773_v46 = vadd.f32 %v3397_v53, %v2701_v2  ;;  %v2723_v49 = vsel %vm2114_vm3, %v4771_v59, 0.0  ;;  %v3197_v2 = vsub.f32 3.0, %v3411_v16 }
 0x31b   : > { %v2721_v13 = vsel %vm2114_vm3, %v4773_v46, 0.0 }
 0x31c   : > { %v2722_v38 = vadd.f32 %v2721_v13, %v2720_v10  ;;  %v4834_v10 = vld [vmem:[#allocation3 + $0x22] sm:$0xff]  ;;  %v4836_v13 = vld [vmem:[#allocation3 + $0x32] sm:$0xff] }
 0x31e   : > { %v2724_v51 = vadd.f32 %v2723_v49, %v2722_v38  ;;  %v4838_v38 = vld [vmem:[#allocation3 + $0x42] sm:$0xff] }
 0x31f   : > { %v4949_v49 = vld [vmem:[#allocation5_spill] sm:$0xff] }
 0x320   : > { %v2725_v14 = vrot.slane %v2724_v51, 4 }
 0x322   : > { %v2726_v36 = vadd.f32 %v2725_v14, %v2724_v51  ;;  %v3081_v51 = vadd.f32 %v3065_v6, %v4949_v49  ;;  %v3412_v14 = vsel %vm3198_vm2, 1.0, %v4945_v4 }
 0x324   : > { %v2727_v34 = vrot.slane %v2726_v36, 2 }
 0x326   : > { %v2728_v43 = vadd.f32 %v2727_v34, %v2726_v36  ;;  %v4844_v36 = vld [vmem:[#allocation3 + $0x52] sm:$0xff]  ;;  %v4846_v34 = vld [vmem:[#allocation3 + $0x62] sm:$0xff] }
 0x328   : > { %v2729_v60 = vrot.slane %v2728_v43, 1 }
 0x32a   : > { %v2730_v32 = vadd.f32 %v2729_v60, %v2728_v43  ;;  %v4848_v43 = vld [vmem:[#allocation3 + $0x72] sm:$0xff]  ;;  %v3082_v60 = vadd.f32 %v3074_v33, %v3066_v12  ;;  %v3112_v12 = vld [vmem:[#allocation3 + $0x81] sm:$0xff] }
 0x32c   : > { %v2732_v58 = vmul.f32 0.015625, %v2730_v32  ;;  %v3083_v32 = vadd.f32 %v4834_v10, %v3067_v42  ;;  %v3098_v39 = vadd.f32 %v3082_v60, %v4793_v30 }
 0x32e   : > { %3686 = vmatmul.mubr.msk.f32.vlgmr.msra.gmra.mxu1 %vm2114_vm3, %v2732_v58  ;;  %v3084_v58 = vadd.f32 %v4836_v13, %v3068_v61 }
 0x32f   : > { %3690 = vmatprep.mubr.msk.f32.mxu1 %vm3758_vm14, %v4945_v4  ;;  %3689 = vmatpush3.msk.msra.mxu1 %vm2816_vm15, %v2810_v31  ;;  %v3085_v31 = vadd.f32 %v4838_v38, %v3069_v11  ;;  %v3201_v4 = vsub.f32 %v3197_v2, %v3412_v14 }
 0x331   : > { %v3202_v6 = vmul.f32 2.0, %v3201_v4 }
 0x3ee   : > { %v2805_v23 = vpop.f32.mrf.mxu1 }
 0x3ef   : > { %v2806_v54 = vadd.f32 %v2805_v23, %v2735_v17  ;;  %v3086_v17 = vadd.f32 %v4844_v36, %v3070_v8  ;;  %v3087_v23 = vadd.f32 %v4846_v34, %v3071_v29 }
 0x3f0   : > { %v3687_v25 = vpop.f32.mrf.mxu1 }
 0x3f1   : > { %v2809_v48 = vmax.f32 %v2806_v54, 0.0  ;;  %v3088_v54 = vadd.f32 %v4848_v43, %v3072_v41  ;;  %v3097_v25 = vadd.f32 %v3081_v51, %v3050_v57  ;;  %v3114_v57 = vadd.f32 %v3098_v39, %v4806_v24  ;;  %v3128_v51 = vld [vmem:[#allocation3 + $0x82] sm:$0xff] }
 0x3f3   : > { %3691 = vmatmul.mubr.msk.f32.vlgmr.msra.gmra.mxu1 %vm2812_vm0, %v2809_v48  ;;  %v3096_v48 = vld [vmem:[#allocation3 + $0x80] sm:$0xff]  ;;  %v3113_v16 = vadd.f32 %v3097_v25, %v3058_v40  ;;  %v3130_v14 = vadd.f32 %v3114_v57, %v4834_v10 }
 0x3f4   : > { %v3104_v1 = vadd.f32 %v3096_v48, %v3088_v54 }
 0x3f5   : > { %v3129_v49 = vadd.f32 %v3113_v16, %v3074_v33  ;;  %v3146_v33 = vadd.f32 %v3130_v14, %v4795_v35 }
 0x3f6   : > { %v3120_v41 = vadd.f32 %v3112_v12, %v3104_v1 }
 0x3f7   : > { %v3145_v54 = vadd.f32 %v3129_v49, %v4793_v30 }
 0x4b3   : > { %v2886_v50 = vpop.f32.mrf.mxu1 }
 0x4b4   : > { %v2887_v19 = vadd.f32 %v2886_v50, %v2811_v44  ;;  %v3099_v44 = vadd.f32 %v3083_v32, %v4795_v35  ;;  %v3100_v50 = vadd.f32 %v3084_v58, %v4797_v27 }
 0x4b5   : > { %v3692_v53 = vpop.f32.mrf.mxu1 }
 0x4b6   : > { %v2890_v21 = vsub.f32 0.0, %v2887_v19  ;;  %v3101_v19 = vadd.f32 %v3085_v31, %v4799_v52  ;;  %v3102_v53 = vadd.f32 %v3086_v17, %v4801_v26  ;;  %v3115_v42 = vadd.f32 %v3099_v44, %v4808_v63 }
 0x4b7   : > { %v3116_v61 = vadd.f32 %v3100_v50, %v4810_v7 }
 0x4b8   : > { %v2891_v22 = vmul.f32 1.442695, %v2890_v21  ;;  %v3103_v21 = vadd.f32 %v3087_v23, %v4803_v56  ;;  %v3117_v11 = vadd.f32 %v3101_v19, %v4812_v5  ;;  %v3118_v8 = vadd.f32 %v3102_v53, %v4814_v9 }
 0x4b9   : > { %v3131_v60 = vadd.f32 %v3115_v42, %v4836_v13  ;;  %v3132_v32 = vadd.f32 %v3116_v61, %v4838_v38  ;;  %v3136_v23 = vadd.f32 %v3128_v51, %v3120_v41  ;;  %v3161_v53 = vadd.f32 %v3145_v54, %v4806_v24 }
 0x4ba   : > { %3740 = vpow2.f32 %v2891_v22  ;;  %v3203_v22 = vmul.f32 3.0, %v3201_v4  ;;  %v3119_v29 = vadd.f32 %v3103_v21, %v4816_v28  ;;  %v3133_v58 = vadd.f32 %v3117_v11, %v4844_v36 }
 0x4bb   : > { %3742 = vrcp.f32 %v3202_v6  ;;  %v3134_v31 = vadd.f32 %v3118_v8, %v4846_v34  ;;  %v3147_v4 = vadd.f32 %v3131_v60, %v4797_v27  ;;  %v3148_v25 = vadd.f32 %v3132_v32, %v4799_v52 }
 0x4bc   : > { %3744 = vrcp.f32 %v3203_v22  ;;  %v3135_v17 = vadd.f32 %v3119_v29, %v4848_v43  ;;  %v3149_v39 = vadd.f32 %v3133_v58, %v4801_v26  ;;  %v3152_v19 = vadd.f32 %v3136_v23, %v4681_v62 }
 0x4bd   : > { %v3150_v44 = vadd.f32 %v3134_v31, %v4803_v56  ;;  %v3162_v21 = vadd.f32 %v3146_v33, %v4808_v63  ;;  %v3163_v1 = vadd.f32 %v3147_v4, %v4810_v7  ;;  %v3164_v30 = vadd.f32 %v3148_v25, %v4812_v5 }
 0x4be   : > { %v3151_v50 = vadd.f32 %v3135_v17, %v3096_v48  ;;  %v3165_v35 = vadd.f32 %v3149_v39, %v4814_v9  ;;  %v3168_v26 = vadd.f32 %v3152_v19, %v4687_v37  ;;  %v3177_v56 = vadd.f32 %v3161_v53, %v4834_v10 }
 0x4bf   : > { %v3166_v27 = vadd.f32 %v3150_v44, %v4816_v28  ;;  %v2898_v62 = vsub.s32 0, %v4788_v47  ;;  %v3178_v24 = vadd.f32 %v3162_v21, %v4836_v13  ;;  %v3179_v63 = vadd.f32 %v3163_v1, %v4838_v38 }
 0x4c0   : > { %v3167_v52 = vadd.f32 %v3151_v50, %v3112_v12  ;;  %v3180_v7 = vadd.f32 %v3164_v30, %v4844_v36  ;;  %v3181_v5 = vadd.f32 %v3165_v35, %v4846_v34  ;;  %v3184_v37 = vadd.f32 %v3168_v26, %v4693_v45 }
 0x4c1   : > { %v3182_v9 = vadd.f32 %v3166_v27, %v4848_v43 }
 0x4c2   : > { %v3183_v28 = vadd.f32 %v3167_v52, %v3128_v51 }
 0x4c7   : > { %v3741_v2 = vpop.eup %3740 }
 0x4c8   : > { %v2893_v40 = vadd.f32 1.0, %v3741_v2  ;;  %v3743_v6 = vpop.eup %3742 }
 0x4c9   : > { %v3745_v48 = vpop.eup %3744  ;;  %v3206_v22 = vmul.f32 %v3743_v6, %v3177_v56  ;;  %v3215_v38 = vmul.f32 %v3743_v6, %v3184_v37 }
 0x4ca   : > { %3746 = vrcp.f32 %v2893_v40  ;;  %v3208_v12 = vmul.f32 %v3745_v48, %v3178_v24  ;;  %v3209_v57 = vmul.f32 %v3745_v48, %v3179_v63  ;;  %v3210_v47 = vmul.f32 %v3745_v48, %v3180_v7 }
 0x4cb   : > { %v3211_v42 = vmul.f32 %v3745_v48, %v3181_v5  ;;  %v3212_v13 = vmul.f32 %v3745_v48, %v3182_v9  ;;  %v3213_v61 = vmul.f32 %v3745_v48, %v3183_v28 }
 0x4d7   : > { %v3747_v16 = vpop.eup %3746 }
 0x4d8   : > { %v2899_v10 = vrot.slane %v3747_v16, %v2898_v62 }
 0x4da   : > { %v2900_v36 = vmul.f32 %v2899_v10, %v4747_v3  ;;  %v2901_v34 = vmul.f32 %v2899_v10, %v4749_v55  ;;  %v2902_v43 = vmul.f32 %v2899_v10, %v4755_v18  ;;  %v2903_v11 = vmul.f32 %v2899_v10, %v4757_v15 }
 0x4db   : > { %v2904_v45 = vmul.f32 %v2899_v10, %v4763_v20  ;;  %v2905_v8 = vmul.f32 %v2899_v10, %v4765_v0  ;;  %v2906_v29 = vmul.f32 %v2899_v10, %v4773_v46  ;;  %v2907_v41 = vmul.f32 %v2899_v10, %v4771_v59 }
 0x4dc   : > { %v3216_v3 = vadd.f32 %v3206_v22, %v2900_v36  ;;  %v3217_v2 = vadd.f32 %v3208_v12, %v2901_v34  ;;  %v3218_v55 = vadd.f32 %v3209_v57, %v2902_v43  ;;  %v3219_v49 = vadd.f32 %v3210_v47, %v2903_v11 }
 0x4dd   : > { %v3220_v18 = vadd.f32 %v3211_v42, %v2904_v45  ;;  %v3221_v40 = vadd.f32 %v3212_v13, %v2905_v8  ;;  %v3222_v15 = vadd.f32 %v3213_v61, %v2906_v29  ;;  %v3223_v51 = vadd.f32 %v3215_v38, %v2907_v41 }
 0x4de   : > { %3224 = vst.msk [vmem:[%s521_s25] sm:$0xff] %vm2114_vm3, %v3216_v3  ;;  %3225 = vst.msk [vmem:[%s521_s25 + $0x8] sm:$0xff] %vm2114_vm3, %v3217_v2 }
 0x4df   : > { %3226 = vst.msk [vmem:[%s521_s25 + $0x10] sm:$0xff] %vm2114_vm3, %v3218_v55  ;;  %3227 = vst.msk [vmem:[%s521_s25 + $0x18] sm:$0xff] %vm2114_vm3, %v3219_v49 }
 0x4e0   : > { %3228 = vst.msk [vmem:[%s521_s25 + $0x20] sm:$0xff] %vm2114_vm3, %v3220_v18  ;;  %3229 = vst.msk [vmem:[%s521_s25 + $0x28] sm:$0xff] %vm2114_vm3, %v3221_v40 }
 0x4e1   : > { %3230 = vst.msk [vmem:[%s521_s25 + $0x30] sm:$0xff] %vm2114_vm3, %v3222_v15  ;;  %3231 = vst.msk [vmem:[%s521_s25 + $0x38] sm:$0xff] %vm2114_vm3, %v3223_v51 }
 0x4e2 PF: > { %s26_s21 = sadd.s32 1, %s3754_s21  }
 0x4e3   : > { %p23_p4 = scmp.ge.s32.totalorder %s26_s21, 4  }
 0x4e5   :  { %25 = sbr.rel (!%p23_p4) target bundleno = 2 (0x2), region = 128 }

// kernel: deformable_mlp_block_forward.3
= control target key start
LH: loop header
LB: loop body
LE: loop exit
PB: predicated region body
PF: predicated region fallthrough
CT: control target
= control target key end

     0   :  { %s7651_s0 = inlined_call_operand.vmem [shape: f32[2,64,16], index: 0, kind: input, shape index: {}]   ;;  %s7652_s1 = inlined_call_operand.vmem [shape: f32[2,16,8,8], index: 1, kind: input, shape index: {}]   ;;  %s7653_s2 = inlined_call_operand.vmem [shape: f32[16,16], index: 2, kind: input, shape index: {}]   ;;  %s7654_s3 = inlined_call_operand.vmem [shape: f32[1,16], index: 3, kind: input, shape index: {}]   ;;  %s7655_s4 = inlined_call_operand.vmem [shape: f32[9,16], index: 4, kind: input, shape index: {}]   ;;  %s7656_s5 = inlined_call_operand.vmem [shape: f32[1,16], index: 5, kind: input, shape index: {}]   ;;  %s7657_s6 = inlined_call_operand.vmem [shape: f32[1,16], index: 6, kind: input, shape index: {}]   ;;  %s7658_s7 = inlined_call_operand.vmem [shape: f32[16,16], index: 7, kind: input, shape index: {}]   ;;  %s7659_s8 = inlined_call_operand.vmem [shape: f32[1,16], index: 8, kind: input, shape index: {}]   ;;  %s7660_s9 = inlined_call_operand.vmem [shape: f32[16,4], index: 9, kind: input, shape index: {}]   ;;  %s7661_s10 = inlined_call_operand.vmem [shape: f32[1,4], index: 10, kind: input, shape index: {}]   ;;  %s7662_s11 = inlined_call_operand.vmem [shape: f32[4,16], index: 11, kind: input, shape index: {}]   ;;  %s7663_s12 = inlined_call_operand.vmem [shape: f32[1,16], index: 12, kind: input, shape index: {}]   ;;  %s7664_s13 = inlined_call_operand.vmem [shape: f32[9,16], index: 13, kind: input, shape index: {}]   ;;  %s7665_s14 = inlined_call_operand.vmem [shape: f32[16,16], index: 14, kind: input, shape index: {}]   ;;  %s7666_s15 = inlined_call_operand.vmem [shape: f32[16,16], index: 15, kind: input, shape index: {}]   ;;  %s7667_s16 = inlined_call_operand.vmem [shape: f32[16,16], index: 16, kind: input, shape index: {}]   ;;  %s7668_s17 = inlined_call_operand.vmem [shape: f32[16,16], index: 17, kind: input, shape index: {}]   ;;  %s7669_s18 = inlined_call_operand.vmem [shape: f32[1,16], index: 18, kind: input, shape index: {}]   ;;  %s7670_s19 = inlined_call_operand.vmem [shape: f32[2,16,64], index: 19, kind: output, shape index: {}]  }
   0x1   :  { %7676 = sst [smem:[#allocation5_spill]] %s7651_s0  ;;  %s5946_s0 = smov 0  }
   0x2   :  { %7677 = sst [smem:[#allocation6_spill]] %s7652_s1 }
   0x3   :  { %7678 = sst [smem:[#allocation7_spill]] %s7653_s2 }
   0x4   :  { %7679 = sst [smem:[#allocation8_spill]] %s7654_s3 }
   0x5 LB: > { %s5335_s30 = sadd.s32 4294967295, %s5840_s0   ;;  %p5339_p0 = scmp.ge.s32.totalorder %s5840_s0, 1  ;;  %s5840_s0 = sphi %s5946_s0, %s29_s0  }
   0x6   : > { %p547_p1 = scmp.lt.s32.totalorder %s5840_s0, 3 }
   0x8   : > { %p548_p2 = pnand %p5339_p0, %p547_p1 }
   0xa   : > { %551 = sbr.rel (%p548_p2) target bundleno = 1816 (0x718), region = 96 }
   0xf   : > { %s7680_s1 = sld [smem:[#allocation7_spill]]  ;;  %p608_p3 = scmp.lt.s32.totalorder %s5335_s30, 1  ;;  %vm640_vm0 = vcmask 130048   ;;  %vm785_vm1 = vcmask 122880   ;;  %v7672_v10 = vmov 0.0   ;;  %vm780_vm2 = vcmask 123904  }
  0x10   : > { %s7681_s3 = sld [smem:[#allocation5_spill]]  ;;  %779 = vst.msk [vmem:[#allocation2] sm:$0xff] %vm640_vm0, %v7672_v10  ;;  %783 = vst.msk [vmem:[#allocation2 + $0x90] sm:$0xff] %vm640_vm0, %v7672_v10  ;;  %v1099_v11 = vld [vmem:[%s7658_s7 + $0x8] sm:$0xff]  ;;  %v1098_v12 = vld [vmem:[%s7658_s7] sm:$0xff]  ;;  %vm5843_vm3 = vmmov 0  }
  0x11   : > { %s7758_s30 = smov (!%p608_p3, %s5335_s30), 1  ;;  %788 = vst.msk [vmem:[#allocation2 + $0x20] sm:$0x1] %vm785_vm1, %v7672_v10  ;;  %787 = vst.msk [vmem:[#allocation2 + $0x10] sm:$0x1] %vm785_vm1, %v7672_v10  ;;  %s7682_s2 = sld [smem:[#allocation8_spill]] }
  0x12   : > { %s5454_s23 = sshll.u32 %s7758_s30, 6  ;;  %789 = vst.msk [vmem:[#allocation2 + $0x30] sm:$0x1] %vm785_vm1, %v7672_v10  ;;  %790 = vst.msk [vmem:[#allocation2 + $0x40] sm:$0x1] %vm785_vm1, %v7672_v10  ;;  %vm1342_vm4 = vcmask 1043456  }
  0x13   : > { %791 = vst.msk [vmem:[#allocation2 + $0x50] sm:$0x1] %vm785_vm1, %v7672_v10  ;;  %792 = vst.msk [vmem:[#allocation2 + $0x60] sm:$0x1] %vm785_vm1, %v7672_v10  ;;  %v6060_v14 = vld [vmem:[%s7655_s4] ss:$0 sm:$0xff] }
  0x14   : > { %793 = vst.msk [vmem:[#allocation2 + $0x70] sm:$0x1] %vm785_vm1, %v7672_v10  ;;  %794 = vst.msk [vmem:[#allocation2 + $0x80] sm:$0x1] %vm785_vm1, %v7672_v10  ;;  %v6065_v17 = vld [vmem:[%s7655_s4 + $0x1] ss:$0 sm:$0xff] }
  0x15   : > { %v632_v0 = vld [vmem:[%s7680_s1 + $0x8] sm:$0xff]  ;;  %v631_v1 = vld [vmem:[%s7680_s1] sm:$0xff]  ;;  %797 = vst.msk [vmem:[#allocation2 + $0x19] sm:$0x1] %vm785_vm1, %v7672_v10  ;;  %798 = vst.msk [vmem:[#allocation2 + $0x29] sm:$0x1] %vm785_vm1, %v7672_v10 }
  0x16   : > { %5554 = vmatprep.subr.mxu0 %v632_v0  ;;  %5742 = vmatprep.subr.mxu1 %v632_v0  ;;  %s612_s26 = scalar_lea.vmem %s7681_s3, %s5454_s23  ;;  %799 = vst.msk [vmem:[#allocation2 + $0x39] sm:$0x1] %vm785_vm1, %v7672_v10  ;;  %800 = vst.msk [vmem:[#allocation2 + $0x49] sm:$0x1] %vm785_vm1, %v7672_v10  ;;  %v6090_v28 = vld [vmem:[%s7655_s4 + $0x2] ss:$0 sm:$0xff] }
  0x17   : > { %5555 = vmatpush3.msra.mxu0 %v632_v0  ;;  %5744 = vmatpush3.msra.mxu1 %v632_v0  ;;  %v5966_v2 = vld [vmem:[%s612_s26] sm:$0xff]  ;;  %v5970_v4 = vld [vmem:[%s612_s26 + $0x8] sm:$0xff]  ;;  %v5978_v6 = vld [vmem:[%s612_s26 + $0x10] sm:$0xff]  ;;  %801 = vst.msk [vmem:[#allocation2 + $0x59] sm:$0x1] %vm785_vm1, %v7672_v10  ;;  %vm1338_vm5 = vcmask 31744  }
  0x18   : > { %5556 = vmatprep.subr.mxu0 %v631_v1  ;;  %5743 = vmatprep.subr.mxu1 %v631_v1  ;;  %v5968_v3 = vld [vmem:[%s612_s26 + $0x20] sm:$0xff]  ;;  %v5976_v5 = vld [vmem:[%s612_s26 + $0x28] sm:$0xff]  ;;  %v5980_v7 = vld [vmem:[%s612_s26 + $0x30] sm:$0xff]  ;;  %802 = vst.msk [vmem:[#allocation2 + $0x69] sm:$0x1] %vm785_vm1, %v7672_v10  ;;  %vm3495_vm6 = vcmask 64512  }
  0x19   : > { %5557 = vmatpush3.msra.mxu0 %v631_v1  ;;  %5745 = vmatpush3.msra.mxu1 %v631_v1  ;;  %v5990_v8 = vld [vmem:[%s612_s26 + $0x18] sm:$0xff]  ;;  %803 = vst.msk [vmem:[#allocation2 + $0x79] sm:$0x1] %vm785_vm1, %v7672_v10  ;;  %804 = vst.msk [vmem:[#allocation2 + $0x89] sm:$0x1] %vm785_vm1, %v7672_v10  ;;  %s5455_s25 = sshll.u32 %s7758_s30, 7 }
  0x1a   : > { %5558 = vmatprep.mubr.msk.f32.mxu0 %vm640_vm0, %v5966_v2  ;;  %5564 = vmatprep.mubr.msk.f32.mxu1 %vm640_vm0, %v5968_v3  ;;  %v5992_v9 = vld [vmem:[%s612_s26 + $0x38] sm:$0xff]  ;;  %786 = vst.msk [vmem:[#allocation2] sm:$0x1] %vm785_vm1, %v7672_v10  ;;  %795 = vst.msk [vmem:[#allocation2 + $0x90] sm:$0x1] %vm785_vm1, %v7672_v10  ;;  %s7690_s27 = sld [smem:[#allocation6_spill]] }
  0x1b   : > { %5559 = vmatmul.mubr.msk.f32.vlgmr.msra.gmra.mxu0 %vm640_vm0, %v5970_v4  ;;  %5565 = vmatmul.mubr.msk.f32.vlgmr.msra.gmra.mxu1 %vm640_vm0, %v5976_v5  ;;  %781 = vst.msk [vmem:[#allocation2 + $0x8] sm:$0x3] %vm780_vm2, %v7672_v10  ;;  %784 = vst.msk [vmem:[#allocation2 + $0x98] sm:$0x3] %vm780_vm2, %v7672_v10  ;;  %v5346_v13 = vld [vmem:[%s7682_s2] ss:$0 sm:$0xff] }
  0x1c   : > { %5561 = vmatprep.mubr.msk.f32.mxu0 %vm640_vm0, %v5978_v6  ;;  %5567 = vmatprep.mubr.msk.f32.mxu1 %vm640_vm0, %v5980_v7  ;;  %796 = vst.msk [vmem:[#allocation2 + $0x9] sm:$0x1] %vm785_vm1, %v7672_v10  ;;  %805 = vst.msk [vmem:[#allocation2 + $0x99] sm:$0x1] %vm785_vm1, %v7672_v10  ;;  %v6121_v41 = vld [vmem:[%s7655_s4 + $0x3] ss:$0 sm:$0xff] }
  0x1d   : > { %5586 = vmatprep.subr.mxu0 %v7672_v10  ;;  %5570 = vmatprep.subr.mxu1 %v1099_v11  ;;  %v6130_v44 = vld [vmem:[%s7655_s4 + $0x6] ss:$0 sm:$0xff]  ;;  %v6135_v45 = vld [vmem:[%s7655_s4 + $0x7] ss:$0 sm:$0xff]  ;;  %v6140_v46 = vld [vmem:[%s7655_s4 + $0x8] ss:$0 sm:$0xff] }
  0x1e   : > { %5571 = vmatpush3.msra.mxu1 %v1099_v11  ;;  %v6155_v52 = vld [vmem:[%s7655_s4 + $0x4] ss:$0 sm:$0xff]  ;;  %v6177_v63 = vld [vmem:[%s7655_s4 + $0x5] ss:$0 sm:$0xff]  ;;  %s5456_s3 = sshll.u32 %s7758_s30, 4 }
  0x1f   : > { %5562 = vmatmul.mubr.msk.f32.gmra.mxu0 %vm640_vm0, %v5990_v8  ;;  %5568 = vmatmul.mubr.msk.f32.gmra.mxu1 %vm640_vm0, %v5992_v9 }
  0x20   : > { %5572 = vmatprep.subr.mxu1 %v1098_v12  ;;  %s6701_s28 = scalar_lea.vmem %s7690_s27, %s5455_s25 }
  0x21   : > { %5573 = vmatpush3.msra.mxu1 %v1098_v12  ;;  %v6067_v18 = vld [vmem:[#allocation2] sm:$0xff] }
  0x22   : > { %5593 = vmatprep.subr.mxu1 %v7672_v10  ;;  %v6069_v19 = vld [vmem:[#allocation2 + $0x1] sm:$0xff]  ;;  %v827_v25 = vmul.f32 %v6060_v14, %v6067_v18 }
  0x23   : > { %7683 = vst [vmem:[#allocation3_spill] sm:$0xff] %v6069_v19  ;;  %v847_v26 = vmul.f32 %v6065_v17, %v6069_v19  ;;  %v6092_v29 = vld [vmem:[#allocation2 + $0x2] sm:$0xff] }
  0x24   : > { %7684 = vst [vmem:[#allocation4_spill] sm:$0xff] %v6092_v29  ;;  %v875_v37 = vmul.f32 %v6090_v28, %v6092_v29 }
  0x25   : > { %v855_v36 = vadd.f32 %v847_v26, %v827_v25 }
  0x27   : > { %v883_v47 = vadd.f32 %v875_v37, %v855_v36 }
  0xdb   : > { %v5560_v15 = vpop.f32.mrf.mxu0  ;;  %v5566_v16 = vpop.f32.mrf.mxu1 }
  0xdc   : > { %v6071_v20 = vadd.f32 %v5560_v15, %v5346_v13  ;;  %v6073_v21 = vadd.f32 %v5566_v16, %v5346_v13 }
  0xdd   : > { %v731_v22 = vpop.f32.mrf.mxu0  ;;  %v751_v23 = vpop.f32.mrf.mxu1 }
  0xde   : > { %808 = vst.msk [vmem:[#allocation2 + $0x21] sm:$0xff] %vm640_vm0, %v6071_v20  ;;  %812 = vst.msk [vmem:[#allocation2 + $0x61] sm:$0xff] %vm640_vm0, %v6073_v21  ;;  %v6079_v24 = vadd.f32 %v5346_v13, %v731_v22  ;;  %v6085_v27 = vadd.f32 %v5346_v13, %v751_v23 }
  0xdf   : > { %v5563_v30 = vpop.f32.mrf.mxu0  ;;  %v5569_v31 = vpop.f32.mrf.mxu1 }
  0xe0   : > { %807 = vst.msk [vmem:[#allocation2 + $0x11] sm:$0xff] %vm640_vm0, %v6079_v24  ;;  %811 = vst.msk [vmem:[#allocation2 + $0x51] sm:$0xff] %vm640_vm0, %v6085_v27  ;;  %v6098_v32 = vadd.f32 %v5563_v30, %v5346_v13  ;;  %v6100_v33 = vadd.f32 %v5569_v31, %v5346_v13 }
  0xe1   : > { %v741_v34 = vpop.f32.mrf.mxu0  ;;  %v761_v35 = vpop.f32.mrf.mxu1 }
  0xe2   : > { %810 = vst.msk [vmem:[#allocation2 + $0x41] sm:$0xff] %vm640_vm0, %v6098_v32  ;;  %814 = vst.msk [vmem:[#allocation2 + $0x81] sm:$0xff] %vm640_vm0, %v6100_v33  ;;  %v6108_v38 = vadd.f32 %v5346_v13, %v741_v34  ;;  %v6110_v39 = vadd.f32 %v5346_v13, %v761_v35 }
  0xe4   : > { %809 = vst.msk [vmem:[#allocation2 + $0x31] sm:$0xff] %vm640_vm0, %v6108_v38  ;;  %813 = vst.msk [vmem:[#allocation2 + $0x71] sm:$0xff] %vm640_vm0, %v6110_v39 }
  0xe5   : > { %v6116_v40 = vld [vmem:[#allocation2 + $0x20] sm:$0xff] }
  0xe6   : > { %v6123_v42 = vld [vmem:[#allocation2 + $0x21] sm:$0xff]  ;;  %v829_v48 = vmul.f32 %v6060_v14, %v6116_v40  ;;  %v988_v26 = vmul.f32 %v6130_v44, %v6116_v40 }
  0xe7   : > { %v6125_v43 = vld [vmem:[#allocation2 + $0x22] sm:$0xff]  ;;  %v816_v53 = vld [vmem:[#allocation2 + $0x10] sm:$0xff]  ;;  %v849_v56 = vmul.f32 %v6065_v17, %v6123_v42 }
  0xe8   : > { %v6144_v49 = vld [vmem:[#allocation2 + $0x60] sm:$0xff]  ;;  %1444 = vst.msk [vmem:[#allocation2 + $0x21] sm:$0xff] %vm640_vm0, %v5970_v4  ;;  %v836_v54 = vld [vmem:[#allocation2 + $0x11] sm:$0xff]  ;;  %v903_v59 = vmul.f32 %v6121_v41, %v816_v53  ;;  %v877_v1 = vmul.f32 %v6090_v28, %v6125_v43  ;;  %v828_v12 = vmul.f32 %v6060_v14, %v816_v53  ;;  %v1044_v30 = vmul.f32 %v6140_v46, %v6125_v43 }
  0xe9   : > { %v6146_v50 = vld [vmem:[#allocation2 + $0x61] sm:$0xff]  ;;  %v864_v55 = vld [vmem:[#allocation2 + $0x12] sm:$0xff]  ;;  %v833_v57 = vmul.f32 %v6060_v14, %v6144_v49  ;;  %v857_v0 = vadd.f32 %v849_v56, %v829_v48  ;;  %v848_v13 = vmul.f32 %v6065_v17, %v836_v54  ;;  %v931_v16 = vmul.f32 %v6155_v52, %v836_v54 }
  0xea   : > { %v6148_v51 = vld [vmem:[#allocation2 + $0x62] sm:$0xff]  ;;  %v853_v58 = vmul.f32 %v6065_v17, %v6146_v50  ;;  %1443 = vst.msk [vmem:[#allocation2 + $0x11] sm:$0xff] %vm640_vm0, %v5966_v2  ;;  %v6168_v60 = vld [vmem:[#allocation2 + $0x50] sm:$0xff]  ;;  %v911_v15 = vadd.f32 %v903_v59, %v883_v47 }
  0xeb   : > { %1448 = vst.msk [vmem:[#allocation2 + $0x61] sm:$0xff] %vm640_vm0, %v5976_v5  ;;  %v6170_v61 = vld [vmem:[#allocation2 + $0x51] sm:$0xff]  ;;  %v6181_v4 = vld [vmem:[#allocation2 + $0x40] sm:$0xff]  ;;  %v881_v36 = vmul.f32 %v6090_v28, %v6148_v51  ;;  %v885_v47 = vadd.f32 %v877_v1, %v857_v0 }
  0xec   : > { %v6172_v62 = vld [vmem:[#allocation2 + $0x52] sm:$0xff]  ;;  %v6183_v5 = vld [vmem:[#allocation2 + $0x41] sm:$0xff]  ;;  %v861_v11 = vadd.f32 %v853_v58, %v833_v57  ;;  %v939_v37 = vadd.f32 %v931_v16, %v911_v15  ;;  %v876_v57 = vmul.f32 %v6090_v28, %v864_v55  ;;  %v856_v16 = vadd.f32 %v848_v13, %v828_v12 }
  0xed   : > { %v6185_v2 = vld [vmem:[#allocation2 + $0x42] sm:$0xff]  ;;  %1447 = vst.msk [vmem:[#allocation2 + $0x51] sm:$0xff] %vm640_vm0, %v5968_v3  ;;  %v1016_v3 = vmul.f32 %v6135_v45, %v6123_v42  ;;  %v893_v31 = vld [vmem:[#allocation2 + $0x30] sm:$0xff]  ;;  %v932_v13 = vmul.f32 %v6155_v52, %v6123_v42 }
  0xee   : > { %v6192_v22 = vld [vmem:[#allocation2 + $0x80] sm:$0xff]  ;;  %1446 = vst.msk [vmem:[#allocation2 + $0x41] sm:$0xff] %vm640_vm0, %v5990_v8  ;;  %v921_v34 = vld [vmem:[#allocation2 + $0x31] sm:$0xff]  ;;  %v959_v8 = vmul.f32 %v6177_v63, %v864_v55  ;;  %v905_v48 = vmul.f32 %v6121_v41, %v893_v31  ;;  %v889_v58 = vadd.f32 %v881_v36, %v861_v11  ;;  %v884_v19 = vadd.f32 %v876_v57, %v856_v16 }
  0xef   : > { %v6194_v23 = vld [vmem:[#allocation2 + $0x81] sm:$0xff]  ;;  %v949_v35 = vld [vmem:[#allocation2 + $0x32] sm:$0xff]  ;;  %v933_v15 = vmul.f32 %v6155_v52, %v921_v34  ;;  %v994_v12 = vmul.f32 %v6130_v44, %v6192_v22  ;;  %v1017_v16 = vmul.f32 %v6135_v45, %v921_v34 }
  0xf0   : > { %v6196_v25 = vld [vmem:[#allocation2 + $0x82] sm:$0xff]  ;;  %v6212_v53 = vld [vmem:[#allocation2 + $0x70] sm:$0xff]  ;;  %1445 = vst.msk [vmem:[#allocation2 + $0x31] sm:$0xff] %vm640_vm0, %v5978_v6  ;;  %v967_v0 = vadd.f32 %v959_v8, %v939_v37  ;;  %v913_v1 = vadd.f32 %v905_v48, %v885_v47  ;;  %v961_v10 = vmul.f32 %v6177_v63, %v949_v35  ;;  %v1018_v6 = vmul.f32 %v6135_v45, %v6183_v5 }
  0xf1   : > { %1450 = vst.msk [vmem:[#allocation2 + $0x81] sm:$0xff] %vm640_vm0, %v5992_v9  ;;  %v6214_v54 = vld [vmem:[#allocation2 + $0x71] sm:$0xff]  ;;  %v990_v9 = vmul.f32 %v6130_v44, %v6181_v4  ;;  %v909_v59 = vmul.f32 %v6121_v41, %v6212_v53  ;;  %v1046_v37 = vmul.f32 %v6140_v46, %v6185_v2  ;;  %v830_v8 = vmul.f32 %v6060_v14, %v893_v31 }
  0xf2   : > { %v6216_v56 = vld [vmem:[#allocation2 + $0x72] sm:$0xff]  ;;  %v937_v11 = vmul.f32 %v6155_v52, %v6214_v54  ;;  %v996_v36 = vadd.f32 %v988_v26, %v967_v0  ;;  %v941_v29 = vadd.f32 %v933_v15, %v913_v1  ;;  %v850_v26 = vmul.f32 %v6065_v17, %v921_v34 }
  0xf3   : > { %1449 = vst.msk [vmem:[#allocation2 + $0x71] sm:$0xff] %vm640_vm0, %v5980_v7  ;;  %v917_v55 = vadd.f32 %v909_v59, %v889_v58  ;;  %v904_v7 = vmul.f32 %v6121_v41, %v6116_v40  ;;  %v6246_v40 = vld [vmem:[%s7656_s5] ss:$0 sm:$0xff]  ;;  %v965_v59 = vmul.f32 %v6177_v63, %v6216_v56  ;;  %v960_v0 = vmul.f32 %v6177_v63, %v6125_v43 }
  0xf4   : > { %v1024_v47 = vadd.f32 %v1016_v3, %v996_v36  ;;  %v969_v48 = vadd.f32 %v961_v10, %v941_v29  ;;  %v878_v42 = vmul.f32 %v6090_v28, %v949_v35  ;;  %v6256_v29 = vld [vmem:[%s7657_s6] ss:$0 sm:$0xff]  ;;  %v989_v15 = vmul.f32 %v6130_v44, %v893_v31 }
  0xf5   : > { %v912_v58 = vadd.f32 %v904_v7, %v884_v19  ;;  %v945_v57 = vadd.f32 %v937_v11, %v917_v55  ;;  %v858_v19 = vadd.f32 %v850_v26, %v830_v8  ;;  %v1045_v55 = vmul.f32 %v6140_v46, %v949_v35 }
  0xf6   : > { %v1052_v1 = vadd.f32 %v1044_v30, %v1024_v47  ;;  %v998_v3 = vadd.f32 %v990_v9, %v969_v48  ;;  %v906_v43 = vmul.f32 %v6121_v41, %v6181_v4  ;;  %v831_v8 = vmul.f32 %v6060_v14, %v6181_v4 }
  0xf7   : > { %v940_v10 = vadd.f32 %v932_v13, %v912_v58  ;;  %v886_v36 = vadd.f32 %v878_v42, %v858_v19  ;;  %v973_v7 = vadd.f32 %v965_v59, %v945_v57  ;;  %v934_v13 = vmul.f32 %v6155_v52, %v6183_v5 }
  0xf8   : > { %v1067_v11 = vadd.f32 %v6246_v40, %v1052_v1  ;;  %v1026_v30 = vadd.f32 %v1018_v6, %v998_v3  ;;  %v851_v31 = vmul.f32 %v6065_v17, %v6183_v5  ;;  %v962_v6 = vmul.f32 %v6177_v63, %v6185_v2 }
  0xf9   : > { %v968_v9 = vadd.f32 %v960_v0, %v940_v10  ;;  %v914_v48 = vadd.f32 %v906_v43, %v886_v36  ;;  %v879_v26 = vmul.f32 %v6090_v28, %v6185_v2  ;;  %v907_v57 = vmul.f32 %v6121_v41, %v6168_v60 }
  0xfa   : > { %v1082_v34 = vmul.f32 %v6256_v29, %v1067_v11  ;;  %v1054_v35 = vadd.f32 %v1046_v37, %v1026_v30  ;;  %v859_v58 = vadd.f32 %v851_v31, %v831_v8  ;;  %v991_v3 = vmul.f32 %v6130_v44, %v6168_v60 }
  0xfb   : > { %v997_v47 = vadd.f32 %v989_v15, %v968_v9  ;;  %v942_v0 = vadd.f32 %v934_v13, %v914_v48  ;;  %v1002_v2 = vadd.f32 %v994_v12, %v973_v7  ;;  %v935_v15 = vmul.f32 %v6155_v52, %v6170_v61 }
  0xfc   : > { %v1090_v4 = vadd.f32 %v1082_v34, %v6079_v24  ;;  %v1069_v59 = vadd.f32 %v6246_v40, %v1054_v35  ;;  %v887_v42 = vadd.f32 %v879_v26, %v859_v58  ;;  %v963_v30 = vmul.f32 %v6177_v63, %v6172_v62 }
  0xfd   : > { %v1025_v5 = vadd.f32 %v1017_v16, %v997_v47  ;;  %v970_v1 = vadd.f32 %v962_v6, %v942_v0  ;;  %v1019_v16 = vmul.f32 %v6135_v45, %v6170_v61  ;;  %v852_v12 = vmul.f32 %v6065_v17, %v6170_v61 }
  0xfe   : > { %5574 = vmatprep.mubr.msk.f32.mxu1 %vm640_vm0, %v1090_v4  ;;  %v1084_v10 = vmul.f32 %v6256_v29, %v1069_v59  ;;  %v915_v19 = vadd.f32 %v907_v57, %v887_v42  ;;  %v880_v9 = vmul.f32 %v6090_v28, %v6172_v62  ;;  %v1047_v13 = vmul.f32 %v6140_v46, %v6172_v62 }
  0xff   : > { %v1053_v37 = vadd.f32 %v1045_v55, %v1025_v5  ;;  %v999_v43 = vadd.f32 %v991_v3, %v970_v1  ;;  %v832_v55 = vmul.f32 %v6060_v14, %v6168_v60  ;;  %v992_v8 = vmul.f32 %v6130_v44, %v6144_v49 }
 0x100   : > { %v943_v11 = vadd.f32 %v935_v15, %v915_v19  ;;  %v1092_v60 = vadd.f32 %v1084_v10, %v6108_v38  ;;  %v908_v35 = vmul.f32 %v6121_v41, %v6144_v49  ;;  %v1020_v48 = vmul.f32 %v6135_v45, %v6146_v50  ;;  %v6331_v19 = vld [vmem:[#allocation2 + $0x90] sm:$0xff] }
 0x101   : > { %v1068_v24 = vadd.f32 %v6246_v40, %v1053_v37  ;;  %v1027_v7 = vadd.f32 %v1019_v16, %v999_v43  ;;  %v860_v34 = vadd.f32 %v852_v12, %v832_v55  ;;  %v936_v6 = vmul.f32 %v6155_v52, %v6146_v50 }
 0x102   : > { %v971_v31 = vadd.f32 %v963_v30, %v943_v11  ;;  %v834_v26 = vmul.f32 %v6060_v14, %v6212_v53  ;;  %v854_v38 = vmul.f32 %v6065_v17, %v6214_v54  ;;  %v1022_v49 = vmul.f32 %v6135_v45, %v6194_v23  ;;  %v6349_v30 = vld [vmem:[#allocation2 + $0x92] sm:$0xff] }
 0x103   : > { %v1083_v36 = vmul.f32 %v6256_v29, %v1068_v24  ;;  %v1055_v47 = vadd.f32 %v1047_v13, %v1027_v7  ;;  %v888_v58 = vadd.f32 %v880_v9, %v860_v34  ;;  %v1048_v57 = vmul.f32 %v6140_v46, %v6148_v51  ;;  %v6337_v24 = vld [vmem:[#allocation2 + $0x91] sm:$0xff] }
 0x104   : > { %v1000_v62 = vadd.f32 %v992_v8, %v971_v31  ;;  %v882_v50 = vmul.f32 %v6090_v28, %v6216_v56  ;;  %v862_v59 = vadd.f32 %v854_v38, %v834_v26  ;;  %v910_v17 = vmul.f32 %v6121_v41, %v6192_v22 }
 0x105   : > { %v1091_v61 = vadd.f32 %v1083_v36, %v6071_v20  ;;  %v1070_v20 = vadd.f32 %v6246_v40, %v1055_v47  ;;  %v916_v14 = vadd.f32 %v908_v35, %v888_v58  ;;  %v1030_v5 = vadd.f32 %v1022_v49, %v1002_v2  ;;  %v5366_v47 = vld [vmem:[%s7659_s8] ss:$0 sm:$0xff] }
 0x106   : > { %v1028_v4 = vadd.f32 %v1020_v48, %v1000_v62  ;;  %v964_v42 = vmul.f32 %v6177_v63, %v6148_v51  ;;  %v993_v37 = vmul.f32 %v6130_v44, %v6212_v53  ;;  %v890_v28 = vadd.f32 %v882_v50, %v862_v59 }
 0x107   : > { %5575 = vmatmul.mubr.msk.f32.vlgmr.msra.gmra.mxu1 %vm640_vm0, %v1091_v61  ;;  %v1085_v0 = vmul.f32 %v6256_v29, %v1070_v20  ;;  %v944_v3 = vadd.f32 %v936_v6, %v916_v14  ;;  %v938_v10 = vmul.f32 %v6155_v52, %v6194_v23  ;;  %v1050_v41 = vmul.f32 %v6140_v46, %v6196_v25  ;;  %v1260_v61 = vld [vmem:[%s7660_s9 + $0x8] sm:$0xff] }
 0x108   : > { %5577 = vmatprep.mubr.msk.f32.mxu1 %vm640_vm0, %v1092_v60  ;;  %v1056_v1 = vadd.f32 %v1048_v57, %v1028_v4  ;;  %v918_v51 = vadd.f32 %v910_v17, %v890_v28  ;;  %v1021_v43 = vmul.f32 %v6135_v45, %v6214_v54  ;;  %v995_v52 = vmul.f32 %v6130_v44, %v6331_v19 }
 0x109   : > { %v1093_v22 = vadd.f32 %v1085_v0, %v6098_v32  ;;  %v972_v15 = vadd.f32 %v964_v42, %v944_v3  ;;  %v1058_v53 = vadd.f32 %v1050_v41, %v1030_v5  ;;  %v966_v32 = vmul.f32 %v6177_v63, %v6196_v25  ;;  %5587 = vmatpush3.msra.mxu0 %v1260_v61  ;;  %v1611_v61 = vld [vmem:[#allocation2 + $0x20] sm:$0xff] }
 0x10a   : > { %v1071_v2 = vadd.f32 %v6246_v40, %v1056_v1  ;;  %v946_v55 = vadd.f32 %v938_v10, %v918_v51  ;;  %v1023_v11 = vmul.f32 %v6135_v45, %v6337_v24  ;;  %v1049_v54 = vmul.f32 %v6140_v46, %v6216_v56 }
 0x10b   : > { %5578 = vmatmul.mubr.msk.f32.gmra.mxu1 %vm640_vm0, %v1093_v22  ;;  %v1001_v16 = vadd.f32 %v993_v37, %v972_v15  ;;  %v1073_v44 = vadd.f32 %v6246_v40, %v1058_v53  ;;  %v1051_v63 = vmul.f32 %v6140_v46, %v6349_v30 }
 0x10c   : > { %v1086_v23 = vmul.f32 %v6256_v29, %v1071_v2  ;;  %v974_v36 = vadd.f32 %v966_v32, %v946_v55 }
 0x10d   : > { %v1029_v9 = vadd.f32 %v1021_v43, %v1001_v16  ;;  %v1088_v8 = vmul.f32 %v6256_v29, %v1073_v44 }
 0x10e   : > { %v1094_v12 = vadd.f32 %v1086_v23, %v6085_v27  ;;  %v1003_v13 = vadd.f32 %v995_v52, %v974_v36  ;;  %v7686_v36 = vld [vmem:[#allocation3_spill] sm:$0xff] }
 0x10f   : > { %v1057_v7 = vadd.f32 %v1049_v54, %v1029_v9  ;;  %v1096_v34 = vadd.f32 %v1088_v8, %v6110_v39  ;;  %v7685_v39 = vmov 0.0   ;;  %v6424_v9 = vld [vmem:[%s7664_s13 + $0x1] ss:$0 sm:$0xff] }
 0x110   : > { %5580 = vmatprep.mubr.msk.f32.mxu1 %vm640_vm0, %v1094_v12  ;;  %v1031_v25 = vadd.f32 %v1023_v11, %v1003_v13  ;;  %5590 = vmatprep.mubr.msk.f32.mxu0 %vm5843_vm3, %v7685_v39  ;;  %v6419_v12 = vld [vmem:[%s7664_s13] ss:$0 sm:$0xff]  ;;  %v1483_v44 = vmul.f32 %v6424_v9, %v7686_v36  ;;  %v1555_v13 = vld [vmem:[#allocation2 + $0x11] sm:$0xff] }
 0x111   : > { %v1072_v45 = vadd.f32 %v6246_v40, %v1057_v7  ;;  %5588 = vmatprep.subr.mxu0 %v7685_v39  ;;  %v1463_v54 = vmul.f32 %v6419_v12, %v6067_v18  ;;  %v1527_v7 = vld [vmem:[#allocation2 + $0x10] sm:$0xff]  ;;  %v6442_v18 = vld [vmem:[%s7664_s13 + $0x3] ss:$0 sm:$0xff] }
 0x112   : > { %v1059_v60 = vadd.f32 %v1051_v63, %v1031_v25  ;;  %v6433_v63 = vld [vmem:[%s7664_s13 + $0x2] ss:$0 sm:$0xff]  ;;  %v1484_v25 = vmul.f32 %v6424_v9, %v1555_v13 }
 0x113   : > { %v1087_v27 = vmul.f32 %v6256_v29, %v1072_v45  ;;  %v1464_v45 = vmul.f32 %v6419_v12, %v1527_v7  ;;  %v1491_v8 = vadd.f32 %v1483_v44, %v1463_v54 }
 0x114   : > { %v1074_v31 = vadd.f32 %v6246_v40, %v1059_v60 }
 0x115   : > { %v1095_v56 = vadd.f32 %v1087_v27, %v6073_v21  ;;  %v1259_v21 = vld [vmem:[%s7660_s9] sm:$0xff]  ;;  %v7687_v27 = vld [vmem:[#allocation4_spill] sm:$0xff] }
 0x116   : > { %v1089_v35 = vmul.f32 %v6256_v29, %v1074_v31  ;;  %5589 = vmatpush3.msra.mxu0 %v1259_v21  ;;  %v1511_v60 = vmul.f32 %v6433_v63, %v7687_v27  ;;  %v1492_v31 = vadd.f32 %v1484_v25, %v1464_v45  ;;  %v1336_v21 = vld [vmem:[%s7662_s11] sm:$0xf] }
 0x117   : > { %5581 = vmatmul.mubr.msk.f32.gmra.mxu1 %vm640_vm0, %v1095_v56  ;;  %v1583_v56 = vld [vmem:[#allocation2 + $0x12] sm:$0xff]  ;;  %v1613_v27 = vld [vmem:[#allocation2 + $0x40] sm:$0xff] }
 0x118   : > { %5583 = vmatprep.mubr.msk.f32.mxu1 %vm640_vm0, %v1096_v34  ;;  %v1097_v46 = vadd.f32 %v1089_v35, %v6100_v33  ;;  %v1512_v34 = vmul.f32 %v6433_v63, %v1583_v56  ;;  %v1519_v35 = vadd.f32 %v1511_v60, %v1491_v8  ;;  %5594 = vmatpush3.msk.msra.mxu1 %vm1342_vm4, %v1336_v21 }
 0x11b   : > { %5584 = vmatmul.mubr.msk.f32.gmra.mxu1 %vm640_vm0, %v1097_v46  ;;  %v1539_v46 = vmul.f32 %v6442_v18, %v1527_v7 }
 0x11c   : > { %5595 = vmatprep.mubr.msk.f32.mxu1 %vm5843_vm3, %v7685_v39 }
 0x1c7   : > { %v5576_v33 = vpop.f32.mrf.mxu1 }
 0x1c8   : > { %v6385_v62 = vadd.f32 %v5576_v33, %v5366_v47  ;;  %v6452_v33 = vld [vmem:[%s7664_s13 + $0x4] ss:$0 sm:$0xff] }
 0x1c9   : > { %v1197_v40 = vpop.f32.mrf.mxu1 }
 0x1ca   : > { %v6383_v48 = vadd.f32 %v5366_v47, %v1197_v40  ;;  %v1237_v38 = vsel %vm640_vm0, %v6385_v62, 0.0  ;;  %v1520_v40 = vadd.f32 %v1512_v34, %v1492_v31  ;;  %v1641_v31 = vld [vmem:[#allocation2 + $0x41] sm:$0xff] }
 0x1cb   : > { %v5579_v29 = vpop.f32.mrf.mxu1 }
 0x1cc   : > { %v1236_v26 = vsel %vm640_vm0, %v6383_v48, 0.0  ;;  %v6395_v57 = vadd.f32 %v5579_v29, %v5366_v47  ;;  %v1540_v29 = vmul.f32 %v6442_v18, %v1611_v61 }
 0x1cd   : > { %v1207_v6 = vpop.f32.mrf.mxu1  ;;  %v1238_v20 = vadd.f32 %v1237_v38, %v1236_v26  ;;  %v1639_v26 = vld [vmem:[#allocation2 + $0x21] sm:$0xff]  ;;  %v1612_v38 = vld [vmem:[#allocation2 + $0x30] sm:$0xff] }
 0x1ce   : > { %v6387_v58 = vadd.f32 %v5366_v47, %v1207_v6  ;;  %v1241_v14 = vsel %vm640_vm0, %v6395_v57, 0.0  ;;  %v1567_v6 = vmul.f32 %v6452_v33, %v1555_v13 }
 0x1d0   : > { %v1239_v49 = vsel %vm640_vm0, %v6387_v58, 0.0 }
 0x1d1   : > { %v1240_v50 = vadd.f32 %v1239_v49, %v1238_v20  ;;  %v1640_v49 = vld [vmem:[#allocation2 + $0x31] sm:$0xff]  ;;  %v1465_v20 = vmul.f32 %v6419_v12, %v1611_v61 }
 0x1d2   : > { %v1569_v8 = vmul.f32 %v6452_v33, %v1640_v49 }
 0x1d3   : > { %v1242_v17 = vadd.f32 %v1241_v14, %v1240_v50  ;;  %v6460_v50 = vld [vmem:[%s7666_s15 + $0x8] sm:$0xff] }
 0x1d4   : > { %v1667_v14 = vld [vmem:[#allocation2 + $0x22] sm:$0xff]  ;;  %5614 = vmatprep.subr.mxu1 %v6460_v50 }
 0x1d7   : > { %v5582_v4 = vpop.f32.mrf.mxu1 }
 0x1d8   : > { %v6399_v5 = vadd.f32 %v5582_v4, %v5366_v47  ;;  %v6465_v4 = vld [vmem:[%s7664_s13 + $0x5] ss:$0 sm:$0xff] }
 0x1d9   : > { %v1217_v59 = vpop.f32.mrf.mxu1 }
 0x1da   : > { %v6401_v0 = vadd.f32 %v5366_v47, %v1217_v59  ;;  %v1245_v28 = vsel %vm640_vm0, %v6399_v5, 0.0  ;;  %v1548_v59 = vadd.f32 %v1540_v29, %v1520_v40 }
 0x1db   : > { %v5585_v42 = vpop.f32.mrf.mxu1 }
 0x1dc   : > { %v1243_v37 = vsel %vm640_vm0, %v6401_v0, 0.0  ;;  %v6407_v10 = vadd.f32 %v5585_v42, %v5366_v47  ;;  %v1485_v42 = vmul.f32 %v6424_v9, %v1639_v26 }
 0x1dd   : > { %v1244_v1 = vadd.f32 %v1243_v37, %v1242_v17  ;;  %v1227_v3 = vpop.f32.mrf.mxu1  ;;  %v1568_v17 = vmul.f32 %v6452_v33, %v1639_v26 }
 0x1de   : > { %v6409_v41 = vadd.f32 %v5366_v47, %v1227_v3  ;;  %v1249_v51 = vsel %vm640_vm0, %v6407_v10, 0.0  ;;  %v1547_v47 = vadd.f32 %v1539_v46, %v1519_v35  ;;  %v1668_v3 = vld [vmem:[#allocation2 + $0x32] sm:$0xff] }
 0x1df   : > { %v1246_v22 = vadd.f32 %v1245_v28, %v1244_v1  ;;  %v1595_v1 = vmul.f32 %v6465_v4, %v1583_v56  ;;  %v1513_v28 = vmul.f32 %v6433_v63, %v1667_v14  ;;  %v1514_v7 = vmul.f32 %v6433_v63, %v1668_v3 }
 0x1e0   : > { %v1247_v2 = vsel %vm640_vm0, %v6409_v41, 0.0  ;;  %v1575_v37 = vadd.f32 %v1567_v6, %v1547_v47  ;;  %v1597_v46 = vmul.f32 %v6465_v4, %v1668_v3  ;;  %v1542_v47 = vmul.f32 %v6442_v18, %v1613_v27 }
 0x1e1   : > { %v1248_v15 = vadd.f32 %v1247_v2, %v1246_v22  ;;  %v1466_v22 = vmul.f32 %v6419_v12, %v1612_v38  ;;  %v6476_v2 = vld [vmem:[%s7664_s13 + $0x6] ss:$0 sm:$0xff] }
 0x1e2   : > { %v1625_v29 = vmul.f32 %v6476_v2, %v1613_v27 }
 0x1e3   : > { %v1250_v53 = vadd.f32 %v1249_v51, %v1248_v15  ;;  %v1576_v15 = vadd.f32 %v1568_v17, %v1548_v59  ;;  %v1596_v51 = vmul.f32 %v6465_v4, %v1667_v14  ;;  %v1467_v17 = vmul.f32 %v6419_v12, %v1613_v27  ;;  %v1643_v27 = vld [vmem:[#allocation2 + $0x61] sm:$0xff] }
 0x1e5   : > { %v1251_v43 = vrot.slane %v1250_v53, 4  ;;  %v1604_v36 = vadd.f32 %v1596_v51, %v1576_v15 }
 0x1e7   : > { %v1252_v52 = vadd.f32 %v1251_v43, %v1250_v53  ;;  %v1493_v53 = vadd.f32 %v1485_v42, %v1465_v20  ;;  %v1486_v43 = vmul.f32 %v6424_v9, %v1640_v49 }
 0x1e9   : > { %v1253_v23 = vrot.slane %v1252_v52, 2  ;;  %v1521_v25 = vadd.f32 %v1513_v28, %v1493_v53  ;;  %v1494_v21 = vadd.f32 %v1486_v43, %v1466_v22  ;;  %v1670_v28 = vld [vmem:[#allocation2 + $0x52] sm:$0xff]  ;;  %v1487_v22 = vmul.f32 %v6424_v9, %v1641_v31 }
 0x1eb   : > { %v1254_v16 = vadd.f32 %v1253_v23, %v1252_v52  ;;  %v6483_v52 = vld [vmem:[%s7664_s13 + $0x7] ss:$0 sm:$0xff]  ;;  %v6488_v23 = vld [vmem:[%s7664_s13 + $0x8] ss:$0 sm:$0xff] }
 0x1ec   : > { %v1651_v54 = vmul.f32 %v6483_v52, %v1639_v26  ;;  %v1652_v44 = vmul.f32 %v6483_v52, %v1640_v49  ;;  %v1679_v45 = vmul.f32 %v6488_v23, %v1667_v14  ;;  %v1680_v56 = vmul.f32 %v6488_v23, %v1668_v3  ;;  %v1642_v3 = vld [vmem:[#allocation2 + $0x51] sm:$0xff] }
 0x1ed   : > { %v1255_v55 = vrot.slane %v1254_v16, 1  ;;  %v1570_v49 = vmul.f32 %v6452_v33, %v1641_v31  ;;  %v1653_v14 = vmul.f32 %v6483_v52, %v1641_v31 }
 0x1ef   : > { %v1256_v32 = vadd.f32 %v1255_v55, %v1254_v16  ;;  %v1603_v16 = vadd.f32 %v1595_v1, %v1575_v37  ;;  %v1623_v55 = vmul.f32 %v6476_v2, %v1611_v61  ;;  %v1669_v61 = vld [vmem:[#allocation2 + $0x42] sm:$0xff]  ;;  %v1614_v1 = vld [vmem:[#allocation2 + $0x50] sm:$0xff] }
 0x1f0   : > { %v1598_v59 = vmul.f32 %v6465_v4, %v1669_v61  ;;  %v1515_v15 = vmul.f32 %v6433_v63, %v1669_v61  ;;  %v1681_v51 = vmul.f32 %v6488_v23, %v1669_v61  ;;  %v1626_v53 = vmul.f32 %v6476_v2, %v1614_v1 }
 0x1f1   : > { %v1258_v11 = vmul.f32 0.015625, %v1256_v32  ;;  %v1624_v32 = vmul.f32 %v6476_v2, %v1612_v38  ;;  %v1631_v13 = vadd.f32 %v1623_v55, %v1603_v16  ;;  %v1495_v55 = vadd.f32 %v1487_v22, %v1467_v17 }
 0x1f3   : > { %5591 = vmatmul.mubr.msk.f32.vlgmr.msra.gmra.mxu0 %vm640_vm0, %v1258_v11  ;;  %v1541_v11 = vmul.f32 %v6442_v18, %v1612_v38  ;;  %v1632_v60 = vadd.f32 %v1624_v32, %v1604_v36  ;;  %v1659_v34 = vadd.f32 %v1651_v54, %v1631_v13  ;;  %v1522_v38 = vadd.f32 %v1514_v7, %v1494_v21 }
 0x1f4   : > { %v1543_v32 = vmul.f32 %v6442_v18, %v1614_v1  ;;  %v1654_v54 = vmul.f32 %v6483_v52, %v1642_v3  ;;  %v1468_v36 = vmul.f32 %v6419_v12, %v1614_v1  ;;  %v1516_v7 = vmul.f32 %v6433_v63, %v1670_v28  ;;  %v1644_v1 = vld [vmem:[#allocation2 + $0x71] sm:$0xff] }
 0x1f5   : > { %v1549_v35 = vadd.f32 %v1541_v11, %v1521_v25  ;;  %v1660_v40 = vadd.f32 %v1652_v44, %v1632_v60  ;;  %v6502_v6 = vadd.f32 %v1679_v45, %v1659_v34  ;;  %v1550_v37 = vadd.f32 %v1542_v47, %v1522_v38  ;;  %v1615_v11 = vld [vmem:[#allocation2 + $0x60] sm:$0xff] }
 0x1f6   : > { %v1488_v44 = vmul.f32 %v6424_v9, %v1642_v3  ;;  %v1523_v25 = vadd.f32 %v1515_v15, %v1495_v55  ;;  %v1682_v60 = vmul.f32 %v6488_v23, %v1670_v28  ;;  %v1544_v34 = vmul.f32 %v6442_v18, %v1615_v11 }
 0x1f7   : > { %v1577_v26 = vadd.f32 %v1569_v8, %v1549_v35  ;;  %v6505_v20 = vadd.f32 %v1680_v56, %v1660_v40  ;;  %5602 = vmatprep.mubr.msk.f32.mxu0 %vm640_vm0, %v6502_v6  ;;  %v1578_v16 = vadd.f32 %v1570_v49, %v1550_v37  ;;  %v1571_v8 = vmul.f32 %v6452_v33, %v1642_v3  ;;  %v1671_v56 = vld [vmem:[#allocation2 + $0x62] sm:$0xff]  ;;  %v1672_v3 = vld [vmem:[#allocation2 + $0x72] sm:$0xff] }
 0x1f8   : > { %v1496_v31 = vadd.f32 %v1488_v44, %v1468_v36  ;;  %v1551_v61 = vadd.f32 %v1543_v32, %v1523_v25  ;;  %v1599_v21 = vmul.f32 %v6465_v4, %v1670_v28  ;;  %v1469_v47 = vmul.f32 %v6419_v12, %v1615_v11 }
 0x1f9   : > { %v1605_v42 = vadd.f32 %v1597_v46, %v1577_v26  ;;  %v1606_v45 = vadd.f32 %v1598_v59, %v1578_v16  ;;  %v1489_v26 = vmul.f32 %v6424_v9, %v1643_v27  ;;  %v1616_v59 = vld [vmem:[#allocation2 + $0x70] sm:$0xff]  ;;  %v1517_v17 = vmul.f32 %v6433_v63, %v1671_v56 }
 0x1fa   : > { %v1524_v40 = vadd.f32 %v1516_v7, %v1496_v31  ;;  %v1579_v49 = vadd.f32 %v1571_v8, %v1551_v61  ;;  %v1600_v37 = vmul.f32 %v6465_v4, %v1671_v56  ;;  %v1545_v22 = vmul.f32 %v6442_v18, %v1616_v59 }
 0x1fb   : > { %v1633_v43 = vadd.f32 %v1625_v29, %v1605_v42  ;;  %v1634_v46 = vadd.f32 %v1626_v53, %v1606_v45  ;;  %v1572_v29 = vmul.f32 %v6452_v33, %v1643_v27  ;;  %v1497_v28 = vadd.f32 %v1489_v26, %v1469_v47 }
 0x1fc   : > { %v1552_v42 = vadd.f32 %v1544_v34, %v1524_v40  ;;  %v1655_v53 = vmul.f32 %v6483_v52, %v1643_v27  ;;  %v1573_v32 = vmul.f32 %v6452_v33, %v1644_v1  ;;  %v1683_v44 = vmul.f32 %v6488_v23, %v1671_v56 }
 0x1fd   : > { %v1661_v13 = vadd.f32 %v1653_v14, %v1633_v43  ;;  %v1662_v38 = vadd.f32 %v1654_v54, %v1634_v46  ;;  %v1627_v14 = vmul.f32 %v6476_v2, %v1615_v11  ;;  %v1628_v43 = vmul.f32 %v6476_v2, %v1616_v59  ;;  %v1617_v11 = vld [vmem:[#allocation2 + $0x80] sm:$0xff] }
 0x1fe   : > { %v1580_v16 = vadd.f32 %v1572_v29, %v1552_v42  ;;  %v1525_v55 = vadd.f32 %v1517_v17, %v1497_v28  ;;  %v1470_v54 = vmul.f32 %v6419_v12, %v1616_v59  ;;  %v1490_v7 = vmul.f32 %v6424_v9, %v1644_v1  ;;  %v1673_v9 = vld [vmem:[#allocation2 + $0x82] sm:$0xff] }
 0x1ff   : > { %v6524_v35 = vadd.f32 %v1681_v51, %v1661_v13  ;;  %v6534_v15 = vadd.f32 %v1682_v60, %v1662_v38  ;;  %v1607_v51 = vadd.f32 %v1599_v21, %v1579_v49  ;;  %v1518_v13 = vmul.f32 %v6433_v63, %v1672_v3  ;;  %v1645_v60 = vld [vmem:[#allocation2 + $0x81] sm:$0xff] }
 0x200   : > { %v1608_v45 = vadd.f32 %v1600_v37, %v1580_v16  ;;  %v1656_v25 = vmul.f32 %v6483_v52, %v1644_v1  ;;  %v1553_v8 = vadd.f32 %v1545_v22, %v1525_v55  ;;  %v1601_v27 = vmul.f32 %v6465_v4, %v1672_v3 }
 0x201   : > { %v1635_v36 = vadd.f32 %v1627_v14, %v1607_v51  ;;  %v1498_v34 = vadd.f32 %v1490_v7, %v1470_v54  ;;  %v1546_v46 = vmul.f32 %v6442_v18, %v1617_v11  ;;  %v1684_v12 = vmul.f32 %v6488_v23, %v1672_v3 }
 0x202   : > { %v1636_v61 = vadd.f32 %v1628_v43, %v1608_v45  ;;  %v1581_v21 = vadd.f32 %v1573_v32, %v1553_v8  ;;  %v1629_v56 = vmul.f32 %v6476_v2, %v1617_v11  ;;  %v1574_v29 = vmul.f32 %v6452_v33, %v1645_v60  ;;  %v1261_v43 = vld [vmem:[%s7661_s10] sm:$0x1] }
 0x203   : > { %v1663_v31 = vadd.f32 %v1655_v53, %v1635_v36  ;;  %v1526_v63 = vadd.f32 %v1518_v13, %v1498_v34  ;;  %v1657_v38 = vmul.f32 %v6483_v52, %v1645_v60  ;;  %v1602_v14 = vmul.f32 %v6465_v4, %v1673_v9 }
 0x204   : > { %v1664_v47 = vadd.f32 %v1656_v25, %v1636_v61  ;;  %v1609_v26 = vadd.f32 %v1601_v27, %v1581_v21  ;;  %v1685_v17 = vmul.f32 %v6488_v23, %v1673_v9  ;;  %v1630_v37 = vmul.f32 %v6476_v2, %v6331_v19  ;;  %v1966_v25 = vld [vmem:[%s7667_s16 + $0x8] sm:$0xff] }
 0x205   : > { %v6548_v40 = vadd.f32 %v1683_v44, %v1663_v31  ;;  %v1554_v49 = vadd.f32 %v1546_v46, %v1526_v63  ;;  %v1658_v33 = vmul.f32 %v6483_v52, %v6337_v24  ;;  %v1686_v4 = vmul.f32 %v6488_v23, %v6349_v30  ;;  %v1842_v24 = vld [vmem:[%s7666_s15] sm:$0xff]  ;;  %v1696_v30 = vld [vmem:[%s7665_s14 + $0x8] sm:$0xff] }
 0x206   : > { %v6553_v18 = vadd.f32 %v1684_v12, %v1664_v47  ;;  %v1637_v59 = vadd.f32 %v1629_v56, %v1609_v26  ;;  %5598 = vmatprep.subr.mxu0 %v1696_v30 }
 0x207   : > { %v1582_v42 = vadd.f32 %v1574_v29, %v1554_v49  ;;  %5599 = vmatpush3.msra.mxu0 %v1696_v30 }
 0x208   : > { %v1665_v1 = vadd.f32 %v1657_v38, %v1637_v59  ;;  %v1422_v59 = vlaneseq }
 0x209   : > { %v1610_v3 = vadd.f32 %v1602_v14, %v1582_v42 }
 0x20a   : > { %v6560_v28 = vadd.f32 %v1685_v17, %v1665_v1  ;;  %v2129_v17 = vand.u32 127, %v1422_v59 }
 0x20b   : > { %v1638_v22 = vadd.f32 %v1630_v37, %v1610_v3 }
 0x20c   : > { %v2130_v37 = vcvt.s32.f32 %v2129_v17 }
 0x20d   : > { %v1666_v51 = vadd.f32 %v1658_v33, %v1638_v22  ;;  %v5844_v22 = vmov 1966171168  }
 0x20e   : > { %v2131_v1 = vadd.f32 0.5, %v2130_v37 }
 0x20f   : > { %v6564_v53 = vadd.f32 %v1686_v4, %v1666_v51  ;;  %v2215_v4 = vunpack.c.l.s4 %v5844_v22 }
 0x210   : > { %v2133_v3 = vmul.f32 0.125, %v2131_v1 }
 0x212   : > { %v6639_v33 = vfloor.f32 %v2133_v3 }
 0x2b3   : > { %v1331_v16 = vpop.f32.mrf.mxu0 }
 0x2b4   : > { %v1332_v19 = vadd.f32 %v1331_v16, %v1261_v43  ;;  %v6642_v16 = vshrl.u32 %v1422_v59, 7 }
 0x2b5   : > { %v5592_v2 = vpop.f32.mrf.mxu0 }
 0x2b6   : > { %v1335_v55 = vmax.f32 %v1332_v19, 0.0 }
 0x2b8   : > { %5596 = vmatmul.mubr.msk.f32.vlgmr.msra.gmra.mxu1 %vm1338_vm5, %v1335_v55 }
 0x2b9   : > { %5615 = vmatpush3.msra.mxu1 %v6460_v50  ;;  %5618 = vmatprep.mubr.msk.f32.mxu1 %vm640_vm0, %v6502_v6  ;;  %v1695_v50 = vld [vmem:[%s7665_s14] sm:$0xff] }
 0x2ba   : > { %5616 = vmatprep.subr.mxu1 %v1842_v24  ;;  %5600 = vmatprep.subr.mxu0 %v1695_v50 }
 0x2bb   : > { %5617 = vmatpush3.msra.mxu1 %v1842_v24  ;;  %5601 = vmatpush3.msra.mxu0 %v1695_v50 }
 0x2bc   : > { %5619 = vmatmul.mubr.msk.f32.vlgmr.msra.gmra.mxu1 %vm640_vm0, %v6505_v20  ;;  %5646 = vmatprep.subr.mxu1 %v7685_v39 }
 0x2bd   : > { %5621 = vmatprep.mubr.msk.f32.mxu1 %vm640_vm0, %v6524_v35  ;;  %5603 = vmatmul.mubr.msk.f32.vlgmr.msra.gmra.mxu0 %vm640_vm0, %v6505_v20 }
 0x2be   : > { %5605 = vmatprep.mubr.msk.f32.mxu0 %vm640_vm0, %v6524_v35  ;;  %5630 = vmatprep.subr.mxu0 %v1966_v25 }
 0x2bf   : > { %5631 = vmatpush3.msra.mxu0 %v1966_v25  ;;  %v6651_v25 = vsub.s32 0, %v6642_v16 }
 0x2c0   : > { %5622 = vmatmul.mubr.msk.f32.gmra.mxu1 %vm640_vm0, %v6534_v15 }
 0x2c1   : > { %5624 = vmatprep.mubr.msk.f32.mxu1 %vm640_vm0, %v6548_v40  ;;  %5606 = vmatmul.mubr.msk.f32.gmra.mxu0 %vm640_vm0, %v6534_v15 }
 0x2c2   : > { %5608 = vmatprep.mubr.msk.f32.mxu0 %vm640_vm0, %v6548_v40 }
 0x2c4   : > { %5625 = vmatmul.mubr.msk.f32.gmra.mxu1 %vm640_vm0, %v6553_v18 }
 0x2c5   : > { %5627 = vmatprep.mubr.msk.f32.mxu1 %vm640_vm0, %v6560_v28  ;;  %5609 = vmatmul.mubr.msk.f32.gmra.mxu0 %vm640_vm0, %v6553_v18 }
 0x2c6   : > { %5611 = vmatprep.mubr.msk.f32.mxu0 %vm640_vm0, %v6560_v28 }
 0x2c8   : > { %5628 = vmatmul.mubr.msk.f32.gmra.mxu1 %vm640_vm0, %v6564_v53 }
 0x2c9   : > { %5648 = vmatprep.mubr.msk.f32.mxu1 %vm5843_vm3, %v7685_v39  ;;  %5612 = vmatmul.mubr.msk.f32.gmra.mxu0 %vm640_vm0, %v6564_v53 }
 0x2ca   : > { %5634 = vmatprep.mubr.msk.f32.mxu0 %vm640_vm0, %v6502_v6  ;;  %v1965_v6 = vld [vmem:[%s7667_s16] sm:$0xff] }
 0x2cb   : > { %5632 = vmatprep.subr.mxu0 %v1965_v6 }
 0x2cc   : > { %5633 = vmatpush3.msra.mxu0 %v1965_v6 }
 0x2cd   : > { %5635 = vmatmul.mubr.msk.f32.vlgmr.msra.gmra.mxu0 %vm640_vm0, %v6505_v20  ;;  %5666 = vmatprep.subr.mxu0 %v7685_v39 }
 0x2ce   : > { %5637 = vmatprep.mubr.msk.f32.mxu0 %vm640_vm0, %v6524_v35 }
 0x2d1   : > { %5638 = vmatmul.mubr.msk.f32.gmra.mxu0 %vm640_vm0, %v6534_v15 }
 0x2d2   : > { %5640 = vmatprep.mubr.msk.f32.mxu0 %vm640_vm0, %v6548_v40 }
 0x2d5   : > { %5641 = vmatmul.mubr.msk.f32.gmra.mxu0 %vm640_vm0, %v6553_v18 }
 0x2d6   : > { %5643 = vmatprep.mubr.msk.f32.mxu0 %vm640_vm0, %v6560_v28  ;;  %v2135_v28 = vmul.f32 8.0, %v6639_v33 }
 0x2d8   : > { %v2136_v51 = vsub.f32 %v2130_v37, %v2135_v28 }
 0x2d9   : > { %5644 = vmatmul.mubr.msk.f32.gmra.mxu0 %vm640_vm0, %v6564_v53  ;;  %v2216_v53 = vunpack.c.0.s8 %v2215_v4 }
 0x2da   : > { %5668 = vmatprep.mubr.msk.f32.mxu0 %vm5843_vm3, %v7685_v39 }
 0x2db   : > { %v6645_v2 = vsub.s32 %v2216_v53, %v6642_v16 }
 0x378   : > { %v6614_v52 = vpop.f32.mrf.mxu1 }
 0x37a   : > { %v5597_v23 = vpop.f32.mrf.mxu1 }
 0x37c   : > { %v5620_v32 = vpop.f32.mrf.mxu1 }
 0x37d   : > { %v5412_v44 = vclamps-f32 %v5620_v32, 2.0  ;;  %v5604_v15 = vpop.f32.mrf.mxu0 }
 0x37e   : > { %v1910_v11 = vpop.f32.mrf.mxu1  ;;  %v5396_v56 = vclamps-f32 %v5604_v15, 2.0 }
 0x37f   : > { %v5411_v54 = vclamps-f32 %v1910_v11, 2.0  ;;  %v1787_v61 = vpop.f32.mrf.mxu0 }
 0x380   : > { %v5623_v36 = vpop.f32.mrf.mxu1  ;;  %v5395_v12 = vclamps-f32 %v1787_v61, 2.0 }
 0x381   : > { %2171 = vxpose.xlu0.b32.start [1/8] (short) (narrow) %v5411_v54, 16  ;;  %v5414_v8 = vclamps-f32 %v5623_v36, 2.0  ;;  %v5607_v21 = vpop.f32.mrf.mxu0 }
 0x382   : > { %v1920_v7 = vpop.f32.mrf.mxu1  ;;  %2137 = vxpose.xlu1.b32.start [1/8] (short) (narrow) %v5395_v12, 16  ;;  %v5398_v29 = vclamps-f32 %v5607_v21, 2.0 }
 0x383   : > { %v5413_v13 = vclamps-f32 %v1920_v7, 2.0  ;;  %v1797_v9 = vpop.f32.mrf.mxu0 }
 0x384   : > { %v5626_v45 = vpop.f32.mrf.mxu1  ;;  %v5397_v40 = vclamps-f32 %v1797_v9, 2.0 }
 0x385   : > { %2172 = vxpose.xlu0.b32.cont [2/8] (short) (narrow) %v5412_v44, 16  ;;  %v5416_v34 = vclamps-f32 %v5626_v45, 2.0  ;;  %v5610_v63 = vpop.f32.mrf.mxu0 }
 0x386   : > { %v1930_v27 = vpop.f32.mrf.mxu1  ;;  %2138 = vxpose.xlu1.b32.cont [2/8] (short) (narrow) %v5396_v56, 16  ;;  %v5400_v49 = vclamps-f32 %v5610_v63, 2.0 }
 0x387   : > { %v5415_v60 = vclamps-f32 %v1930_v27, 2.0  ;;  %v1807_v47 = vpop.f32.mrf.mxu0 }
 0x388   : > { %v5629_v31 = vpop.f32.mrf.mxu1  ;;  %v5399_v26 = vclamps-f32 %v1807_v47, 2.0 }
 0x389   : > { %2173 = vxpose.xlu0.b32.cont [3/8] (short) (narrow) %v5413_v13, 16  ;;  %v5418_v35 = vclamps-f32 %v5629_v31, 2.0  ;;  %v5613_v38 = vpop.f32.mrf.mxu0 }
 0x38a   : > { %v1940_v46 = vpop.f32.mrf.mxu1  ;;  %2139 = vxpose.xlu1.b32.cont [3/8] (short) (narrow) %v5397_v40, 16  ;;  %v5402_v42 = vclamps-f32 %v5613_v38, 2.0 }
 0x38b   : > { %v5417_v20 = vclamps-f32 %v1940_v46, 2.0  ;;  %v1817_v14 = vpop.f32.mrf.mxu0 }
 0x38c   : > { %v5401_v18 = vclamps-f32 %v1817_v14, 2.0 }
 0x38d   : > { %2174 = vxpose.xlu0.b32.cont [4/8] (short) (narrow) %v5414_v8, 16 }
 0x38e   : > { %2140 = vxpose.xlu1.b32.cont [4/8] (short) (narrow) %v5398_v29, 16 }
 0x391   : > { %2175 = vxpose.xlu0.b32.cont [5/8] (short) (narrow) %v5415_v60, 16 }
 0x392   : > { %2141 = vxpose.xlu1.b32.cont [5/8] (short) (narrow) %v5399_v26, 16 }
 0x395   : > { %2176 = vxpose.xlu0.b32.cont [6/8] (short) (narrow) %v5416_v34, 16 }
 0x396   : > { %2142 = vxpose.xlu1.b32.cont [6/8] (short) (narrow) %v5400_v49, 16 }
 0x399   : > { %2177 = vxpose.xlu0.b32.cont [7/8] (short) (narrow) %v5417_v20, 16 }
 0x39a   : > { %2143 = vxpose.xlu1.b32.cont [7/8] (short) (narrow) %v5401_v18, 16 }
 0x39d   : > { %2178 = vxpose.xlu0.b32.end [8/8] (short) (narrow) %v5418_v35, 16 }
 0x39e   : > { %2144 = vxpose.xlu1.b32.end [8/8] (short) (narrow) %v5402_v42, 16 }
 0x3fd   : > { %v2187_v43 = vpop.trf.xlu0 }
 0x3fe   : > { %v2203_v19 = vadd.f32 %v2187_v43, %v2136_v51 }
 0x400   : > { %v2207_v55 = vfloor.f32 %v2203_v19 }
 0x401   : > { %v2188_v24 = vpop.trf.xlu0 }
 0x402   : > { %v2327_v30 = vsub.f32 %v2203_v19, %v2207_v55  ;;  %v5750_v50 = vtrunc.f32 %v2207_v55  ;;  %v2204_v23 = vadd.f32 %v2188_v24, %v2136_v51 }
 0x404   : > { %v2331_v32 = vcombine.high %v2327_v30, %v2327_v30  ;;  %v2338_v11 = vrot.slane %v2327_v30, %v6645_v2  ;;  %v5751_v54 = vcvt.f32.s32 %v5750_v50  ;;  %v2208_v36 = vfloor.f32 %v2204_v23 }
 0x406   : > { %v2345_v44 = vrot.slane %v2331_v32, %v6645_v2  ;;  %v2346_v7 = vcombine.high %v2338_v11, %v2338_v11  ;;  %v2354_v13 = vrot.slane %v2338_v11, %v6645_v2  ;;  %v2547_v45 = vcombine.high %v5751_v54, %v5751_v54  ;;  %v3479_v11 = vld [vmem:[%s6701_s28] sm:$0xff] }
 0x407   : > { %v2554_v6 = vrot.slane %v5751_v54, %v6645_v2  ;;  %v2328_v8 = vsub.f32 %v2204_v23, %v2208_v36  ;;  %v5752_v27 = vtrunc.f32 %v2208_v36 }
 0x408   : > { %v2347_v60 = vcombine.high %v2345_v44, %v2345_v44  ;;  %v6655_v31 = vrot.slane %v2345_v44, %v6645_v2  ;;  %v6658_v34 = vrot.slane %v2346_v7, %v6645_v2  ;;  %v6660_v46 = vcombine.high %v2354_v13, %v2354_v13 }
 0x409   : > { %v2561_v20 = vrot.slane %v2547_v45, %v6645_v2  ;;  %v2562_v35 = vcombine.high %v2554_v6, %v2554_v6  ;;  %v6664_v15 = vrot.slane %v2554_v6, %v6645_v2  ;;  %v3143_v61 = vsub.f32 1.0, %v2354_v13 }
 0x40a   : > { %v6667_v12 = vrot.slane %v2347_v60, %v6645_v2  ;;  %v3370_v21 = vrot.slane %v2354_v13, %v6651_v25  ;;  %v2380_v56 = vcombine.high %v2328_v8, %v2328_v8  ;;  %v2387_v9 = vrot.slane %v2328_v8, %v6645_v2 }
 0x40b   : > { %v2563_v40 = vcombine.high %v2561_v20, %v2561_v20  ;;  %v2577_v63 = vrot.slane %v2561_v20, %v6645_v2  ;;  %v6673_v29 = vrot.slane %v2562_v35, %v6645_v2  ;;  %v3066_v47 = vrot.slane %v6664_v15, %v6651_v25 }
 0x40c   : > { %v3178_v26 = vrot.slane %v3143_v61, %v6651_v25  ;;  %v3271_v38 = vadd.s32 1, %v6664_v15  ;;  %v2394_v49 = vrot.slane %v2380_v56, %v6645_v2  ;;  %v2395_v14 = vcombine.high %v2387_v9, %v2387_v9 }
 0x40d   : > { %v6682_v18 = vrot.slane %v2563_v40, %v6645_v2  ;;  %vm6685_vm7 = vcmp.eq.s32.totalorder %v6642_v16, %v3066_v47  ;;  %v6690_v17 = vrot.slane %v2387_v9, %v6645_v2  ;;  %v5753_v42 = vcvt.f32.s32 %v5752_v27  ;;  %v3481_v40 = vld [vmem:[%s6701_s28 + $0x10] sm:$0xff] }
 0x40e   : > { %v3255_v37 = vsel %vm6685_vm7, %v3178_v26, 0.0  ;;  %v3290_v1 = vrot.slane %v3271_v38, %v6651_v25  ;;  %v2396_v3 = vcombine.high %v2394_v49, %v2394_v49  ;;  %v6696_v28 = vrot.slane %v2394_v49, %v6645_v2 }
 0x40f   : > { %v6704_v22 = vrot.slane %v2395_v14, %v6645_v2  ;;  %v6708_v4 = vcombine.high %v6690_v17, %v6690_v17  ;;  %v2596_v51 = vcombine.high %v5753_v42, %v5753_v42  ;;  %v2603_v53 = vrot.slane %v5753_v42, %v6645_v2 }
 0x410   : > { %vm3351_vm8 = vcmp.eq.s32.totalorder %v6642_v16, %v3290_v1  ;;  %v6713_v43 = vrot.slane %v2396_v3, %v6645_v2  ;;  %v3151_v19 = vsub.f32 1.0, %v6690_v17  ;;  %v3070_v55 = vrot.slane %v6673_v29, %v6651_v25 }
 0x411   : > { %v3447_v24 = vsel %vm3351_vm8, %v3370_v21, 0.0  ;;  %v2610_v30 = vrot.slane %v2596_v51, %v6645_v2  ;;  %v2611_v50 = vcombine.high %v2603_v53, %v2603_v53  ;;  %v6720_v23 = vrot.slane %v2603_v53, %v6645_v2 }
 0x412   : > { %v3463_v32 = vadd.f32 %v3447_v24, %v3255_v37  ;;  %vm6724_vm9 = vcmp.eq.s32.totalorder %v6642_v16, %v3070_v55  ;;  %v3144_v36 = vsub.f32 1.0, %v6658_v34  ;;  %v3272_v44 = vadd.s32 1, %v6673_v29  ;;  %v3480_v37 = vld [vmem:[%s6701_s28 + $0x8] sm:$0xff] }
 0x413   : > { %v2612_v7 = vcombine.high %v2610_v30, %v2610_v30  ;;  %v6731_v13 = vrot.slane %v2610_v30, %v6645_v2  ;;  %v6734_v45 = vrot.slane %v2611_v50, %v6645_v2  ;;  %v3374_v6 = vrot.slane %v6658_v34, %v6651_v25 }
 0x414   : > { %5647 = vmatpush3.msra.mxu1 %v3463_v32  ;;  %v3182_v8 = vrot.slane %v3144_v36, %v6651_v25  ;;  %v3294_v27 = vrot.slane %v3272_v44, %v6651_v25  ;;  %v3082_v60 = vrot.slane %v2577_v63, %v6651_v25  ;;  %v3147_v20 = vsub.f32 1.0, %v6655_v31  ;;  %v3483_v32 = vld [vmem:[%s6701_s28 + $0x20] sm:$0xff] }
 0x415   : > { %5649 = vmatmul.mubr.msk.f32.vlgmr.msra.gmra.mxu1 %vm3495_vm6, %v3479_v11  ;;  %5651 = vmatprep.subr.mxu1 %v7685_v39  ;;  %v6745_v35 = vrot.slane %v2612_v7, %v6645_v2  ;;  %v3275_v61 = vadd.s32 1, %v2577_v63  ;;  %v3386_v21 = vrot.slane %v6655_v31, %v6651_v25  ;;  %v2377_v56 = vcombine.high %v6655_v31, %v6655_v31 }
 0x416   : > { %v3256_v9 = vsel %vm6724_vm9, %v3182_v8, 0.0  ;;  %vm3352_vm10 = vcmp.eq.s32.totalorder %v6642_v16, %v3294_v27  ;;  %vm6755_vm11 = vcmp.eq.s32.totalorder %v6642_v16, %v3082_v60  ;;  %v3194_v47 = vrot.slane %v3147_v20, %v6651_v25  ;;  %5653 = vmatprep.mubr.msk.f32.mxu1 %vm5843_vm3, %v7685_v39 }
 0x417   : > { %v3448_v26 = vsel %vm3352_vm10, %v3374_v6, 0.0  ;;  %v3306_v38 = vrot.slane %v3275_v61, %v6651_v25  ;;  %v2593_v49 = vcombine.high %v2577_v63, %v2577_v63  ;;  %v3149_v31 = vsub.f32 1.0, %v2377_v56 }
 0x418   : > { %v3464_v14 = vadd.f32 %v3448_v26, %v3256_v9  ;;  %v3259_v59 = vsel %vm6755_vm11, %v3194_v47, 0.0  ;;  %v3394_v42 = vrot.slane %v2377_v56, %v6651_v25  ;;  %v2592_v1 = vcombine.high %v6664_v15, %v6664_v15 }
 0x419   : > { %vm3355_vm12 = vcmp.eq.s32.totalorder %v6642_v16, %v3306_v38  ;;  %v3090_v3 = vrot.slane %v2593_v49, %v6651_v25  ;;  %v3202_v51 = vrot.slane %v3149_v31, %v6651_v25  ;;  %v3277_v53 = vadd.s32 1, %v2593_v49 }
 0x41a   : > { %5652 = vmatpush3.msra.mxu1 %v3464_v14  ;;  %v3451_v63 = vsel %vm3355_vm12, %v3386_v21, 0.0  ;;  %v3074_v55 = vrot.slane %v2592_v1, %v6651_v25  ;;  %v3145_v24 = vsub.f32 1.0, %v6660_v46  ;;  %v3273_v30 = vadd.s32 1, %v2592_v1 }
 0x41b   : > { %v3467_v50 = vadd.f32 %v3451_v63, %v3259_v59  ;;  %5656 = vmatprep.subr.mxu1 %v7685_v39  ;;  %vm6777_vm13 = vcmp.eq.s32.totalorder %v6642_v16, %v3090_v3  ;;  %v3314_v11 = vrot.slane %v3277_v53, %v6651_v25  ;;  %5654 = vmatmul.mubr.msk.f32.vlgmr.msra.gmra.mxu1 %vm3495_vm6, %v3480_v37  ;;  %v3148_v54 = vsub.f32 1.0, %v6667_v12 }
 0x41c   : > { %v3261_v36 = vsel %vm6777_vm13, %v3202_v51, 0.0  ;;  %vm6787_vm14 = vcmp.eq.s32.totalorder %v6642_v16, %v3074_v55  ;;  %v3186_v7 = vrot.slane %v3145_v24, %v6651_v25  ;;  %v3298_v6 = vrot.slane %v3273_v30, %v6651_v25  ;;  %5658 = vmatprep.mubr.msk.f32.mxu1 %vm5843_vm3, %v7685_v39 }
 0x41d   : > { %5667 = vmatpush3.msra.mxu0 %v3467_v50  ;;  %vm3357_vm15 = vcmp.eq.s32.totalorder %v6642_v16, %v3314_v11  ;;  %v3378_v8 = vrot.slane %v6660_v46, %v6651_v25  ;;  %v2378_v27 = vcombine.high %v6658_v34, %v6658_v34  ;;  %v2594_v60 = vcombine.high %v6673_v29, %v6673_v29 }
 0x41e   : > { %5676 = vmatprep.subr.mxu0 %v7685_v39  ;;  %5669 = vmatmul.mubr.msk.f32.vlgmr.msra.gmra.mxu0 %vm3495_vm6, %v3483_v32  ;;  %v3453_v20 = vsel %vm3357_vm15, %v3394_v42, 0.0  ;;  %v3257_v61 = vsel %vm6787_vm14, %v3186_v7, 0.0  ;;  %vm3353_vm1 = vcmp.eq.s32.totalorder %v6642_v16, %v3298_v6  ;;  %v3086_v21 = vrot.slane %v6682_v18, %v6651_v25  ;;  %v3485_v42 = vld [vmem:[%s6701_s28 + $0x30] sm:$0xff] }
 0x41f   : > { %v3469_v46 = vadd.f32 %v3453_v20, %v3261_v36  ;;  %v3449_v56 = vsel %vm3353_vm1, %v3378_v8, 0.0  ;;  %v3078_v34 = vrot.slane %v2594_v60, %v6651_v25  ;;  %v3146_v9 = vsub.f32 1.0, %v2378_v27  ;;  %5678 = vmatprep.mubr.msk.f32.mxu0 %vm5843_vm3, %v7685_v39 }
 0x420   : > { %v3465_v29 = vadd.f32 %v3449_v56, %v3257_v61  ;;  %v3274_v47 = vadd.s32 1, %v2594_v60  ;;  %v3382_v26 = vrot.slane %v2378_v27, %v6651_v25  ;;  %vm6815_vm2 = vcmp.eq.s32.totalorder %v6642_v16, %v3086_v21 }
 0x421   : > { %5677 = vmatpush3.msra.mxu0 %v3469_v46  ;;  %vm6820_vm4 = vcmp.eq.s32.totalorder %v6642_v16, %v3078_v34  ;;  %v3190_v31 = vrot.slane %v3146_v9, %v6651_v25  ;;  %v3198_v14 = vrot.slane %v3148_v54, %v6651_v25  ;;  %v3276_v59 = vadd.s32 1, %v6682_v18  ;;  %v3482_v54 = vld [vmem:[%s6701_s28 + $0x18] sm:$0xff] }
 0x422   : > { %5657 = vmatpush3.msra.mxu1 %v3465_v29  ;;  %v3302_v37 = vrot.slane %v3274_v47, %v6651_v25  ;;  %v3390_v1 = vrot.slane %v6667_v12, %v6651_v25  ;;  %v2379_v3 = vcombine.high %v6667_v12, %v6667_v12  ;;  %v2595_v51 = vcombine.high %v6682_v18, %v6682_v18 }
 0x423   : > { %5661 = vmatprep.subr.mxu1 %v7685_v39  ;;  %5659 = vmatmul.mubr.msk.f32.vlgmr.msra.gmra.mxu1 %vm3495_vm6, %v3481_v40  ;;  %v3258_v53 = vsel %vm6820_vm4, %v3190_v31, 0.0  ;;  %v3260_v63 = vsel %vm6815_vm2, %v3198_v14, 0.0  ;;  %v3310_v55 = vrot.slane %v3276_v59, %v6651_v25  ;;  %v3098_v24 = vrot.slane %v6720_v23, %v6651_v25 }
 0x424   : > { %vm3354_vm5 = vcmp.eq.s32.totalorder %v6642_v16, %v3302_v37  ;;  %5663 = vmatprep.mubr.msk.f32.mxu1 %vm5843_vm3, %v7685_v39  ;;  %v3094_v12 = vrot.slane %v2595_v51, %v6651_v25  ;;  %v3150_v18 = vsub.f32 1.0, %v2379_v3  ;;  %v3278_v30 = vadd.s32 1, %v2595_v51  ;;  %5679 = vmatmul.mubr.msk.f32.vlgmr.msra.gmra.mxu0 %vm3495_vm6, %v3485_v42 }
 0x425   : > { %v3450_v50 = vsel %vm3354_vm5, %v3382_v26, 0.0  ;;  %vm3356_vm7 = vcmp.eq.s32.totalorder %v6642_v16, %v3310_v55  ;;  %v3398_v32 = vrot.slane %v2379_v3, %v6651_v25  ;;  %5686 = vmatprep.subr.mxu0 %v7685_v39  ;;  %vm6853_vm8 = vcmp.eq.s32.totalorder %v6642_v16, %v3098_v24  ;;  %5688 = vmatprep.mubr.msk.f32.mxu0 %vm5843_vm3, %v7685_v39 }
 0x426   : > { %v3466_v11 = vadd.f32 %v3450_v50, %v3258_v53  ;;  %v3452_v36 = vsel %vm3356_vm7, %v3390_v1, 0.0  ;;  %vm6861_vm9 = vcmp.eq.s32.totalorder %v6642_v16, %v3094_v12  ;;  %v3206_v7 = vrot.slane %v3150_v18, %v6651_v25  ;;  %v3487_v1 = vld [vmem:[%s6701_s28 + $0x40] sm:$0xff] }
 0x427   : > { %v3468_v6 = vadd.f32 %v3452_v36, %v3260_v63  ;;  %v3318_v8 = vrot.slane %v3278_v30, %v6651_v25  ;;  %v3210_v27 = vrot.slane %v3151_v19, %v6651_v25  ;;  %v3279_v60 = vadd.s32 1, %v6720_v23  ;;  %v3488_v36 = vld [vmem:[%s6701_s28 + $0x48] sm:$0xff] }
 0x428   : > { %5662 = vmatpush3.msra.mxu1 %v3466_v11  ;;  %v3262_v20 = vsel %vm6861_vm9, %v3206_v7, 0.0  ;;  %v3402_v61 = vrot.slane %v6690_v17, %v6651_v25  ;;  %v3102_v21 = vrot.slane %v6734_v45, %v6651_v25  ;;  %v3152_v46 = vsub.f32 1.0, %v6704_v22  ;;  %v3484_v17 = vld [vmem:[%s6701_s28 + $0x28] sm:$0xff]  ;;  %v3493_v7 = vld [vmem:[%s6701_s28 + $0x70] sm:$0xff] }
 0x429   : > { %5671 = vmatprep.subr.mxu1 %v7685_v39  ;;  %5664 = vmatmul.mubr.msk.f32.vlgmr.msra.gmra.mxu1 %vm3495_vm6, %v3482_v54  ;;  %vm3358_vm10 = vcmp.eq.s32.totalorder %v6642_v16, %v3318_v8  ;;  %v3263_v19 = vsel %vm6853_vm8, %v3210_v27, 0.0  ;;  %v3322_v56 = vrot.slane %v3279_v60, %v6651_v25  ;;  %v3280_v34 = vadd.s32 1, %v6734_v45  ;;  %v3489_v60 = vld [vmem:[%s6701_s28 + $0x50] sm:$0xff] }
 0x42a   : > { %5672 = vmatpush3.msra.mxu1 %v3468_v6  ;;  %5673 = vmatprep.mubr.msk.f32.mxu1 %vm5843_vm3, %v7685_v39  ;;  %v3454_v9 = vsel %vm3358_vm10, %v3398_v32, 0.0  ;;  %vm6889_vm11 = vcmp.eq.s32.totalorder %v6642_v16, %v3102_v21  ;;  %v3214_v40 = vrot.slane %v3152_v46, %v6651_v25  ;;  %v3406_v47 = vrot.slane %v6704_v22, %v6651_v25 }
 0x42b   : > { %5681 = vmatprep.subr.mxu1 %v7685_v39  ;;  %v3470_v26 = vadd.f32 %v3454_v9, %v3262_v20  ;;  %vm3359_vm12 = vcmp.eq.s32.totalorder %v6642_v16, %v3322_v56  ;;  %v3326_v38 = vrot.slane %v3280_v34, %v6651_v25  ;;  %v2641_v49 = vcombine.high %v6720_v23, %v6720_v23  ;;  %v3486_v23 = vld [vmem:[%s6701_s28 + $0x38] sm:$0xff] }
 0x42c   : > { %v3455_v31 = vsel %vm3359_vm12, %v3402_v61, 0.0  ;;  %v3264_v14 = vsel %vm6889_vm11, %v3214_v40, 0.0  ;;  %v3153_v59 = vsub.f32 1.0, %v6708_v4  ;;  %v3410_v42 = vrot.slane %v6708_v4, %v6651_v25  ;;  %v3490_v40 = vld [vmem:[%s6701_s28 + $0x58] sm:$0xff] }
 0x42d   : > { %5674 = vmatmul.mubr.msk.f32.vlgmr.msra.gmra.mxu1 %vm3495_vm6, %v3484_v17  ;;  %v3471_v37 = vadd.f32 %v3455_v31, %v3263_v19  ;;  %vm3360_vm13 = vcmp.eq.s32.totalorder %v6642_v16, %v3326_v38  ;;  %v3106_v3 = vrot.slane %v2641_v49, %v6651_v25  ;;  %v3281_v51 = vadd.s32 1, %v2641_v49 }
 0x42e   : > { %5682 = vmatpush3.msra.mxu1 %v3470_v26  ;;  %5683 = vmatprep.mubr.msk.f32.mxu1 %vm5843_vm3, %v7685_v39  ;;  %v3456_v53 = vsel %vm3360_vm13, %v3406_v47, 0.0  ;;  %v3218_v63 = vrot.slane %v3153_v59, %v6651_v25  ;;  %v2427_v4 = vcombine.high %v6704_v22, %v6704_v22  ;;  %v2643_v55 = vcombine.high %v6734_v45, %v6734_v45  ;;  %v3491_v59 = vld [vmem:[%s6701_s28 + $0x60] sm:$0xff] }
 0x42f   : > { %5687 = vmatpush3.msra.mxu0 %v3471_v37  ;;  %5691 = vmatprep.subr.mxu1 %v7685_v39  ;;  %v3472_v24 = vadd.f32 %v3456_v53, %v3264_v14  ;;  %vm6920_vm14 = vcmp.eq.s32.totalorder %v6642_v16, %v3106_v3  ;;  %v3330_v18 = vrot.slane %v3281_v51, %v6651_v25  ;;  %v3155_v30 = vsub.f32 1.0, %v6696_v28 }
 0x430   : > { %5689 = vmatmul.mubr.msk.f32.vlgmr.msra.gmra.mxu0 %vm3495_vm6, %v3487_v1  ;;  %5696 = vmatprep.subr.mxu0 %v7685_v39  ;;  %v3265_v22 = vsel %vm6920_vm14, %v3218_v63, 0.0  ;;  %v3110_v45 = vrot.slane %v2643_v55, %v6651_v25  ;;  %v3154_v50 = vsub.f32 1.0, %v2427_v4  ;;  %v3282_v32 = vadd.s32 1, %v2643_v55 }
 0x431   : > { %5684 = vmatmul.mubr.msk.f32.vlgmr.msra.gmra.mxu1 %vm3495_vm6, %v3486_v23  ;;  %vm3361_vm15 = vcmp.eq.s32.totalorder %v6642_v16, %v3330_v18  ;;  %5698 = vmatprep.mubr.msk.f32.mxu0 %vm5843_vm3, %v7685_v39  ;;  %v3414_v15 = vrot.slane %v2427_v4, %v6651_v25  ;;  %v3114_v11 = vrot.slane %v6731_v13, %v6651_v25  ;;  %v3283_v54 = vadd.s32 1, %v6731_v13 }
 0x432   : > { %5692 = vmatpush3.msra.mxu1 %v3472_v24  ;;  %5693 = vmatprep.mubr.msk.f32.mxu1 %vm5843_vm3, %v7685_v39  ;;  %v3457_v44 = vsel %vm3361_vm15, %v3410_v42, 0.0  ;;  %vm6943_vm1 = vcmp.eq.s32.totalorder %v6642_v16, %v3110_v45  ;;  %v3222_v6 = vrot.slane %v3154_v50, %v6651_v25  ;;  %v3334_v8 = vrot.slane %v3282_v32, %v6651_v25 }
 0x433   : > { %v3473_v27 = vadd.f32 %v3457_v44, %v3265_v22  ;;  %5701 = vmatprep.subr.mxu1 %v7685_v39  ;;  %vm6952_vm2 = vcmp.eq.s32.totalorder %v6642_v16, %v3114_v11  ;;  %v3226_v61 = vrot.slane %v3155_v30, %v6651_v25  ;;  %v3338_v21 = vrot.slane %v3283_v54, %v6651_v25  ;;  %v3492_v30 = vld [vmem:[%s6701_s28 + $0x68] sm:$0xff] }
 0x434   : > { %v3266_v46 = vsel %vm6943_vm1, %v3222_v6, 0.0  ;;  %vm3362_vm4 = vcmp.eq.s32.totalorder %v6642_v16, %v3334_v8  ;;  %v3418_v19 = vrot.slane %v6696_v28, %v6651_v25  ;;  %v3118_v56 = vrot.slane %v6745_v35, %v6651_v25 }
 0x435   : > { %5694 = vmatmul.mubr.msk.f32.vlgmr.msra.gmra.mxu1 %vm3495_vm6, %v3488_v36  ;;  %5697 = vmatpush3.msra.mxu0 %v3473_v27  ;;  %v3458_v34 = vsel %vm3362_vm4, %v3414_v15, 0.0  ;;  %v3267_v17 = vsel %vm6952_vm2, %v3226_v61, 0.0  ;;  %vm3363_vm5 = vcmp.eq.s32.totalorder %v6642_v16, %v3338_v21  ;;  %v3156_v9 = vsub.f32 1.0, %v6713_v43  ;;  %v3494_v27 = vld [vmem:[%s6701_s28 + $0x78] sm:$0xff]  ;;  %s622_s28 = scalar_lea.vmem %s7670_s19, %s5456_s3 }
 0x436   : > { %5699 = vmatmul.mubr.msk.f32.vlgmr.msra.gmra.mxu0 %vm3495_vm6, %v3489_v60  ;;  %v3474_v29 = vadd.f32 %v3458_v34, %v3266_v46  ;;  %5703 = vmatprep.mubr.msk.f32.mxu1 %vm5843_vm3, %v7685_v39  ;;  %v3459_v47 = vsel %vm3363_vm5, %v3418_v19, 0.0  ;;  %vm6975_vm7 = vcmp.eq.s32.totalorder %v6642_v16, %v3118_v56  ;;  %v3284_v38 = vadd.s32 1, %v6745_v35  ;;  %v2153_v60 = vpop.trf.xlu1 }
 0x437   : > { %5706 = vmatprep.subr.mxu0 %v7685_v39  ;;  %v3475_v49 = vadd.f32 %v3459_v47, %v3267_v17  ;;  %5708 = vmatprep.mubr.msk.f32.mxu0 %vm5843_vm3, %v7685_v39  ;;  %v3230_v31 = vrot.slane %v3156_v9, %v6651_v25  ;;  %v3422_v14 = vrot.slane %v6713_v43, %v6651_v25 }
 0x438   : > { %5702 = vmatpush3.msra.mxu1 %v3474_v29  ;;  %v3342_v42 = vrot.slane %v3284_v38, %v6651_v25  ;;  %v2426_v37 = vcombine.high %v6696_v28, %v6696_v28  ;;  %v2642_v1 = vcombine.high %v6731_v13, %v6731_v13  ;;  %v2428_v3 = vcombine.high %v6713_v43, %v6713_v43 }
 0x439   : > { %5704 = vmatmul.mubr.msk.f32.vlgmr.msra.gmra.mxu1 %vm3495_vm6, %v3490_v40  ;;  %5707 = vmatpush3.msra.mxu0 %v3475_v49  ;;  %v3268_v51 = vsel %vm6975_vm7, %v3230_v31, 0.0  ;;  %v2644_v23 = vcombine.high %v6745_v35, %v6745_v35  ;;  %v2169_v20 = vadd.f32 %v2153_v60, %v6639_v33 }
 0x43a   : > { %5711 = vmatprep.subr.mxu1 %v7685_v39  ;;  %5716 = vmatprep.subr.mxu0 %v7685_v39  ;;  %vm3364_vm8 = vcmp.eq.s32.totalorder %v6642_v16, %v3342_v42  ;;  %v3122_v28 = vrot.slane %v2642_v1, %v6651_v25  ;;  %v3157_v13 = vsub.f32 1.0, %v2426_v37  ;;  %v3285_v43 = vadd.s32 1, %v2642_v1  ;;  %v2154_v40 = vpop.trf.xlu1 }
 0x43b   : > { %5709 = vmatmul.mubr.msk.f32.vlgmr.msra.gmra.mxu0 %vm3495_vm6, %v3491_v59  ;;  %v3460_v53 = vsel %vm3364_vm8, %v3422_v14, 0.0  ;;  %v3426_v63 = vrot.slane %v2426_v37, %v6651_v25  ;;  %5713 = vmatprep.mubr.msk.f32.mxu1 %vm5843_vm3, %v7685_v39  ;;  %v3126_v35 = vrot.slane %v2644_v23, %v6651_v25  ;;  %v3158_v4 = vsub.f32 1.0, %v2428_v3 }
 0x43c   : > { %v3476_v55 = vadd.f32 %v3460_v53, %v3268_v51  ;;  %vm7009_vm9 = vcmp.eq.s32.totalorder %v6642_v16, %v3122_v28  ;;  %v3234_v12 = vrot.slane %v3157_v13, %v6651_v25  ;;  %v3346_v18 = vrot.slane %v3285_v43, %v6651_v25  ;;  %5718 = vmatprep.mubr.msk.f32.mxu0 %vm5843_vm3, %v7685_v39 }
 0x43d   : > { %vm7019_vm10 = vcmp.eq.s32.totalorder %v6642_v16, %v3126_v35  ;;  %v3238_v45 = vrot.slane %v3158_v4, %v6651_v25  ;;  %v3286_v50 = vadd.s32 1, %v2644_v23  ;;  %v3430_v15 = vrot.slane %v2428_v3, %v6651_v25 }
 0x43e   : > { %5712 = vmatpush3.msra.mxu1 %v3476_v55  ;;  %v3269_v32 = vsel %vm7009_vm9, %v3234_v12, 0.0  ;;  %vm3365_vm11 = vcmp.eq.s32.totalorder %v6642_v16, %v3346_v18  ;;  %v2205_v61 = vfloor.f32 %v2169_v20  ;;  %v2170_v31 = vadd.f32 %v2154_v40, %v6639_v33  ;;  %v7095_v40 = vpop.f32.mrf.mxu0 }
 0x43f   : > { %v3461_v11 = vsel %vm3365_vm11, %v3426_v63, 0.0  ;;  %5721 = vmatprep.subr.mxu1 %v7685_v39  ;;  %5714 = vmatmul.mubr.msk.f32.vlgmr.msra.gmra.mxu1 %vm3495_vm6, %v3492_v30  ;;  %v3350_v54 = vrot.slane %v3286_v50, %v6651_v25  ;;  %v3270_v44 = vsel %vm7019_vm10, %v3238_v45, 0.0 }
 0x440   : > { %v3477_v36 = vadd.f32 %v3461_v11, %v3269_v32  ;;  %5723 = vmatprep.mubr.msk.f32.mxu1 %vm5843_vm3, %v7685_v39  ;;  %v5746_v21 = vtrunc.f32 %v2205_v61  ;;  %v2209_v19 = vsub.f32 %v2169_v20, %v2205_v61  ;;  %v2206_v13 = vfloor.f32 %v2170_v31 }
 0x441   : > { %vm3366_vm12 = vcmp.eq.s32.totalorder %v6642_v16, %v3350_v54 }
 0x442   : > { %5717 = vmatpush3.msra.mxu0 %v3477_v36  ;;  %v3462_v6 = vsel %vm3366_vm12, %v3430_v15, 0.0  ;;  %v5747_v46 = vcvt.f32.s32 %v5746_v21  ;;  %v2220_v34 = vrot.slane %v2209_v19, %v6645_v2  ;;  %v2213_v47 = vcombine.high %v2209_v19, %v2209_v19 }
 0x443   : > { %v3478_v8 = vadd.f32 %v3462_v6, %v3270_v44  ;;  %5719 = vmatmul.mubr.msk.f32.vlgmr.msra.gmra.mxu0 %vm3495_vm6, %v3493_v7  ;;  %v2210_v4 = vsub.f32 %v2170_v31, %v2206_v13  ;;  %v5748_v50 = vtrunc.f32 %v2206_v13 }
 0x444   : > { %v2454_v39 = vrot.slane %v5747_v46, %v6645_v2  ;;  %v2228_v9 = vcombine.high %v2220_v34, %v2220_v34  ;;  %v2236_v38 = vrot.slane %v2220_v34, %v6645_v2  ;;  %v2447_v59 = vcombine.high %v5747_v46, %v5747_v46 }
 0x445   : > { %5722 = vmatpush3.msra.mxu1 %v3478_v8  ;;  %v2227_v1 = vrot.slane %v2213_v47, %v6645_v2  ;;  %v2262_v54 = vcombine.high %v2210_v4, %v2210_v4  ;;  %v2269_v61 = vrot.slane %v2210_v4, %v6645_v2  ;;  %v5749_v21 = vcvt.f32.s32 %v5748_v50 }
 0x446   : > { %5724 = vmatmul.mubr.msk.f32.vlgmr.msra.gmra.mxu1 %vm3495_vm6, %v3494_v27  ;;  %v2462_v56 = vcombine.high %v2454_v39, %v2454_v39  ;;  %v2470_v17 = vrot.slane %v2454_v39, %v6645_v2  ;;  %v2250_v14 = vrot.slane %v2228_v9, %v6645_v2  ;;  %v2258_v37 = vcombine.high %v2236_v38, %v2236_v38 }
 0x447   : > { %v2727_v23 = vsub.f32 1.0, %v2236_v38  ;;  %v2461_v43 = vrot.slane %v2447_v59, %v6645_v2  ;;  %v2229_v35 = vcombine.high %v2227_v1, %v2227_v1  ;;  %v2954_v12 = vrot.slane %v2236_v38, %v6651_v25 }
 0x448   : > { %v2484_v29 = vrot.slane %v2462_v56, %v6645_v2  ;;  %v2492_v26 = vcombine.high %v2470_v17, %v2470_v17  ;;  %v2855_v49 = vadd.s32 1, %v2470_v17  ;;  %v2650_v51 = vrot.slane %v2470_v17, %v6651_v25 }
 0x449   : > { %v2728_v63 = vsub.f32 1.0, %v2250_v14  ;;  %v2729_v55 = vsub.f32 1.0, %v2258_v37  ;;  %v2463_v24 = vcombine.high %v2461_v43, %v2461_v43  ;;  %v2762_v45 = vrot.slane %v2727_v23, %v6651_v25 }
 0x44a   : > { %v2856_v42 = vadd.s32 1, %v2484_v29  ;;  %v2857_v3 = vadd.s32 1, %v2492_v26  ;;  %v2874_v28 = vrot.slane %v2855_v49, %v6651_v25  ;;  %v2654_v53 = vrot.slane %v2484_v29, %v6651_v25 }
 0x44b   : > { %v2658_v18 = vrot.slane %v2492_v26, %v6651_v25  ;;  %vm7058_vm3 = vcmp.eq.s32.totalorder %v6642_v16, %v2650_v51  ;;  %v2766_v15 = vrot.slane %v2728_v63, %v6651_v25  ;;  %v2958_v11 = vrot.slane %v2250_v14, %v6651_v25 }
 0x44c   : > { %v2878_v33 = vrot.slane %v2856_v42, %v6651_v25  ;;  %v2882_v30 = vrot.slane %v2857_v3, %v6651_v25  ;;  %vm2935_vm6 = vcmp.eq.s32.totalorder %v6642_v16, %v2874_v28  ;;  %vm7065_vm13 = vcmp.eq.s32.totalorder %v6642_v16, %v2654_v53  ;;  %v7117_v53 = vpop.f32.mrf.mxu0 }
 0x44d   : > { %v2770_v36 = vrot.slane %v2729_v55, %v6651_v25  ;;  %v2962_v44 = vrot.slane %v2258_v37, %v6651_v25  ;;  %v2494_v7 = vcombine.high %v2484_v29, %v2484_v29  ;;  %v7075_v6 = vrot.slane %v2227_v1, %v6645_v2 }
 0x44e   : > { %vm2936_vm14 = vcmp.eq.s32.totalorder %v6642_v16, %v2878_v33  ;;  %vm7078_vm15 = vcmp.eq.s32.totalorder %v6642_v16, %v2658_v18  ;;  %vm2937_vm1 = vcmp.eq.s32.totalorder %v6642_v16, %v2882_v30  ;;  %v2477_v27 = vrot.slane %v2461_v43, %v6645_v2 }
 0x44f   : > { %v2839_v60 = vsel %vm7058_vm3, %v2762_v45, 0.0  ;;  %v3031_v20 = vsel %vm2935_vm6, %v2954_v12, 0.0  ;;  %v2840_v46 = vsel %vm7065_vm13, %v2766_v15, 0.0  ;;  %v3032_v19 = vsel %vm2936_vm14, %v2958_v11, 0.0 }
 0x450   : > { %v2260_v39 = vcombine.high %v2250_v14, %v2250_v14  ;;  %v2491_v56 = vrot.slane %v2463_v24, %v6645_v2  ;;  %v7091_v34 = vrot.slane %v2262_v54, %v6645_v2  ;;  %v2841_v17 = vsel %vm7078_vm15, %v2770_v36, 0.0  ;;  %v7139_v54 = vpop.f32.mrf.mxu0 }
 0x451   : > { %v3033_v9 = vsel %vm2937_vm1, %v2962_v44, 0.0  ;;  %v2858_v29 = vadd.s32 1, %v2494_v7  ;;  %v7097_v47 = vadd.f32 %v3031_v20, %v2839_v60  ;;  %v2277_v26 = vcombine.high %v2269_v61, %v2269_v61 }
 0x452   : > { %v2859_v38 = vadd.s32 1, %v2477_v27  ;;  %v2257_v49 = vrot.slane %v2229_v35, %v6645_v2  ;;  %v7100_v31 = vadd.f32 %v3032_v19, %v2840_v46  ;;  %v7103_v14 = vrot.slane %v2269_v61, %v6645_v2 }
 0x453   : > { %v2496_v59 = vcombine.high %v5749_v21, %v5749_v21  ;;  %v2503_v42 = vrot.slane %v5749_v21, %v6645_v2  ;;  %v7106_v37 = vadd.f32 %v3033_v9, %v2841_v17  ;;  %v2662_v1 = vrot.slane %v2494_v7, %v6651_v25  ;;  %v7163_v17 = vpop.f32.mrf.mxu0 }
 0x454   : > { %v2730_v3 = vsub.f32 1.0, %v2260_v39  ;;  %v2860_v51 = vadd.s32 1, %v2491_v56  ;;  %v2278_v23 = vcombine.high %v7091_v34, %v7091_v34  ;;  %v7113_v28 = vrot.slane %v7091_v34, %v6645_v2 }
 0x455   : > { %v2886_v13 = vrot.slane %v2858_v29, %v6651_v25  ;;  %v2731_v43 = vsub.f32 1.0, %v7075_v6  ;;  %v7120_v63 = vrot.slane %v2277_v26, %v6645_v2  ;;  %v2666_v33 = vrot.slane %v2477_v27, %v6651_v25 }
 0x456   : > { %v2890_v35 = vrot.slane %v2859_v38, %v6651_v25  ;;  %v2732_v4 = vsub.f32 1.0, %v2257_v49  ;;  %v2511_v55 = vcombine.high %v2503_v42, %v2503_v42  ;;  %v2966_v24 = vrot.slane %v2260_v39, %v6651_v25 }
 0x457   : > { %v2670_v12 = vrot.slane %v2491_v56, %v6651_v25  ;;  %v2493_v18 = vcombine.high %v2477_v27, %v2477_v27  ;;  %vm7127_vm2 = vcmp.eq.s32.totalorder %v6642_v16, %v2662_v1  ;;  %v2774_v22 = vrot.slane %v2730_v3, %v6651_v25 }
 0x458   : > { %v2970_v45 = vrot.slane %v7075_v6, %v6651_v25  ;;  %v2894_v50 = vrot.slane %v2860_v51, %v6651_v25  ;;  %vm2938_vm4 = vcmp.eq.s32.totalorder %v6642_v16, %v2886_v13  ;;  %v2778_v32 = vrot.slane %v2731_v43, %v6651_v25 }
 0x459   : > { %v2259_v15 = vcombine.high %v7075_v6, %v7075_v6  ;;  %v2495_v11 = vcombine.high %v2491_v56, %v2491_v56  ;;  %v2519_v36 = vrot.slane %v2503_v42, %v6645_v2  ;;  %vm7143_vm5 = vcmp.eq.s32.totalorder %v6642_v16, %v2666_v33 }
 0x45a   : > { %vm2939_vm7 = vcmp.eq.s32.totalorder %v6642_v16, %v2890_v35  ;;  %v2782_v7 = vrot.slane %v2732_v4, %v6651_v25  ;;  %vm7150_vm8 = vcmp.eq.s32.totalorder %v6642_v16, %v2670_v12  ;;  %v2974_v6 = vrot.slane %v2257_v49, %v6651_v25  ;;  %v7182_v12 = vpop.f32.mrf.mxu0 }
 0x45b   : > { %v2861_v27 = vadd.s32 1, %v2493_v18  ;;  %v2261_v60 = vcombine.high %v2257_v49, %v2257_v49  ;;  %v7156_v20 = vrot.slane %v2496_v59, %v6645_v2  ;;  %v2842_v61 = vsel %vm7127_vm2, %v2774_v22, 0.0 }
 0x45c   : > { %v3034_v21 = vsel %vm2938_vm4, %v2966_v24, 0.0  ;;  %vm2940_vm9 = vcmp.eq.s32.totalorder %v6642_v16, %v2894_v50  ;;  %v2843_v46 = vsel %vm7143_vm5, %v2778_v32, 0.0  ;;  %v3035_v19 = vsel %vm2939_vm7, %v2970_v45, 0.0 }
 0x45d   : > { %v2733_v39 = vsub.f32 1.0, %v2259_v15  ;;  %v2862_v56 = vadd.s32 1, %v2495_v11  ;;  %v2512_v9 = vcombine.high %v7156_v20, %v7156_v20  ;;  %v2844_v29 = vsel %vm7150_vm8, %v2782_v7, 0.0 }
 0x45e   : > { %v2674_v26 = vrot.slane %v2493_v18, %v6651_v25  ;;  %v2863_v38 = vadd.s32 1, %v2519_v36  ;;  %v3036_v49 = vsel %vm2940_vm9, %v2974_v6, 0.0  ;;  %v2898_v59 = vrot.slane %v2861_v27, %v6651_v25 }
 0x45f   : > { %v2734_v42 = vsub.f32 1.0, %v2261_v60  ;;  %v2533_v1 = vrot.slane %v2511_v55, %v6645_v2  ;;  %v7172_v3 = vadd.f32 %v3034_v21, %v2842_v61  ;;  %v7174_v51 = vadd.f32 %v3035_v19, %v2843_v46 }
 0x460   : > { %v2678_v13 = vrot.slane %v2495_v11, %v6651_v25  ;;  %v2735_v43 = vsub.f32 1.0, %v7103_v14  ;;  %v2786_v33 = vrot.slane %v2733_v39, %v6651_v25  ;;  %v2978_v35 = vrot.slane %v2259_v15, %v6651_v25 }
 0x461   : > { %v2902_v4 = vrot.slane %v2862_v56, %v6651_v25  ;;  %v2682_v24 = vrot.slane %v2519_v36, %v6651_v25  ;;  %v7184_v18 = vadd.f32 %v3036_v49, %v2844_v29  ;;  %vm7187_vm10 = vcmp.eq.s32.totalorder %v6642_v16, %v2674_v26 }
 0x462   : > { %v2906_v30 = vrot.slane %v2863_v38, %v6651_v25  ;;  %v2541_v22 = vcombine.high %v2519_v36, %v2519_v36  ;;  %vm7193_vm11 = vcmp.eq.s32.totalorder %v6642_v16, %v2898_v59  ;;  %v2790_v50 = vrot.slane %v2734_v42, %v6651_v25 }
 0x463   : > { %v2982_v32 = vrot.slane %v2261_v60, %v6651_v25  ;;  %v2543_v15 = vcombine.high %v2533_v1, %v2533_v1  ;;  %vm7200_vm12 = vcmp.eq.s32.totalorder %v6642_v16, %v2678_v13  ;;  %v2794_v44 = vrot.slane %v2735_v43, %v6651_v25  ;;  %v7216_v60 = vpop.f32.mrf.mxu0 }
 0x464   : > { %v2864_v7 = vadd.s32 1, %v2533_v1  ;;  %v2307_v36 = vcombine.high %v7103_v14, %v7103_v14  ;;  %vm4680_vm3 = vcmask 523264   ;;  %vm2942_vm6 = vcmp.eq.s32.totalorder %v6642_v16, %v2902_v4 }
 0x465   : > { %vm7209_vm13 = vcmp.eq.s32.totalorder %v6642_v16, %v2682_v24  ;;  %v2986_v6 = vrot.slane %v7103_v14, %v6651_v25  ;;  %v2736_v27 = vsub.f32 1.0, %v7120_v63  ;;  %vm2943_vm14 = vcmp.eq.s32.totalorder %v6642_v16, %v2906_v30 }
 0x466   : > { %v2686_v61 = vrot.slane %v2533_v1, %v6651_v25  ;;  %v2865_v21 = vadd.s32 1, %v2541_v22  ;;  %v2309_v46 = vcombine.high %v7120_v63, %v7120_v63  ;;  %v2845_v19 = vsel %vm7187_vm10, %v2786_v33, 0.0  ;;  %v7235_v33 = vpop.f32.mrf.mxu0 }
 0x467   : > { %v3037_v39 = vsel %vm7193_vm11, %v2978_v35, 0.0  ;;  %v2846_v14 = vsel %vm7200_vm12, %v2790_v50, 0.0  ;;  %v2866_v56 = vadd.s32 1, %v2543_v15  ;;  %v3038_v29 = vsel %vm2942_vm6, %v2982_v32, 0.0 }
 0x468   : > { %v2847_v26 = vsel %vm7209_vm13, %v2794_v44, 0.0  ;;  %v2910_v38 = vrot.slane %v2864_v7, %v6651_v25  ;;  %v2737_v49 = vsub.f32 1.0, %v2307_v36  ;;  %v3039_v42 = vsel %vm2943_vm14, %v2986_v6, 0.0 }
 0x469   : > { %v2798_v1 = vrot.slane %v2736_v27, %v6651_v25  ;;  %v2690_v13 = vrot.slane %v2541_v22, %v6651_v25  ;;  %v2526_v43 = vrot.slane %v7156_v20, %v6645_v2  ;;  %v7237_v35 = vadd.f32 %v3037_v39, %v2845_v19  ;;  %v7264_v27 = vpop.f32.mrf.mxu0 }
 0x46a   : > { %vm7240_vm15 = vcmp.eq.s32.totalorder %v6642_v16, %v2686_v61  ;;  %v2914_v24 = vrot.slane %v2865_v21, %v6651_v25  ;;  %v2738_v55 = vsub.f32 1.0, %v2309_v46  ;;  %v7245_v45 = vadd.f32 %v3038_v29, %v2846_v14 }
 0x46b   : > { %v2990_v22 = vrot.slane %v7120_v63, %v6651_v25  ;;  %v2694_v50 = vrot.slane %v2543_v15, %v6651_v25  ;;  %v2918_v32 = vrot.slane %v2866_v56, %v6651_v25  ;;  %v7252_v44 = vadd.f32 %v3039_v42, %v2847_v26 }
 0x46c   : > { %vm2944_vm1 = vcmp.eq.s32.totalorder %v6642_v16, %v2910_v38  ;;  %v2802_v7 = vrot.slane %v2737_v49, %v6651_v25  ;;  %v2848_v8 = vsel %vm7240_vm15, %v2798_v1, 0.0  ;;  %vm7259_vm2 = vcmp.eq.s32.totalorder %v6642_v16, %v2690_v13 }
 0x46d   : > { %v2994_v63 = vrot.slane %v2307_v36, %v6651_v25  ;;  %v2867_v15 = vadd.s32 1, %v2526_v43  ;;  %vm2945_vm4 = vcmp.eq.s32.totalorder %v6642_v16, %v2914_v24  ;;  %v2998_v61 = vrot.slane %v2309_v46, %v6651_v25 }
 0x46e   : > { %v2739_v21 = vsub.f32 1.0, %v7113_v28  ;;  %v3040_v39 = vsel %vm2944_vm1, %v2990_v22, 0.0  ;;  %vm7271_vm5 = vcmp.eq.s32.totalorder %v6642_v16, %v2694_v50  ;;  %vm2946_vm7 = vcmp.eq.s32.totalorder %v6642_v16, %v2918_v32 }
 0x46f   : > { %v7280_v36 = vrot.slane %v2512_v9, %v6645_v2  ;;  %v2849_v29 = vsel %vm7259_vm2, %v2802_v7, 0.0  ;;  %v2698_v26 = vrot.slane %v2526_v43, %v6651_v25  ;;  %v3041_v49 = vsel %vm2945_vm4, %v2994_v63, 0.0 }
 0x470   : > { %v2306_v20 = vrot.slane %v2278_v23, %v6645_v2  ;;  %v2542_v9 = vcombine.high %v2526_v43, %v2526_v43  ;;  %v3042_v13 = vsel %vm2946_vm7, %v2998_v61, 0.0  ;;  %v2810_v4 = vrot.slane %v2739_v21, %v6651_v25 }
 0x471   : > { %v2868_v22 = vadd.s32 1, %v7280_v36  ;;  %v7298_v32 = vadd.f32 %v3040_v39, %v2848_v8  ;;  %vm7301_vm8 = vcmp.eq.s32.totalorder %v6642_v16, %v2698_v26  ;;  %v3002_v34 = vrot.slane %v7113_v28, %v6651_v25 }
 0x472   : > { %v2308_v23 = vcombine.high %v7113_v28, %v7113_v28  ;;  %v7311_v8 = vadd.f32 %v3041_v49, %v2849_v29  ;;  %v2702_v63 = vrot.slane %v7280_v36, %v6651_v25  ;;  %v2851_v61 = vsel %vm7301_vm8, %v2810_v4, 0.0 }
 0x473   : > { %v2926_v28 = vrot.slane %v2868_v22, %v6651_v25  ;;  %v3006_v21 = vrot.slane %v2306_v20, %v6651_v25  ;;  %vm4809_vm13 = vcmask 1041409   ;;  %vm4811_vm14 = vcmask 1042434  }
 0x474   : > { %v2741_v29 = vsub.f32 1.0, %v2308_v23  ;;  %vm7328_vm10 = vcmp.eq.s32.totalorder %v6642_v16, %v2702_v63  ;;  %v3010_v22 = vrot.slane %v2308_v23, %v6651_v25  ;;  %vm4813_vm15 = vcmask 1043459  }
 0x475   : > { %vm2948_vm11 = vcmp.eq.s32.totalorder %v6642_v16, %v2926_v28  ;;  %v7351_v28 = vcombine.high %v7280_v36, %v7280_v36  ;;  %vm4815_vm1 = vcmask 1044484   ;;  %vm4817_vm2 = vcmask 1045509  }
 0x476   : > { %v3044_v63 = vsel %vm2948_vm11, %v3006_v21, 0.0  ;;  %vm4819_vm4 = vcmask 1046534   ;;  %vm4821_vm8 = vcmask 1047559  }
 0x4d5   : > { %v3565_v59 = vpop.f32.mrf.mxu1 }
 0x4d6   : > { %v4664_v11 = vmul.f32 %v3565_v59, %v7097_v47  ;;  %v2806_v47 = vrot.slane %v2738_v55, %v6651_v25  ;;  %v2922_v59 = vrot.slane %v2867_v15, %v6651_v25 }
 0x4d7   : > { %v5650_v30 = vpop.f32.mrf.mxu1 }
 0x4d8   : > { %v4681_v56 = vsel %vm4680_vm3, %v4664_v11, 0.0  ;;  %vm2947_vm9 = vcmp.eq.s32.totalorder %v6642_v16, %v2922_v59  ;;  %v2869_v11 = vadd.s32 1, %v2542_v9 }
 0x4d9   : > { %v4682_v24 = vrot.slane %v4681_v56, 4 }
 0x4da   : > { %v2930_v59 = vrot.slane %v2869_v11, %v6651_v25 }
 0x4db   : > { %v3638_v19 = vpop.f32.mrf.mxu1  ;;  %v4683_v15 = vadd.f32 %v4682_v24, %v4681_v56  ;;  %v2706_v56 = vrot.slane %v2542_v9, %v6651_v25 }
 0x4dc   : > { %v4665_v46 = vmul.f32 %v3638_v19, %v7100_v31  ;;  %v2850_v31 = vsel %vm7271_vm5, %v2806_v47, 0.0  ;;  %vm2949_vm6 = vcmp.eq.s32.totalorder %v6642_v16, %v2930_v59 }
 0x4dd   : > { %v5655_v38 = vpop.f32.mrf.mxu1  ;;  %v7313_v6 = vadd.f32 %v3042_v13, %v2850_v31  ;;  %v7332_v13 = vcombine.high %v2306_v20, %v2306_v20  ;;  %v4684_v4 = vrot.slane %v4683_v15, 2  ;;  %vm7343_vm12 = vcmp.eq.s32.totalorder %v6642_v16, %v2706_v56 }
 0x4de   : > { %v4688_v42 = vsel %vm4680_vm3, %v4665_v46, 0.0  ;;  %v3857_v1 = vpop.f32.mrf.mxu0  ;;  %v3043_v46 = vsel %vm2947_vm9, %v3002_v34, 0.0  ;;  %v2710_v56 = vrot.slane %v7351_v28, %v6651_v25 }
 0x4df   : > { %v4689_v55 = vrot.slane %v4688_v42, 4  ;;  %v4668_v30 = vmul.f32 %v3857_v1, %v7174_v51  ;;  %v2740_v51 = vsub.f32 1.0, %v2306_v20 }
 0x4e0   : > { %v5670_v50 = vpop.f32.mrf.mxu0  ;;  %vm7382_vm5 = vcmp.eq.s32.totalorder %v6642_v16, %v2710_v56 }
 0x4e1   : > { %v4709_v43 = vsel %vm4680_vm3, %v4668_v30, 0.0  ;;  %v4690_v7 = vadd.f32 %v4689_v55, %v4688_v42  ;;  %v2814_v49 = vrot.slane %v2740_v51, %v6651_v25  ;;  %v7336_v55 = vadd.f32 %v3043_v46, %v2851_v61 }
 0x4e2   : > { %v4710_v39 = vrot.slane %v4709_v43, 4  ;;  %v2818_v30 = vrot.slane %v2741_v29, %v6651_v25  ;;  %v3045_v46 = vsel %vm2949_vm6, %v3010_v22, 0.0 }
 0x4e3   : > { %v3711_v47 = vpop.f32.mrf.mxu1  ;;  %v4691_v42 = vrot.slane %v4690_v7, 2  ;;  %v2852_v34 = vsel %vm7328_vm10, %v2814_v49, 0.0 }
 0x4e4   : > { %v4666_v19 = vmul.f32 %v3711_v47, %v7106_v37  ;;  %v4003_v14 = vpop.f32.mrf.mxu0  ;;  %v4711_v9 = vadd.f32 %v4710_v39, %v4709_v43  ;;  %v4685_v47 = vadd.f32 %v4684_v4, %v4683_v15  ;;  %v7357_v15 = vadd.f32 %v3044_v63, %v2852_v34 }
 0x4e5   : > { %v5660_v26 = vpop.f32.mrf.mxu1  ;;  %v4670_v38 = vmul.f32 %v4003_v14, %v7237_v35  ;;  %v4692_v51 = vadd.f32 %v4691_v42, %v4690_v7  ;;  %v2853_v7 = vsel %vm7343_vm12, %v2818_v30, 0.0 }
 0x4e6   : > { %v4695_v1 = vsel %vm4680_vm3, %v4666_v19, 0.0  ;;  %v5680_v31 = vpop.f32.mrf.mxu0  ;;  %v2742_v19 = vsub.f32 1.0, %v7332_v13  ;;  %v4712_v14 = vrot.slane %v4711_v9, 2  ;;  %v3014_v26 = vrot.slane %v7332_v13, %v6651_v25 }
 0x4e7   : > { %v4696_v24 = vrot.slane %v4695_v1, 4  ;;  %v4723_v35 = vsel %vm4680_vm3, %v4670_v38, 0.0  ;;  %v4693_v36 = vrot.slane %v4692_v51, 1  ;;  %v4686_v59 = vrot.slane %v4685_v47, 1 }
 0x4e8   : > { %v4724_v11 = vrot.slane %v4723_v35, 4  ;;  %v7364_v31 = vadd.f32 %v3045_v46, %v2853_v7  ;;  %v7367_v37 = vrot.slane %v2742_v19, %v6651_v25 }
 0x4e9   : > { %v4697_v50 = vadd.f32 %v4696_v24, %v4695_v1  ;;  %v3784_v2 = vpop.f32.mrf.mxu1  ;;  %v4713_v24 = vadd.f32 %v4712_v14, %v4711_v9  ;;  %v4694_v20 = vadd.f32 %v4693_v36, %v4692_v51 }
 0x4ea   : > { %v4667_v43 = vmul.f32 %v3784_v2, %v7172_v3  ;;  %v4725_v49 = vadd.f32 %v4724_v11, %v4723_v35 }
 0x4eb   : > { %v4698_v23 = vrot.slane %v4697_v50, 2  ;;  %v5665_v61 = vpop.f32.mrf.mxu1  ;;  %v4714_v14 = vrot.slane %v4713_v24, 1 }
 0x4ec   : > { %v4702_v39 = vsel %vm4680_vm3, %v4667_v43, 0.0  ;;  %v4726_v43 = vrot.slane %v4725_v49, 2 }
 0x4ed   : > { %v4699_v3 = vadd.f32 %v4698_v23, %v4697_v50  ;;  %v4703_v29 = vrot.slane %v4702_v39, 4  ;;  %v3930_v21 = vpop.f32.mrf.mxu1  ;;  %v4687_v23 = vadd.f32 %v4686_v59, %v4685_v47 }
 0x4ee   : > { %v4669_v38 = vmul.f32 %v3930_v21, %v7184_v18  ;;  %v7371_v18 = vadd.s32 1, %v7351_v28  ;;  %v4727_v36 = vadd.f32 %v4726_v43, %v4725_v49 }
 0x4ef   : > { %v4704_v42 = vadd.f32 %v4703_v29, %v4702_v39  ;;  %v5675_v1 = vpop.f32.mrf.mxu1  ;;  %v4700_v4 = vrot.slane %v4699_v3, 1 }
 0x4f0   : > { %v4716_v30 = vsel %vm4680_vm3, %v4669_v38, 0.0  ;;  %v4149_v22 = vpop.f32.mrf.mxu0  ;;  %v2934_v49 = vrot.slane %v7371_v18, %v6651_v25 }
 0x4f1   : > { %v4705_v35 = vrot.slane %v4704_v42, 2  ;;  %v4717_v50 = vrot.slane %v4716_v30, 4  ;;  %v4076_v2 = vpop.f32.mrf.mxu1  ;;  %v4672_v34 = vmul.f32 %v4149_v22, %v7252_v44  ;;  %v4701_v28 = vadd.f32 %v4700_v4, %v4699_v3 }
 0x4f2   : > { %v4671_v11 = vmul.f32 %v4076_v2, %v7245_v45  ;;  %v5690_v63 = vpop.f32.mrf.mxu0  ;;  %v4810_v45 = vsel %vm4809_vm13, %v4694_v20, %v4687_v23  ;;  %v4715_v22 = vadd.f32 %v4714_v14, %v4713_v24  ;;  %v4728_v24 = vrot.slane %v4727_v36, 1 }
 0x4f3   : > { %v4706_v9 = vadd.f32 %v4705_v35, %v4704_v42  ;;  %v4718_v61 = vadd.f32 %v4717_v50, %v4716_v30  ;;  %v5685_v19 = vpop.f32.mrf.mxu1  ;;  %v4737_v39 = vsel %vm4680_vm3, %v4672_v34, 0.0  ;;  %vm7398_vm7 = vcmp.eq.s32.totalorder %v6642_v16, %v2934_v49 }
 0x4f4   : > { %v4730_v7 = vsel %vm4680_vm3, %v4671_v11, 0.0  ;;  %v4738_v46 = vrot.slane %v4737_v39, 4 }
 0x4f5   : > { %v4707_v29 = vrot.slane %v4706_v9, 1  ;;  %v4719_v44 = vrot.slane %v4718_v61, 2  ;;  %v4731_v21 = vrot.slane %v4730_v7, 4  ;;  %v4222_v51 = vpop.f32.mrf.mxu1 }
 0x4f6   : > { %v4739_v38 = vadd.f32 %v4738_v46, %v4737_v39  ;;  %v4673_v47 = vmul.f32 %v4222_v51, %v7298_v32  ;;  %v4295_v59 = vpop.f32.mrf.mxu0  ;;  %v4812_v32 = vsel %vm4811_vm14, %v4701_v28, %v4810_v45 }
 0x4f7   : > { %v4708_v42 = vadd.f32 %v4707_v29, %v4706_v9  ;;  %v4720_v1 = vadd.f32 %v4719_v44, %v4718_v61  ;;  %v4732_v30 = vadd.f32 %v4731_v21, %v4730_v7  ;;  %v5695_v3 = vpop.f32.mrf.mxu1  ;;  %v4674_v4 = vmul.f32 %v4295_v59, %v7311_v8 }
 0x4f8   : > { %v4744_v35 = vsel %vm4680_vm3, %v4673_v47, 0.0  ;;  %v5700_v50 = vpop.f32.mrf.mxu0  ;;  %v4740_v19 = vrot.slane %v4739_v38, 2 }
 0x4f9   : > { %v4721_v34 = vrot.slane %v4720_v1, 1  ;;  %v4733_v20 = vrot.slane %v4732_v30, 2  ;;  %v4745_v43 = vrot.slane %v4744_v35, 4  ;;  %v4751_v11 = vsel %vm4680_vm3, %v4674_v4, 0.0  ;;  %v4368_v8 = vpop.f32.mrf.mxu1 }
 0x4fa   : > { %v4752_v63 = vrot.slane %v4751_v11, 4  ;;  %v4675_v23 = vmul.f32 %v4368_v8, %v7313_v6  ;;  %v4814_v56 = vsel %vm4813_vm15, %v4708_v42, %v4812_v32  ;;  %v4729_v42 = vadd.f32 %v4728_v24, %v4727_v36 }
 0x4fb   : > { %v4722_v9 = vadd.f32 %v4721_v34, %v4720_v1  ;;  %v4734_v61 = vadd.f32 %v4733_v20, %v4732_v30  ;;  %v4746_v39 = vadd.f32 %v4745_v43, %v4744_v35  ;;  %v5705_v14 = vpop.f32.mrf.mxu1  ;;  %v4441_v18 = vpop.f32.mrf.mxu0  ;;  %v4816_v29 = vsel %vm4815_vm1, %v4715_v22, %v4814_v56 }
 0x4fc   : > { %v4753_v7 = vadd.f32 %v4752_v63, %v4751_v11  ;;  %v4758_v28 = vsel %vm4680_vm3, %v4675_v23, 0.0  ;;  %v4676_v46 = vmul.f32 %v4441_v18, %v7336_v55  ;;  %v4741_v22 = vadd.f32 %v4740_v19, %v4739_v38 }
 0x4fd   : > { %v4747_v44 = vrot.slane %v4746_v39, 2  ;;  %v4759_v21 = vrot.slane %v4758_v28, 4  ;;  %v5710_v51 = vpop.f32.mrf.mxu0  ;;  %v4735_v45 = vrot.slane %v4734_v61, 1  ;;  %v4818_v6 = vsel %vm4817_vm2, %v4722_v9, %v4816_v29 }
 0x4fe   : > { %v4765_v47 = vsel %vm4680_vm3, %v4676_v46, 0.0  ;;  %v4754_v35 = vrot.slane %v4753_v7, 2  ;;  %v4820_v32 = vsel %vm4819_vm4, %v4729_v42, %v4818_v6  ;;  %v2854_v38 = vsel %vm7382_vm5, %v7367_v37, 0.0 }
 0x4ff   : > { %v4748_v1 = vadd.f32 %v4747_v44, %v4746_v39  ;;  %v4760_v30 = vadd.f32 %v4759_v21, %v4758_v28  ;;  %v4766_v55 = vrot.slane %v4765_v47, 4  ;;  %v4514_v3 = vpop.f32.mrf.mxu1  ;;  %v4736_v4 = vadd.f32 %v4735_v45, %v4734_v61 }
 0x500   : > { %v4677_v50 = vmul.f32 %v4514_v3, %v7357_v15  ;;  %v3046_v15 = vsel %vm7398_vm7, %v3014_v26, 0.0  ;;  %v4742_v63 = vrot.slane %v4741_v22, 1  ;;  %v4755_v23 = vadd.f32 %v4754_v35, %v4753_v7 }
 0x501   : > { %v4761_v34 = vrot.slane %v4760_v30, 2  ;;  %v4767_v20 = vadd.f32 %v4766_v55, %v4765_v47  ;;  %v5715_v43 = vpop.f32.mrf.mxu1  ;;  %v4822_v16 = vsel %vm4821_vm8, %v4736_v4, %v4820_v32  ;;  %v4749_v49 = vrot.slane %v4748_v1, 1 }
 0x502   : > { %v4772_v36 = vsel %vm4680_vm3, %v4677_v50, 0.0  ;;  %4832 = vxpose.xlu0.b32.start [1/2] (short) (narrow) %v4822_v16, 64  ;;  %v3062_v18 = vadd.f32 %v3046_v15, %v2854_v38  ;;  %v4743_v29 = vadd.f32 %v4742_v63, %v4741_v22  ;;  %v4756_v13 = vrot.slane %v4755_v23, 1  ;;  %v4873_v43 = vld [vmem:[%s7668_s17 + $0x8] sm:$0xff] }
 0x503   : > { %v4762_v11 = vadd.f32 %v4761_v34, %v4760_v30  ;;  %v4773_v8 = vrot.slane %v4772_v36, 4  ;;  %v4587_v24 = vpop.f32.mrf.mxu0  ;;  %v4768_v56 = vrot.slane %v4767_v20, 2  ;;  %v4750_v39 = vadd.f32 %v4749_v49, %v4748_v1  ;;  %5726 = vmatprep.subr.mxu0 %v4873_v43 }
 0x504   : > { %v4678_v9 = vmul.f32 %v4587_v24, %v7364_v31  ;;  %v4757_v1 = vadd.f32 %v4756_v13, %v4755_v23  ;;  %5727 = vmatpush3.msra.mxu0 %v4873_v43  ;;  %v4872_v24 = vld [vmem:[%s7668_s17] sm:$0xff]  ;;  %v2072_v63 = vsub.f32 0.0, %v7117_v53  ;;  %v2073_v23 = vsub.f32 0.0, %v7095_v40 }
 0x505   : > { %v4774_v61 = vadd.f32 %v4773_v8, %v4772_v36  ;;  %v5720_v19 = vpop.f32.mrf.mxu0  ;;  %v4763_v2 = vrot.slane %v4762_v11, 1  ;;  %v4769_v44 = vadd.f32 %v4768_v56, %v4767_v20  ;;  %v4823_v45 = vsel %vm4809_vm13, %v4750_v39, %v4743_v29  ;;  %5728 = vmatprep.subr.mxu0 %v4872_v24 }
 0x506   : > { %v4779_v14 = vsel %vm4680_vm3, %v4678_v9, 0.0  ;;  %v4660_v28 = vpop.f32.mrf.mxu1  ;;  %v4824_v4 = vsel %vm4811_vm14, %v4757_v1, %v4823_v45  ;;  %5729 = vmatpush3.msra.mxu0 %v4872_v24  ;;  %v2080_v56 = vmul.f32 1.442695, %v2072_v63  ;;  %v2082_v9 = vmul.f32 1.442695, %v2073_v23 }
 0x507   : > { %v4775_v37 = vrot.slane %v4774_v61, 2  ;;  %v4780_v46 = vrot.slane %v4779_v14, 4  ;;  %v4679_v21 = vmul.f32 %v4660_v28, %v3062_v18  ;;  %v4764_v6 = vadd.f32 %v4763_v2, %v4762_v11 }
 0x508   : > { %v5725_v26 = vpop.f32.mrf.mxu1  ;;  %v4770_v30 = vrot.slane %v4769_v44, 1  ;;  %5766 = vpow2.f32 %v2080_v56  ;;  %v2075_v19 = vsub.f32 0.0, %v7139_v54  ;;  %v2076_v18 = vsub.f32 0.0, %v7216_v60 }
 0x509   : > { %v4776_v51 = vadd.f32 %v4775_v37, %v4774_v61  ;;  %v4781_v7 = vadd.f32 %v4780_v46, %v4779_v14  ;;  %v4786_v31 = vsel %vm4680_vm3, %v4679_v21, 0.0  ;;  %v4825_v50 = vsel %vm4813_vm15, %v4764_v6, %v4824_v4 }
 0x50a   : > { %v4787_v42 = vrot.slane %v4786_v31, 4  ;;  %v4771_v32 = vadd.f32 %v4770_v30, %v4769_v44  ;;  %v2074_v61 = vsub.f32 0.0, %v7163_v17  ;;  %5768 = vpow2.f32 %v2082_v9 }
 0x50b   : > { %v4777_v47 = vrot.slane %v4776_v51, 1  ;;  %v4782_v59 = vrot.slane %v4781_v7, 2  ;;  %v2086_v14 = vmul.f32 1.442695, %v2075_v19  ;;  %v2077_v2 = vsub.f32 0.0, %v7182_v12 }
 0x50c   : > { %v4788_v3 = vadd.f32 %v4787_v42, %v4786_v31  ;;  %v4826_v16 = vsel %vm4815_vm1, %v4771_v32, %v4825_v50  ;;  %v2084_v39 = vmul.f32 1.442695, %v2074_v61  ;;  %v2088_v53 = vmul.f32 1.442695, %v2076_v18 }
 0x50d   : > { %v4783_v55 = vadd.f32 %v4782_v59, %v4781_v7  ;;  %v4778_v22 = vadd.f32 %v4777_v47, %v4776_v51  ;;  %v2090_v46 = vmul.f32 1.442695, %v2077_v2  ;;  %v2078_v29 = vsub.f32 0.0, %v7264_v27  ;;  %v1337_v2 = vld [vmem:[%s7663_s12] sm:$0x1] }
 0x50e   : > { %v4789_v35 = vrot.slane %v4788_v3, 2  ;;  %5770 = vpow2.f32 %v2084_v39  ;;  %v2079_v54 = vsub.f32 0.0, %v7235_v33 }
 0x50f   : > { %v4784_v34 = vrot.slane %v4783_v55, 1  ;;  %v4827_v36 = vsel %vm4817_vm2, %v4778_v22, %v4826_v16  ;;  %5772 = vpow2.f32 %v2086_v14  ;;  %v2092_v13 = vmul.f32 1.442695, %v2078_v29 }
 0x510   : > { %v4790_v20 = vadd.f32 %v4789_v35, %v4788_v3  ;;  %5774 = vpow2.f32 %v2088_v53  ;;  %v2094_v60 = vmul.f32 1.442695, %v2079_v54  ;;  %v1413_v53 = vadd.f32 %v6614_v52, %v1337_v2 }
 0x511   : > { %v4785_v11 = vadd.f32 %v4784_v34, %v4783_v55 }
 0x512   : > { %v4791_v49 = vrot.slane %v4790_v20, 1 }
 0x513   : > { %v4828_v38 = vsel %vm4819_vm4, %v4785_v11, %v4827_v36 }
 0x514   : > { %v4792_v8 = vadd.f32 %v4791_v49, %v4790_v20 }
 0x515   : > { %v5767_v28 = vpop.eup %5766 }
 0x516   : > { %v4829_v15 = vsel %vm4821_vm8, %v4792_v8, %v4828_v38  ;;  %v2096_v37 = vadd.f32 1.0, %v5767_v28 }
 0x517   : > { %4833 = vxpose.xlu0.b32.end [2/2] (short) (narrow) %v4829_v15, 64  ;;  %v5769_v40 = vpop.eup %5768 }
 0x518   : > { %v2097_v17 = vadd.f32 1.0, %v5769_v40  ;;  %5776 = vrcp.f32 %v2096_v37  ;;  %v1416_v37 = vsub.f32 0.0, %v1413_v53  ;;  %v5443_v40 = vld [vmem:[%s7669_s18] ss:$0 sm:$0xff] }
 0x519   : > { %5778 = vpow2.f32 %v2090_v46 }
 0x51a   : > { %5780 = vrcp.f32 %v2097_v17  ;;  %v1417_v17 = vmul.f32 1.442695, %v1416_v37 }
 0x51b   : > { %v5771_v44 = vpop.eup %5770  ;;  %5782 = vpow2.f32 %v2092_v13 }
 0x51c   : > { %v2098_v21 = vadd.f32 1.0, %v5771_v44  ;;  %v5773_v26 = vpop.eup %5772  ;;  %5784 = vpow2.f32 %v2094_v60 }
 0x51d   : > { %v2099_v12 = vadd.f32 1.0, %v5773_v26  ;;  %v5775_v51 = vpop.eup %5774 }
 0x51e   : > { %5786 = vrcp.f32 %v2098_v21  ;;  %v2100_v45 = vadd.f32 1.0, %v5775_v51 }
 0x51f   : > { %5788 = vrcp.f32 %v2099_v12 }
 0x520   : > { %5790 = vrcp.f32 %v2100_v45 }
 0x525   : > { %v5777_v7 = vpop.eup %5776 }
 0x526   : > { %v5779_v27 = vpop.eup %5778  ;;  %v2120_v33 = vmul.f32 2.0, %v5777_v7 }
 0x527   : > { %v5781_v31 = vpop.eup %5780  ;;  %v2101_v6 = vadd.f32 1.0, %v5779_v27 }
 0x528   : > { %v5783_v47 = vpop.eup %5782  ;;  %v2121_v55 = vmul.f32 2.0, %v5781_v31 }
 0x529   : > { %v5785_v1 = vpop.eup %5784  ;;  %5792 = vrcp.f32 %v2101_v6  ;;  %v2102_v30 = vadd.f32 1.0, %v5783_v47 }
 0x52a   : > { %v2103_v35 = vadd.f32 1.0, %v5785_v1 }
 0x52b   : > { %v5787_v3 = vpop.eup %5786  ;;  %5794 = vrcp.f32 %v2102_v30 }
 0x52c   : > { %v2122_v50 = vmul.f32 2.0, %v5787_v3  ;;  %v5789_v32 = vpop.eup %5788  ;;  %5796 = vrcp.f32 %v2103_v35 }
 0x52d   : > { %v2123_v43 = vmul.f32 2.0, %v5789_v32  ;;  %v5791_v16 = vpop.eup %5790  ;;  %5798 = vpow2.f32 %v1417_v17 }
 0x52e   : > { %v2124_v11 = vmul.f32 2.0, %v5791_v16 }
 0x536   : > { %v5793_v8 = vpop.eup %5792 }
 0x537   : > { %v2125_v15 = vmul.f32 2.0, %v5793_v8 }
 0x538   : > { %v5795_v63 = vpop.eup %5794 }
 0x539   : > { %v2126_v9 = vmul.f32 2.0, %v5795_v63  ;;  %v5797_v61 = vpop.eup %5796 }
 0x53a   : > { %v2127_v14 = vmul.f32 2.0, %v5797_v61  ;;  %v5799_v35 = vpop.eup %5798 }
 0x58f   : > { %v4848_v59 = vpop.trf.xlu0 }
 0x590   : > { %v4864_v42 = vmul.f32 %v4848_v59, %v2120_v33 }
 0x592   : > { %5730 = vmatprep.mubr.msk.f32.mxu0 %vm640_vm0, %v4864_v42 }
 0x593   : > { %v4849_v4 = vpop.trf.xlu0 }
 0x594   : > { %v4865_v22 = vmul.f32 %v4849_v4, %v2121_v55 }
 0x596   : > { %5731 = vmatmul.mubr.msk.f32.vlgmr.msra.gmra.mxu0 %vm640_vm0, %v4865_v22 }
 0x597   : > { %v4850_v34 = vpop.trf.xlu0 }
 0x598   : > { %v4866_v20 = vmul.f32 %v4850_v34, %v2122_v50 }
 0x59a   : > { %5733 = vmatprep.mubr.msk.f32.mxu0 %vm640_vm0, %v4866_v20 }
 0x59b   : > { %v4851_v49 = vpop.trf.xlu0 }
 0x59c   : > { %v4867_v36 = vmul.f32 %v4851_v49, %v2123_v43  ;;  %v1419_v49 = vadd.f32 1.0, %v5799_v35 }
 0x59e   : > { %5734 = vmatmul.mubr.msk.f32.gmra.mxu0 %vm640_vm0, %v4867_v36 }
 0x59f   : > { %v4852_v24 = vpop.trf.xlu0 }
 0x5a0   : > { %v4868_v38 = vmul.f32 %v4852_v24, %v2124_v11 }
 0x5a2   : > { %5736 = vmatprep.mubr.msk.f32.mxu0 %vm640_vm0, %v4868_v38 }
 0x5a3   : > { %v4853_v23 = vpop.trf.xlu0 }
 0x5a4   : > { %v4869_v56 = vmul.f32 %v4853_v23, %v2125_v15 }
 0x5a6   : > { %5737 = vmatmul.mubr.msk.f32.gmra.mxu0 %vm640_vm0, %v4869_v56 }
 0x5a7   : > { %v4854_v19 = vpop.trf.xlu0 }
 0x5a8   : > { %v4870_v39 = vmul.f32 %v4854_v19, %v2126_v9 }
 0x5aa   : > { %5739 = vmatprep.mubr.msk.f32.mxu0 %vm640_vm0, %v4870_v39 }
 0x5ab   : > { %v4855_v18 = vpop.trf.xlu0 }
 0x5ac   : > { %v4871_v28 = vmul.f32 %v4855_v18, %v2127_v14 }
 0x5ae   : > { %5740 = vmatmul.mubr.msk.f32.gmra.mxu0 %vm640_vm0, %v4871_v28 }
 0x656   : > { %v5732_v46 = vpop.f32.mrf.mxu0 }
 0x657   : > { %v7453_v29 = vadd.f32 %v5732_v46, %v5443_v40 }
 0x658   : > { %v4971_v54 = vpop.f32.mrf.mxu0 }
 0x659   : > { %v7456_v13 = vmul.f32 0.70710677, %v7453_v29  ;;  %v7458_v44 = vadd.f32 %v5443_v40, %v4971_v54 }
 0x65b   : > { %v5043_v60 = vand.u32 2147483647, %v7456_v13  ;;  %v7462_v21 = vmul.f32 0.70710677, %v7458_v44  ;;  %vm5027_vm0 = vcmp.lt.f32.partialorder %v7456_v13, 0.0 }
 0x65d   : > { %v5051_v52 = vmul.f32 0.3275911, %v5043_v60  ;;  %v5042_v26 = vand.u32 2147483647, %v7462_v21  ;;  %v5155_v30 = vsub.f32 0.0, %v5043_v60  ;;  %vm5026_vm9 = vcmp.lt.f32.partialorder %v7462_v21, 0.0 }
 0x65e   : > { %v5735_v12 = vpop.f32.mrf.mxu0 }
 0x65f   : > { %v5059_v51 = vadd.f32 1.0, %v5051_v52  ;;  %v5050_v7 = vmul.f32 0.3275911, %v5042_v26  ;;  %v7465_v45 = vadd.f32 %v5735_v12, %v5443_v40  ;;  %v5163_v20 = vmul.f32 %v5155_v30, %v5043_v60 }
 0x660   : > { %v4981_v27 = vpop.f32.mrf.mxu0  ;;  %v5154_v23 = vsub.f32 0.0, %v5042_v26 }
 0x661   : > { %5800 = vrcp.f32 %v5059_v51  ;;  %v7468_v31 = vmul.f32 0.70710677, %v7465_v45  ;;  %v7470_v6 = vadd.f32 %v5443_v40, %v4981_v27  ;;  %v5058_v33 = vadd.f32 1.0, %v5050_v7 }
 0x662   : > { %v5172_v63 = vmul.f32 1.442695, %v5163_v20  ;;  %v5162_v46 = vmul.f32 %v5154_v23, %v5042_v26  ;;  %v7522_v26 = vmul.f32 0.5, %v7458_v44 }
 0x663   : > { %v5045_v47 = vand.u32 2147483647, %v7468_v31  ;;  %v7474_v59 = vmul.f32 0.70710677, %v7470_v6  ;;  %5802 = vrcp.f32 %v5058_v33  ;;  %vm5029_vm11 = vcmp.lt.f32.partialorder %v7468_v31, 0.0 }
 0x665   : > { %v5053_v42 = vmul.f32 0.3275911, %v5045_v47  ;;  %v5044_v55 = vand.u32 2147483647, %v7474_v59  ;;  %v5157_v9 = vsub.f32 0.0, %v5045_v47  ;;  %vm5028_vm10 = vcmp.lt.f32.partialorder %v7474_v59, 0.0 }
 0x666   : > { %v5738_v1 = vpop.f32.mrf.mxu0 }
 0x667   : > { %v7477_v3 = vadd.f32 %v5738_v1, %v5443_v40  ;;  %v5061_v4 = vadd.f32 1.0, %v5053_v42  ;;  %v5052_v50 = vmul.f32 0.3275911, %v5044_v55  ;;  %v5156_v28 = vsub.f32 0.0, %v5044_v55 }
 0x668   : > { %v4991_v22 = vpop.f32.mrf.mxu0  ;;  %v5165_v60 = vmul.f32 %v5157_v9, %v5045_v47  ;;  %v5170_v42 = vmul.f32 1.442695, %v5162_v46 }
 0x669   : > { %v7480_v32 = vmul.f32 0.70710677, %v7477_v3  ;;  %5804 = vrcp.f32 %v5061_v4  ;;  %v7482_v34 = vadd.f32 %v5443_v40, %v4991_v22  ;;  %v5060_v43 = vadd.f32 1.0, %v5052_v50 }
 0x66a   : > { %v5164_v7 = vmul.f32 %v5156_v28, %v5044_v55  ;;  %v5176_v4 = vmul.f32 1.442695, %v5165_v60 }
 0x66b   : > { %v7485_v16 = vand.u32 2147483647, %v7480_v32  ;;  %v7488_v36 = vmul.f32 0.70710677, %v7482_v34  ;;  %5806 = vrcp.f32 %v5060_v43  ;;  %vm5031_vm6 = vcmp.lt.f32.partialorder %v7480_v32, 0.0 }
 0x66c   : > { %5808 = vrcp.f32 %v1419_v49  ;;  %v5845_v49 = vmov 1.0  }
 0x66d   : > { %v5055_v11 = vmul.f32 0.3275911, %v7485_v16  ;;  %v7494_v24 = vand.u32 2147483647, %v7488_v36  ;;  %v5159_v22 = vsub.f32 0.0, %v7485_v16  ;;  %vm5030_vm12 = vcmp.lt.f32.partialorder %v7488_v36, 0.0 }
 0x66e   : > { %v7491_v8 = vpop.eup %5800  ;;  %v5741_v38 = vpop.f32.mrf.mxu0 }
 0x66f   : > { %v5083_v15 = vmul.f32 1.0614054, %v7491_v8  ;;  %v5063_v56 = vadd.f32 1.0, %v5055_v11  ;;  %v5054_v61 = vmul.f32 0.3275911, %v7494_v24  ;;  %v7498_v19 = vadd.f32 %v5741_v38, %v5443_v40 }
 0x670   : > { %v5001_v39 = vpop.f32.mrf.mxu0  ;;  %v7509_v54 = vpop.eup %5802  ;;  %v5158_v55 = vsub.f32 0.0, %v7494_v24  ;;  %v7538_v11 = vsel %vm5027_vm0, -1.0, %v5845_v49  ;;  %v5167_v9 = vmul.f32 %v5159_v22, %v7485_v16 }
 0x671   : > { %v5091_v14 = vadd.f32 -1.4531521, %v5083_v15  ;;  %5810 = vrcp.f32 %v5063_v56  ;;  %v7500_v18 = vadd.f32 %v5443_v40, %v5001_v39  ;;  %v5062_v2 = vadd.f32 1.0, %v5054_v61 }
 0x672   : > { %v7503_v53 = vmul.f32 0.70710677, %v7498_v19  ;;  %5812 = vpow2.f32 %v5172_v63  ;;  %v7515_v40 = vmul.f32 0.5, %v7453_v29  ;;  %v5082_v1 = vmul.f32 1.0614054, %v7509_v54 }
 0x673   : > { %v5099_v37 = vmul.f32 %v7491_v8, %v5091_v14  ;;  %v7507_v17 = vmul.f32 0.70710677, %v7500_v18  ;;  %5814 = vrcp.f32 %v5062_v2  ;;  %v5174_v15 = vmul.f32 1.442695, %v5164_v7 }
 0x674   : > { %v7512_v52 = vand.u32 2147483647, %v7503_v53  ;;  %v5090_v20 = vadd.f32 -1.4531521, %v5082_v1  ;;  %v5166_v28 = vmul.f32 %v5158_v55, %v7494_v24  ;;  %v7557_v24 = vsel %vm5026_vm9, -1.0, %v5845_v49 }
 0x675   : > { %v5107_v12 = vadd.f32 1.4214138, %v5099_v37  ;;  %v7518_v51 = vand.u32 2147483647, %v7507_v17  ;;  %vm5032_vm13 = vcmp.lt.f32.partialorder %v7507_v17, 0.0  ;;  %vm5033_vm14 = vcmp.lt.f32.partialorder %v7503_v53, 0.0 }
 0x676   : > { %v5057_v27 = vmul.f32 0.3275911, %v7512_v52  ;;  %v7525_v33 = vpop.eup %5804  ;;  %v5098_v61 = vmul.f32 %v7509_v54, %v5090_v20  ;;  %v5161_v46 = vsub.f32 0.0, %v7512_v52 }
 0x677   : > { %v5115_v47 = vmul.f32 %v7491_v8, %v5107_v12  ;;  %v5056_v29 = vmul.f32 0.3275911, %v7518_v51  ;;  %v5085_v30 = vmul.f32 1.0614054, %v7525_v33 }
 0x678   : > { %v5065_v35 = vadd.f32 1.0, %v5057_v27  ;;  %v7533_v43 = vpop.eup %5806  ;;  %v5106_v60 = vadd.f32 1.4214138, %v5098_v61  ;;  %v5160_v27 = vsub.f32 0.0, %v7518_v51 }
 0x679   : > { %v5123_v44 = vadd.f32 -0.28449672, %v5115_v47  ;;  %v5064_v50 = vadd.f32 1.0, %v5056_v29  ;;  %v5093_v38 = vadd.f32 -1.4531521, %v5085_v30  ;;  %v5809_v13 = vpop.eup %5808 }
 0x67a   : > { %5816 = vrcp.f32 %v5065_v35  ;;  %v5084_v23 = vmul.f32 1.0614054, %v7533_v43  ;;  %v5180_v29 = vmul.f32 1.442695, %v5167_v9  ;;  %v5114_v1 = vmul.f32 %v7509_v54, %v5106_v60 }
 0x67b   : > { %v5131_v63 = vmul.f32 %v7491_v8, %v5123_v44  ;;  %5818 = vrcp.f32 %v5064_v50  ;;  %v5101_v56 = vmul.f32 %v7525_v33, %v5093_v38  ;;  %v5178_v35 = vmul.f32 1.442695, %v5166_v28 }
 0x67c   : > { %5820 = vpow2.f32 %v5170_v42  ;;  %v5092_v14 = vadd.f32 -1.4531521, %v5084_v23  ;;  %v5122_v21 = vadd.f32 -0.28449672, %v5114_v1 }
 0x67d   : > { %v5139_v39 = vadd.f32 0.2548296, %v5131_v63  ;;  %5822 = vpow2.f32 %v5176_v4  ;;  %v5109_v37 = vadd.f32 1.4214138, %v5101_v56  ;;  %v5168_v63 = vmul.f32 %v5160_v27, %v7518_v51 }
 0x67e   : > { %v7547_v2 = vpop.eup %5810  ;;  %5824 = vpow2.f32 %v5174_v15  ;;  %v5100_v7 = vmul.f32 %v7533_v43, %v5092_v14  ;;  %v5169_v15 = vmul.f32 %v5161_v46, %v7512_v52  ;;  %v5130_v56 = vmul.f32 %v7509_v54, %v5122_v21 }
 0x67f   : > { %v5147_v12 = vmul.f32 %v7491_v8, %v5139_v39  ;;  %v5087_v16 = vmul.f32 1.0614054, %v7547_v2  ;;  %v5813_v47 = vpop.eup %5812  ;;  %v5117_v42 = vmul.f32 %v7525_v33, %v5109_v37  ;;  %v7564_v8 = vrot.slane %v5809_v13, %v6651_v25 }
 0x680   : > { %v7561_v30 = vpop.eup %5814  ;;  %v5108_v4 = vadd.f32 1.4214138, %v5100_v7  ;;  %5826 = vpow2.f32 %v5180_v29  ;;  %v5138_v52 = vadd.f32 0.2548296, %v5130_v56  ;;  %v5184_v46 = vmul.f32 1.442695, %v5169_v15 }
 0x681   : > { %v5095_v22 = vadd.f32 -1.4531521, %v5087_v16  ;;  %v5187_v44 = vmul.f32 %v5813_v47, %v5147_v12  ;;  %v5125_v55 = vadd.f32 -0.28449672, %v5117_v42  ;;  %v5086_v50 = vmul.f32 1.0614054, %v7561_v30 }
 0x682   : > { %v5116_v20 = vmul.f32 %v7533_v43, %v5108_v4  ;;  %5828 = vpow2.f32 %v5178_v35  ;;  %v5182_v60 = vmul.f32 1.442695, %v5168_v63  ;;  %v5146_v47 = vmul.f32 %v7509_v54, %v5138_v52 }
 0x683   : > { %v5103_v38 = vmul.f32 %v7547_v2, %v5095_v22  ;;  %v5133_v23 = vmul.f32 %v7525_v33, %v5125_v55  ;;  %v5094_v25 = vadd.f32 -1.4531521, %v5086_v50  ;;  %v5195_v13 = vsub.f32 1.0, %v5187_v44 }
 0x684   : > { %v5124_v9 = vadd.f32 -0.28449672, %v5116_v20  ;;  %v1426_v22 = vmul.f32 %v7564_v8, %v6383_v48  ;;  %v5036_v63 = vsel %vm5028_vm10, -1.0, %v5845_v49  ;;  %5830 = vpow2.f32 %v5182_v60 }
 0x685   : > { %v5111_v61 = vadd.f32 1.4214138, %v5103_v38  ;;  %v5141_v39 = vadd.f32 0.2548296, %v5133_v23  ;;  %v5102_v14 = vmul.f32 %v7561_v30, %v5094_v25  ;;  %v5203_v44 = vmul.f32 %v5195_v13, %v7538_v11 }
 0x686   : > { %v5132_v51 = vmul.f32 %v7533_v43, %v5124_v9  ;;  %5832 = vpow2.f32 %v5184_v46  ;;  %v5037_v60 = vsel %vm5029_vm11, -1.0, %v5845_v49 }
 0x687   : > { %v7576_v28 = vpop.eup %5816  ;;  %v5119_v37 = vmul.f32 %v7547_v2, %v5111_v61  ;;  %v5149_v7 = vmul.f32 %v7525_v33, %v5141_v39  ;;  %v5110_v16 = vadd.f32 1.4214138, %v5102_v14  ;;  %v5211_v39 = vadd.f32 1.0, %v5203_v44 }
 0x688   : > { %v7580_v12 = vpop.eup %5818  ;;  %v5089_v27 = vmul.f32 1.0614054, %v7576_v28  ;;  %v5140_v29 = vadd.f32 0.2548296, %v5132_v51 }
 0x689   : > { %v5821_v42 = vpop.eup %5820  ;;  %v5127_v1 = vadd.f32 -0.28449672, %v5119_v37  ;;  %v5088_v4 = vmul.f32 1.0614054, %v7580_v12  ;;  %v5118_v55 = vmul.f32 %v7561_v30, %v5110_v16 }
 0x68a   : > { %v5823_v35 = vpop.eup %5822  ;;  %v5097_v50 = vadd.f32 -1.4531521, %v5089_v27  ;;  %v5186_v33 = vmul.f32 %v5821_v42, %v5146_v47  ;;  %v5148_v38 = vmul.f32 %v7533_v43, %v5140_v29  ;;  %v5012_v47 = vmul.f32 0.5, %v7470_v6 }
 0x68b   : > { %v5825_v21 = vpop.eup %5824  ;;  %v5189_v20 = vmul.f32 %v5823_v35, %v5149_v7  ;;  %v5135_v54 = vmul.f32 %v7547_v2, %v5127_v1  ;;  %v5096_v15 = vadd.f32 -1.4531521, %v5088_v4  ;;  %v5126_v23 = vadd.f32 -0.28449672, %v5118_v55 }
 0x68c   : > { %v5105_v48 = vmul.f32 %v7576_v28, %v5097_v50  ;;  %v5194_v25 = vsub.f32 1.0, %v5186_v33  ;;  %v5188_v11 = vmul.f32 %v5825_v21, %v5148_v38  ;;  %v5219_v4 = vmul.f32 %v5211_v39, %v7515_v40 }
 0x68d   : > { %v5143_v56 = vadd.f32 0.2548296, %v5135_v54  ;;  %v5104_v9 = vmul.f32 %v7580_v12, %v5096_v15  ;;  %v5134_v61 = vmul.f32 %v7561_v30, %v5126_v23  ;;  %v5197_v14 = vsub.f32 1.0, %v5189_v20  ;;  %v5827_v27 = vpop.eup %5826 }
 0x68e   : > { %v5113_v13 = vadd.f32 1.4214138, %v5105_v48  ;;  %v5202_v43 = vmul.f32 %v5194_v25, %v7557_v24  ;;  %v5196_v52 = vsub.f32 1.0, %v5188_v11  ;;  %v1427_v20 = vmul.f32 %v7564_v8, %v6385_v62 }
 0x68f   : > { %v5112_v59 = vadd.f32 1.4214138, %v5104_v9  ;;  %v5151_v51 = vmul.f32 %v7547_v2, %v5143_v56  ;;  %v5142_v37 = vadd.f32 0.2548296, %v5134_v61  ;;  %v5829_v42 = vpop.eup %5828  ;;  %v5205_v35 = vmul.f32 %v5197_v14, %v5037_v60 }
 0x690   : > { %v5121_v7 = vmul.f32 %v7576_v28, %v5113_v13  ;;  %v5210_v16 = vadd.f32 1.0, %v5202_v43  ;;  %v5204_v46 = vmul.f32 %v5196_v52, %v5036_v63  ;;  %v1428_v40 = vmul.f32 %v7564_v8, %v6387_v58 }
 0x691   : > { %v5120_v24 = vmul.f32 %v7580_v12, %v5112_v59  ;;  %v5150_v29 = vmul.f32 %v7561_v30, %v5142_v37  ;;  %v5191_v31 = vmul.f32 %v5827_v27, %v5151_v51  ;;  %v5213_v63 = vadd.f32 1.0, %v5205_v35  ;;  %v5831_v11 = vpop.eup %5830 }
 0x692   : > { %v5129_v2 = vadd.f32 -0.28449672, %v5121_v7  ;;  %v5218_v1 = vmul.f32 %v5210_v16, %v7522_v26  ;;  %v5212_v44 = vadd.f32 1.0, %v5204_v46  ;;  %v5038_v26 = vsel %vm5030_vm12, -1.0, %v5845_v49 }
 0x693   : > { %v5128_v55 = vadd.f32 -0.28449672, %v5120_v24  ;;  %v5190_v50 = vmul.f32 %v5829_v42, %v5150_v29  ;;  %v5199_v23 = vsub.f32 1.0, %v5191_v31  ;;  %v5013_v56 = vmul.f32 0.5, %v7465_v45  ;;  %v5833_v32 = vpop.eup %5832 }
 0x694   : > { %v5137_v6 = vmul.f32 %v7576_v28, %v5129_v2  ;;  %v5226_v33 = vadd.f32 %v5218_v1, %v1426_v22  ;;  %v5220_v38 = vmul.f32 %v5212_v44, %v5012_v47  ;;  %v5227_v22 = vadd.f32 %v5219_v4, %v1427_v20 }
 0x695   : > { %v5136_v21 = vmul.f32 %v7580_v12, %v5128_v55  ;;  %v5198_v30 = vsub.f32 1.0, %v5190_v50  ;;  %v5039_v61 = vsel %vm5031_vm6, -1.0, %v5845_v49  ;;  %v5221_v13 = vmul.f32 %v5213_v63, %v5013_v56 }
 0x696   : > { %v5145_v54 = vadd.f32 0.2548296, %v5137_v6  ;;  %5234 = vxpose.xlu1.b32.start [1/8] (short) (narrow) %v5226_v33, 16  ;;  %v5228_v58 = vadd.f32 %v5220_v38, %v1428_v40  ;;  %v5207_v43 = vmul.f32 %v5199_v23, %v5039_v61  ;;  %v5014_v39 = vmul.f32 0.5, %v7482_v34 }
 0x697   : > { %v5144_v15 = vadd.f32 0.2548296, %v5136_v21  ;;  %v5206_v48 = vmul.f32 %v5198_v30, %v5038_v26  ;;  %v1429_v45 = vmul.f32 %v7564_v8, %v6395_v57  ;;  %v1430_v51 = vmul.f32 %v7564_v8, %v6401_v0 }
 0x698   : > { %v5153_v62 = vmul.f32 %v7576_v28, %v5145_v54  ;;  %v5215_v37 = vadd.f32 1.0, %v5207_v43  ;;  %v5015_v34 = vmul.f32 0.5, %v7477_v3  ;;  %v5041_v60 = vsel %vm5033_vm14, -1.0, %v5845_v49 }
 0x699   : > { %v5152_v25 = vmul.f32 %v7580_v12, %v5144_v15  ;;  %v5214_v9 = vadd.f32 1.0, %v5206_v48  ;;  %v5040_v12 = vsel %vm5032_vm13, -1.0, %v5845_v49  ;;  %v5229_v7 = vadd.f32 %v5221_v13, %v1429_v45 }
 0x69a   : > { %5235 = vxpose.xlu1.b32.cont [2/8] (short) (narrow) %v5227_v22, 16  ;;  %v5193_v14 = vmul.f32 %v5833_v32, %v5153_v62  ;;  %v5223_v47 = vmul.f32 %v5215_v37, %v5015_v34  ;;  %v5016_v57 = vmul.f32 0.5, %v7500_v18  ;;  %v1431_v0 = vmul.f32 %v7564_v8, %v6399_v5 }
 0x69b   : > { %v5192_v36 = vmul.f32 %v5831_v11, %v5152_v25  ;;  %v5222_v52 = vmul.f32 %v5214_v9, %v5014_v39  ;;  %v1432_v3 = vmul.f32 %v7564_v8, %v6409_v41  ;;  %v5017_v29 = vmul.f32 0.5, %v7498_v19 }
 0x69c   : > { %v5201_v17 = vsub.f32 1.0, %v5193_v14  ;;  %v5231_v42 = vadd.f32 %v5223_v47, %v1431_v0  ;;  %v1433_v1 = vmul.f32 %v7564_v8, %v6407_v10 }
 0x69d   : > { %v5200_v28 = vsub.f32 1.0, %v5192_v36  ;;  %v5230_v27 = vadd.f32 %v5222_v52, %v1430_v51 }
 0x69e   : > { %5236 = vxpose.xlu1.b32.cont [3/8] (short) (narrow) %v5228_v58, 16  ;;  %v5209_v46 = vmul.f32 %v5201_v17, %v5041_v60 }
 0x69f   : > { %v5208_v59 = vmul.f32 %v5200_v28, %v5040_v12 }
 0x6a0   : > { %v5217_v53 = vadd.f32 1.0, %v5209_v46 }
 0x6a1   : > { %v5216_v16 = vadd.f32 1.0, %v5208_v59 }
 0x6a2   : > { %5237 = vxpose.xlu1.b32.cont [4/8] (short) (narrow) %v5229_v7, 16  ;;  %v5225_v49 = vmul.f32 %v5217_v53, %v5017_v29 }
 0x6a3   : > { %v5224_v24 = vmul.f32 %v5216_v16, %v5016_v57 }
 0x6a4   : > { %v5233_v18 = vadd.f32 %v5225_v49, %v1433_v1 }
 0x6a5   : > { %v5232_v2 = vadd.f32 %v5224_v24, %v1432_v3 }
 0x6a6   : > { %5238 = vxpose.xlu1.b32.cont [5/8] (short) (narrow) %v5230_v27, 16 }
 0x6aa   : > { %5239 = vxpose.xlu1.b32.cont [6/8] (short) (narrow) %v5231_v42, 16 }
 0x6ae   : > { %5240 = vxpose.xlu1.b32.cont [7/8] (short) (narrow) %v5232_v2, 16 }
 0x6b2   : > { %5241 = vxpose.xlu1.b32.end [8/8] (short) (narrow) %v5233_v18, 16 }
 0x712   : > { %v5250_v5 = vpop.trf.xlu1 }
 0x713   : > { %5266 = vst.msk [vmem:[%s622_s28] sm:$0xff] %vm4680_vm3, %v5250_v5 }
 0x716   : > { %v5251_v41 = vpop.trf.xlu1 }
 0x717   : > { %5267 = vst.msk [vmem:[%s622_s28 + $0x8] sm:$0xff] %vm4680_vm3, %v5251_v41 }
 0x718 PF: > { %s29_s0 = sadd.s32 1, %s5840_s0  }
 0x719   : > { %p26_p4 = scmp.ge.s32.totalorder %s29_s0, 4  }
 0x71b   :  { %28 = sbr.rel (!%p26_p4) target bundleno = 5 (0x5), region = 132 }

</bundles_post_ra>
